<compile_context>
chip_gen: v7x
topology: tpu7x:2x2x1
jax: 0.10.0
libtpu: 0.0.40
codegen_flags: <defaults>
</compile_context>

<pallas_src>
import functools
import math

import jax
import jax.numpy as jnp
from jax.experimental import pallas as pl
from jax.experimental.pallas import tpu as pltpu

_LANE = 128


def _wce_kernel(logits_ref, labels_ref, w_ref, out_ref, *,
                num_classes, rows_total, row_tile, needs_mask):
    """Weighted softmax CE partial sum for one (batch, row-tile) block.

    logits_ref: (C, RT, 128)  model dtype (bf16/f32) -- upcast in-kernel
    labels_ref: (RT, 128)     integer labels (native dtype) -- cast to int32
    w_ref:      (RT, 128)     weight map (native dtype) -- cast to f32
    out_ref:    (1, 1)        f32 partial sum of w * CE over this tile
    """
    labels = labels_ref[...].astype(jnp.int32)            # (RT, 128)
    w = w_ref[...].astype(jnp.float32)                    # (RT, 128)

    # Class axis is a leading (non-vreg) axis: everything below is dense
    # elementwise VPU work over (RT, 128) slabs, no XLU sublane reduces.
    m = logits_ref[0].astype(jnp.float32)
    for c in range(1, num_classes):
        m = jnp.maximum(m, logits_ref[c].astype(jnp.float32))

    s = None
    true_logit = None
    for c in range(num_classes):
        xc = logits_ref[c].astype(jnp.float32)
        e = jnp.exp(xc - m)
        sel = jnp.where(labels == c, xc, 0.0)
        s = e if s is None else s + e
        true_logit = sel if true_logit is None else true_logit + sel

    contrib = w * (m + jnp.log(s) - true_logit)            # (RT, 128)

    if needs_mask:
        i = pl.program_id(1)
        last = pl.num_programs(1) - 1

        @pl.when(i == last)
        def _():
            # select (not multiply) so garbage rows of the padded tail block
            # cannot propagate NaN/Inf into the sum
            row = i * row_tile + jax.lax.broadcasted_iota(
                jnp.int32, contrib.shape, 0)
            out_ref[...] = jnp.sum(
                jnp.where(row < rows_total, contrib, 0.0), keepdims=True)

        @pl.when(i != last)
        def _():
            out_ref[...] = jnp.sum(contrib, keepdims=True)
    else:
        out_ref[...] = jnp.sum(contrib, keepdims=True)


def _weighted_ce_jnp(logits, labels, weight_map):
    """Plain-XLA base loss: mean over pixels of weight_map * softmax_CE."""
    x = logits.astype(jnp.float32)
    lab = labels.astype(jnp.int32)
    if lab.ndim != x.ndim:
        lab = lab[:, None]
    logp = jax.nn.log_softmax(x, axis=1)
    nll = -jnp.take_along_axis(logp, lab, axis=1)          # (B, 1, spatial...)
    w = weight_map.astype(jnp.float32).reshape(nll.shape)
    return jnp.mean(nll * w)


def weighted_ce_loss(logits, labels, weight_map, *,
                     min_pallas_pixels=65536,
                     max_rows_per_tile=512,
                     block_budget_bytes=6 * 1024 * 1024):
    """Base loss: mean over all pixels of (weight_map * softmax_CE(logits, labels))."""
    B, C = logits.shape[0], logits.shape[1]
    n_spatial = int(math.prod(logits.shape[2:]))

    # Coarse deep-supervision heads (or pixel counts not divisible by 128):
    # launch + per-step fixed cost dominates a dedicated pallas_call; plain XLA wins.
    if n_spatial < min_pallas_pixels or (n_spatial % _LANE) != 0:
        return _weighted_ce_jnp(logits, labels, weight_map)

    rows = n_spatial // _LANE

    # Free reshapes: NCHW order preserved, pixel axis viewed as (rows, 128).
    # Dtypes stay native; all upcasts happen inside the kernel.
    x = logits.reshape(B, C, rows, _LANE)
    lab = labels.reshape(B, rows, _LANE)
    wm = weight_map.reshape(B, rows, _LANE)

    # VMEM-budgeted row tile (double-buffered input blocks), multiple of 16 sublanes
    # so f32 and bf16 blocks are both dense.
    bytes_per_row = _LANE * (C * x.dtype.itemsize
                             + lab.dtype.itemsize + wm.dtype.itemsize)
    rt = min(max_rows_per_tile, block_budget_bytes // (2 * bytes_per_row))
    rt = int(max(16, (rt // 16) * 16))

    if rows <= rt:
        row_tile = rows          # full-extent block (any row count allowed)
        needs_mask = False
    else:
        row_tile = rt
        needs_mask = (rows % row_tile) != 0
    num_tiles = pl.cdiv(rows, row_tile)

    kernel = functools.partial(_wce_kernel, num_classes=C, rows_total=rows,
                               row_tile=row_tile, needs_mask=needs_mask)

    out = pl.pallas_call(
        kernel,
        out_shape=jax.ShapeDtypeStruct((B, num_tiles, 1), jnp.float32),
        grid_spec=pltpu.PrefetchScalarGridSpec(
            num_scalar_prefetch=0,
            grid=(B, num_tiles),
            in_specs=[
                pl.BlockSpec((None, C, row_tile, _LANE),
                             lambda b, i: (b, 0, i, 0)),
                pl.BlockSpec((None, row_tile, _LANE), lambda b, i: (b, i, 0)),
                pl.BlockSpec((None, row_tile, _LANE), lambda b, i: (b, i, 0)),
            ],
            out_specs=pl.BlockSpec((None, 1, 1), lambda b, i: (b, i, 0)),
        ),
        compiler_params=pltpu.CompilerParams(
            dimension_semantics=("parallel", "parallel"),
            vmem_limit_bytes=32 * 1024 * 1024),
    )(x, lab, wm)

    # mean over B * 1 * spatial pixels, matching torch's mean of (w * nll)
    return jnp.sum(out) / jnp.float32(B * n_spatial)


def multiple_output_loss2_with_weight_maps(xs, ys, ws, weight_factors=None):
    """Pallas port of MultipleOutputLoss2WithWeightMaps.forward."""
    assert isinstance(xs, (tuple, list)), "x must be either tuple or list"
    assert isinstance(ys, (tuple, list)), "y must be either tuple or list"
    assert isinstance(ws, (tuple, list)), "w must be either tuple or list"
    weights = [1.0] * len(xs) if weight_factors is None else weight_factors

    l = weights[0] * weighted_ce_loss(xs[0], ys[0], ws[0])
    for i in range(1, len(xs)):
        if weights[i] != 0:
            l = l + weights[i] * weighted_ce_loss(xs[i], ys[i], ws[i])
    return l


# ----------------------------- reference (plain JAX) -----------------------------

def _reference_loss(xs, ys, ws, weight_factors):
    total = weight_factors[0] * _weighted_ce_jnp(xs[0], ys[0], ws[0])
    for i in range(1, len(xs)):
        if weight_factors[i] != 0:
            total = total + weight_factors[i] * _weighted_ce_jnp(xs[i], ys[i], ws[i])
    return total


if __name__ == "__main__":
    key = jax.random.PRNGKey(0)
    B, C = 2, 4
    # deep-supervision levels (NCHW like PyTorch); the finest level is large enough
    # to take the Pallas path, coarse levels dispatch to plain jnp.
    levels = [((256, 256), jnp.float32),
              ((128, 128), jnp.bfloat16),
              ((64, 64), jnp.float32)]
    weight_factors = [1.0, 0.5, 0.25]

    xs, ys, ws = [], [], []
    for (H, W), dt in levels:
        key, k1, k2, k3 = jax.random.split(key, 4)
        xs.append(jax.random.normal(k1, (B, C, H, W), dtype=jnp.float32).astype(dt))
        ys.append(jax.random.randint(k2, (B, 1, H, W), 0, C, dtype=jnp.int32))
        ws.append(jax.random.uniform(k3, (B, 1, H, W), dtype=jnp.float32,
                                     minval=0.5, maxval=2.0))

    out = jax.block_until_ready(
        multiple_output_loss2_with_weight_maps(xs, ys, ws, weight_factors))
    ref = jax.block_until_ready(_reference_loss(xs, ys, ws, weight_factors))
    assert jnp.allclose(out, ref, rtol=1e-4, atol=1e-5), (out, ref)

    # Force the Pallas path with multiple row tiles + masked tail (72 rows, 16/tile).
    key, k1, k2, k3 = jax.random.split(key, 4)
    H, W = 72, 128
    xt = jax.random.normal(k1, (B, C, H, W), dtype=jnp.float32)
    yt = jax.random.randint(k2, (B, 1, H, W), 0, C, dtype=jnp.int32)
    wt = jax.random.uniform(k3, (B, 1, H, W), dtype=jnp.float32,
                            minval=0.5, maxval=2.0)
    ker_tail = jax.block_until_ready(
        weighted_ce_loss(xt, yt, wt, min_pallas_pixels=0, max_rows_per_tile=16))
    ref_tail = jax.block_until_ready(_weighted_ce_jnp(xt, yt, wt))
    assert jnp.allclose(ker_tail, ref_tail, rtol=1e-4, atol=1e-5), (ker_tail, ref_tail)

    # Force the Pallas path with native bf16 logits + bf16 weight map (in-kernel upcast).
    key, k1, k2, k3 = jax.random.split(key, 4)
    H, W = 64, 64
    xb = jax.random.normal(k1, (B, C, H, W), dtype=jnp.float32).astype(jnp.bfloat16)
    yb = jax.random.randint(k2, (B, 1, H, W), 0, C, dtype=jnp.int32)
    wb = jax.random.uniform(k3, (B, 1, H, W), dtype=jnp.float32,
                            minval=0.5, maxval=2.0).astype(jnp.bfloat16)
    ker_bf16 = jax.block_until_ready(
        weighted_ce_loss(xb, yb, wb, min_pallas_pixels=0))
    ref_bf16 = jax.block_until_ready(_weighted_ce_jnp(xb, yb, wb))
    assert jnp.allclose(ker_bf16, ref_bf16, rtol=2e-3, atol=1e-4), (ker_bf16, ref_bf16)

    print("KERNEL_OK")
</pallas_src>

<mosaic_0001>
module attributes {stable_mosaic.version = 11 : i64} {
  func.func @_wce_kernel(%arg0: i32, %arg1: i32, %arg2: memref<1x4x512x128xf32, #tpu.memory_space<vmem>>, %arg3: memref<1x512x128xi32, #tpu.memory_space<vmem>>, %arg4: memref<1x512x128xf32, #tpu.memory_space<vmem>>, %arg5: memref<1x1x1xf32, #tpu.memory_space<vmem>>) attributes {dimension_semantics = [#tpu.dimension_semantics<parallel>, #tpu.dimension_semantics<parallel>], iteration_bounds = array<i64: 2, 1>, scalar_prefetch = 0 : i64, scratch_operands = 0 : i64, tpu.core_type = #tpu.core_type<tc>, window_params = [{transform_indices = @transform_0, window_bounds = array<i64: 1, 4, 512, 128>}, {transform_indices = @transform_1, window_bounds = array<i64: 1, 512, 128>}, {transform_indices = @transform_2, window_bounds = array<i64: 1, 512, 128>}, {transform_indices = @transform_3, window_bounds = array<i64: 1, 1, 1>}]} {
    %c0 = arith.constant 0 : index
    %c0_0 = arith.constant 0 : index
    %c0_1 = arith.constant 0 : index
    %0 = vector.load %arg3[%c0, %c0_0, %c0_1] : memref<1x512x128xi32, #tpu.memory_space<vmem>>, vector<1x512x128xi32>
    %1 = vector.shape_cast %0 : vector<1x512x128xi32> to vector<512x128xi32>
    %c0_2 = arith.constant 0 : index
    %c0_3 = arith.constant 0 : index
    %c0_4 = arith.constant 0 : index
    %2 = vector.load %arg4[%c0_2, %c0_3, %c0_4] : memref<1x512x128xf32, #tpu.memory_space<vmem>>, vector<1x512x128xf32>
    %3 = vector.shape_cast %2 : vector<1x512x128xf32> to vector<512x128xf32>
    %c0_5 = arith.constant 0 : index
    %c0_6 = arith.constant 0 : index
    %c0_7 = arith.constant 0 : index
    %c0_8 = arith.constant 0 : index
    %4 = vector.load %arg2[%c0_5, %c0_6, %c0_7, %c0_8] : memref<1x4x512x128xf32, #tpu.memory_space<vmem>>, vector<1x1x512x128xf32>
    %5 = vector.shape_cast %4 : vector<1x1x512x128xf32> to vector<512x128xf32>
    %c0_9 = arith.constant 0 : index
    %c1 = arith.constant 1 : index
    %c0_10 = arith.constant 0 : index
    %c0_11 = arith.constant 0 : index
    %6 = vector.load %arg2[%c0_9, %c1, %c0_10, %c0_11] : memref<1x4x512x128xf32, #tpu.memory_space<vmem>>, vector<1x1x512x128xf32>
    %7 = vector.shape_cast %6 : vector<1x1x512x128xf32> to vector<512x128xf32>
    %8 = arith.maximumf %5, %7 : vector<512x128xf32>
    %c0_12 = arith.constant 0 : index
    %c2 = arith.constant 2 : index
    %c0_13 = arith.constant 0 : index
    %c0_14 = arith.constant 0 : index
    %9 = vector.load %arg2[%c0_12, %c2, %c0_13, %c0_14] : memref<1x4x512x128xf32, #tpu.memory_space<vmem>>, vector<1x1x512x128xf32>
    %10 = vector.shape_cast %9 : vector<1x1x512x128xf32> to vector<512x128xf32>
    %11 = arith.maximumf %8, %10 : vector<512x128xf32>
    %c0_15 = arith.constant 0 : index
    %c3 = arith.constant 3 : index
    %c0_16 = arith.constant 0 : index
    %c0_17 = arith.constant 0 : index
    %12 = vector.load %arg2[%c0_15, %c3, %c0_16, %c0_17] : memref<1x4x512x128xf32, #tpu.memory_space<vmem>>, vector<1x1x512x128xf32>
    %13 = vector.shape_cast %12 : vector<1x1x512x128xf32> to vector<512x128xf32>
    %14 = arith.maximumf %11, %13 : vector<512x128xf32>
    %c0_18 = arith.constant 0 : index
    %c0_19 = arith.constant 0 : index
    %c0_20 = arith.constant 0 : index
    %c0_21 = arith.constant 0 : index
    %15 = vector.load %arg2[%c0_18, %c0_19, %c0_20, %c0_21] : memref<1x4x512x128xf32, #tpu.memory_space<vmem>>, vector<1x1x512x128xf32>
    %16 = vector.shape_cast %15 : vector<1x1x512x128xf32> to vector<512x128xf32>
    %17 = arith.subf %16, %14 : vector<512x128xf32>
    %18 = math.exp %17 : vector<512x128xf32>
    %c0_i32 = arith.constant 0 : i32
    %19 = vector.broadcast %c0_i32 : i32 to vector<512x128xi32>
    %20 = arith.cmpi eq, %1, %19 : vector<512x128xi32>
    %cst = arith.constant 0.000000e+00 : f32
    %21 = vector.broadcast %cst : f32 to vector<512x128xf32>
    %22 = arith.select %20, %16, %21 : vector<512x128xi1>, vector<512x128xf32>
    %c0_22 = arith.constant 0 : index
    %c1_23 = arith.constant 1 : index
    %c0_24 = arith.constant 0 : index
    %c0_25 = arith.constant 0 : index
    %23 = vector.load %arg2[%c0_22, %c1_23, %c0_24, %c0_25] : memref<1x4x512x128xf32, #tpu.memory_space<vmem>>, vector<1x1x512x128xf32>
    %24 = vector.shape_cast %23 : vector<1x1x512x128xf32> to vector<512x128xf32>
    %25 = arith.subf %24, %14 : vector<512x128xf32>
    %26 = math.exp %25 : vector<512x128xf32>
    %c1_i32 = arith.constant 1 : i32
    %27 = vector.broadcast %c1_i32 : i32 to vector<512x128xi32>
    %28 = arith.cmpi eq, %1, %27 : vector<512x128xi32>
    %cst_26 = arith.constant 0.000000e+00 : f32
    %29 = vector.broadcast %cst_26 : f32 to vector<512x128xf32>
    %30 = arith.select %28, %24, %29 : vector<512x128xi1>, vector<512x128xf32>
    %31 = arith.addf %18, %26 : vector<512x128xf32>
    %32 = arith.addf %22, %30 : vector<512x128xf32>
    %c0_27 = arith.constant 0 : index
    %c2_28 = arith.constant 2 : index
    %c0_29 = arith.constant 0 : index
    %c0_30 = arith.constant 0 : index
    %33 = vector.load %arg2[%c0_27, %c2_28, %c0_29, %c0_30] : memref<1x4x512x128xf32, #tpu.memory_space<vmem>>, vector<1x1x512x128xf32>
    %34 = vector.shape_cast %33 : vector<1x1x512x128xf32> to vector<512x128xf32>
    %35 = arith.subf %34, %14 : vector<512x128xf32>
    %36 = math.exp %35 : vector<512x128xf32>
    %c2_i32 = arith.constant 2 : i32
    %37 = vector.broadcast %c2_i32 : i32 to vector<512x128xi32>
    %38 = arith.cmpi eq, %1, %37 : vector<512x128xi32>
    %cst_31 = arith.constant 0.000000e+00 : f32
    %39 = vector.broadcast %cst_31 : f32 to vector<512x128xf32>
    %40 = arith.select %38, %34, %39 : vector<512x128xi1>, vector<512x128xf32>
    %41 = arith.addf %31, %36 : vector<512x128xf32>
    %42 = arith.addf %32, %40 : vector<512x128xf32>
    %c0_32 = arith.constant 0 : index
    %c3_33 = arith.constant 3 : index
    %c0_34 = arith.constant 0 : index
    %c0_35 = arith.constant 0 : index
    %43 = vector.load %arg2[%c0_32, %c3_33, %c0_34, %c0_35] : memref<1x4x512x128xf32, #tpu.memory_space<vmem>>, vector<1x1x512x128xf32>
    %44 = vector.shape_cast %43 : vector<1x1x512x128xf32> to vector<512x128xf32>
    %45 = arith.subf %44, %14 : vector<512x128xf32>
    %46 = math.exp %45 : vector<512x128xf32>
    %c3_i32 = arith.constant 3 : i32
    %47 = vector.broadcast %c3_i32 : i32 to vector<512x128xi32>
    %48 = arith.cmpi eq, %1, %47 : vector<512x128xi32>
    %cst_36 = arith.constant 0.000000e+00 : f32
    %49 = vector.broadcast %cst_36 : f32 to vector<512x128xf32>
    %50 = arith.select %48, %44, %49 : vector<512x128xi1>, vector<512x128xf32>
    %51 = arith.addf %41, %46 : vector<512x128xf32>
    %52 = arith.addf %42, %50 : vector<512x128xf32>
    %53 = math.log %51 : vector<512x128xf32>
    %54 = arith.addf %14, %53 : vector<512x128xf32>
    %55 = arith.subf %54, %52 : vector<512x128xf32>
    %56 = arith.mulf %3, %55 : vector<512x128xf32>
    %57 = vector.shape_cast %56 : vector<512x128xf32> to vector<1x512x128xf32>
    %cst_37 = arith.constant dense<0.000000e+00> : vector<1xf32>
    %58 = vector.multi_reduction <add>, %57, %cst_37 [1, 2] : vector<1x512x128xf32> to vector<1xf32>
    %59 = vector.shape_cast %58 : vector<1xf32> to vector<1x1x1xf32>
    %60 = vector.extract %59[0, 0, 0] : f32 from vector<1x1x1xf32>
    %61 = vector.broadcast %60 : f32 to vector<1x1xf32>
    %c0_38 = arith.constant 0 : index
    %c0_39 = arith.constant 0 : index
    %c0_40 = arith.constant 0 : index
    %62 = vector.load %arg5[%c0_38, %c0_39, %c0_40] : memref<1x1x1xf32, #tpu.memory_space<vmem>>, vector<1x1x1xf32>
    %63 = vector.shape_cast %62 : vector<1x1x1xf32> to vector<1x1xf32>
    %64 = vector.shape_cast %61 : vector<1x1xf32> to vector<1x1x1xf32>
    tpu.vector_store %arg5[%c0_38, %c0_39, %c0_40], %64 {strides = array<i32>} : memref<1x1x1xf32, #tpu.memory_space<vmem>>, vector<1x1x1xf32>,
    return
  }
  func.func @transform_0(%arg0: i32, %arg1: i32) -> (i32, i32, i32, i32) {
    %c0_i32 = arith.constant 0 : i32
    %c0_i32_0 = arith.constant 0 : i32
    %c0_i32_1 = arith.constant 0 : i32
    return %arg0, %c0_i32, %arg1, %c0_i32_0 : i32, i32, i32, i32
  }
  func.func @transform_1(%arg0: i32, %arg1: i32) -> (i32, i32, i32) {
    %c0_i32 = arith.constant 0 : i32
    %c0_i32_0 = arith.constant 0 : i32
    return %arg0, %arg1, %c0_i32 : i32, i32, i32
  }
  func.func @transform_2(%arg0: i32, %arg1: i32) -> (i32, i32, i32) {
    %c0_i32 = arith.constant 0 : i32
    %c0_i32_0 = arith.constant 0 : i32
    return %arg0, %arg1, %c0_i32 : i32, i32, i32
  }
  func.func @transform_3(%arg0: i32, %arg1: i32) -> (i32, i32, i32) {
    %c0_i32 = arith.constant 0 : i32
    %c0_i32_0 = arith.constant 0 : i32
    return %arg0, %arg1, %c0_i32 : i32, i32, i32
  }
}

</mosaic_0001>

<bundles_post_ra>
// kernel: tpu_custom_call.1
= control target key start
LH: loop header
LB: loop body
LE: loop exit
PB: predicated region body
PF: predicated region fallthrough
CT: control target
= control target key end

     0   :  { %8 = vsyncpa [#allocation3], 0  ;;  %s11952_s0 = inlined_call_operand.hbm [shape: f32[2,4,512,128], index: 0, kind: input, shape index: {}]   ;;  %s11953_s1 = inlined_call_operand.hbm [shape: s32[2,512,128], index: 1, kind: input, shape index: {}]   ;;  %s11954_s2 = inlined_call_operand.hbm [shape: f32[2,512,128], index: 2, kind: input, shape index: {}]   ;;  %s11955_s3 = inlined_call_operand.vmem [shape: f32[2,1,1], index: 3, kind: output, shape index: {}]  }
   0x1   :  { %10 = vsyncpa [#allocation3 + $0x1], 0 }
   0x2   :  { %11 = vsyncpa [#allocation5], 0 }
   0x3   :  { %13 = vsyncpa [#allocation5 + $0x1], 0  ;;  %s4555_s12 = smov 0   ;;  %s4557_s13 = smov 0  }
   0x4   :  { %s4559_s14 = smov 0   ;;  %s4561_s15 = smov 0  }
   0x5   :  { %s4563_s16 = smov 0   ;;  %s4565_s17 = smov 0  }
   0x6 LB: > { %s11957_s18 = sadd.s32 4294967295, %s4528_s17   ;;  %s31_s19 = sadd.s32 1, %s4524_s16  ;;  %s4528_s17 = sphi %s4565_s17, %s19_s17   ;;  %s4524_s16 = sphi %s4563_s16, %s15651_s16   ;;  %s4520_s15 = sphi %s4561_s15, %s15650_s15   ;;  %s4516_s14 = sphi %s4559_s14, %s15649_s14   ;;  %s4512_s13 = sphi %s4557_s13, %s15648_s13   ;;  %s4508_s12 = sphi %s4555_s12, %s15647_s12  }
   0x7   : > { %p33_p0 = scmp.ge.s32.totalorder %s31_s19, 2  ;;  %s40_s20 = sadd.s32 1, %s4516_s14 }
   0x8   : > { %p47_p1 = scmp.ne.s32.totalorder %s4516_s14, %s4512_s13  ;;  %p48_p2 = scmp.eq.s32.totalorder %s4528_s17, 0 }
   0x9   : > { %s15653_s19 = smov (%p33_p0, %s31_s19), 0  ;;  %p53_p4 = scmp.ne.s32.totalorder %s4512_s13, %s4508_s12 }
   0xa   : > { %p49_p3 = por %p48_p2, %p47_p1  ;;  %s35_s21 = ssub.s32 %s4524_s16, %s15653_s19 }
   0xb   : > { %p54_p5 = scmp.eq.s32.totalorder %s11957_s18, 0  ;;  %p38_p6 = scmp.eq.s32.totalorder %s35_s21, 0 }
   0xc   : > { %p3298_p8 = scmp.lt.s32.totalorder %s4528_s17, 2  ;;  %s4605_s24 = sand.u32 1, %s4516_s14  }
   0xd   : > { %p4596_p7 = por %p54_p5, %p53_p4  ;;  %s184_s26 = sand.u32 1, %s4528_s17  }
   0xe   : > { %s4602_s23 = scalar_select %p38_p6, %s4516_s14, %s40_s20  }
   0xf   : > { %s12627_s22 = scalar_select %p4596_p7, 1, 0 }
  0x10   : > { %p4607_p9 = pnand %p3298_p8, %p49_p3  ;;  %s3073_s27 = sshll.u32 %s4605_s24, 9 }
  0x11   : > { %s3278_s28 = sshll.u32 %s4524_s16, 13  ;;  %s188_s5 = scalar_lea.vmem [#allocation4], %s3073_s27 }
  0x12   : > { %s4619_s4 = scalar_lea.hbm %s11953_s1, %s3278_s28  ;;  %s197_s6 = sshll.u32 %s188_s5, 4  ;;  %s4623_s6 = int_to_ptr.vmem [resolvable:$true] %s197_s6 }
  0x13   : > { %s4625_s7 = scalar_lea.sflag [#allocation5], %s184_s26  ;;  %s4384_s8 = scalar_lea.hbm %s4619_s4, 8192 }
  0x14   : > { %p4385_p10 = scmp.ne.s32.totalorder %s4619_s4, %s4384_s8  ;;  %p4631_p11 = pneg %p4607_p9 }
  0x15   : > { %s4389_s12 = scalar_lea.hbm %s11953_s1, 16384  ;;  %p4390_p0 = scmp.lt.u32.totalorder %s4619_s4, %s11953_s1 }
  0x16   : > { %p4387_p12 = pnand %p4631_p11, %p4385_p10  ;;  %p4391_p1 = scmp.lt.u32.totalorder %s4389_s12, %s4384_s8 }
  0x17   : > { %p4393_p3 = scmp.lt.u32.totalorder %s4384_s8, %s4619_s4 }
  0x18   : > { %p4388_p13 = pneg %p4387_p12  ;;  %p4392_p2 = por %p4391_p1, %p4390_p0 }
  0x1a   : > { %p4394_p4 = por %p4393_p3, %p4392_p2 }
  0x1c   : > { %p4395_p5 = pnand %p4394_p4, %p4388_p13 }
  0x1e   : > { %4398 = shalt.err (!%p4395_p5)
}
  0x1f   : > { %s4399_s26 = scalar_lea.vmem %s4623_s6, 8192  ;;  %s4530_s29 = smov [#allocation4]  }
  0x20   : > { %p4400_p6 = scmp.ne.s32.totalorder %s4623_s6, %s4399_s26  ;;  %s4404_s30 = sshll.u32 %s4530_s29, 4  ;;  %s4405_s30 = int_to_ptr.vmem [resolvable:$false] %s4404_s30 }
  0x21   : > { %s4406_s5 = scalar_lea.vmem %s4405_s30, 16384  ;;  %p4407_p12 = scmp.lt.s32.totalorder %s4623_s6, %s4405_s30 }
  0x22   : > { %p4402_p8 = pnand %p4400_p6, %p4631_p11  ;;  %p4408_p7 = scmp.lt.s32.totalorder %s4406_s5, %s4399_s26 }
  0x24   : > { %p4403_p10 = pneg %p4402_p8  ;;  %p4409_p0 = por %p4408_p7, %p4407_p12 }
  0x26   : > { %p4410_p1 = pnand %p4409_p0, %p4403_p10 }
  0x28   : > { %4413 = shalt.err (!%p4410_p1)
}
  0x29   : > { %s11958_s8 = smov 128   ;;  %s4532_s10 = smov 8  }
  0x2a   : > { %3294 = dma.hbm_to_vmem [thread:$0]  (!%p4607_p9), %s4619_s4, 8192, %s4623_s6, %s4625_s7, %s11958_s8, %s11958_s8, %s4532_s10  }
  0x2b   : > { %s4663_s20 = scalar_lea.hbm %s11954_s2, %s3278_s28  ;;  %s211_s21 = scalar_lea.vmem [#allocation6], %s3073_s27 }
  0x2c   : > { %s220_s26 = sshll.u32 %s211_s21, 4  ;;  %p3079_p7 = scmp.ge.s32.totalorder %s4528_s17, 1  ;;  %s4667_s26 = int_to_ptr.vmem [resolvable:$true] %s220_s26 }
  0x2d   : > { %p228_p13 = scmp.lt.s32.totalorder %s4528_s17, 3  ;;  %s3070_s30 = sshll.u32 %s4605_s24, 11 }
  0x2e   : > { %s3277_s4 = sshll.u32 %s4524_s16, 15  ;;  %s165_s27 = scalar_lea.vmem [#allocation2], %s3070_s30 }
  0x2f   : > { %p4671_p2 = pnand %p3079_p7, %p228_p13  ;;  %s4680_s11 = scalar_lea.hbm %s11952_s0, %s3277_s4 }
  0x30   : > { %s174_s28 = sshll.u32 %s165_s27, 4  ;;  %s162_s12 = scalar_lea.sflag [#allocation3], %s4605_s24  ;;  %s4682_s28 = int_to_ptr.vmem [resolvable:$true] %s174_s28 }
  0x31   : > { %s12630_s29 = scalar_select %p4671_p2, 1, 0 }
  0x32   : > { %s4414_s21 = scalar_lea.hbm %s4680_s11, 32768  ;;  %s4419_s6 = scalar_lea.hbm %s11952_s0, 65536 }
  0x33   : > { %p4415_p3 = scmp.ne.s32.totalorder %s4680_s11, %s4414_s21  ;;  %p4420_p6 = scmp.lt.u32.totalorder %s4680_s11, %s11952_s0 }
  0x34   : > { %p4421_p8 = scmp.lt.u32.totalorder %s4419_s6, %s4414_s21  ;;  %p4423_p12 = scmp.lt.u32.totalorder %s4414_s21, %s4680_s11 }
  0x35   : > { %p4417_p4 = pnand %p4415_p3, %p4631_p11 }
  0x36   : > { %p4422_p10 = por %p4421_p8, %p4420_p6 }
  0x37   : > { %p4418_p5 = pneg %p4417_p4 }
  0x38   : > { %p4424_p0 = por %p4423_p12, %p4422_p10 }
  0x3a   : > { %p4425_p1 = pnand %p4424_p0, %p4418_p5 }
  0x3c   : > { %4428 = shalt.err (!%p4425_p1)
}
  0x3d   : > { %s4429_s30 = scalar_lea.vmem %s4682_s28, 32768  ;;  %s4533_s18 = smov [#allocation2]  }
  0x3e   : > { %p4430_p7 = scmp.ne.s32.totalorder %s4682_s28, %s4429_s30  ;;  %s4434_s8 = sshll.u32 %s4533_s18, 4  ;;  %s4435_s8 = int_to_ptr.vmem [resolvable:$false] %s4434_s8 }
  0x3f   : > { %s4436_s27 = scalar_lea.vmem %s4435_s8, 65536  ;;  %p4437_p4 = scmp.lt.s32.totalorder %s4682_s28, %s4435_s8 }
  0x40   : > { %p4432_p13 = pnand %p4430_p7, %p4631_p11  ;;  %p4438_p2 = scmp.lt.s32.totalorder %s4436_s27, %s4429_s30 }
  0x42   : > { %p4433_p3 = pneg %p4432_p13  ;;  %p4439_p6 = por %p4438_p2, %p4437_p4 }
  0x44   : > { %p4440_p8 = pnand %p4439_p6, %p4433_p3 }
  0x46   : > { %4443 = shalt.err (!%p4440_p8)
}
  0x47   : > { %s12631_s21 = smov 128   ;;  %s4444_s6 = scalar_lea.hbm %s4663_s20, 8192 }
  0x48   : > { %3291 = dma.hbm_to_vmem [thread:$0]  (!%p4607_p9), %s4680_s11, 32768, %s4682_s28, %s162_s12, %s12631_s21, %s12631_s21, %s4532_s10  }
  0x49   : > { %p4445_p5 = scmp.ne.s32.totalorder %s4663_s20, %s4444_s6  ;;  %s4449_s30 = scalar_lea.hbm %s11954_s2, 16384 }
  0x4a   : > { %p4450_p12 = scmp.lt.u32.totalorder %s4663_s20, %s11954_s2  ;;  %p4451_p0 = scmp.lt.u32.totalorder %s4449_s30, %s4444_s6 }
  0x4b   : > { %p4447_p2 = pnand %p4445_p5, %p4631_p11  ;;  %p4453_p7 = scmp.lt.u32.totalorder %s4444_s6, %s4663_s20 }
  0x4c   : > { %p4452_p1 = por %p4451_p0, %p4450_p12 }
  0x4d   : > { %p4448_p10 = pneg %p4447_p2 }
  0x4e   : > { %p4454_p13 = por %p4453_p7, %p4452_p1 }
  0x50   : > { %p4455_p3 = pnand %p4454_p13, %p4448_p10 }
  0x52   : > { %4458 = shalt.err (!%p4455_p3)
}
  0x53   : > { %s4459_s24 = scalar_lea.vmem %s4667_s26, 8192  ;;  %s4534_s11 = smov [#allocation6]  }
  0x54   : > { %p4460_p4 = scmp.ne.s32.totalorder %s4667_s26, %s4459_s24  ;;  %s4464_s28 = sshll.u32 %s4534_s11, 4  ;;  %s4465_s28 = int_to_ptr.vmem [resolvable:$false] %s4464_s28 }
  0x55   : > { %s4466_s12 = scalar_lea.vmem %s4465_s28, 16384  ;;  %p4467_p5 = scmp.lt.s32.totalorder %s4667_s26, %s4465_s28 }
  0x56   : > { %p4462_p6 = pnand %p4460_p4, %p4631_p11  ;;  %p4468_p2 = scmp.lt.s32.totalorder %s4466_s12, %s4459_s24 }
  0x58   : > { %p4463_p8 = pneg %p4462_p6  ;;  %p4469_p12 = por %p4468_p2, %p4467_p5 }
  0x5a   : > { %p4470_p0 = pnand %p4469_p12, %p4463_p8 }
  0x5c   : > { %4473 = shalt.err (!%p4470_p0)
}
  0x5d   : > { %3297 = dma.hbm_to_vmem [thread:$0]  (!%p4607_p9), %s4663_s20, 8192, %s4667_s26, %s4625_s7, %s12631_s21, %s12631_s21, %s4532_s10  }
  0x5e   : > { %p12632_p11 = scmp.ne.s32.totalorder %s12630_s29, 0 }
  0x60   : > { %232 = sbr.rel (%p12632_p11) target bundleno = 1278 (0x4fe), region = 32 }
  0x67   : > { %s4739_s9 = sand.u32 1, %s4512_s13   ;;  %p12633_p10 = scmp.ne.s32.totalorder %s12627_s22, 0 }
  0x68   : > { %s3080_s27 = sshll.u32 %s4739_s9, 11  ;;  %s235_s6 = scalar_lea.sflag [#allocation3], %s4739_s9 }
  0x69   : > { %s4743_s4 = scalar_lea.vmem [#allocation2], %s3080_s27 }
  0x6a   : > { %4499 = dma.done.wait (%p12633_p10), %s235_s6, 32768  }
  0x6b   : > { %4501 = vsyncadd (%p12633_p10), %s235_s6, 4294934528  ;;  %s12634_s25 = sadd.s32 4294967295, %s4528_s17   ;;  %s3081_s10 = sshll.u32 %s4739_s9, 9 }
  0x6c   : > { %s243_s7 = sand.u32 1, %s12634_s25   ;;  %s4754_s26 = scalar_lea.vmem [#allocation4], %s3081_s10 }
  0x6d   : > { %s244_s20 = scalar_lea.sflag [#allocation5], %s243_s7 }
  0x6e   : > { %4503 = dma.done.wait (%p12633_p10), %s244_s20, 16384  }
  0x6f   : > { %4505 = vsyncadd (%p12633_p10), %s244_s20, 4294950912  ;;  %v299_v0 = vld [vmem:[%s4754_s26] sm:$0xff]  ;;  %v300_v1 = vld [vmem:[%s4754_s26 + $0x8] sm:$0xff]  ;;  %s11530_s22 = scalar_lea.vmem [#allocation6], %s3081_s10  ;;  %p293_p9 = scmp.lt.s32.totalorder %s4520_s15, 1 }
  0x70   : > { %v301_v2 = vld [vmem:[%s4754_s26 + $0x10] sm:$0xff]  ;;  %v302_v3 = vld [vmem:[%s4754_s26 + $0x18] sm:$0xff]  ;;  %v303_v4 = vld [vmem:[%s4754_s26 + $0x20] sm:$0xff]  ;;  %vm1070_vm0 = vcmp.eq.s32.totalorder %v299_v0, 0  ;;  %vm1071_vm1 = vcmp.eq.s32.totalorder %v300_v1, 0 }
  0x71   : > { %v304_v5 = vld [vmem:[%s4754_s26 + $0x28] sm:$0xff]  ;;  %v305_v6 = vld [vmem:[%s4754_s26 + $0x30] sm:$0xff]  ;;  %v306_v7 = vld [vmem:[%s4754_s26 + $0x38] sm:$0xff]  ;;  %vm1072_vm2 = vcmp.eq.s32.totalorder %v301_v2, 0  ;;  %vm1073_vm3 = vcmp.eq.s32.totalorder %v302_v3, 0  ;;  %vm1074_vm4 = vcmp.eq.s32.totalorder %v303_v4, 0 }
  0x72   : > { %v307_v8 = vld [vmem:[%s4754_s26 + $0x40] sm:$0xff]  ;;  %v308_v9 = vld [vmem:[%s4754_s26 + $0x48] sm:$0xff]  ;;  %v309_v10 = vld [vmem:[%s4754_s26 + $0x50] sm:$0xff]  ;;  %vm1075_vm5 = vcmp.eq.s32.totalorder %v304_v5, 0  ;;  %vm1076_vm6 = vcmp.eq.s32.totalorder %v305_v6, 0  ;;  %vm1077_vm7 = vcmp.eq.s32.totalorder %v306_v7, 0 }
  0x73   : > { %v310_v11 = vld [vmem:[%s4754_s26 + $0x58] sm:$0xff]  ;;  %v311_v12 = vld [vmem:[%s4754_s26 + $0x60] sm:$0xff]  ;;  %v4774_v13 = vld [vmem:[%s4754_s26 + $0x68] sm:$0xff]  ;;  %vm1078_vm8 = vcmp.eq.s32.totalorder %v307_v8, 0  ;;  %vm1079_vm9 = vcmp.eq.s32.totalorder %v308_v9, 0  ;;  %vm1080_vm10 = vcmp.eq.s32.totalorder %v309_v10, 0 }
  0x74   : > { %v4777_v14 = vld [vmem:[%s4743_s4] sm:$0xff]  ;;  %v4780_v15 = vld [vmem:[%s4743_s4 + $0x8] sm:$0xff]  ;;  %v4783_v16 = vld [vmem:[%s4743_s4 + $0x10] sm:$0xff]  ;;  %vm1081_vm11 = vcmp.eq.s32.totalorder %v310_v11, 0  ;;  %vm1082_vm12 = vcmp.eq.s32.totalorder %v311_v12, 0  ;;  %vm1083_vm13 = vcmp.eq.s32.totalorder %v4774_v13, 0 }
  0x75   : > { %12635 = vst [vmem:[#allocation9_spill] sm:$0xff] %v4777_v14  ;;  %12636 = vst [vmem:[#allocation10_spill] sm:$0xff] %v4780_v15  ;;  %v4786_v17 = vld [vmem:[%s4743_s4 + $0x18] sm:$0xff]  ;;  %v4789_v18 = vld [vmem:[%s4743_s4 + $0x20] sm:$0xff]  ;;  %v4796_v20 = vsel %vm1070_vm0, %v4777_v14, 0.0  ;;  %v4800_v21 = vsel %vm1071_vm1, %v4780_v15, 0.0 }
  0x76   : > { %12637 = vst [vmem:[#allocation11_spill] sm:$0xff] %v4783_v16  ;;  %12638 = vst [vmem:[#allocation12_spill] sm:$0xff] %v4786_v17  ;;  %v4792_v19 = vld [vmem:[%s4743_s4 + $0x28] sm:$0xff]  ;;  %v4803_v22 = vld [vmem:[%s4754_s26 + $0x70] sm:$0xff]  ;;  %v4813_v25 = vsel %vm1072_vm2, %v4783_v16, 0.0  ;;  %v4817_v26 = vsel %vm1073_vm3, %v4786_v17, 0.0 }
  0x77   : > { %12639 = vst [vmem:[#allocation13_spill] sm:$0xff] %v4789_v18  ;;  %12640 = vst [vmem:[#allocation14_spill] sm:$0xff] %v4792_v19  ;;  %v4806_v23 = vld [vmem:[%s4743_s4 + $0x30] sm:$0xff]  ;;  %v4809_v24 = vld [vmem:[%s4743_s4 + $0x38] sm:$0xff]  ;;  %v4836_v32 = vsel %vm1074_vm4, %v4789_v18, 0.0  ;;  %v4858_v39 = vsel %vm1075_vm5, %v4792_v19, 0.0 }
  0x78   : > { %12641 = vst [vmem:[#allocation15_spill] sm:$0xff] %v4796_v20  ;;  %12642 = vst [vmem:[#allocation16_spill] sm:$0xff] %v4800_v21  ;;  %v4820_v27 = vld [vmem:[%s4743_s4 + $0x40] sm:$0xff]  ;;  %v4823_v28 = vld [vmem:[%s4743_s4 + $0x48] sm:$0xff]  ;;  %v4875_v44 = vsel %vm1076_vm6, %v4806_v23, 0.0  ;;  %v4879_v45 = vsel %vm1077_vm7, %v4809_v24, 0.0 }
  0x79   : > { %12643 = vst [vmem:[#allocation17_spill] sm:$0xff] %v4806_v23  ;;  %12644 = vst [vmem:[#allocation18_spill] sm:$0xff] %v4809_v24  ;;  %v4826_v29 = vld [vmem:[%s4743_s4 + $0x50] sm:$0xff]  ;;  %v4829_v30 = vld [vmem:[%s4743_s4 + $0x200] sm:$0xff]  ;;  %v4895_v50 = vsel %vm1078_vm8, %v4820_v27, 0.0  ;;  %v4899_v51 = vsel %vm1079_vm9, %v4823_v28, 0.0 }
  0x7a   : > { %12645 = vst [vmem:[#allocation19_spill] sm:$0xff] %v4813_v25  ;;  %12646 = vst [vmem:[#allocation20_spill] sm:$0xff] %v4817_v26  ;;  %v4832_v31 = vld [vmem:[%s4743_s4 + $0x208] sm:$0xff]  ;;  %v4839_v33 = vld [vmem:[%s4754_s26 + $0x78] sm:$0xff]  ;;  %v4903_v52 = vsel %vm1080_vm10, %v4826_v29, 0.0  ;;  %vm1084_vm14 = vcmp.eq.s32.totalorder %v4803_v22, 0 }
  0x7b   : > { %12647 = vst [vmem:[#allocation21_spill] sm:$0xff] %v4820_v27  ;;  %12648 = vst [vmem:[#allocation22_spill] sm:$0xff] %v4823_v28  ;;  %v4842_v34 = vld [vmem:[%s4743_s4 + $0x58] sm:$0xff]  ;;  %v4845_v35 = vld [vmem:[%s4743_s4 + $0x60] sm:$0xff]  ;;  %vm1085_vm15 = vcmp.eq.s32.totalorder %v4839_v33, 0  ;;  %s15655_s15 = smov (!%p293_p9, %s4520_s15), 1 }
  0x7c   : > { %12649 = vst [vmem:[#allocation23_spill] sm:$0xff] %v4826_v29  ;;  %12650 = vst [vmem:[#allocation24_spill] sm:$0xff] %v4836_v32  ;;  %v4848_v36 = vld [vmem:[%s4743_s4 + $0x210] sm:$0xff]  ;;  %v4851_v37 = vld [vmem:[%s4743_s4 + $0x218] sm:$0xff]  ;;  %v4920_v57 = vsel %vm1081_vm11, %v4842_v34, 0.0  ;;  %v4924_v58 = vsel %vm1082_vm12, %v4845_v35, 0.0  ;;  %s298_s5 = scalar_lea.vmem %s11955_s3, %s15655_s15 }
  0x7d   : > { %12651 = vst [vmem:[#allocation25_spill] sm:$0xff] %v4842_v34  ;;  %12652 = vst [vmem:[#allocation26_spill] sm:$0xff] %v4845_v35  ;;  %v4854_v38 = vld [vmem:[%s4743_s4 + $0x220] sm:$0xff]  ;;  %v4861_v40 = vld [vmem:[%s4743_s4 + $0x68] sm:$0xff] }
  0x7e   : > { %12653 = vst [vmem:[#allocation27_spill] sm:$0xff] %v4854_v38  ;;  %12654 = vst [vmem:[#allocation28_spill] sm:$0xff] %v4858_v39  ;;  %v4864_v41 = vld [vmem:[%s4743_s4 + $0x228] sm:$0xff]  ;;  %v4867_v42 = vld [vmem:[%s4743_s4 + $0x230] sm:$0xff]  ;;  %v4956_v5 = vsel %vm1083_vm13, %v4861_v40, 0.0 }
  0x7f   : > { %12655 = vst [vmem:[#allocation29_spill] sm:$0xff] %v4861_v40  ;;  %12656 = vst [vmem:[#allocation30_spill] sm:$0xff] %v4864_v41  ;;  %v4870_v43 = vld [vmem:[%s4743_s4 + $0x238] sm:$0xff]  ;;  %v4882_v46 = vld [vmem:[%s4754_s26 + $0x80] sm:$0xff] }
  0x80   : > { %12657 = vst [vmem:[#allocation31_spill] sm:$0xff] %v4867_v42  ;;  %12658 = vst [vmem:[#allocation32_spill] sm:$0xff] %v4870_v43  ;;  %v4885_v47 = vld [vmem:[%s4743_s4 + $0x240] sm:$0xff]  ;;  %v4888_v48 = vld [vmem:[%s4743_s4 + $0x248] sm:$0xff]  ;;  %vm1086_vm0 = vcmp.eq.s32.totalorder %v4882_v46, 0 }
  0x81   : > { %12659 = vst [vmem:[#allocation33_spill] sm:$0xff] %v4875_v44  ;;  %12660 = vst [vmem:[#allocation34_spill] sm:$0xff] %v4879_v45  ;;  %v4891_v49 = vld [vmem:[%s4743_s4 + $0x250] sm:$0xff]  ;;  %v4909_v54 = vld [vmem:[%s4743_s4 + $0x258] sm:$0xff] }
  0x82   : > { %12661 = vst [vmem:[#allocation35_spill] sm:$0xff] %v4885_v47  ;;  %12662 = vst [vmem:[#allocation36_spill] sm:$0xff] %v4888_v48  ;;  %v4906_v53 = vld [vmem:[%s4743_s4 + $0x70] sm:$0xff]  ;;  %v4912_v55 = vld [vmem:[%s4743_s4 + $0x260] sm:$0xff] }
  0x83   : > { %12663 = vst [vmem:[#allocation37_spill] sm:$0xff] %v4891_v49  ;;  %12664 = vst [vmem:[#allocation38_spill] sm:$0xff] %v4895_v50  ;;  %v4915_v56 = vld [vmem:[%s4743_s4 + $0x268] sm:$0xff]  ;;  %v4930_v60 = vld [vmem:[%s4743_s4 + $0x78] sm:$0xff]  ;;  %v5013_v50 = vsel %vm1084_vm14, %v4906_v53, 0.0 }
  0x84   : > { %12665 = vst [vmem:[#allocation39_spill] sm:$0xff] %v4899_v51  ;;  %12666 = vst [vmem:[#allocation40_spill] sm:$0xff] %v4903_v52  ;;  %v4927_v59 = vld [vmem:[%s4754_s26 + $0x88] sm:$0xff]  ;;  %v4933_v61 = vld [vmem:[%s4743_s4 + $0x80] sm:$0xff]  ;;  %v5073_v48 = vsel %vm1085_vm15, %v4930_v60, 0.0 }
  0x85   : > { %12667 = vst [vmem:[#allocation41_spill] sm:$0xff] %v4906_v53  ;;  %12668 = vst [vmem:[#allocation42_spill] sm:$0xff] %v4909_v54  ;;  %v4936_v62 = vld [vmem:[%s4743_s4 + $0x88] sm:$0xff]  ;;  %v4939_v63 = vld [vmem:[%s4743_s4 + $0x270] sm:$0xff]  ;;  %vm1087_vm1 = vcmp.eq.s32.totalorder %v4927_v59, 0 }
  0x86   : > { %12669 = vst [vmem:[#allocation43_spill] sm:$0xff] %v4912_v55  ;;  %12670 = vst [vmem:[#allocation44_spill] sm:$0xff] %v4915_v56  ;;  %v4942_v0 = vld [vmem:[%s4743_s4 + $0x278] sm:$0xff]  ;;  %v4945_v1 = vld [vmem:[%s4743_s4 + $0x280] sm:$0xff] }
  0x87   : > { %12671 = vst [vmem:[#allocation45_spill] sm:$0xff] %v4920_v57  ;;  %12672 = vst [vmem:[#allocation46_spill] sm:$0xff] %v4924_v58  ;;  %v4959_v6 = vld [vmem:[%s4743_s4 + $0x90] sm:$0xff]  ;;  %v4962_v7 = vld [vmem:[%s4743_s4 + $0x98] sm:$0xff] }
  0x88   : > { %12673 = vst [vmem:[#allocation47_spill] sm:$0xff] %v4930_v60  ;;  %12674 = vst [vmem:[#allocation48_spill] sm:$0xff] %v4933_v61  ;;  %v4965_v8 = vld [vmem:[%s4743_s4 + $0xa0] sm:$0xff]  ;;  %v4968_v9 = vld [vmem:[%s4743_s4 + $0x288] sm:$0xff]  ;;  %v5127_v60 = vsel %vm1086_vm0, %v4933_v61, 0.0 }
  0x89   : > { %12675 = vst [vmem:[#allocation49_spill] sm:$0xff] %v4936_v62  ;;  %12676 = vst [vmem:[#allocation50_spill] sm:$0xff] %v4939_v63  ;;  %v4971_v10 = vld [vmem:[%s4743_s4 + $0x290] sm:$0xff]  ;;  %v4974_v11 = vld [vmem:[%s4743_s4 + $0x298] sm:$0xff] }
  0x8a   : > { %12677 = vst [vmem:[#allocation51_spill] sm:$0xff] %v4942_v0  ;;  %12678 = vst [vmem:[#allocation52_spill] sm:$0xff] %v4945_v1  ;;  %v4984_v3 = vld [vmem:[%s4754_s26 + $0x90] sm:$0xff]  ;;  %v4987_v2 = vld [vmem:[%s4743_s4 + $0xa8] sm:$0xff] }
  0x8b   : > { %12679 = vst [vmem:[#allocation53_spill] sm:$0xff] %v4956_v5  ;;  %12680 = vst [vmem:[#allocation54_spill] sm:$0xff] %v4959_v6  ;;  %v4990_v5 = vld [vmem:[%s4743_s4 + $0xb0] sm:$0xff]  ;;  %v4993_v12 = vld [vmem:[%s4743_s4 + $0xb8] sm:$0xff]  ;;  %vm1088_vm2 = vcmp.eq.s32.totalorder %v4984_v3, 0 }
  0x8c   : > { %12681 = vst [vmem:[#allocation55_spill] sm:$0xff] %v4962_v7  ;;  %12682 = vst [vmem:[#allocation56_spill] sm:$0xff] %v4965_v8  ;;  %v4996_v58 = vld [vmem:[%s4743_s4 + $0x2a0] sm:$0xff]  ;;  %v4999_v13 = vld [vmem:[%s4743_s4 + $0x2a8] sm:$0xff] }
  0x8d   : > { %12683 = vst [vmem:[#allocation57_spill] sm:$0xff] %v4968_v9  ;;  %12684 = vst [vmem:[#allocation58_spill] sm:$0xff] %v4971_v10  ;;  %v5002_v57 = vld [vmem:[%s4743_s4 + $0x2b0] sm:$0xff]  ;;  %v5016_v45 = vld [vmem:[%s4754_s26 + $0x98] sm:$0xff] }
  0x8e   : > { %12685 = vst [vmem:[#allocation59_spill] sm:$0xff] %v4974_v11  ;;  %12686 = vst [vmem:[#allocation60_spill] sm:$0xff] %v4987_v2  ;;  %v5019_v44 = vld [vmem:[%s4743_s4 + $0xc0] sm:$0xff]  ;;  %v5022_v4 = vld [vmem:[%s4743_s4 + $0xc8] sm:$0xff]  ;;  %vm1089_vm3 = vcmp.eq.s32.totalorder %v5016_v45, 0 }
  0x8f   : > { %12687 = vst [vmem:[#allocation61_spill] sm:$0xff] %v4990_v5  ;;  %12688 = vst [vmem:[#allocation62_spill] sm:$0xff] %v4993_v12  ;;  %v5025_v52 = vld [vmem:[%s4743_s4 + $0x2b8] sm:$0xff]  ;;  %v5028_v39 = vld [vmem:[%s4743_s4 + $0x2c0] sm:$0xff] }
  0x90   : > { %12689 = vst [vmem:[#allocation63_spill] sm:$0xff] %v4996_v58  ;;  %12690 = vst [vmem:[#allocation64_spill] sm:$0xff] %v4999_v13  ;;  %v5031_v51 = vld [vmem:[%s4743_s4 + $0x2c8] sm:$0xff]  ;;  %v5041_v26 = vld [vmem:[%s4743_s4 + $0xd0] sm:$0xff]  ;;  %v5192_v13 = vsel %vm1087_vm1, %v4936_v62, 0.0 }
  0x91   : > { %12691 = vst [vmem:[#allocation65_spill] sm:$0xff] %v5002_v57  ;;  %12692 = vst [vmem:[#allocation66_spill] sm:$0xff] %v5013_v50  ;;  %v5044_v25 = vld [vmem:[%s4743_s4 + $0xd8] sm:$0xff]  ;;  %v5047_v21 = vld [vmem:[%s4743_s4 + $0xe0] sm:$0xff] }
  0x92   : > { %12693 = vst [vmem:[#allocation67_spill] sm:$0xff] %v5019_v44  ;;  %12694 = vst [vmem:[#allocation68_spill] sm:$0xff] %v5022_v4  ;;  %v5050_v22 = vld [vmem:[%s4743_s4 + $0xe8] sm:$0xff]  ;;  %v5053_v20 = vld [vmem:[%s4743_s4 + $0x2d0] sm:$0xff] }
  0x93   : > { %12695 = vst [vmem:[#allocation69_spill] sm:$0xff] %v5025_v52  ;;  %12696 = vst [vmem:[#allocation70_spill] sm:$0xff] %v5028_v39  ;;  %v5056_v50 = vld [vmem:[%s4743_s4 + $0x2d8] sm:$0xff]  ;;  %v5059_v49 = vld [vmem:[%s4743_s4 + $0x2e0] sm:$0xff] }
  0x94   : > { %12697 = vst [vmem:[#allocation71_spill] sm:$0xff] %v5031_v51  ;;  %12698 = vst [vmem:[#allocation72_spill] sm:$0xff] %v5041_v26  ;;  %v5062_v32 = vld [vmem:[%s4743_s4 + $0x2e8] sm:$0xff]  ;;  %v5076_v28 = vld [vmem:[%s4743_s4 + $0xf0] sm:$0xff] }
  0x95   : > { %12699 = vst [vmem:[#allocation73_spill] sm:$0xff] %v5044_v25  ;;  %12700 = vst [vmem:[#allocation74_spill] sm:$0xff] %v5047_v21  ;;  %v5079_v47 = vld [vmem:[%s4743_s4 + $0xf8] sm:$0xff]  ;;  %v5082_v54 = vld [vmem:[%s4743_s4 + $0x100] sm:$0xff] }
  0x96   : > { %12701 = vst [vmem:[#allocation75_spill] sm:$0xff] %v5050_v22  ;;  %12702 = vst [vmem:[#allocation76_spill] sm:$0xff] %v5053_v20  ;;  %v5085_v55 = vld [vmem:[%s4743_s4 + $0x2f0] sm:$0xff]  ;;  %v5088_v34 = vld [vmem:[%s4743_s4 + $0x2f8] sm:$0xff] }
  0x97   : > { %12703 = vst [vmem:[#allocation77_spill] sm:$0xff] %v5056_v50  ;;  %12704 = vst [vmem:[#allocation78_spill] sm:$0xff] %v5059_v49  ;;  %v5091_v56 = vld [vmem:[%s4743_s4 + $0x300] sm:$0xff]  ;;  %v5101_v63 = vld [vmem:[%s4743_s4 + $0x108] sm:$0xff]  ;;  %v5259_v50 = vsel %vm1088_vm2, %v4959_v6, 0.0 }
  0x98   : > { %12705 = vst [vmem:[#allocation79_spill] sm:$0xff] %v5062_v32  ;;  %12706 = vst [vmem:[#allocation80_spill] sm:$0xff] %v5073_v48  ;;  %v5104_v53 = vld [vmem:[%s4743_s4 + $0x110] sm:$0xff]  ;;  %v5107_v40 = vld [vmem:[%s4743_s4 + $0x118] sm:$0xff] }
  0x99   : > { %12707 = vst [vmem:[#allocation81_spill] sm:$0xff] %v5076_v28  ;;  %12708 = vst [vmem:[#allocation82_spill] sm:$0xff] %v5079_v47  ;;  %v5110_v33 = vld [vmem:[%s4743_s4 + $0x308] sm:$0xff]  ;;  %v5113_v0 = vld [vmem:[%s4743_s4 + $0x310] sm:$0xff] }
  0x9a   : > { %12709 = vst [vmem:[#allocation83_spill] sm:$0xff] %v5082_v54  ;;  %12710 = vst [vmem:[#allocation84_spill] sm:$0xff] %v5085_v55  ;;  %v5116_v29 = vld [vmem:[%s4743_s4 + $0x318] sm:$0xff]  ;;  %v5130_v35 = vld [vmem:[%s4743_s4 + $0x120] sm:$0xff]  ;;  %v5294_v55 = vsel %vm1089_vm3, %v4962_v7, 0.0 }
  0x9b   : > { %12711 = vst [vmem:[#allocation85_spill] sm:$0xff] %v5088_v34  ;;  %12712 = vst [vmem:[#allocation86_spill] sm:$0xff] %v5091_v56  ;;  %v5133_v27 = vld [vmem:[%s4743_s4 + $0x128] sm:$0xff]  ;;  %v5136_v48 = vld [vmem:[%s4743_s4 + $0x130] sm:$0xff] }
  0x9c   : > { %12713 = vst [vmem:[#allocation87_spill] sm:$0xff] %v5101_v63  ;;  %12714 = vst [vmem:[#allocation88_spill] sm:$0xff] %v5104_v53  ;;  %v5139_v9 = vld [vmem:[%s4743_s4 + $0x138] sm:$0xff]  ;;  %v5142_v1 = vld [vmem:[%s4743_s4 + $0x320] sm:$0xff] }
  0x9d   : > { %12715 = vst [vmem:[#allocation89_spill] sm:$0xff] %v5107_v40  ;;  %12716 = vst [vmem:[#allocation90_spill] sm:$0xff] %v5110_v33  ;;  %v5145_v58 = vld [vmem:[%s4743_s4 + $0x328] sm:$0xff]  ;;  %v5148_v46 = vld [vmem:[%s4743_s4 + $0x330] sm:$0xff] }
  0x9e   : > { %12717 = vst [vmem:[#allocation91_spill] sm:$0xff] %v5113_v0  ;;  %12718 = vst [vmem:[#allocation92_spill] sm:$0xff] %v5116_v29  ;;  %v5161_v61 = vld [vmem:[%s4743_s4 + $0x140] sm:$0xff]  ;;  %v5164_v43 = vld [vmem:[%s4743_s4 + $0x148] sm:$0xff] }
  0x9f   : > { %12719 = vst [vmem:[#allocation93_spill] sm:$0xff] %v5127_v60  ;;  %12720 = vst [vmem:[#allocation94_spill] sm:$0xff] %v5130_v35  ;;  %v5151_v60 = vld [vmem:[%s4743_s4 + $0x338] sm:$0xff]  ;;  %v5167_v24 = vld [vmem:[%s4743_s4 + $0x150] sm:$0xff] }
  0xa0   : > { %12721 = vst [vmem:[#allocation95_spill] sm:$0xff] %v5133_v27  ;;  %12722 = vst [vmem:[#allocation96_spill] sm:$0xff] %v5136_v48  ;;  %v5170_v8 = vld [vmem:[%s4743_s4 + $0x158] sm:$0xff]  ;;  %v5173_v11 = vld [vmem:[%s4743_s4 + $0x340] sm:$0xff] }
  0xa1   : > { %12723 = vst [vmem:[#allocation97_spill] sm:$0xff] %v5139_v9  ;;  %12724 = vst [vmem:[#allocation98_spill] sm:$0xff] %v5145_v58  ;;  %v5176_v57 = vld [vmem:[%s4743_s4 + $0x348] sm:$0xff]  ;;  %v5179_v10 = vld [vmem:[%s4743_s4 + $0x350] sm:$0xff] }
  0xa2   : > { %12725 = vst [vmem:[#allocation99_spill] sm:$0xff] %v5148_v46  ;;  %12726 = vst [vmem:[#allocation100_spill] sm:$0xff] %v5151_v60  ;;  %v5182_v52 = vld [vmem:[%s4743_s4 + $0x358] sm:$0xff]  ;;  %v5195_v2 = vld [vmem:[%s4743_s4 + $0x160] sm:$0xff]  ;;  %v12770_v60 = vmax.f32 %v4780_v15, %v4832_v31 }
  0xa3   : > { %12727 = vst [vmem:[#allocation101_spill] sm:$0xff] %v5161_v61  ;;  %12728 = vst [vmem:[#allocation102_spill] sm:$0xff] %v5164_v43  ;;  %v5198_v42 = vld [vmem:[%s4743_s4 + $0x168] sm:$0xff]  ;;  %v5201_v12 = vld [vmem:[%s4743_s4 + $0x170] sm:$0xff] }
  0xa4   : > { %12729 = vst [vmem:[#allocation103_spill] sm:$0xff] %v5167_v24  ;;  %12730 = vst [vmem:[#allocation104_spill] sm:$0xff] %v5170_v8  ;;  %v5204_v5 = vld [vmem:[%s4743_s4 + $0x178] sm:$0xff]  ;;  %v5207_v51 = vld [vmem:[%s4743_s4 + $0x360] sm:$0xff] }
  0xa5   : > { %12731 = vst [vmem:[#allocation105_spill] sm:$0xff] %v5176_v57  ;;  %12732 = vst [vmem:[#allocation106_spill] sm:$0xff] %v5179_v10  ;;  %v5210_v4 = vld [vmem:[%s4743_s4 + $0x368] sm:$0xff]  ;;  %v5213_v59 = vld [vmem:[%s4743_s4 + $0x370] sm:$0xff] }
  0xa6   : > { %12733 = vst [vmem:[#allocation107_spill] sm:$0xff] %v5192_v13  ;;  %12734 = vst [vmem:[#allocation108_spill] sm:$0xff] %v5195_v2  ;;  %v5216_v13 = vld [vmem:[%s4743_s4 + $0x378] sm:$0xff]  ;;  %v5227_v41 = vld [vmem:[%s4743_s4 + $0x180] sm:$0xff] }
  0xa7   : > { %12735 = vst [vmem:[#allocation109_spill] sm:$0xff] %v5198_v42  ;;  %12736 = vst [vmem:[#allocation110_spill] sm:$0xff] %v5201_v12  ;;  %v5230_v19 = vld [vmem:[%s4743_s4 + $0x188] sm:$0xff]  ;;  %v5233_v39 = vld [vmem:[%s4743_s4 + $0x190] sm:$0xff] }
  0xa8   : > { %12737 = vst [vmem:[#allocation111_spill] sm:$0xff] %v5204_v5  ;;  %12738 = vst [vmem:[#allocation112_spill] sm:$0xff] %v5213_v59  ;;  %v5236_v20 = vld [vmem:[%s4743_s4 + $0x198] sm:$0xff]  ;;  %v5239_v44 = vld [vmem:[%s4743_s4 + $0x380] sm:$0xff] }
  0xa9   : > { %12739 = vst [vmem:[#allocation113_spill] sm:$0xff] %v5216_v13  ;;  %12740 = vst [vmem:[#allocation114_spill] sm:$0xff] %v5227_v41  ;;  %v5242_v62 = vld [vmem:[%s4743_s4 + $0x388] sm:$0xff]  ;;  %v5245_v49 = vld [vmem:[%s4743_s4 + $0x390] sm:$0xff] }
  0xaa   : > { %12741 = vst [vmem:[#allocation115_spill] sm:$0xff] %v5230_v19  ;;  %12742 = vst [vmem:[#allocation116_spill] sm:$0xff] %v5233_v39  ;;  %v5248_v23 = vld [vmem:[%s4743_s4 + $0x398] sm:$0xff]  ;;  %v5262_v25 = vld [vmem:[%s4743_s4 + $0x1a0] sm:$0xff] }
  0xab   : > { %12743 = vst [vmem:[#allocation117_spill] sm:$0xff] %v5236_v20  ;;  %12744 = vst [vmem:[#allocation118_spill] sm:$0xff] %v5245_v49  ;;  %v5265_v26 = vld [vmem:[%s4743_s4 + $0x1a8] sm:$0xff]  ;;  %v5268_v32 = vld [vmem:[%s4743_s4 + $0x1b0] sm:$0xff] }
  0xac   : > { %12745 = vst [vmem:[#allocation119_spill] sm:$0xff] %v5248_v23  ;;  %12746 = vst [vmem:[#allocation120_spill] sm:$0xff] %v5259_v50  ;;  %v5271_v22 = vld [vmem:[%s4743_s4 + $0x1b8] sm:$0xff]  ;;  %v5274_v21 = vld [vmem:[%s4743_s4 + $0x3a0] sm:$0xff] }
  0xad   : > { %12747 = vst [vmem:[#allocation121_spill] sm:$0xff] %v5262_v25  ;;  %12748 = vst [vmem:[#allocation122_spill] sm:$0xff] %v5265_v26  ;;  %v5277_v56 = vld [vmem:[%s4743_s4 + $0x3a8] sm:$0xff]  ;;  %v5280_v3 = vld [vmem:[%s4743_s4 + $0x3b0] sm:$0xff] }
  0xae   : > { %12749 = vst [vmem:[#allocation123_spill] sm:$0xff] %v5268_v32  ;;  %12750 = vst [vmem:[#allocation124_spill] sm:$0xff] %v5271_v22  ;;  %v5283_v50 = vld [vmem:[%s4743_s4 + $0x3b8] sm:$0xff]  ;;  %v5297_v28 = vld [vmem:[%s4743_s4 + $0x1c0] sm:$0xff] }
  0xaf   : > { %12751 = vst [vmem:[#allocation125_spill] sm:$0xff] %v5280_v3  ;;  %12752 = vst [vmem:[#allocation126_spill] sm:$0xff] %v5283_v50  ;;  %v5300_v6 = vld [vmem:[%s4743_s4 + $0x1c8] sm:$0xff]  ;;  %v5303_v54 = vld [vmem:[%s4743_s4 + $0x1d0] sm:$0xff] }
  0xb0   : > { %12753 = vst [vmem:[#allocation127_spill] sm:$0xff] %v5294_v55  ;;  %12754 = vst [vmem:[#allocation128_spill] sm:$0xff] %v5297_v28  ;;  %v5306_v34 = vld [vmem:[%s4743_s4 + $0x1d8] sm:$0xff]  ;;  %v5309_v47 = vld [vmem:[%s4743_s4 + $0x3c0] sm:$0xff] }
  0xb1   : > { %12755 = vst [vmem:[#allocation129_spill] sm:$0xff] %v5300_v6  ;;  %12756 = vst [vmem:[#allocation130_spill] sm:$0xff] %v5303_v54  ;;  %v5312_v29 = vld [vmem:[%s4743_s4 + $0x3c8] sm:$0xff]  ;;  %v5315_v45 = vld [vmem:[%s4743_s4 + $0x3d0] sm:$0xff] }
  0xb2   : > { %12757 = vst [vmem:[#allocation131_spill] sm:$0xff] %v5306_v34  ;;  %12758 = vst [vmem:[#allocation132_spill] sm:$0xff] %v5312_v29  ;;  %v5318_v55 = vld [vmem:[%s4743_s4 + $0x3d8] sm:$0xff]  ;;  %v5329_v63 = vld [vmem:[%s4743_s4 + $0x1e0] sm:$0xff] }
  0xb3   : > { %12759 = vst [vmem:[#allocation133_spill] sm:$0xff] %v5315_v45  ;;  %12760 = vst [vmem:[#allocation134_spill] sm:$0xff] %v5318_v55  ;;  %v5332_v7 = vld [vmem:[%s4743_s4 + $0x1e8] sm:$0xff]  ;;  %v5335_v38 = vld [vmem:[%s4743_s4 + $0x1f0] sm:$0xff] }
  0xb4   : > { %12761 = vst [vmem:[#allocation135_spill] sm:$0xff] %v5329_v63  ;;  %12762 = vst [vmem:[#allocation136_spill] sm:$0xff] %v5332_v7  ;;  %v5338_v18 = vld [vmem:[%s4743_s4 + $0x1f8] sm:$0xff]  ;;  %v5341_v40 = vld [vmem:[%s4743_s4 + $0x3e0] sm:$0xff] }
  0xb5   : > { %12763 = vst [vmem:[#allocation137_spill] sm:$0xff] %v5335_v38  ;;  %12764 = vst [vmem:[#allocation138_spill] sm:$0xff] %v5338_v18  ;;  %v5344_v0 = vld [vmem:[%s4743_s4 + $0x3e8] sm:$0xff]  ;;  %v5347_v53 = vld [vmem:[%s4743_s4 + $0x3f0] sm:$0xff]  ;;  %v12772_v18 = vmax.f32 %v4783_v16, %v4848_v36  ;;  %v12774_v38 = vmax.f32 %v4786_v17, %v4851_v37 }
  0xb6   : > { %12765 = vst [vmem:[#allocation139_spill] sm:$0xff] %v5341_v40  ;;  %12766 = vst [vmem:[#allocation140_spill] sm:$0xff] %v5344_v0  ;;  %v5350_v46 = vld [vmem:[%s4743_s4 + $0x3f8] sm:$0xff]  ;;  %v3147_v57 = vld [vmem:[%s4743_s4 + $0x400] sm:$0xff]  ;;  %v12769_v0 = vmax.f32 %v4777_v14, %v4829_v30 }
  0xb7   : > { %12767 = vst [vmem:[#allocation141_spill] sm:$0xff] %v5347_v53  ;;  %12768 = vst [vmem:[#allocation142_spill] sm:$0xff] %v5350_v46  ;;  %v3148_v9 = vld [vmem:[%s4743_s4 + $0x408] sm:$0xff]  ;;  %v3149_v10 = vld [vmem:[%s4743_s4 + $0x410] sm:$0xff] }
  0xb8   : > { %v3150_v48 = vld [vmem:[%s4743_s4 + $0x418] sm:$0xff]  ;;  %v3151_v13 = vld [vmem:[%s4743_s4 + $0x420] sm:$0xff]  ;;  %v3152_v5 = vld [vmem:[%s4743_s4 + $0x428] sm:$0xff]  ;;  %v5427_v33 = vmax.f32 %v12769_v0, %v3147_v57  ;;  %v5432_v46 = vmax.f32 %v12770_v60, %v3148_v9  ;;  %v5437_v53 = vmax.f32 %v12772_v18, %v3149_v10 }
  0xb9   : > { %v3153_v59 = vld [vmem:[%s4743_s4 + $0x430] sm:$0xff]  ;;  %v3154_v12 = vld [vmem:[%s4743_s4 + $0x438] sm:$0xff]  ;;  %v3155_v23 = vld [vmem:[%s4743_s4 + $0x440] sm:$0xff]  ;;  %v5442_v7 = vmax.f32 %v12774_v38, %v3150_v48 }
  0xba   : > { %v3156_v20 = vld [vmem:[%s4743_s4 + $0x448] sm:$0xff]  ;;  %v3157_v49 = vld [vmem:[%s4743_s4 + $0x450] sm:$0xff]  ;;  %v3158_v39 = vld [vmem:[%s4743_s4 + $0x458] sm:$0xff]  ;;  %12771 = vst [vmem:[#allocation143_spill] sm:$0xff] %v5432_v46 }
  0xbb   : > { %v3159_v50 = vld [vmem:[%s4743_s4 + $0x460] sm:$0xff]  ;;  %v3160_v22 = vld [vmem:[%s4743_s4 + $0x468] sm:$0xff]  ;;  %v3161_v3 = vld [vmem:[%s4743_s4 + $0x470] sm:$0xff]  ;;  %12773 = vst [vmem:[#allocation144_spill] sm:$0xff] %v5437_v53 }
  0xbc   : > { %v3162_v32 = vld [vmem:[%s4743_s4 + $0x478] sm:$0xff]  ;;  %v3163_v55 = vld [vmem:[%s4743_s4 + $0x480] sm:$0xff]  ;;  %v3164_v34 = vld [vmem:[%s4743_s4 + $0x488] sm:$0xff]  ;;  %12775 = vst [vmem:[#allocation145_spill] sm:$0xff] %v5442_v7 }
  0xbd   : > { %v3165_v45 = vld [vmem:[%s4743_s4 + $0x490] sm:$0xff]  ;;  %v3166_v54 = vld [vmem:[%s4743_s4 + $0x498] sm:$0xff]  ;;  %v3167_v29 = vld [vmem:[%s4743_s4 + $0x4a0] sm:$0xff] }
  0xbe   : > { %v3168_v58 = vld [vmem:[%s4743_s4 + $0x4a8] sm:$0xff]  ;;  %v3169_v40 = vld [vmem:[%s4743_s4 + $0x4b0] sm:$0xff]  ;;  %v3170_v27 = vld [vmem:[%s4743_s4 + $0x4b8] sm:$0xff] }
  0xbf   : > { %v3171_v63 = vld [vmem:[%s4743_s4 + $0x4c0] sm:$0xff]  ;;  %v3172_v30 = vld [vmem:[%s4743_s4 + $0x4c8] sm:$0xff]  ;;  %v3173_v57 = vld [vmem:[%s4743_s4 + $0x4d0] sm:$0xff] }
  0xc0   : > { %v3174_v0 = vld [vmem:[%s4743_s4 + $0x4d8] sm:$0xff]  ;;  %v12776_v31 = vld [vmem:[#allocation13_spill] sm:$0xff]  ;;  %v12777_v60 = vld [vmem:[#allocation27_spill] sm:$0xff] }
  0xc1   : > { %v12778_v9 = vmax.f32 %v12776_v31, %v12777_v60  ;;  %v12780_v18 = vld [vmem:[#allocation14_spill] sm:$0xff]  ;;  %v12784_v37 = vld [vmem:[#allocation17_spill] sm:$0xff]  ;;  %v12785_v38 = vld [vmem:[#allocation31_spill] sm:$0xff] }
  0xc2   : > { %v12781_v36 = vld [vmem:[#allocation30_spill] sm:$0xff]  ;;  %v12786_v48 = vmax.f32 %v12784_v37, %v12785_v38  ;;  %v12789_v7 = vld [vmem:[#allocation32_spill] sm:$0xff]  ;;  %v3175_v6 = vld [vmem:[%s4743_s4 + $0x4e0] sm:$0xff] }
  0xc3   : > { %v5451_v15 = vmax.f32 %v12778_v9, %v3151_v13  ;;  %v12782_v10 = vmax.f32 %v12780_v18, %v12781_v36  ;;  %v12788_v14 = vld [vmem:[#allocation18_spill] sm:$0xff]  ;;  %v3177_v13 = vld [vmem:[%s4743_s4 + $0x4f0] sm:$0xff]  ;;  %v3178_v9 = vld [vmem:[%s4743_s4 + $0x4f8] sm:$0xff] }
  0xc4   : > { %v5461_v17 = vmax.f32 %v12786_v48, %v3153_v59  ;;  %v12790_v53 = vmax.f32 %v12788_v14, %v12789_v7  ;;  %v3176_v60 = vld [vmem:[%s4743_s4 + $0x4e8] sm:$0xff]  ;;  %v12792_v36 = vld [vmem:[#allocation21_spill] sm:$0xff]  ;;  %v12797_v38 = vld [vmem:[#allocation36_spill] sm:$0xff] }
  0xc5   : > { %12779 = vst [vmem:[#allocation27_spill] sm:$0xff] %v5451_v15  ;;  %v5456_v16 = vmax.f32 %v12782_v10, %v3152_v5  ;;  %v12793_v5 = vld [vmem:[#allocation35_spill] sm:$0xff]  ;;  %v12796_v59 = vld [vmem:[#allocation22_spill] sm:$0xff]  ;;  %v12801_v7 = vld [vmem:[#allocation37_spill] sm:$0xff] }
  0xc6   : > { %12787 = vst [vmem:[#allocation31_spill] sm:$0xff] %v5461_v17  ;;  %v5466_v46 = vmax.f32 %v12790_v53, %v3154_v12  ;;  %v12794_v10 = vmax.f32 %v12792_v36, %v12793_v5  ;;  %v12798_v48 = vmax.f32 %v12796_v59, %v12797_v38  ;;  %v12800_v53 = vld [vmem:[#allocation23_spill] sm:$0xff]  ;;  %v12804_v31 = vld [vmem:[#allocation25_spill] sm:$0xff]  ;;  %v3180_v5 = vld [vmem:[%s4743_s4 + $0x508] sm:$0xff] }
  0xc7   : > { %12783 = vst [vmem:[#allocation30_spill] sm:$0xff] %v5456_v16  ;;  %v12802_v12 = vmax.f32 %v12800_v53, %v12801_v7  ;;  %v3179_v15 = vld [vmem:[%s4743_s4 + $0x500] sm:$0xff]  ;;  %v12808_v38 = vld [vmem:[#allocation26_spill] sm:$0xff]  ;;  %v12813_v7 = vld [vmem:[#allocation44_spill] sm:$0xff] }
  0xc8   : > { %12791 = vst [vmem:[#allocation32_spill] sm:$0xff] %v5466_v46  ;;  %v5475_v18 = vmax.f32 %v12794_v10, %v3155_v23  ;;  %v5480_v37 = vmax.f32 %v12798_v48, %v3156_v20  ;;  %v12805_v46 = vld [vmem:[#allocation42_spill] sm:$0xff]  ;;  %v3181_v23 = vld [vmem:[%s4743_s4 + $0x510] sm:$0xff]  ;;  %v3182_v10 = vld [vmem:[%s4743_s4 + $0x518] sm:$0xff] }
  0xc9   : > { %v5485_v14 = vmax.f32 %v12802_v12, %v3157_v49  ;;  %v12806_v17 = vmax.f32 %v12804_v31, %v12805_v46  ;;  %v12809_v20 = vld [vmem:[#allocation43_spill] sm:$0xff]  ;;  %v12812_v49 = vld [vmem:[#allocation29_spill] sm:$0xff] }
  0xca   : > { %12795 = vst [vmem:[#allocation35_spill] sm:$0xff] %v5475_v18  ;;  %12799 = vst [vmem:[#allocation36_spill] sm:$0xff] %v5480_v37  ;;  %v12810_v48 = vmax.f32 %v12808_v38, %v12809_v20  ;;  %v12814_v12 = vmax.f32 %v12812_v49, %v12813_v7  ;;  %v12820_v36 = vld [vmem:[#allocation47_spill] sm:$0xff]  ;;  %v3183_v18 = vld [vmem:[%s4743_s4 + $0x520] sm:$0xff] }
  0xcb   : > { %12803 = vst [vmem:[#allocation37_spill] sm:$0xff] %v5485_v14  ;;  %v5490_v16 = vmax.f32 %v12806_v17, %v3158_v39  ;;  %v12816_v17 = vld [vmem:[#allocation41_spill] sm:$0xff]  ;;  %v12817_v39 = vld [vmem:[#allocation50_spill] sm:$0xff]  ;;  %v12824_v7 = vld [vmem:[#allocation48_spill] sm:$0xff] }
  0xcc   : > { %v5499_v59 = vmax.f32 %v12810_v48, %v3159_v50  ;;  %v5504_v53 = vmax.f32 %v12814_v12, %v3160_v22  ;;  %v12818_v46 = vmax.f32 %v12816_v17, %v12817_v39  ;;  %v3184_v20 = vld [vmem:[%s4743_s4 + $0x528] sm:$0xff]  ;;  %v3185_v50 = vld [vmem:[%s4743_s4 + $0x530] sm:$0xff]  ;;  %v3186_v48 = vld [vmem:[%s4743_s4 + $0x538] sm:$0xff] }
  0xcd   : > { %12807 = vst [vmem:[#allocation42_spill] sm:$0xff] %v5490_v16  ;;  %v12821_v16 = vld [vmem:[#allocation51_spill] sm:$0xff]  ;;  %v12825_v22 = vld [vmem:[#allocation52_spill] sm:$0xff]  ;;  %v12827_v39 = vld [vmem:[#allocation49_spill] sm:$0xff] }
  0xce   : > { %12811 = vst [vmem:[#allocation43_spill] sm:$0xff] %v5499_v59  ;;  %12815 = vst [vmem:[#allocation44_spill] sm:$0xff] %v5504_v53  ;;  %v5509_v31 = vmax.f32 %v12818_v46, %v3161_v3  ;;  %v12822_v14 = vmax.f32 %v12820_v36, %v12821_v16  ;;  %v12826_v12 = vmax.f32 %v12824_v7, %v12825_v22  ;;  %v12828_v3 = vld [vmem:[#allocation57_spill] sm:$0xff]  ;;  %v12831_v16 = vld [vmem:[#allocation54_spill] sm:$0xff] }
  0xcf   : > { %v12829_v46 = vmax.f32 %v12827_v39, %v12828_v3  ;;  %v12835_v38 = vld [vmem:[#allocation55_spill] sm:$0xff]  ;;  %v3187_v59 = vld [vmem:[%s4743_s4 + $0x540] sm:$0xff]  ;;  %v12839_v3 = vld [vmem:[#allocation56_spill] sm:$0xff] }
  0xd0   : > { %12819 = vst [vmem:[#allocation50_spill] sm:$0xff] %v5509_v31  ;;  %v5514_v37 = vmax.f32 %v12822_v14, %v3162_v32  ;;  %v5523_v49 = vmax.f32 %v12826_v12, %v3163_v55  ;;  %v12832_v14 = vld [vmem:[#allocation58_spill] sm:$0xff]  ;;  %v3189_v22 = vld [vmem:[%s4743_s4 + $0x550] sm:$0xff]  ;;  %v3190_v12 = vld [vmem:[%s4743_s4 + $0x558] sm:$0xff] }
  0xd1   : > { %v5528_v17 = vmax.f32 %v12829_v46, %v3164_v34  ;;  %v12833_v32 = vmax.f32 %v12831_v16, %v12832_v14  ;;  %v3188_v55 = vld [vmem:[%s4743_s4 + $0x548] sm:$0xff]  ;;  %v12840_v34 = vld [vmem:[#allocation63_spill] sm:$0xff]  ;;  %v12842_v14 = vld [vmem:[#allocation60_spill] sm:$0xff] }
  0xd2   : > { %12823 = vst [vmem:[#allocation51_spill] sm:$0xff] %v5514_v37  ;;  %v12836_v37 = vld [vmem:[#allocation59_spill] sm:$0xff]  ;;  %v12841_v46 = vmax.f32 %v12839_v3, %v12840_v34  ;;  %v12850_v7 = vld [vmem:[#allocation62_spill] sm:$0xff]  ;;  %v3191_v34 = vld [vmem:[%s4743_s4 + $0x560] sm:$0xff] }
  0xd3   : > { %12830 = vst [vmem:[#allocation52_spill] sm:$0xff] %v5528_v17  ;;  %v5533_v36 = vmax.f32 %v12833_v32, %v3165_v45  ;;  %v12837_v31 = vmax.f32 %v12835_v38, %v12836_v37  ;;  %v12843_v45 = vld [vmem:[#allocation64_spill] sm:$0xff]  ;;  %v12846_v37 = vld [vmem:[#allocation61_spill] sm:$0xff]  ;;  %v12854_v3 = vld [vmem:[#allocation67_spill] sm:$0xff] }
  0xd4   : > { %v5547_v39 = vmax.f32 %v12841_v46, %v3167_v29  ;;  %v12844_v32 = vmax.f32 %v12842_v14, %v12843_v45  ;;  %v3192_v29 = vld [vmem:[%s4743_s4 + $0x568] sm:$0xff]  ;;  %v3193_v46 = vld [vmem:[%s4743_s4 + $0x570] sm:$0xff]  ;;  %v12857_v14 = vld [vmem:[#allocation68_spill] sm:$0xff] }
  0xd5   : > { %12834 = vst [vmem:[#allocation57_spill] sm:$0xff] %v5533_v36  ;;  %v5538_v53 = vmax.f32 %v12837_v31, %v3166_v54  ;;  %v12847_v54 = vld [vmem:[#allocation65_spill] sm:$0xff]  ;;  %v12855_v45 = vld [vmem:[#allocation70_spill] sm:$0xff] }
  0xd6   : > { %v5552_v16 = vmax.f32 %v12844_v32, %v3168_v58  ;;  %v12848_v31 = vmax.f32 %v12846_v37, %v12847_v54  ;;  %v12856_v58 = vmax.f32 %v12854_v3, %v12855_v45  ;;  %v12858_v54 = vld [vmem:[#allocation71_spill] sm:$0xff]  ;;  %v12861_v37 = vld [vmem:[#allocation72_spill] sm:$0xff]  ;;  %v12869_v3 = vld [vmem:[#allocation74_spill] sm:$0xff] }
  0xd7   : > { %12838 = vst [vmem:[#allocation58_spill] sm:$0xff] %v5538_v53  ;;  %v12851_v53 = vld [vmem:[#allocation69_spill] sm:$0xff]  ;;  %v3194_v45 = vld [vmem:[%s4743_s4 + $0x578] sm:$0xff] }
  0xd8   : > { %12845 = vst [vmem:[#allocation59_spill] sm:$0xff] %v5552_v16  ;;  %v5557_v38 = vmax.f32 %v12848_v31, %v3169_v40  ;;  %v12852_v36 = vmax.f32 %v12850_v7, %v12851_v53  ;;  %v5570_v32 = vmax.f32 %v12856_v58, %v3171_v63  ;;  %v12859_v40 = vmax.f32 %v12857_v14, %v12858_v54  ;;  %v12862_v53 = vld [vmem:[#allocation76_spill] sm:$0xff]  ;;  %v3195_v63 = vld [vmem:[%s4743_s4 + $0x580] sm:$0xff]  ;;  %v3196_v58 = vld [vmem:[%s4743_s4 + $0x588] sm:$0xff] }
  0xd9   : > { %v12863_v7 = vmax.f32 %v12861_v37, %v12862_v53  ;;  %v12870_v54 = vld [vmem:[#allocation78_spill] sm:$0xff]  ;;  %v12873_v14 = vld [vmem:[#allocation75_spill] sm:$0xff]  ;;  %v12876_v37 = vld [vmem:[#allocation81_spill] sm:$0xff] }
  0xda   : > { %12849 = vst [vmem:[#allocation63_spill] sm:$0xff] %v5557_v38  ;;  %v5562_v17 = vmax.f32 %v12852_v36, %v3170_v27  ;;  %v5575_v31 = vmax.f32 %v12859_v40, %v3172_v30  ;;  %v12865_v36 = vld [vmem:[#allocation73_spill] sm:$0xff]  ;;  %v12871_v30 = vmax.f32 %v12869_v3, %v12870_v54  ;;  %v12874_v53 = vld [vmem:[#allocation79_spill] sm:$0xff] }
  0xdb   : > { %v5580_v27 = vmax.f32 %v12863_v7, %v3173_v57  ;;  %v12875_v57 = vmax.f32 %v12873_v14, %v12874_v53  ;;  %v3197_v54 = vld [vmem:[%s4743_s4 + $0x590] sm:$0xff]  ;;  %v12888_v14 = vld [vmem:[#allocation90_spill] sm:$0xff] }
  0xdc   : > { %12853 = vst [vmem:[#allocation64_spill] sm:$0xff] %v5562_v17  ;;  %12860 = vst [vmem:[#allocation65_spill] sm:$0xff] %v5575_v31  ;;  %v12866_v17 = vld [vmem:[#allocation77_spill] sm:$0xff]  ;;  %v5593_v40 = vmax.f32 %v12871_v30, %v3175_v6  ;;  %v3198_v6 = vld [vmem:[%s4743_s4 + $0x598] sm:$0xff] }
  0xdd   : > { %12864 = vst [vmem:[#allocation69_spill] sm:$0xff] %v5580_v27  ;;  %v12867_v38 = vmax.f32 %v12865_v36, %v12866_v17  ;;  %v5598_v7 = vmax.f32 %v12875_v57, %v3176_v60  ;;  %v12877_v17 = vld [vmem:[#allocation84_spill] sm:$0xff]  ;;  %v3199_v30 = vld [vmem:[%s4743_s4 + $0x5a0] sm:$0xff]  ;;  %v12884_v3 = vld [vmem:[#allocation83_spill] sm:$0xff] }
  0xde   : > { %12872 = vst [vmem:[#allocation71_spill] sm:$0xff] %v5593_v40  ;;  %v12878_v36 = vmax.f32 %v12876_v37, %v12877_v17  ;;  %v12885_v40 = vld [vmem:[#allocation86_spill] sm:$0xff]  ;;  %v12887_v57 = vld [vmem:[#allocation87_spill] sm:$0xff] }
  0xdf   : > { %v5585_v16 = vmax.f32 %v12867_v38, %v3174_v0  ;;  %v12880_v38 = vld [vmem:[#allocation82_spill] sm:$0xff]  ;;  %v12886_v53 = vmax.f32 %v12884_v3, %v12885_v40  ;;  %v12889_v17 = vmax.f32 %v12887_v57, %v12888_v14  ;;  %v12891_v37 = vld [vmem:[#allocation91_spill] sm:$0xff] }
  0xe0   : > { %v5603_v0 = vmax.f32 %v12878_v36, %v3177_v13  ;;  %v12890_v36 = vld [vmem:[#allocation88_spill] sm:$0xff]  ;;  %v3201_v40 = vld [vmem:[%s4743_s4 + $0x5b0] sm:$0xff] }
  0xe1   : > { %12868 = vst [vmem:[#allocation70_spill] sm:$0xff] %v5585_v16  ;;  %v12881_v16 = vld [vmem:[#allocation85_spill] sm:$0xff]  ;;  %v5616_v60 = vmax.f32 %v12886_v53, %v3179_v15  ;;  %v5621_v13 = vmax.f32 %v12889_v17, %v3180_v5  ;;  %v3200_v15 = vld [vmem:[%s4743_s4 + $0x5a8] sm:$0xff]  ;;  %v3202_v53 = vld [vmem:[%s4743_s4 + $0x5b8] sm:$0xff]  ;;  %v12897_v5 = vmax.f32 %v5130_v35, %v5142_v1 }
  0xe2   : > { %12879 = vst [vmem:[#allocation76_spill] sm:$0xff] %v5603_v0  ;;  %v12882_v27 = vmax.f32 %v12880_v38, %v12881_v16  ;;  %v12892_v16 = vmax.f32 %v12890_v36, %v12891_v37  ;;  %v12894_v38 = vld [vmem:[#allocation92_spill] sm:$0xff]  ;;  %v12898_v17 = vld [vmem:[#allocation95_spill] sm:$0xff]  ;;  %v12899_v37 = vld [vmem:[#allocation98_spill] sm:$0xff] }
  0xe3   : > { %v5639_v14 = vmax.f32 %v12897_v5, %v3183_v18  ;;  %v12900_v36 = vmax.f32 %v12898_v17, %v12899_v37  ;;  %v12902_v57 = vld [vmem:[#allocation99_spill] sm:$0xff]  ;;  %v3203_v1 = vld [vmem:[%s4743_s4 + $0x5c0] sm:$0xff]  ;;  %v3204_v18 = vld [vmem:[%s4743_s4 + $0x5c8] sm:$0xff]  ;;  %v12907_v5 = vmax.f32 %v5161_v61, %v5173_v11 }
  0xe4   : > { %v5608_v31 = vmax.f32 %v12882_v27, %v3178_v9  ;;  %v5626_v9 = vmax.f32 %v12892_v16, %v3181_v23  ;;  %v12893_v27 = vld [vmem:[#allocation89_spill] sm:$0xff]  ;;  %v12901_v16 = vld [vmem:[#allocation96_spill] sm:$0xff]  ;;  %v3212_v61 = vld [vmem:[%s4743_s4 + $0x608] sm:$0xff] }
  0xe5   : > { %v5644_v23 = vmax.f32 %v12900_v36, %v3184_v20  ;;  %v5661_v20 = vmax.f32 %v12907_v5, %v3187_v59  ;;  %v12908_v36 = vld [vmem:[#allocation105_spill] sm:$0xff]  ;;  %v3205_v59 = vld [vmem:[%s4743_s4 + $0x5d0] sm:$0xff]  ;;  %v3206_v5 = vld [vmem:[%s4743_s4 + $0x5d8] sm:$0xff] }
  0xe6   : > { %12883 = vst [vmem:[#allocation77_spill] sm:$0xff] %v5608_v31  ;;  %v12895_v31 = vmax.f32 %v12893_v27, %v12894_v38  ;;  %v12903_v38 = vmax.f32 %v12901_v16, %v12902_v57  ;;  %v12905_v27 = vld [vmem:[#allocation100_spill] sm:$0xff]  ;;  %v12909_v57 = vmax.f32 %v5164_v43, %v12908_v36  ;;  %v3211_v11 = vld [vmem:[%s4743_s4 + $0x600] sm:$0xff]  ;;  %v3229_v16 = vld [vmem:[%s4743_s4 + $0x690] sm:$0xff] }
  0xe7   : > { %v12980_v17 = vld [vmem:[#allocation32_spill] sm:$0xff] }
  0xe8   : > { %v5631_v0 = vmax.f32 %v12895_v31, %v3182_v10  ;;  %v5649_v10 = vmax.f32 %v12903_v38, %v3185_v50  ;;  %v12904_v31 = vld [vmem:[#allocation97_spill] sm:$0xff]  ;;  %v5666_v37 = vmax.f32 %v12909_v57, %v3188_v55  ;;  %v12910_v50 = vld [vmem:[#allocation106_spill] sm:$0xff]  ;;  %v12913_v55 = vmax.f32 %v5195_v2, %v5207_v51  ;;  %v3221_v2 = vld [vmem:[%s4743_s4 + $0x650] sm:$0xff] }
  0xe9   : > { %v12906_v3 = vmax.f32 %v12904_v31, %v12905_v27  ;;  %v12911_v38 = vmax.f32 %v5167_v24, %v12910_v50  ;;  %v12915_v50 = vld [vmem:[#allocation110_spill] sm:$0xff]  ;;  %v3207_v51 = vld [vmem:[%s4743_s4 + $0x5e0] sm:$0xff] }
  0xea   : > { %12896 = vst [vmem:[#allocation78_spill] sm:$0xff] %v5631_v0  ;;  %v5684_v36 = vmax.f32 %v12913_v55, %v3191_v34  ;;  %v3208_v34 = vld [vmem:[%s4743_s4 + $0x5e8] sm:$0xff]  ;;  %v12921_v55 = vmax.f32 %v5227_v41, %v5239_v44  ;;  %v3213_v44 = vld [vmem:[%s4743_s4 + $0x610] sm:$0xff]  ;;  %v12957_v41 = vld [vmem:[#allocation144_spill] sm:$0xff] }
  0xeb   : > { %v5654_v0 = vmax.f32 %v12906_v3, %v3186_v48  ;;  %v5671_v27 = vmax.f32 %v12911_v38, %v3189_v22  ;;  %v12912_v48 = vmax.f32 %v5170_v8, %v5182_v52  ;;  %v12914_v22 = vmax.f32 %v5198_v42, %v5210_v4  ;;  %v12916_v52 = vld [vmem:[#allocation112_spill] sm:$0xff]  ;;  %v12919_v8 = vld [vmem:[#allocation113_spill] sm:$0xff] }
  0xec   : > { %v12917_v38 = vmax.f32 %v12915_v50, %v12916_v52  ;;  %v5707_v4 = vmax.f32 %v12921_v55, %v3195_v63  ;;  %v12924_v52 = vld [vmem:[#allocation118_spill] sm:$0xff]  ;;  %v3209_v63 = vld [vmem:[%s4743_s4 + $0x5f0] sm:$0xff]  ;;  %v3210_v55 = vld [vmem:[%s4743_s4 + $0x5f8] sm:$0xff] }
  0xed   : > { %v5676_v3 = vmax.f32 %v12912_v48, %v3190_v12  ;;  %v5689_v57 = vmax.f32 %v12914_v22, %v3192_v29  ;;  %v12918_v48 = vld [vmem:[#allocation111_spill] sm:$0xff]  ;;  %v12922_v29 = vmax.f32 %v5230_v19, %v5242_v62  ;;  %v12923_v22 = vld [vmem:[#allocation116_spill] sm:$0xff]  ;;  %v12929_v62 = vmax.f32 %v5262_v25, %v5274_v21  ;;  %v12936_v25 = vld [vmem:[#allocation126_spill] sm:$0xff] }
  0xee   : > { %v5694_v12 = vmax.f32 %v12917_v38, %v3193_v46  ;;  %v12920_v24 = vmax.f32 %v12918_v48, %v12919_v8  ;;  %v12925_v8 = vmax.f32 %v12923_v22, %v12924_v52  ;;  %v12927_v38 = vld [vmem:[#allocation119_spill] sm:$0xff]  ;;  %v12935_v21 = vld [vmem:[#allocation124_spill] sm:$0xff]  ;;  %v12971_v31 = vld [vmem:[#allocation145_spill] sm:$0xff] }
  0xef   : > { %v5712_v46 = vmax.f32 %v12922_v29, %v3196_v58  ;;  %v5730_v58 = vmax.f32 %v12929_v62, %v3199_v30  ;;  %v12930_v29 = vmax.f32 %v5265_v26, %v5277_v56  ;;  %v12931_v52 = vld [vmem:[#allocation123_spill] sm:$0xff]  ;;  %v12937_v30 = vmax.f32 %v12935_v21, %v12936_v25  ;;  %v12940_v26 = vld [vmem:[#allocation132_spill] sm:$0xff] }
  0xf0   : > { %v5699_v43 = vmax.f32 %v12920_v24, %v3194_v45  ;;  %v5717_v24 = vmax.f32 %v12925_v8, %v3197_v54  ;;  %v12926_v45 = vld [vmem:[#allocation117_spill] sm:$0xff]  ;;  %v12938_v56 = vmax.f32 %v5297_v28, %v5309_v47  ;;  %v12954_v28 = vld [vmem:[#allocation139_spill] sm:$0xff]  ;;  %v3218_v19 = vld [vmem:[%s4743_s4 + $0x638] sm:$0xff] }
  0xf1   : > { %v12928_v48 = vmax.f32 %v12926_v45, %v12927_v38  ;;  %v5735_v54 = vmax.f32 %v12930_v29, %v3200_v15  ;;  %v12932_v8 = vld [vmem:[#allocation125_spill] sm:$0xff]  ;;  %v5744_v45 = vmax.f32 %v5427_v33, %v3211_v11  ;;  %v5749_v62 = vmax.f32 %v12937_v30, %v3202_v53  ;;  %v3216_v33 = vld [vmem:[%s4743_s4 + $0x628] sm:$0xff]  ;;  %v3217_v11 = vld [vmem:[%s4743_s4 + $0x630] sm:$0xff] }
  0xf2   : > { %v12933_v38 = vmax.f32 %v12931_v52, %v12932_v8  ;;  %v5754_v15 = vmax.f32 %v12938_v56, %v3203_v1  ;;  %v12939_v29 = vld [vmem:[#allocation129_spill] sm:$0xff]  ;;  %v12943_v52 = vld [vmem:[#allocation143_spill] sm:$0xff]  ;;  %v12945_v53 = vld [vmem:[#allocation130_spill] sm:$0xff]  ;;  %v5827_v35 = vmax.f32 %v12980_v17, %v3218_v19 }
  0xf3   : > { %v5722_v50 = vmax.f32 %v12928_v48, %v3198_v6  ;;  %v3214_v48 = vld [vmem:[%s4743_s4 + $0x618] sm:$0xff]  ;;  %12934 = vst [vmem:[#allocation79_spill] sm:$0xff] %v5744_v45  ;;  %v12941_v8 = vmax.f32 %v12939_v29, %v12940_v26  ;;  %v5765_v25 = vmax.f32 %v12943_v52, %v3212_v61  ;;  %v12946_v30 = vld [vmem:[#allocation133_spill] sm:$0xff]  ;;  %v12949_v56 = vld [vmem:[#allocation131_spill] sm:$0xff] }
  0xf4   : > { %v5740_v6 = vmax.f32 %v12933_v38, %v3201_v40  ;;  %v3215_v38 = vld [vmem:[%s4743_s4 + $0x620] sm:$0xff]  ;;  %v12947_v47 = vmax.f32 %v12945_v53, %v12946_v30  ;;  %v12950_v26 = vld [vmem:[#allocation134_spill] sm:$0xff]  ;;  %v5786_v30 = vmax.f32 %v12957_v41, %v3213_v44  ;;  %v3222_v41 = vld [vmem:[%s4743_s4 + $0x658] sm:$0xff]  ;;  %12981 = vst [vmem:[#allocation118_spill] sm:$0xff] %v5827_v35 }
  0xf5   : > { %v5759_v40 = vmax.f32 %v12941_v8, %v3204_v18  ;;  %12944 = vst [vmem:[#allocation85_spill] sm:$0xff] %v5765_v25  ;;  %v12951_v29 = vmax.f32 %v12949_v56, %v12950_v26  ;;  %v12953_v8 = vld [vmem:[#allocation135_spill] sm:$0xff]  ;;  %v3219_v61 = vld [vmem:[%s4743_s4 + $0x640] sm:$0xff]  ;;  %v3220_v52 = vld [vmem:[%s4743_s4 + $0x648] sm:$0xff] }
  0xf6   : > { %v5770_v1 = vmax.f32 %v12947_v47, %v3205_v59  ;;  %v12955_v21 = vmax.f32 %v12953_v8, %v12954_v28  ;;  %12958 = vst [vmem:[#allocation92_spill] sm:$0xff] %v5786_v30  ;;  %v12959_v59 = vld [vmem:[#allocation136_spill] sm:$0xff]  ;;  %v3223_v44 = vld [vmem:[%s4743_s4 + $0x660] sm:$0xff]  ;;  %v12989_v19 = vld [vmem:[#allocation42_spill] sm:$0xff] }
  0xf7   : > { %12942 = vst [vmem:[#allocation84_spill] sm:$0xff] %v5759_v40  ;;  %v5775_v18 = vmax.f32 %v12951_v29, %v3206_v5  ;;  %v12960_v47 = vld [vmem:[#allocation140_spill] sm:$0xff]  ;;  %v12963_v5 = vld [vmem:[#allocation137_spill] sm:$0xff]  ;;  %v5844_v17 = vmax.f32 %v12989_v19, %v3222_v41  ;;  %v12998_v41 = vld [vmem:[#allocation51_spill] sm:$0xff] }
  0xf8   : > { %12948 = vst [vmem:[#allocation86_spill] sm:$0xff] %v5770_v1  ;;  %v5780_v22 = vmax.f32 %v12955_v21, %v3207_v51  ;;  %v12961_v53 = vmax.f32 %v12959_v59, %v12960_v47  ;;  %v12964_v29 = vld [vmem:[#allocation141_spill] sm:$0xff]  ;;  %v12967_v51 = vld [vmem:[#allocation138_spill] sm:$0xff]  ;;  %v5807_v47 = vmax.f32 %v12971_v31, %v3214_v48  ;;  %v3234_v25 = vld [vmem:[%s4743_s4 + $0x6b8] sm:$0xff] }
  0xf9   : > { %12952 = vst [vmem:[#allocation90_spill] sm:$0xff] %v5775_v18  ;;  %v12965_v56 = vmax.f32 %v12963_v5, %v12964_v29  ;;  %v12968_v21 = vld [vmem:[#allocation142_spill] sm:$0xff]  ;;  %v3226_v29 = vld [vmem:[%s4743_s4 + $0x678] sm:$0xff]  ;;  %v12973_v5 = vld [vmem:[#allocation27_spill] sm:$0xff] }
  0xfa   : > { %12956 = vst [vmem:[#allocation91_spill] sm:$0xff] %v5780_v22  ;;  %v5791_v26 = vmax.f32 %v12961_v53, %v3208_v34  ;;  %v12969_v8 = vmax.f32 %v12967_v51, %v12968_v21  ;;  %12972 = vst [vmem:[#allocation105_spill] sm:$0xff] %v5807_v47  ;;  %v3224_v34 = vld [vmem:[%s4743_s4 + $0x668] sm:$0xff]  ;;  %v3225_v53 = vld [vmem:[%s4743_s4 + $0x670] sm:$0xff]  ;;  %v5861_v19 = vmax.f32 %v12998_v41, %v3226_v29 }
  0xfb   : > { %v5796_v28 = vmax.f32 %v12965_v56, %v3209_v63  ;;  %v5813_v63 = vmax.f32 %v12973_v5, %v3215_v38  ;;  %v12975_v56 = vld [vmem:[#allocation30_spill] sm:$0xff]  ;;  %v3227_v31 = vld [vmem:[%s4743_s4 + $0x680] sm:$0xff]  ;;  %v12982_v38 = vld [vmem:[#allocation35_spill] sm:$0xff]  ;;  %12990 = vst [vmem:[#allocation132_spill] sm:$0xff] %v5844_v17 }
  0xfc   : > { %12962 = vst [vmem:[#allocation98_spill] sm:$0xff] %v5791_v26  ;;  %v5801_v42 = vmax.f32 %v12969_v8, %v3210_v55  ;;  %v5816_v59 = vmax.f32 %v12975_v56, %v3216_v33  ;;  %v12977_v55 = vld [vmem:[#allocation31_spill] sm:$0xff]  ;;  %v3228_v48 = vld [vmem:[%s4743_s4 + $0x688] sm:$0xff]  ;;  %v5830_v5 = vmax.f32 %v12982_v38, %v3219_v61  ;;  %v12984_v33 = vld [vmem:[#allocation36_spill] sm:$0xff]  ;;  %v5869_v18 = vmax.f32 %v5523_v49, %v3227_v31 }
  0xfd   : > { %12966 = vst [vmem:[#allocation99_spill] sm:$0xff] %v5796_v28  ;;  %12974 = vst [vmem:[#allocation106_spill] sm:$0xff] %v5813_v63  ;;  %v5819_v8 = vmax.f32 %v12977_v55, %v3217_v11  ;;  %v5833_v56 = vmax.f32 %v12984_v33, %v3220_v52  ;;  %v3230_v51 = vld [vmem:[%s4743_s4 + $0x698] sm:$0xff]  ;;  %v3232_v28 = vld [vmem:[%s4743_s4 + $0x6a8] sm:$0xff] }
  0xfe   : > { %12970 = vst [vmem:[#allocation100_spill] sm:$0xff] %v5801_v42  ;;  %12976 = vst [vmem:[#allocation112_spill] sm:$0xff] %v5816_v59  ;;  %v3231_v42 = vld [vmem:[%s4743_s4 + $0x6a0] sm:$0xff]  ;;  %v12991_v61 = vld [vmem:[#allocation43_spill] sm:$0xff] }
  0xff   : > { %12978 = vst [vmem:[#allocation113_spill] sm:$0xff] %v5819_v8  ;;  %12983 = vst [vmem:[#allocation119_spill] sm:$0xff] %v5830_v5  ;;  %v12987_v26 = vld [vmem:[#allocation37_spill] sm:$0xff]  ;;  %v5847_v38 = vmax.f32 %v12991_v61, %v3223_v44  ;;  %v3233_v55 = vld [vmem:[%s4743_s4 + $0x6b0] sm:$0xff]  ;;  %v5886_v49 = vmax.f32 %v5547_v39, %v3231_v42 }
 0x100   : > { %12985 = vst [vmem:[#allocation125_spill] sm:$0xff] %v5833_v56  ;;  %v5841_v45 = vmax.f32 %v12987_v26, %v3221_v2  ;;  %v3235_v11 = vld [vmem:[%s4743_s4 + $0x6c0] sm:$0xff]  ;;  %v12994_v21 = vld [vmem:[#allocation44_spill] sm:$0xff]  ;;  %v12996_v2 = vld [vmem:[#allocation50_spill] sm:$0xff] }
 0x101   : > { %12992 = vst [vmem:[#allocation143_spill] sm:$0xff] %v5847_v38  ;;  %v5855_v22 = vmax.f32 %v12994_v21, %v3224_v34  ;;  %v5858_v26 = vmax.f32 %v12996_v2, %v3225_v53  ;;  %12999 = vst [vmem:[#allocation139_spill] sm:$0xff] %v5861_v19  ;;  %v3236_v33 = vld [vmem:[%s4743_s4 + $0x6c8] sm:$0xff]  ;;  %v3237_v30 = vld [vmem:[%s4743_s4 + $0x6d0] sm:$0xff]  ;;  %v5903_v42 = vmax.f32 %v5570_v32, %v3235_v11 }
 0x102   : > { %12988 = vst [vmem:[#allocation126_spill] sm:$0xff] %v5841_v45  ;;  %v3238_v52 = vld [vmem:[%s4743_s4 + $0x6d8] sm:$0xff]  ;;  %13001 = vst [vmem:[#allocation144_spill] sm:$0xff] %v5869_v18  ;;  %v13004_v53 = vld [vmem:[#allocation57_spill] sm:$0xff] }
 0x103   : > { %12995 = vst [vmem:[#allocation133_spill] sm:$0xff] %v5855_v22  ;;  %12997 = vst [vmem:[#allocation134_spill] sm:$0xff] %v5858_v26  ;;  %v13002_v34 = vld [vmem:[#allocation52_spill] sm:$0xff]  ;;  %v5875_v2 = vmax.f32 %v13004_v53, %v3229_v16  ;;  %v3239_v61 = vld [vmem:[%s4743_s4 + $0x6e0] sm:$0xff] }
 0x104   : > { %v5872_v21 = vmax.f32 %v13002_v34, %v3228_v48  ;;  %v3240_v47 = vld [vmem:[%s4743_s4 + $0x6e8] sm:$0xff]  ;;  %v3241_v44 = vld [vmem:[%s4743_s4 + $0x6f0] sm:$0xff]  ;;  %13009 = vst [vmem:[#allocation145_spill] sm:$0xff] %v5886_v49  ;;  %v3242_v53 = vld [vmem:[%s4743_s4 + $0x6f8] sm:$0xff] }
 0x105   : > { %13005 = vst [vmem:[#allocation141_spill] sm:$0xff] %v5875_v2  ;;  %v13007_v1 = vld [vmem:[#allocation58_spill] sm:$0xff]  ;;  %v13010_v31 = vld [vmem:[#allocation59_spill] sm:$0xff]  ;;  %v3243_v41 = vld [vmem:[%s4743_s4 + $0x700] sm:$0xff] }
 0x106   : > { %13003 = vst [vmem:[#allocation140_spill] sm:$0xff] %v5872_v21  ;;  %v5883_v40 = vmax.f32 %v13007_v1, %v3230_v51  ;;  %v5889_v48 = vmax.f32 %v13010_v31, %v3232_v28  ;;  %v3244_v63 = vld [vmem:[%s4743_s4 + $0x708] sm:$0xff]  ;;  %v13013_v29 = vld [vmem:[#allocation63_spill] sm:$0xff]  ;;  %v13015_v1 = vld [vmem:[#allocation64_spill] sm:$0xff] }
 0x107   : > { %v5897_v2 = vmax.f32 %v13013_v29, %v3233_v55  ;;  %v5900_v51 = vmax.f32 %v13015_v1, %v3234_v25  ;;  %13017 = vst [vmem:[#allocation32_spill] sm:$0xff] %v5903_v42  ;;  %v3245_v31 = vld [vmem:[%s4743_s4 + $0x710] sm:$0xff]  ;;  %v3246_v34 = vld [vmem:[%s4743_s4 + $0x718] sm:$0xff]  ;;  %v3247_v59 = vld [vmem:[%s4743_s4 + $0x720] sm:$0xff] }
 0x108   : > { %13008 = vst [vmem:[#allocation142_spill] sm:$0xff] %v5883_v40  ;;  %13011 = vst [vmem:[#allocation27_spill] sm:$0xff] %v5889_v48  ;;  %v13019_v16 = vld [vmem:[#allocation65_spill] sm:$0xff]  ;;  %v13023_v25 = vld [vmem:[#allocation70_spill] sm:$0xff]  ;;  %v5953_v5 = vmax.f32 %v5626_v9, %v3245_v31 }
 0x109   : > { %13014 = vst [vmem:[#allocation30_spill] sm:$0xff] %v5897_v2  ;;  %13016 = vst [vmem:[#allocation31_spill] sm:$0xff] %v5900_v51  ;;  %v5911_v48 = vmax.f32 %v13019_v16, %v3236_v33  ;;  %v13021_v55 = vld [vmem:[#allocation69_spill] sm:$0xff]  ;;  %v5917_v1 = vmax.f32 %v13023_v25, %v3238_v52  ;;  %v3248_v28 = vld [vmem:[%s4743_s4 + $0x728] sm:$0xff]  ;;  %v5928_v33 = vmax.f32 %v5598_v7, %v3240_v47 }
 0x10a   : > { %v5914_v29 = vmax.f32 %v13021_v55, %v3237_v30  ;;  %v3249_v8 = vld [vmem:[%s4743_s4 + $0x730] sm:$0xff]  ;;  %v3250_v39 = vld [vmem:[%s4743_s4 + $0x738] sm:$0xff]  ;;  %v13031_v52 = vld [vmem:[#allocation21_spill] sm:$0xff]  ;;  %v5945_v7 = vmax.f32 %v5621_v13, %v3244_v63  ;;  %13037 = vst [vmem:[#allocation57_spill] sm:$0xff] %v5953_v5  ;;  %v5967_v47 = vmax.f32 %v5644_v23, %v3248_v28 }
 0x10b   : > { %13020 = vst [vmem:[#allocation35_spill] sm:$0xff] %v5911_v48  ;;  %13024 = vst [vmem:[#allocation37_spill] sm:$0xff] %v5917_v1  ;;  %v13026_v42 = vld [vmem:[#allocation71_spill] sm:$0xff]  ;;  %v13029_v30 = vld [vmem:[#allocation76_spill] sm:$0xff]  ;;  %v5970_v9 = vmax.f32 %v5649_v10, %v3249_v8 }
 0x10c   : > { %13022 = vst [vmem:[#allocation36_spill] sm:$0xff] %v5914_v29  ;;  %v5925_v51 = vmax.f32 %v13026_v42, %v3239_v61  ;;  %13028 = vst [vmem:[#allocation43_spill] sm:$0xff] %v5928_v33  ;;  %v5931_v16 = vmax.f32 %v13029_v30, %v3241_v44  ;;  %v3251_v25 = vld [vmem:[%s4743_s4 + $0x740] sm:$0xff]  ;;  %v3252_v11 = vld [vmem:[%s4743_s4 + $0x748] sm:$0xff]  ;;  %v5942_v61 = vmax.f32 %v5616_v60, %v3243_v41 }
 0x10d   : > { %v3253_v35 = vld [vmem:[%s4743_s4 + $0x750] sm:$0xff]  ;;  %v13032_v32 = vld [vmem:[#allocation77_spill] sm:$0xff]  ;;  %13035 = vst [vmem:[#allocation52_spill] sm:$0xff] %v5945_v7  ;;  %v3254_v42 = vld [vmem:[%s4743_s4 + $0x758] sm:$0xff]  ;;  %v5959_v60 = vmax.f32 %v5639_v14, %v3247_v59  ;;  %v5981_v45 = vmax.f32 %v5661_v20, %v3251_v25  ;;  %v5984_v23 = vmax.f32 %v5666_v37, %v3252_v11 }
 0x10e   : > { %13027 = vst [vmem:[#allocation42_spill] sm:$0xff] %v5925_v51  ;;  %13030 = vst [vmem:[#allocation44_spill] sm:$0xff] %v5931_v16  ;;  %v5939_v1 = vmax.f32 %v13032_v32, %v3242_v53  ;;  %v3255_v30 = vld [vmem:[%s4743_s4 + $0x760] sm:$0xff]  ;;  %v3256_v55 = vld [vmem:[%s4743_s4 + $0x768] sm:$0xff]  ;;  %v5987_v10 = vmax.f32 %v5671_v27, %v3253_v35  ;;  %v5995_v17 = vmax.f32 %v5676_v3, %v3254_v42 }
 0x10f   : > { %13034 = vst [vmem:[#allocation51_spill] sm:$0xff] %v5942_v61  ;;  %v13038_v53 = vld [vmem:[#allocation78_spill] sm:$0xff]  ;;  %13040 = vst [vmem:[#allocation59_spill] sm:$0xff] %v5959_v60  ;;  %v13041_v13 = vld [vmem:[#allocation23_spill] sm:$0xff]  ;;  %v5998_v20 = vmax.f32 %v5684_v36, %v3255_v30  ;;  %v6001_v37 = vmax.f32 %v5689_v57, %v3256_v55 }
 0x110   : > { %13033 = vst [vmem:[#allocation50_spill] sm:$0xff] %v5939_v1  ;;  %v5956_v32 = vmax.f32 %v13038_v53, %v3246_v34  ;;  %v3257_v41 = vld [vmem:[%s4743_s4 + $0x770] sm:$0xff]  ;;  %v3258_v44 = vld [vmem:[%s4743_s4 + $0x778] sm:$0xff]  ;;  %v3259_v56 = vld [vmem:[%s4743_s4 + $0x780] sm:$0xff]  ;;  %v5973_v34 = vmax.f32 %v5654_v0, %v3250_v39 }
 0x111   : > { %13042 = vst [vmem:[#allocation63_spill] sm:$0xff] %v5967_v47  ;;  %13043 = vst [vmem:[#allocation64_spill] sm:$0xff] %v5970_v9  ;;  %v13045_v14 = vld [vmem:[#allocation25_spill] sm:$0xff]  ;;  %v3260_v31 = vld [vmem:[%s4743_s4 + $0x788] sm:$0xff]  ;;  %v6012_v3 = vmax.f32 %v5699_v43, %v3258_v44  ;;  %v6015_v36 = vmax.f32 %v5707_v4, %v3259_v56 }
 0x112   : > { %13039 = vst [vmem:[#allocation58_spill] sm:$0xff] %v5956_v32  ;;  %13044 = vst [vmem:[#allocation65_spill] sm:$0xff] %v5973_v34  ;;  %v3261_v53 = vld [vmem:[%s4743_s4 + $0x790] sm:$0xff]  ;;  %v3262_v63 = vld [vmem:[%s4743_s4 + $0x798] sm:$0xff] }
 0x113   : > { %13046 = vst [vmem:[#allocation69_spill] sm:$0xff] %v5981_v45  ;;  %13047 = vst [vmem:[#allocation70_spill] sm:$0xff] %v5984_v23  ;;  %v13049_v0 = vld [vmem:[#allocation26_spill] sm:$0xff]  ;;  %v3263_v39 = vld [vmem:[%s4743_s4 + $0x7a0] sm:$0xff] }
 0x114   : > { %13048 = vst [vmem:[#allocation71_spill] sm:$0xff] %v5987_v10  ;;  %v3264_v28 = vld [vmem:[%s4743_s4 + $0x7a8] sm:$0xff]  ;;  %v3265_v59 = vld [vmem:[%s4743_s4 + $0x7b0] sm:$0xff]  ;;  %13050 = vst [vmem:[#allocation76_spill] sm:$0xff] %v5995_v17  ;;  %v6009_v10 = vmax.f32 %v5694_v12, %v3257_v41  ;;  %v6029_v12 = vmax.f32 %v5722_v50, %v3262_v63  ;;  %v6036_v41 = vmax.f32 %v5730_v58, %v3263_v39 }
 0x115   : > { %13051 = vst [vmem:[#allocation21_spill] sm:$0xff] %v5998_v20  ;;  %13052 = vst [vmem:[#allocation77_spill] sm:$0xff] %v6001_v37  ;;  %v13053_v35 = vld [vmem:[#allocation29_spill] sm:$0xff]  ;;  %v3266_v11 = vld [vmem:[%s4743_s4 + $0x7b8] sm:$0xff]  ;;  %v6023_v37 = vmax.f32 %v5712_v46, %v3260_v31  ;;  %v6026_v20 = vmax.f32 %v5717_v24, %v3261_v53  ;;  %v6039_v55 = vmax.f32 %v5735_v54, %v3264_v28 }
 0x116   : > { %v3267_v25 = vld [vmem:[%s4743_s4 + $0x7c0] sm:$0xff]  ;;  %v3268_v8 = vld [vmem:[%s4743_s4 + $0x7c8] sm:$0xff]  ;;  %13054 = vst [vmem:[#allocation78_spill] sm:$0xff] %v6009_v10  ;;  %13055 = vst [vmem:[#allocation23_spill] sm:$0xff] %v6012_v3  ;;  %v6042_v46 = vmax.f32 %v5740_v6, %v3265_v59  ;;  %v6048_v50 = vmax.f32 %v5749_v62, %v3266_v11 }
 0x117   : > { %13056 = vst [vmem:[#allocation25_spill] sm:$0xff] %v6015_v36  ;;  %v13057_v57 = vld [vmem:[#allocation41_spill] sm:$0xff]  ;;  %v3269_v42 = vld [vmem:[%s4743_s4 + $0x7d0] sm:$0xff]  ;;  %v3270_v30 = vld [vmem:[%s4743_s4 + $0x7d8] sm:$0xff]  ;;  %v6051_v63 = vmax.f32 %v5754_v15, %v3267_v25 }
 0x118   : > { %v3271_v27 = vld [vmem:[%s4743_s4 + $0x7e0] sm:$0xff]  ;;  %13058 = vst [vmem:[#allocation26_spill] sm:$0xff] %v6023_v37  ;;  %13059 = vst [vmem:[#allocation29_spill] sm:$0xff] %v6026_v20  ;;  %v13061_v43 = vld [vmem:[#allocation47_spill] sm:$0xff] }
 0x119   : > { %13060 = vst [vmem:[#allocation41_spill] sm:$0xff] %v6029_v12  ;;  %v3272_v4 = vld [vmem:[%s4743_s4 + $0x7e8] sm:$0xff]  ;;  %v3273_v56 = vld [vmem:[%s4743_s4 + $0x7f0] sm:$0xff]  ;;  %13062 = vst [vmem:[#allocation47_spill] sm:$0xff] %v6036_v41 }
 0x11a   : > { %13063 = vst [vmem:[#allocation146_spill] sm:$0xff] %v6039_v55  ;;  %13064 = vst [vmem:[#allocation147_spill] sm:$0xff] %v6042_v46  ;;  %v13065_v24 = vld [vmem:[#allocation48_spill] sm:$0xff]  ;;  %v13070_v58 = vld [vmem:[#allocation49_spill] sm:$0xff] }
 0x11b   : > { %v3274_v53 = vld [vmem:[%s4743_s4 + $0x7f8] sm:$0xff]  ;;  %13066 = vst [vmem:[#allocation48_spill] sm:$0xff] %v6048_v50  ;;  %13067 = vst [vmem:[#allocation148_spill] sm:$0xff] %v6051_v63  ;;  %v13071_v39 = vld [vmem:[#allocation86_spill] sm:$0xff] }
 0x11c   : > { %v13068_v44 = vld [vmem:[#allocation84_spill] sm:$0xff]  ;;  %v6059_v28 = vmax.f32 %v13071_v39, %v3269_v42  ;;  %v13073_v6 = vld [vmem:[#allocation90_spill] sm:$0xff]  ;;  %v13075_v31 = vld [vmem:[#allocation91_spill] sm:$0xff] }
 0x11d   : > { %v6054_v12 = vmax.f32 %v13068_v44, %v3268_v8  ;;  %v6062_v59 = vmax.f32 %v13073_v6, %v3270_v30  ;;  %v6065_v46 = vmax.f32 %v13075_v31, %v3271_v27  ;;  %v13077_v62 = vld [vmem:[#allocation9_spill] sm:$0xff]  ;;  %v13078_v11 = vld [vmem:[#allocation79_spill] sm:$0xff]  ;;  %v13080_v25 = vld [vmem:[#allocation98_spill] sm:$0xff] }
 0x11e   : > { %13072 = vst [vmem:[#allocation49_spill] sm:$0xff] %v6059_v28  ;;  %v13079_v50 = vsub.f32 %v13077_v62, %v13078_v11  ;;  %v6071_v63 = vmax.f32 %v13080_v25, %v3272_v4  ;;  %v13082_v8 = vld [vmem:[#allocation99_spill] sm:$0xff]  ;;  %v13086_v39 = vld [vmem:[#allocation10_spill] sm:$0xff]  ;;  %v13087_v28 = vld [vmem:[#allocation85_spill] sm:$0xff] }
 0x11f   : > { %13069 = vst [vmem:[#allocation84_spill] sm:$0xff] %v6054_v12  ;;  %13074 = vst [vmem:[#allocation86_spill] sm:$0xff] %v6062_v59  ;;  %v6074_v44 = vmax.f32 %v13082_v8, %v3273_v56  ;;  %v13085_v12 = vld [vmem:[#allocation54_spill] sm:$0xff]  ;;  %v13088_v30 = vsub.f32 %v13086_v39, %v13087_v28  ;;  %v13089_v59 = vld [vmem:[#allocation100_spill] sm:$0xff] }
 0x120   : > { %13076 = vst [vmem:[#allocation90_spill] sm:$0xff] %v6065_v46  ;;  %v942_v15 = vmul.f32 1.442695, %v13079_v50  ;;  %13081 = vst [vmem:[#allocation91_spill] sm:$0xff] %v6071_v63  ;;  %v6082_v27 = vmax.f32 %v13089_v59, %v3274_v53  ;;  %v13092_v50 = vld [vmem:[#allocation56_spill] sm:$0xff]  ;;  %v13093_v25 = vld [vmem:[#allocation11_spill] sm:$0xff] }
 0x121   : > { %13083 = vst [vmem:[#allocation9_spill] sm:$0xff] %v6074_v44  ;;  %v944_v6 = vmul.f32 1.442695, %v13088_v30  ;;  %v13094_v11 = vld [vmem:[#allocation92_spill] sm:$0xff]  ;;  %v13105_v31 = vld [vmem:[#allocation67_spill] sm:$0xff]  ;;  %v13112_v53 = vld [vmem:[#allocation73_spill] sm:$0xff]  ;;  %v13163_v30 = vsub.f32 %v13065_v24, %v5869_v18 }
 0x122   : > { %13090 = vst [vmem:[#allocation98_spill] sm:$0xff] %v6082_v27  ;;  %v13095_v56 = vsub.f32 %v13093_v25, %v13094_v11  ;;  %v13097_v63 = vld [vmem:[#allocation60_spill] sm:$0xff]  ;;  %v13102_v27 = vld [vmem:[#allocation105_spill] sm:$0xff]  ;;  %3349 = vpow2.f32 %v942_v15  ;;  %v13108_v11 = vld [vmem:[#allocation106_spill] sm:$0xff] }
 0x123   : > { %v13101_v59 = vld [vmem:[#allocation12_spill] sm:$0xff]  ;;  %3351 = vpow2.f32 %v944_v6  ;;  %v13116_v4 = vld [vmem:[#allocation74_spill] sm:$0xff]  ;;  %v13117_v15 = vld [vmem:[#allocation75_spill] sm:$0xff] }
 0x124   : > { %v946_v8 = vmul.f32 1.442695, %v13095_v56  ;;  %v13103_v54 = vsub.f32 %v13101_v59, %v13102_v27  ;;  %v13106_v49 = vld [vmem:[#allocation68_spill] sm:$0xff]  ;;  %v13107_v56 = vld [vmem:[#allocation13_spill] sm:$0xff]  ;;  %v13113_v59 = vld [vmem:[#allocation14_spill] sm:$0xff] }
 0x125   : > { %v13109_v42 = vsub.f32 %v13107_v56, %v13108_v11  ;;  %v13110_v39 = vld [vmem:[#allocation72_spill] sm:$0xff]  ;;  %v13118_v56 = vld [vmem:[#allocation17_spill] sm:$0xff]  ;;  %v13122_v6 = vld [vmem:[#allocation82_spill] sm:$0xff] }
 0x126   : > { %v948_v62 = vmul.f32 1.442695, %v13103_v54  ;;  %v13114_v54 = vld [vmem:[#allocation112_spill] sm:$0xff]  ;;  %3353 = vpow2.f32 %v946_v8  ;;  %v13121_v2 = vld [vmem:[#allocation81_spill] sm:$0xff]  ;;  %v13126_v40 = vld [vmem:[#allocation83_spill] sm:$0xff] }
 0x127   : > { %v950_v44 = vmul.f32 1.442695, %v13109_v42  ;;  %v13115_v27 = vsub.f32 %v13113_v59, %v13114_v54  ;;  %v13119_v42 = vld [vmem:[#allocation113_spill] sm:$0xff]  ;;  %v13123_v59 = vld [vmem:[#allocation18_spill] sm:$0xff]  ;;  %v13127_v8 = vld [vmem:[#allocation87_spill] sm:$0xff] }
 0x128   : > { %v13120_v11 = vsub.f32 %v13118_v56, %v13119_v42  ;;  %3355 = vpow2.f32 %v948_v62  ;;  %v13130_v29 = vld [vmem:[#allocation88_spill] sm:$0xff]  ;;  %v13131_v62 = vld [vmem:[#allocation89_spill] sm:$0xff]  ;;  %v13135_v51 = vld [vmem:[#allocation94_spill] sm:$0xff] }
 0x129   : > { %v952_v28 = vmul.f32 1.442695, %v13115_v27  ;;  %v13124_v27 = vld [vmem:[#allocation118_spill] sm:$0xff]  ;;  %3357 = vpow2.f32 %v950_v44  ;;  %v13136_v44 = vld [vmem:[#allocation95_spill] sm:$0xff]  ;;  %v13139_v16 = vld [vmem:[#allocation96_spill] sm:$0xff] }
 0x12a   : > { %v954_v48 = vmul.f32 1.442695, %v13120_v11  ;;  %v13125_v54 = vsub.f32 %v13123_v59, %v13124_v27  ;;  %v13128_v11 = vld [vmem:[#allocation119_spill] sm:$0xff]  ;;  %v13132_v59 = vld [vmem:[#allocation22_spill] sm:$0xff]  ;;  %v13143_v61 = vld [vmem:[#allocation101_spill] sm:$0xff] }
 0x12b   : > { %v13129_v56 = vsub.f32 %v13031_v52, %v13128_v11  ;;  %3359 = vpow2.f32 %v952_v28  ;;  %v13137_v52 = vld [vmem:[#allocation126_spill] sm:$0xff]  ;;  %v13140_v28 = vld [vmem:[#allocation97_spill] sm:$0xff]  ;;  %v13146_v5 = vld [vmem:[#allocation71_spill] sm:$0xff] }
 0x12c   : > { %v956_v46 = vmul.f32 1.442695, %v13125_v54  ;;  %v13133_v54 = vld [vmem:[#allocation125_spill] sm:$0xff]  ;;  %3361 = vpow2.f32 %v954_v48  ;;  %v6170_v60 = vpop.eup %3349  ;;  %v13152_v25 = vld [vmem:[#allocation108_spill] sm:$0xff]  ;;  %v13180_v41 = vld [vmem:[#allocation142_spill] sm:$0xff] }
 0x12d   : > { %v958_v42 = vmul.f32 1.442695, %v13129_v56  ;;  %v13134_v27 = vsub.f32 %v13132_v59, %v13133_v54  ;;  %v13138_v56 = vsub.f32 %v13041_v13, %v13137_v52  ;;  %v13145_v13 = vsub.f32 %v13049_v0, %v5847_v38  ;;  %v13147_v52 = vld [vmem:[#allocation103_spill] sm:$0xff]  ;;  %13150 = vst [vmem:[#allocation99_spill] sm:$0xff] %v6170_v60  ;;  %v13153_v23 = vld [vmem:[#allocation77_spill] sm:$0xff]  ;;  %v6179_v38 = vpop.eup %3351  ;;  %v6328_v37 = vld [vmem:[%s4754_s26 + $0x108] sm:$0xff] }
 0x12e   : > { %3363 = vpow2.f32 %v956_v46  ;;  %v13148_v46 = vld [vmem:[#allocation104_spill] sm:$0xff]  ;;  %v13154_v48 = vld [vmem:[#allocation109_spill] sm:$0xff]  ;;  %13156 = vst [vmem:[#allocation54_spill] sm:$0xff] %v6179_v38  ;;  %v974_v38 = vmul.f32 1.442695, %v13163_v30  ;;  %v13168_v0 = vsub.f32 %v13070_v58, %v5872_v21  ;;  %13240 = vst [vmem:[#allocation97_spill] sm:$0xff] %v6328_v37 }
 0x12f   : > { %v960_v1 = vmul.f32 1.442695, %v13134_v27  ;;  %v962_v11 = vmul.f32 1.442695, %v13138_v56  ;;  %v13141_v27 = vld [vmem:[#allocation132_spill] sm:$0xff]  ;;  %3365 = vpow2.f32 %v958_v42  ;;  %v13159_v42 = vsub.f32 %v13061_v43, %v5861_v19  ;;  %v13187_v58 = vld [vmem:[#allocation145_spill] sm:$0xff] }
 0x130   : > { %v13142_v59 = vsub.f32 %v13045_v14, %v13141_v27  ;;  %v966_v56 = vmul.f32 1.442695, %v13145_v13  ;;  %v13149_v14 = vsub.f32 %v13053_v35, %v5855_v22  ;;  %v13151_v27 = vld [vmem:[#allocation21_spill] sm:$0xff]  ;;  %v13155_v13 = vsub.f32 %v13057_v57, %v5858_v26  ;;  %v13158_v35 = vld [vmem:[#allocation111_spill] sm:$0xff]  ;;  %v6188_v22 = vpop.eup %3353  ;;  %v6284_v19 = vld [vmem:[%s4754_s26 + $0xd8] sm:$0xff] }
 0x131   : > { %3367 = vpow2.f32 %v960_v1  ;;  %v13157_v1 = vld [vmem:[#allocation110_spill] sm:$0xff]  ;;  %v972_v60 = vmul.f32 1.442695, %v13159_v42  ;;  %13160 = vst [vmem:[#allocation10_spill] sm:$0xff] %v6188_v22  ;;  %v13162_v57 = vld [vmem:[#allocation115_spill] sm:$0xff]  ;;  %13220 = vst [vmem:[#allocation82_spill] sm:$0xff] %v6284_v19 }
 0x132   : > { %v964_v54 = vmul.f32 1.442695, %v13142_v59  ;;  %v968_v59 = vmul.f32 1.442695, %v13149_v14  ;;  %3369 = vpow2.f32 %v962_v11  ;;  %v970_v9 = vmul.f32 1.442695, %v13155_v13  ;;  %v6197_v26 = vpop.eup %3355 }
 0x133   : > { %v13161_v11 = vld [vmem:[#allocation114_spill] sm:$0xff]  ;;  %13164 = vst [vmem:[#allocation100_spill] sm:$0xff] %v6197_v26  ;;  %v976_v22 = vmul.f32 1.442695, %v13168_v0  ;;  %v6206_v36 = vpop.eup %3357  ;;  %v13172_v26 = vld [vmem:[#allocation141_spill] sm:$0xff]  ;;  %v13179_v13 = vld [vmem:[#allocation55_spill] sm:$0xff] }
 0x134   : > { %3371 = vpow2.f32 %v964_v54  ;;  %13169 = vst [vmem:[#allocation56_spill] sm:$0xff] %v6206_v36  ;;  %v13173_v14 = vsub.f32 %v13085_v12, %v13172_v26  ;;  %v6263_v0 = vld [vmem:[%s4754_s26 + $0xb8] sm:$0xff]  ;;  %v6281_v12 = vld [vmem:[%s4754_s26 + $0xd0] sm:$0xff]  ;;  %v6325_v54 = vld [vmem:[%s4754_s26 + $0x100] sm:$0xff]  ;;  %vm1097_vm11 = vcmp.eq.s32.totalorder %v6284_v19, 0 }
 0x135   : > { %3373 = vpow2.f32 %v966_v56  ;;  %v6215_v20 = vpop.eup %3359  ;;  %v13181_v56 = vsub.f32 %v13179_v13, %v13180_v41  ;;  %13208 = vst [vmem:[#allocation14_spill] sm:$0xff] %v6263_v0  ;;  %13219 = vst [vmem:[#allocation81_spill] sm:$0xff] %v6281_v12  ;;  %v6302_v41 = vld [vmem:[%s4754_s26 + $0xe0] sm:$0xff]  ;;  %v6322_v42 = vld [vmem:[%s4754_s26 + $0xf8] sm:$0xff]  ;;  %vm1093_vm7 = vcmp.eq.s32.totalorder %v6263_v0, 0  ;;  %vm1096_vm10 = vcmp.eq.s32.totalorder %v6281_v12, 0 }
 0x136   : > { %3375 = vpow2.f32 %v968_v59  ;;  %v978_v18 = vmul.f32 1.442695, %v13173_v14  ;;  %13174 = vst [vmem:[#allocation11_spill] sm:$0xff] %v6215_v20  ;;  %v13188_v59 = vsub.f32 %v13092_v50, %v13187_v58  ;;  %v13194_v14 = vld [vmem:[#allocation27_spill] sm:$0xff]  ;;  %v6245_v50 = vld [vmem:[%s4754_s26 + $0xa0] sm:$0xff]  ;;  %v6278_v58 = vld [vmem:[%s4754_s26 + $0xc8] sm:$0xff] }
 0x137   : > { %3377 = vpow2.f32 %v970_v9  ;;  %v980_v30 = vmul.f32 1.442695, %v13181_v56  ;;  %v6224_v9 = vpop.eup %3361  ;;  %v13195_v24 = vsub.f32 %v13097_v63, %v13194_v14  ;;  %13197 = vst [vmem:[#allocation68_spill] sm:$0xff] %v6245_v50  ;;  %v6260_v14 = vld [vmem:[%s4754_s26 + $0xb0] sm:$0xff]  ;;  %v6266_v20 = vld [vmem:[%s4754_s26 + $0xc0] sm:$0xff]  ;;  %13218 = vst [vmem:[#allocation17_spill] sm:$0xff] %v6278_v58 }
 0x138   : > { %3379 = vpow2.f32 %v972_v60  ;;  %13182 = vst [vmem:[#allocation60_spill] sm:$0xff] %v6224_v9  ;;  %v982_v36 = vmul.f32 1.442695, %v13188_v59  ;;  %v6233_v60 = vpop.eup %3363  ;;  %v6248_v59 = vld [vmem:[%s4754_s26 + $0xa8] sm:$0xff]  ;;  %13207 = vst [vmem:[#allocation73_spill] sm:$0xff] %v6260_v14  ;;  %vm1090_vm4 = vcmp.eq.s32.totalorder %v6245_v50, 0 }
 0x139   : > { %3381 = vpow2.f32 %v974_v38  ;;  %13189 = vst [vmem:[#allocation12_spill] sm:$0xff] %v6233_v60  ;;  %v984_v26 = vmul.f32 1.442695, %v13195_v24  ;;  %v6242_v38 = vpop.eup %3365  ;;  %13198 = vst [vmem:[#allocation13_spill] sm:$0xff] %v6248_v59  ;;  %v13204_v9 = vld [vmem:[#allocation30_spill] sm:$0xff]  ;;  %v13221_v60 = vld [vmem:[#allocation32_spill] sm:$0xff] }
 0x13a   : > { %3383 = vpow2.f32 %v976_v22  ;;  %13196 = vst [vmem:[#allocation67_spill] sm:$0xff] %v6242_v38  ;;  %v13203_v22 = vld [vmem:[#allocation61_spill] sm:$0xff]  ;;  %13209 = vst [vmem:[#allocation74_spill] sm:$0xff] %v6266_v20  ;;  %v13222_v55 = vsub.f32 %v13105_v31, %v13221_v60  ;;  %v13231_v31 = vld [vmem:[#allocation35_spill] sm:$0xff]  ;;  %vm1091_vm5 = vcmp.eq.s32.totalorder %v6248_v59, 0  ;;  %vm1092_vm6 = vcmp.eq.s32.totalorder %v6260_v14, 0 }
 0x13b   : > { %3385 = vpow2.f32 %v978_v18  ;;  %v13205_v63 = vsub.f32 %v13203_v22, %v13204_v9  ;;  %v6257_v38 = vpop.eup %3367  ;;  %v13214_v22 = vld [vmem:[#allocation62_spill] sm:$0xff]  ;;  %13228 = vst [vmem:[#allocation88_spill] sm:$0xff] %v6302_v41  ;;  %13238 = vst [vmem:[#allocation95_spill] sm:$0xff] %v6322_v42  ;;  %vm1094_vm8 = vcmp.eq.s32.totalorder %v6266_v20, 0  ;;  %vm1095_vm9 = vcmp.eq.s32.totalorder %v6278_v58, 0  ;;  %v7069_v19 = vld [vmem:[%s4743_s4 + $0x2c0] sm:$0xff] }
 0x13c   : > { %13206 = vst [vmem:[#allocation72_spill] sm:$0xff] %v6257_v38  ;;  %3387 = vpow2.f32 %v980_v30  ;;  %v6275_v56 = vpop.eup %3369  ;;  %v990_v13 = vmul.f32 1.442695, %v13222_v55  ;;  %v6290_v30 = vld [vmem:[%s4743_s4 + $0x200] sm:$0xff]  ;;  %v6308_v55 = vld [vmem:[%s4754_s26 + $0xf0] sm:$0xff]  ;;  %13239 = vst [vmem:[#allocation96_spill] sm:$0xff] %v6325_v54 }
 0x13d   : > { %v986_v24 = vmul.f32 1.442695, %v13205_v63  ;;  %v13215_v63 = vld [vmem:[#allocation31_spill] sm:$0xff]  ;;  %13217 = vst [vmem:[#allocation75_spill] sm:$0xff] %v6275_v56  ;;  %3389 = vpow2.f32 %v982_v36  ;;  %13223 = vst [vmem:[#allocation18_spill] sm:$0xff] %v6290_v30  ;;  %v6295_v56 = vld [vmem:[%s4743_s4 + $0x208] sm:$0xff] }
 0x13e   : > { %v13216_v38 = vsub.f32 %v13214_v22, %v13215_v63  ;;  %13225 = vst [vmem:[#allocation83_spill] sm:$0xff] %v6295_v56  ;;  %v6299_v18 = vpop.eup %3371  ;;  %v6305_v36 = vld [vmem:[%s4754_s26 + $0xe8] sm:$0xff]  ;;  %13230 = vst [vmem:[#allocation22_spill] sm:$0xff] %v6308_v55  ;;  %3391 = vpow2.f32 %v984_v26  ;;  %v13233_v30 = vld [vmem:[#allocation36_spill] sm:$0xff]  ;;  %vm1098_vm12 = vcmp.eq.s32.totalorder %v6302_v41, 0  ;;  %vm1100_vm14 = vcmp.eq.s32.totalorder %v6308_v55, 0 }
 0x13f   : > { %13227 = vst [vmem:[#allocation87_spill] sm:$0xff] %v6299_v18  ;;  %13229 = vst [vmem:[#allocation89_spill] sm:$0xff] %v6305_v36  ;;  %v13234_v60 = vsub.f32 %v13110_v39, %v13233_v30  ;;  %v13235_v18 = vld [vmem:[#allocation37_spill] sm:$0xff]  ;;  %v6319_v43 = vpop.eup %3373  ;;  %3393 = vpow2.f32 %v986_v24  ;;  %v13241_v26 = vld [vmem:[#allocation42_spill] sm:$0xff]  ;;  %vm1099_vm13 = vcmp.eq.s32.totalorder %v6305_v36, 0  ;;  %vm1101_vm15 = vcmp.eq.s32.totalorder %v6322_v42, 0 }
 0x140   : > { %v988_v9 = vmul.f32 1.442695, %v13216_v38  ;;  %v13232_v38 = vsub.f32 %v13106_v49, %v13231_v31  ;;  %v13236_v63 = vsub.f32 %v13112_v53, %v13235_v18  ;;  %13237 = vst [vmem:[#allocation94_spill] sm:$0xff] %v6319_v43  ;;  %v13242_v49 = vsub.f32 %v13116_v4, %v13241_v26  ;;  %v6343_v18 = vpop.eup %3375  ;;  %v6346_v30 = vld [vmem:[%s4754_s26 + $0x110] sm:$0xff]  ;;  %v6349_v24 = vld [vmem:[%s4754_s26 + $0x118] sm:$0xff]  ;;  %v6352_v4 = vld [vmem:[%s4754_s26 + $0x120] sm:$0xff] }
 0x141   : > { %v994_v21 = vmul.f32 1.442695, %v13234_v60  ;;  %v13243_v60 = vsub.f32 %v13117_v15, %v5928_v33  ;;  %13246 = vst [vmem:[#allocation101_spill] sm:$0xff] %v6343_v18  ;;  %13247 = vst [vmem:[#allocation103_spill] sm:$0xff] %v6346_v30  ;;  %v7056_v42 = vld [vmem:[%s4743_s4 + $0x2b0] sm:$0xff]  ;;  %v13516_v55 = vld [vmem:[#allocation30_spill] sm:$0xff] }
 0x142   : > { %v992_v22 = vmul.f32 1.442695, %v13232_v38  ;;  %v996_v56 = vmul.f32 1.442695, %v13236_v63  ;;  %v998_v39 = vmul.f32 1.442695, %v13242_v49  ;;  %3395 = vpow2.f32 %v988_v9 }
 0x143   : > { %v6336_v53 = vmul.f32 1.442695, %v13243_v60  ;;  %v13244_v63 = vld [vmem:[#allocation44_spill] sm:$0xff]  ;;  %13248 = vst [vmem:[#allocation104_spill] sm:$0xff] %v6349_v24  ;;  %13249 = vst [vmem:[#allocation108_spill] sm:$0xff] %v6352_v4  ;;  %v13250_v49 = vld [vmem:[#allocation50_spill] sm:$0xff]  ;;  %3397 = vpow2.f32 %v990_v13 }
 0x144   : > { %v13245_v38 = vsub.f32 %v13121_v2, %v13244_v63  ;;  %v13251_v15 = vsub.f32 %v13122_v6, %v13250_v49  ;;  %v13252_v60 = vld [vmem:[#allocation51_spill] sm:$0xff]  ;;  %v6371_v6 = vpop.eup %3377  ;;  %v6374_v9 = vld [vmem:[%s4754_s26 + $0x128] sm:$0xff]  ;;  %v6403_v13 = vld [vmem:[%s4754_s26 + $0x140] sm:$0xff]  ;;  %3399 = vpow2.f32 %v992_v22  ;;  %13515 = vst [vmem:[#allocation251_spill] sm:$0xff] %v7056_v42 }
 0x145   : > { %v13253_v26 = vsub.f32 %v13126_v40, %v13252_v60  ;;  %13255 = vst [vmem:[#allocation109_spill] sm:$0xff] %v6371_v6  ;;  %13256 = vst [vmem:[#allocation110_spill] sm:$0xff] %v6374_v9  ;;  %v6380_v40 = vld [vmem:[%s4754_s26 + $0x138] sm:$0xff]  ;;  %v13262_v49 = vld [vmem:[#allocation59_spill] sm:$0xff]  ;;  %3401 = vpow2.f32 %v994_v21 }
 0x146   : > { %v6341_v43 = vmul.f32 1.442695, %v13245_v38  ;;  %v6357_v33 = vmul.f32 1.442695, %v13251_v15  ;;  %v13254_v38 = vsub.f32 %v13127_v8, %v5945_v7  ;;  %v6377_v15 = vld [vmem:[%s4754_s26 + $0x130] sm:$0xff]  ;;  %13258 = vst [vmem:[#allocation114_spill] sm:$0xff] %v6380_v40  ;;  %v13261_v7 = vsub.f32 %v13131_v62, %v5956_v32 }
 0x147   : > { %v6362_v2 = vmul.f32 1.442695, %v13253_v26  ;;  %13257 = vst [vmem:[#allocation111_spill] sm:$0xff] %v6377_v15  ;;  %v13259_v8 = vld [vmem:[#allocation57_spill] sm:$0xff]  ;;  %v13263_v6 = vsub.f32 %v13135_v51, %v13262_v49  ;;  %13265 = vst [vmem:[#allocation55_spill] sm:$0xff] %v6403_v13  ;;  %v6409_v62 = vld [vmem:[%s4754_s26 + $0x150] sm:$0xff]  ;;  %v13268_v51 = vsub.f32 %v13136_v44, %v5967_v47  ;;  %3403 = vpow2.f32 %v996_v56 }
 0x148   : > { %v6367_v18 = vmul.f32 1.442695, %v13254_v38  ;;  %v13260_v26 = vsub.f32 %v13130_v29, %v13259_v8  ;;  %v6390_v60 = vmul.f32 1.442695, %v13261_v7  ;;  %v6400_v29 = vpop.eup %3379  ;;  %v6406_v7 = vld [vmem:[%s4754_s26 + $0x148] sm:$0xff]  ;;  %13267 = vst [vmem:[#allocation62_spill] sm:$0xff] %v6409_v62  ;;  %3405 = vpow2.f32 %v998_v39 }
 0x149   : > { %v6395_v63 = vmul.f32 1.442695, %v13263_v6  ;;  %13264 = vst [vmem:[#allocation115_spill] sm:$0xff] %v6400_v29  ;;  %13266 = vst [vmem:[#allocation61_spill] sm:$0xff] %v6406_v7  ;;  %v6414_v6 = vmul.f32 1.442695, %v13268_v51  ;;  %v13271_v29 = vsub.f32 %v13140_v28, %v5973_v34  ;;  %v6429_v44 = vpop.eup %3381  ;;  %v13276_v28 = vsub.f32 %v13143_v61, %v5981_v45 }
 0x14a   : > { %v6385_v38 = vmul.f32 1.442695, %v13260_v26  ;;  %v13269_v26 = vld [vmem:[#allocation64_spill] sm:$0xff]  ;;  %13272 = vst [vmem:[#allocation149_spill] sm:$0xff] %v6429_v44  ;;  %v13277_v51 = vld [vmem:[#allocation102_spill] sm:$0xff]  ;;  %v13280_v44 = vsub.f32 %v13147_v52, %v13146_v5  ;;  %v6458_v21 = vpop.eup %3383  ;;  %v6461_v61 = vld [vmem:[%s4754_s26 + $0x170] sm:$0xff]  ;;  %v13286_v52 = vsub.f32 %v13148_v46, %v5995_v17  ;;  %3407 = vpow2.f32 %v6336_v53 }
 0x14b   : > { %v13270_v49 = vsub.f32 %v13139_v16, %v13269_v26  ;;  %v6424_v8 = vmul.f32 1.442695, %v13271_v29  ;;  %v6432_v22 = vld [vmem:[%s4754_s26 + $0x158] sm:$0xff]  ;;  %v6435_v16 = vld [vmem:[%s4754_s26 + $0x160] sm:$0xff]  ;;  %v6443_v29 = vmul.f32 1.442695, %v13276_v28  ;;  %v6487_v46 = vpop.eup %3385  ;;  %3409 = vpow2.f32 %v6341_v43 }
 0x14c   : > { %13273 = vst [vmem:[#allocation150_spill] sm:$0xff] %v6432_v22  ;;  %13274 = vst [vmem:[#allocation151_spill] sm:$0xff] %v6435_v16  ;;  %v13278_v34 = vld [vmem:[#allocation70_spill] sm:$0xff]  ;;  %v6453_v31 = vmul.f32 1.442695, %v13280_v44  ;;  %v6467_v28 = vld [vmem:[%s4754_s26 + $0x180] sm:$0xff]  ;;  %3411 = vpow2.f32 %v6357_v33 }
 0x14d   : > { %v6419_v32 = vmul.f32 1.442695, %v13270_v49  ;;  %v6438_v49 = vld [vmem:[%s4754_s26 + $0x168] sm:$0xff]  ;;  %v13279_v26 = vsub.f32 %v13277_v51, %v13278_v34  ;;  %13282 = vst [vmem:[#allocation153_spill] sm:$0xff] %v6458_v21  ;;  %13283 = vst [vmem:[#allocation154_spill] sm:$0xff] %v6461_v61  ;;  %v13288_v51 = vsub.f32 %v13152_v25, %v13151_v27  ;;  %v13290_v21 = vsub.f32 %v13154_v48, %v13153_v23  ;;  %v6493_v25 = vld [vmem:[%s4754_s26 + $0x190] sm:$0xff] }
 0x14e   : > { %13275 = vst [vmem:[#allocation152_spill] sm:$0xff] %v6438_v49  ;;  %13281 = vst [vmem:[#allocation102_spill] sm:$0xff] %v6453_v31  ;;  %v6472_v44 = vmul.f32 1.442695, %v13286_v52  ;;  %v6490_v56 = vld [vmem:[%s4754_s26 + $0x188] sm:$0xff]  ;;  %v6496_v52 = vld [vmem:[%s4754_s26 + $0x198] sm:$0xff]  ;;  %v13296_v48 = vsub.f32 %v13157_v1, %v6009_v10  ;;  %v6516_v1 = vpop.eup %3387  ;;  %3413 = vpow2.f32 %v6362_v2 }
 0x14f   : > { %v6448_v47 = vmul.f32 1.442695, %v13279_v26  ;;  %v6464_v26 = vld [vmem:[%s4754_s26 + $0x178] sm:$0xff]  ;;  %13285 = vst [vmem:[#allocation156_spill] sm:$0xff] %v6467_v28  ;;  %v6477_v5 = vmul.f32 1.442695, %v13288_v51  ;;  %v13298_v51 = vsub.f32 %v13158_v35, %v6012_v3  ;;  %3415 = vpow2.f32 %v6367_v18 }
 0x150   : > { %13284 = vst [vmem:[#allocation155_spill] sm:$0xff] %v6464_v26  ;;  %13287 = vst [vmem:[#allocation157_spill] sm:$0xff] %v6472_v44  ;;  %v6482_v34 = vmul.f32 1.442695, %v13290_v21  ;;  %v6501_v21 = vmul.f32 1.442695, %v13296_v48  ;;  %3417 = vpow2.f32 %v6385_v38 }
 0x151   : > { %13289 = vst [vmem:[#allocation158_spill] sm:$0xff] %v6477_v5  ;;  %13292 = vst [vmem:[#allocation160_spill] sm:$0xff] %v6487_v46  ;;  %v6506_v23 = vmul.f32 1.442695, %v13298_v51  ;;  %v13300_v27 = vld [vmem:[#allocation25_spill] sm:$0xff]  ;;  %v6522_v35 = vld [vmem:[%s4754_s26 + $0x1a8] sm:$0xff]  ;;  %3419 = vpow2.f32 %v6390_v60 }
 0x152   : > { %13291 = vst [vmem:[#allocation159_spill] sm:$0xff] %v6482_v34  ;;  %13293 = vst [vmem:[#allocation161_spill] sm:$0xff] %v6490_v56  ;;  %v13301_v46 = vsub.f32 %v13161_v11, %v13300_v27  ;;  %v6519_v39 = vld [vmem:[%s4754_s26 + $0x1a0] sm:$0xff]  ;;  %v6525_v48 = vld [vmem:[%s4754_s26 + $0x1b0] sm:$0xff]  ;;  %vm1121_vm2 = vcmp.eq.s32.totalorder %v6496_v52, 0 }
 0x153   : > { %13294 = vst [vmem:[#allocation162_spill] sm:$0xff] %v6493_v25  ;;  %13295 = vst [vmem:[#allocation163_spill] sm:$0xff] %v6496_v52  ;;  %v13307_v11 = vld [vmem:[#allocation26_spill] sm:$0xff]  ;;  %v13310_v27 = vld [vmem:[#allocation116_spill] sm:$0xff] }
 0x154   : > { %13297 = vst [vmem:[#allocation164_spill] sm:$0xff] %v6501_v21  ;;  %13299 = vst [vmem:[#allocation165_spill] sm:$0xff] %v6506_v23  ;;  %v6511_v17 = vmul.f32 1.442695, %v13301_v46  ;;  %v13308_v46 = vsub.f32 %v13162_v57, %v13307_v11  ;;  %v13311_v3 = vld [vmem:[#allocation29_spill] sm:$0xff]  ;;  %v6546_v57 = vpop.eup %3389  ;;  %v6549_v53 = vld [vmem:[%s4754_s26 + $0x1b8] sm:$0xff]  ;;  %3421 = vpow2.f32 %v6395_v63 }
 0x155   : > { %13303 = vst [vmem:[#allocation167_spill] sm:$0xff] %v6516_v1  ;;  %13304 = vst [vmem:[#allocation168_spill] sm:$0xff] %v6519_v39  ;;  %v13312_v10 = vsub.f32 %v13310_v27, %v13311_v3  ;;  %v13315_v1 = vld [vmem:[#allocation41_spill] sm:$0xff]  ;;  %v6555_v27 = vld [vmem:[%s4754_s26 + $0x1c8] sm:$0xff]  ;;  %v6576_v43 = vpop.eup %3391  ;;  %vm1125_vm0 = vcmp.eq.s32.totalorder %v6549_v53, 0  ;;  %3423 = vpow2.f32 %v6414_v6 }
 0x156   : > { %13302 = vst [vmem:[#allocation166_spill] sm:$0xff] %v6511_v17  ;;  %13305 = vst [vmem:[#allocation169_spill] sm:$0xff] %v6522_v35  ;;  %v6531_v51 = vmul.f32 1.442695, %v13308_v46  ;;  %v13314_v17 = vld [vmem:[#allocation117_spill] sm:$0xff]  ;;  %v13326_v3 = vld [vmem:[#allocation122_spill] sm:$0xff]  ;;  %v6606_v33 = vpop.eup %3393  ;;  %3425 = vpow2.f32 %v6419_v32 }
 0x157   : > { %13306 = vst [vmem:[#allocation170_spill] sm:$0xff] %v6525_v48  ;;  %v6536_v45 = vmul.f32 1.442695, %v13312_v10  ;;  %v13316_v23 = vsub.f32 %v13314_v17, %v13315_v1  ;;  %13318 = vst [vmem:[#allocation172_spill] sm:$0xff] %v6546_v57  ;;  %v6552_v10 = vld [vmem:[%s4754_s26 + $0x1c0] sm:$0xff]  ;;  %v13327_v11 = vld [vmem:[#allocation146_spill] sm:$0xff]  ;;  %v6627_v2 = vpop.eup %3395  ;;  %3427 = vpow2.f32 %v6424_v8 }
 0x158   : > { %13309 = vst [vmem:[#allocation171_spill] sm:$0xff] %v6531_v51  ;;  %13319 = vst [vmem:[#allocation173_spill] sm:$0xff] %v6549_v53  ;;  %v13322_v17 = vld [vmem:[#allocation121_spill] sm:$0xff]  ;;  %v13330_v51 = vld [vmem:[#allocation123_spill] sm:$0xff]  ;;  %v6648_v18 = vpop.eup %3397  ;;  %vm1126_vm3 = vcmp.eq.s32.totalorder %v6552_v10, 0  ;;  %vm1127_vm1 = vcmp.eq.s32.totalorder %v6555_v27, 0  ;;  %3429 = vpow2.f32 %v6443_v29 }
 0x159   : > { %13313 = vst [vmem:[#allocation116_spill] sm:$0xff] %v6536_v45  ;;  %v6541_v21 = vmul.f32 1.442695, %v13316_v23  ;;  %13320 = vst [vmem:[#allocation174_spill] sm:$0xff] %v6552_v10  ;;  %v13323_v23 = vld [vmem:[#allocation47_spill] sm:$0xff]  ;;  %v3998_v63 = vld [vmem:[%s4743_s4 + $0xd8] sm:$0xff] }
 0x15a   : > { %13321 = vst [vmem:[#allocation175_spill] sm:$0xff] %v6555_v27  ;;  %v13324_v46 = vsub.f32 %v13322_v17, %v13323_v23  ;;  %v13331_v57 = vld [vmem:[#allocation147_spill] sm:$0xff]  ;;  %13334 = vst [vmem:[#allocation176_spill] sm:$0xff] %v6576_v43  ;;  %v13343_v23 = vld [vmem:[#allocation148_spill] sm:$0xff] }
 0x15b   : > { %13317 = vst [vmem:[#allocation117_spill] sm:$0xff] %v6541_v21  ;;  %v13328_v21 = vsub.f32 %v13326_v3, %v13327_v11  ;;  %v13332_v34 = vsub.f32 %v13330_v51, %v13331_v57  ;;  %v6579_v17 = vld [vmem:[%s4754_s26 + $0x1d0] sm:$0xff]  ;;  %v6585_v3 = vld [vmem:[%s4754_s26 + $0x1e0] sm:$0xff]  ;;  %v13339_v51 = vld [vmem:[#allocation48_spill] sm:$0xff] }
 0x15c   : > { %v6561_v1 = vmul.f32 1.442695, %v13324_v46  ;;  %13335 = vst [vmem:[#allocation177_spill] sm:$0xff] %v6579_v17  ;;  %v6582_v46 = vld [vmem:[%s4754_s26 + $0x1d8] sm:$0xff]  ;;  %13337 = vst [vmem:[#allocation179_spill] sm:$0xff] %v6585_v3  ;;  %v3993_v38 = vld [vmem:[%s4743_s4 + $0xb0] sm:$0xff] }
 0x15d   : > { %v6566_v45 = vmul.f32 1.442695, %v13328_v21  ;;  %v6571_v5 = vmul.f32 1.442695, %v13332_v34  ;;  %13336 = vst [vmem:[#allocation178_spill] sm:$0xff] %v6582_v46  ;;  %v13338_v21 = vld [vmem:[#allocation124_spill] sm:$0xff] }
 0x15e   : > { %13325 = vst [vmem:[#allocation121_spill] sm:$0xff] %v6561_v1  ;;  %v13340_v34 = vsub.f32 %v13338_v21, %v13339_v51  ;;  %v13342_v11 = vld [vmem:[#allocation128_spill] sm:$0xff]  ;;  %v13346_v1 = vld [vmem:[#allocation129_spill] sm:$0xff]  ;;  %13350 = vst [vmem:[#allocation180_spill] sm:$0xff] %v6606_v33 }
 0x15f   : > { %13329 = vst [vmem:[#allocation122_spill] sm:$0xff] %v6566_v45  ;;  %13333 = vst [vmem:[#allocation123_spill] sm:$0xff] %v6571_v5  ;;  %v13344_v5 = vsub.f32 %v13342_v11, %v13343_v23  ;;  %v13347_v43 = vld [vmem:[#allocation84_spill] sm:$0xff]  ;;  %v13351_v21 = vld [vmem:[#allocation130_spill] sm:$0xff] }
 0x160   : > { %v6591_v57 = vmul.f32 1.442695, %v13340_v34  ;;  %v13348_v44 = vsub.f32 %v13346_v1, %v13347_v43  ;;  %v13352_v34 = vld [vmem:[#allocation49_spill] sm:$0xff]  ;;  %v13354_v23 = vld [vmem:[#allocation131_spill] sm:$0xff]  ;;  %v13355_v1 = vld [vmem:[#allocation86_spill] sm:$0xff]  ;;  %13521 = vst [vmem:[#allocation253_spill] sm:$0xff] %v7069_v19 }
 0x161   : > { %v6596_v45 = vmul.f32 1.442695, %v13344_v5  ;;  %v13353_v11 = vsub.f32 %v13351_v21, %v13352_v34  ;;  %v13358_v51 = vld [vmem:[#allocation135_spill] sm:$0xff]  ;;  %v13367_v33 = vld [vmem:[#allocation9_spill] sm:$0xff]  ;;  %v13370_v34 = vld [vmem:[#allocation98_spill] sm:$0xff] }
 0x162   : > { %13341 = vst [vmem:[#allocation124_spill] sm:$0xff] %v6591_v57  ;;  %v6601_v31 = vmul.f32 1.442695, %v13348_v44  ;;  %v13356_v44 = vsub.f32 %v13354_v23, %v13355_v1  ;;  %13362 = vst [vmem:[#allocation135_spill] sm:$0xff] %v6627_v2  ;;  %v13363_v23 = vld [vmem:[#allocation136_spill] sm:$0xff]  ;;  %v13364_v21 = vld [vmem:[#allocation91_spill] sm:$0xff]  ;;  %v6673_v2 = vpop.eup %3399  ;;  %3431 = vpow2.f32 %v6448_v47 }
 0x163   : > { %13345 = vst [vmem:[#allocation128_spill] sm:$0xff] %v6596_v45  ;;  %v6612_v5 = vmul.f32 1.442695, %v13353_v11  ;;  %v13365_v11 = vsub.f32 %v13363_v23, %v13364_v21  ;;  %v13369_v1 = vld [vmem:[#allocation138_spill] sm:$0xff]  ;;  %13372 = vst [vmem:[#allocation136_spill] sm:$0xff] %v6648_v18  ;;  %v4001_v6 = vld [vmem:[%s4743_s4 + $0xf0] sm:$0xff] }
 0x164   : > { %13349 = vst [vmem:[#allocation129_spill] sm:$0xff] %v6601_v31  ;;  %v6617_v43 = vmul.f32 1.442695, %v13356_v44  ;;  %v13359_v31 = vld [vmem:[#allocation90_spill] sm:$0xff]  ;;  %13378 = vst [vmem:[#allocation184_spill] sm:$0xff] %v6673_v2  ;;  %v6694_v2 = vpop.eup %3401  ;;  %v4005_v32 = vld [vmem:[%s4743_s4 + $0x110] sm:$0xff] }
 0x165   : > { %v13360_v45 = vsub.f32 %v13358_v51, %v13359_v31  ;;  %v6633_v44 = vmul.f32 1.442695, %v13365_v11  ;;  %v13366_v51 = vld [vmem:[#allocation137_spill] sm:$0xff]  ;;  %v6651_v23 = vld [vmem:[%s4754_s26 + $0x1e8] sm:$0xff]  ;;  %v6654_v11 = vld [vmem:[%s4754_s26 + $0x1f0] sm:$0xff]  ;;  %13382 = vst [vmem:[#allocation188_spill] sm:$0xff] %v6694_v2 }
 0x166   : > { %13357 = vst [vmem:[#allocation130_spill] sm:$0xff] %v6617_v43  ;;  %13373 = vst [vmem:[#allocation137_spill] sm:$0xff] %v6651_v23  ;;  %v4008_v8 = vld [vmem:[%s4743_s4 + $0x128] sm:$0xff]  ;;  %v4011_v29 = vld [vmem:[%s4743_s4 + $0x140] sm:$0xff] }
 0x167   : > { %v6622_v57 = vmul.f32 1.442695, %v13360_v45  ;;  %v13368_v45 = vsub.f32 %v13366_v51, %v13367_v33  ;;  %13374 = vst [vmem:[#allocation138_spill] sm:$0xff] %v6654_v11  ;;  %v6657_v51 = vld [vmem:[%s4754_s26 + $0x1f8] sm:$0xff]  ;;  %v13418_v47 = vld [vmem:[#allocation102_spill] sm:$0xff]  ;;  %v13484_v10 = vld [vmem:[#allocation125_spill] sm:$0xff] }
 0x168   : > { %13375 = vst [vmem:[#allocation181_spill] sm:$0xff] %v6657_v51  ;;  %3433 = vpow2.f32 %v13418_v47  ;;  %v13426_v47 = vld [vmem:[#allocation157_spill] sm:$0xff]  ;;  %v13474_v2 = vld [vmem:[#allocation112_spill] sm:$0xff]  ;;  %v6979_v27 = vld [vmem:[%s4743_s4 + $0x248] sm:$0xff] }
 0x169   : > { %13361 = vst [vmem:[#allocation131_spill] sm:$0xff] %v6622_v57  ;;  %v6638_v31 = vmul.f32 1.442695, %v13368_v45  ;;  %v13371_v57 = vsub.f32 %v13369_v1, %v13370_v34  ;;  %v3992_v45 = vld [vmem:[%s4743_s4 + $0xa8] sm:$0xff]  ;;  %13483 = vst [vmem:[#allocation240_spill] sm:$0xff] %v6979_v27  ;;  %v6984_v53 = vld [vmem:[%s4743_s4 + $0x250] sm:$0xff] }
 0x16a   : > { %v6671_v18 = vsel %vm1091_vm5, %v3992_v45, 0.0  ;;  %v3994_v45 = vld [vmem:[%s4743_s4 + $0xb8] sm:$0xff]  ;;  %vm1129_vm5 = vcmp.eq.s32.totalorder %v6582_v46, 0  ;;  %v6974_v46 = vld [vmem:[%s4743_s4 + $0x240] sm:$0xff]  ;;  %13485 = vst [vmem:[#allocation241_spill] sm:$0xff] %v6984_v53  ;;  %v13520_v41 = vld [vmem:[#allocation31_spill] sm:$0xff] }
 0x16b   : > { %v6643_v43 = vmul.f32 1.442695, %v13371_v57  ;;  %v3991_v57 = vld [vmem:[%s4743_s4 + $0xa0] sm:$0xff]  ;;  %13377 = vst [vmem:[#allocation183_spill] sm:$0xff] %v6671_v18  ;;  %v6687_v18 = vsel %vm1093_vm7, %v3994_v45, 0.0  ;;  %vm1131_vm7 = vcmp.eq.s32.totalorder %v6651_v23, 0 }
 0x16c   : > { %v6666_v1 = vsel %vm1090_vm4, %v3991_v57, 0.0  ;;  %v6682_v57 = vsel %vm1092_vm6, %v3993_v38, 0.0  ;;  %13380 = vst [vmem:[#allocation186_spill] sm:$0xff] %v6687_v18  ;;  %vm1128_vm4 = vcmp.eq.s32.totalorder %v6579_v17, 0  ;;  %vm1130_vm6 = vcmp.eq.s32.totalorder %v6585_v3, 0  ;;  %v3996_v38 = vld [vmem:[%s4743_s4 + $0xc8] sm:$0xff] }
 0x16d   : > { %13376 = vst [vmem:[#allocation182_spill] sm:$0xff] %v6666_v1  ;;  %13379 = vst [vmem:[#allocation185_spill] sm:$0xff] %v6682_v57  ;;  %v3995_v1 = vld [vmem:[%s4743_s4 + $0xc0] sm:$0xff]  ;;  %v6703_v45 = vsel %vm1095_vm9, %v3996_v38, 0.0  ;;  %v6713_v18 = vsel %vm1097_vm11, %v3998_v63, 0.0  ;;  %v6715_v57 = vpop.eup %3403  ;;  %vm1133_vm9 = vcmp.eq.s32.totalorder %v6657_v51, 0  ;;  %3435 = vpow2.f32 %v13426_v47 }
 0x16e   : > { %v6692_v60 = vsel %vm1094_vm8, %v3995_v1, 0.0  ;;  %13383 = vst [vmem:[#allocation189_spill] sm:$0xff] %v6703_v45  ;;  %v3997_v1 = vld [vmem:[%s4743_s4 + $0xd0] sm:$0xff]  ;;  %13385 = vst [vmem:[#allocation191_spill] sm:$0xff] %v6713_v18  ;;  %vm1132_vm8 = vcmp.eq.s32.totalorder %v6654_v11, 0  ;;  %v3999_v38 = vld [vmem:[%s4743_s4 + $0xe0] sm:$0xff]  ;;  %v6736_v45 = vpop.eup %3405 }
 0x16f   : > { %13381 = vst [vmem:[#allocation187_spill] sm:$0xff] %v6692_v60  ;;  %v6708_v60 = vsel %vm1096_vm10, %v3997_v1, 0.0  ;;  %13386 = vst [vmem:[#allocation192_spill] sm:$0xff] %v6715_v57  ;;  %v6724_v1 = vsel %vm1098_vm12, %v3999_v38, 0.0  ;;  %v4000_v63 = vld [vmem:[%s4743_s4 + $0xe8] sm:$0xff]  ;;  %v4002_v57 = vld [vmem:[%s4743_s4 + $0xf8] sm:$0xff] }
 0x170   : > { %13384 = vst [vmem:[#allocation190_spill] sm:$0xff] %v6708_v60  ;;  %13387 = vst [vmem:[#allocation193_spill] sm:$0xff] %v6724_v1  ;;  %v6729_v18 = vsel %vm1099_vm13, %v4000_v63, 0.0  ;;  %v6734_v60 = vsel %vm1100_vm14, %v4001_v6, 0.0  ;;  %v6742_v38 = vsel %vm1101_vm15, %v4002_v57, 0.0  ;;  %v4003_v1 = vld [vmem:[%s4743_s4 + $0x100] sm:$0xff] }
 0x171   : > { %13388 = vst [vmem:[#allocation194_spill] sm:$0xff] %v6729_v18  ;;  %13389 = vst [vmem:[#allocation195_spill] sm:$0xff] %v6734_v60  ;;  %vm13392_vm10 = vcmp.eq.s32.totalorder %v6325_v54, 0  ;;  %v4004_v18 = vld [vmem:[%s4743_s4 + $0x108] sm:$0xff]  ;;  %vm13394_vm11 = vcmp.eq.s32.totalorder %v6328_v37, 0  ;;  %v6754_v60 = vpop.eup %3407  ;;  %vm13397_vm12 = vcmp.eq.s32.totalorder %v6346_v30, 0 }
 0x172   : > { %13390 = vst [vmem:[#allocation196_spill] sm:$0xff] %v6736_v45  ;;  %13391 = vst [vmem:[#allocation197_spill] sm:$0xff] %v6742_v38  ;;  %v6747_v63 = vsel %vm13392_vm10, %v4003_v1, 0.0  ;;  %v6752_v6 = vsel %vm13394_vm11, %v4004_v18, 0.0  ;;  %v6760_v57 = vsel %vm13397_vm12, %v4005_v32, 0.0  ;;  %v4006_v38 = vld [vmem:[%s4743_s4 + $0x118] sm:$0xff] }
 0x173   : > { %13393 = vst [vmem:[#allocation198_spill] sm:$0xff] %v6747_v63  ;;  %13395 = vst [vmem:[#allocation199_spill] sm:$0xff] %v6752_v6  ;;  %vm13399_vm13 = vcmp.eq.s32.totalorder %v6349_v24, 0  ;;  %v4007_v63 = vld [vmem:[%s4743_s4 + $0x120] sm:$0xff]  ;;  %vm13401_vm14 = vcmp.eq.s32.totalorder %v6352_v4, 0  ;;  %v6772_v6 = vpop.eup %3409  ;;  %vm13404_vm15 = vcmp.eq.s32.totalorder %v6374_v9, 0 }
 0x174   : > { %13396 = vst [vmem:[#allocation200_spill] sm:$0xff] %v6754_v60  ;;  %13398 = vst [vmem:[#allocation201_spill] sm:$0xff] %v6760_v57  ;;  %v6765_v1 = vsel %vm13399_vm13, %v4006_v38, 0.0  ;;  %v6770_v18 = vsel %vm13401_vm14, %v4007_v63, 0.0  ;;  %v6778_v32 = vsel %vm13404_vm15, %v4008_v8, 0.0  ;;  %v4009_v57 = vld [vmem:[%s4743_s4 + $0x130] sm:$0xff] }
 0x175   : > { %13400 = vst [vmem:[#allocation202_spill] sm:$0xff] %v6765_v1  ;;  %13402 = vst [vmem:[#allocation203_spill] sm:$0xff] %v6770_v18  ;;  %vm13406_vm10 = vcmp.eq.s32.totalorder %v6377_v15, 0  ;;  %v4010_v1 = vld [vmem:[%s4743_s4 + $0x138] sm:$0xff]  ;;  %vm13408_vm11 = vcmp.eq.s32.totalorder %v6380_v40, 0  ;;  %v6790_v18 = vpop.eup %3411  ;;  %vm13411_vm12 = vcmp.eq.s32.totalorder %v6403_v13, 0 }
 0x176   : > { %13403 = vst [vmem:[#allocation204_spill] sm:$0xff] %v6772_v6  ;;  %13405 = vst [vmem:[#allocation205_spill] sm:$0xff] %v6778_v32  ;;  %v6783_v38 = vsel %vm13406_vm10, %v4009_v57, 0.0  ;;  %v6788_v63 = vsel %vm13408_vm11, %v4010_v1, 0.0  ;;  %v6796_v8 = vsel %vm13411_vm12, %v4011_v29, 0.0  ;;  %v4012_v32 = vld [vmem:[%s4743_s4 + $0x148] sm:$0xff] }
 0x177   : > { %13407 = vst [vmem:[#allocation206_spill] sm:$0xff] %v6783_v38  ;;  %13409 = vst [vmem:[#allocation207_spill] sm:$0xff] %v6788_v63  ;;  %vm13413_vm13 = vcmp.eq.s32.totalorder %v6406_v7, 0  ;;  %v4013_v38 = vld [vmem:[%s4743_s4 + $0x150] sm:$0xff]  ;;  %vm13415_vm14 = vcmp.eq.s32.totalorder %v6409_v62, 0  ;;  %v6808_v63 = vpop.eup %3413  ;;  %vm13419_vm15 = vcmp.eq.s32.totalorder %v6432_v22, 0 }
 0x178   : > { %13410 = vst [vmem:[#allocation208_spill] sm:$0xff] %v6790_v18  ;;  %13412 = vst [vmem:[#allocation209_spill] sm:$0xff] %v6796_v8  ;;  %v6801_v57 = vsel %vm13413_vm13, %v4012_v32, 0.0  ;;  %v6806_v1 = vsel %vm13415_vm14, %v4013_v38, 0.0  ;;  %v4014_v18 = vld [vmem:[%s4743_s4 + $0x158] sm:$0xff]  ;;  %v4015_v8 = vld [vmem:[%s4743_s4 + $0x160] sm:$0xff] }
 0x179   : > { %13414 = vst [vmem:[#allocation210_spill] sm:$0xff] %v6801_v57  ;;  %13416 = vst [vmem:[#allocation211_spill] sm:$0xff] %v6806_v1  ;;  %v6814_v29 = vsel %vm13419_vm15, %v4014_v18, 0.0  ;;  %vm13421_vm10 = vcmp.eq.s32.totalorder %v6435_v16, 0  ;;  %v4016_v57 = vld [vmem:[%s4743_s4 + $0x168] sm:$0xff]  ;;  %vm13423_vm11 = vcmp.eq.s32.totalorder %v6438_v49, 0  ;;  %v6826_v1 = vpop.eup %3415 }
 0x17a   : > { %13417 = vst [vmem:[#allocation212_spill] sm:$0xff] %v6808_v63  ;;  %13420 = vst [vmem:[#allocation102_spill] sm:$0xff] %v6814_v29  ;;  %v6819_v32 = vsel %vm13421_vm10, %v4015_v8, 0.0  ;;  %v6824_v38 = vsel %vm13423_vm11, %v4016_v57, 0.0  ;;  %v4017_v63 = vld [vmem:[%s4743_s4 + $0x170] sm:$0xff]  ;;  %vm13427_vm12 = vcmp.eq.s32.totalorder %v6461_v61, 0 }
 0x17b   : > { %13422 = vst [vmem:[#allocation213_spill] sm:$0xff] %v6819_v32  ;;  %13424 = vst [vmem:[#allocation214_spill] sm:$0xff] %v6824_v38  ;;  %v6832_v18 = vsel %vm13427_vm12, %v4017_v63, 0.0  ;;  %v4018_v29 = vld [vmem:[%s4743_s4 + $0x178] sm:$0xff]  ;;  %vm13429_vm13 = vcmp.eq.s32.totalorder %v6464_v26, 0  ;;  %v4019_v32 = vld [vmem:[%s4743_s4 + $0x180] sm:$0xff]  ;;  %v6844_v38 = vpop.eup %3417 }
 0x17c   : > { %13425 = vst [vmem:[#allocation215_spill] sm:$0xff] %v6826_v1  ;;  %13428 = vst [vmem:[#allocation157_spill] sm:$0xff] %v6832_v18  ;;  %v6837_v8 = vsel %vm13429_vm13, %v4018_v29, 0.0  ;;  %vm13431_vm14 = vcmp.eq.s32.totalorder %v6467_v28, 0  ;;  %v13434_v47 = vld [vmem:[#allocation158_spill] sm:$0xff]  ;;  %vm13435_vm15 = vcmp.eq.s32.totalorder %v6490_v56, 0 }
 0x17d   : > { %13430 = vst [vmem:[#allocation216_spill] sm:$0xff] %v6837_v8  ;;  %v6842_v57 = vsel %vm13431_vm14, %v4019_v32, 0.0  ;;  %13433 = vst [vmem:[#allocation218_spill] sm:$0xff] %v6844_v38  ;;  %3437 = vpow2.f32 %v13434_v47  ;;  %v4020_v1 = vld [vmem:[%s4743_s4 + $0x188] sm:$0xff]  ;;  %v4021_v18 = vld [vmem:[%s4743_s4 + $0x190] sm:$0xff]  ;;  %vm13437_vm10 = vcmp.eq.s32.totalorder %v6493_v25, 0 }
 0x17e   : > { %13432 = vst [vmem:[#allocation217_spill] sm:$0xff] %v6842_v57  ;;  %v6850_v63 = vsel %vm13435_vm15, %v4020_v1, 0.0  ;;  %v6855_v29 = vsel %vm13437_vm10, %v4021_v18, 0.0  ;;  %v4022_v8 = vld [vmem:[%s4743_s4 + $0x198] sm:$0xff]  ;;  %v6862_v57 = vpop.eup %3419  ;;  %v13441_v47 = vld [vmem:[#allocation159_spill] sm:$0xff]  ;;  %v4023_v38 = vld [vmem:[%s4743_s4 + $0x1a0] sm:$0xff] }
 0x17f   : > { %13436 = vst [vmem:[#allocation158_spill] sm:$0xff] %v6850_v63  ;;  %13438 = vst [vmem:[#allocation219_spill] sm:$0xff] %v6855_v29  ;;  %v6860_v32 = vsel %vm1121_vm2, %v4022_v8, 0.0  ;;  %3439 = vpow2.f32 %v13441_v47  ;;  %vm13442_vm11 = vcmp.eq.s32.totalorder %v6519_v39, 0  ;;  %v4024_v63 = vld [vmem:[%s4743_s4 + $0x1a8] sm:$0xff]  ;;  %vm13444_vm12 = vcmp.eq.s32.totalorder %v6522_v35, 0 }
 0x180   : > { %13439 = vst [vmem:[#allocation220_spill] sm:$0xff] %v6860_v32  ;;  %13440 = vst [vmem:[#allocation221_spill] sm:$0xff] %v6862_v57  ;;  %v6868_v1 = vsel %vm13442_vm11, %v4023_v38, 0.0  ;;  %v6873_v18 = vsel %vm13444_vm12, %v4024_v63, 0.0  ;;  %v4025_v29 = vld [vmem:[%s4743_s4 + $0x1b0] sm:$0xff]  ;;  %vm13446_vm2 = vcmp.eq.s32.totalorder %v6525_v48, 0  ;;  %v6880_v32 = vpop.eup %3421 }
 0x181   : > { %13443 = vst [vmem:[#allocation159_spill] sm:$0xff] %v6868_v1  ;;  %13445 = vst [vmem:[#allocation222_spill] sm:$0xff] %v6873_v18  ;;  %v6878_v8 = vsel %vm13446_vm2, %v4025_v29, 0.0  ;;  %v13449_v47 = vld [vmem:[#allocation164_spill] sm:$0xff]  ;;  %v4027_v1 = vld [vmem:[%s4743_s4 + $0x1c0] sm:$0xff] }
 0x182   : > { %13447 = vst [vmem:[#allocation223_spill] sm:$0xff] %v6878_v8  ;;  %13448 = vst [vmem:[#allocation224_spill] sm:$0xff] %v6880_v32  ;;  %3441 = vpow2.f32 %v13449_v47  ;;  %v4026_v57 = vld [vmem:[%s4743_s4 + $0x1b8] sm:$0xff]  ;;  %v6891_v63 = vsel %vm1126_vm3, %v4027_v1, 0.0  ;;  %v4028_v18 = vld [vmem:[%s4743_s4 + $0x1c8] sm:$0xff]  ;;  %v6898_v8 = vpop.eup %3423 }
 0x183   : > { %v6886_v38 = vsel %vm1125_vm0, %v4026_v57, 0.0  ;;  %13451 = vst [vmem:[#allocation225_spill] sm:$0xff] %v6891_v63  ;;  %v6896_v29 = vsel %vm1127_vm1, %v4028_v18, 0.0  ;;  %13453 = vst [vmem:[#allocation227_spill] sm:$0xff] %v6898_v8  ;;  %v13454_v47 = vld [vmem:[#allocation165_spill] sm:$0xff]  ;;  %v4029_v32 = vld [vmem:[%s4743_s4 + $0x1d0] sm:$0xff] }
 0x184   : > { %13450 = vst [vmem:[#allocation164_spill] sm:$0xff] %v6886_v38  ;;  %13452 = vst [vmem:[#allocation226_spill] sm:$0xff] %v6896_v29  ;;  %3443 = vpow2.f32 %v13454_v47  ;;  %v6904_v57 = vsel %vm1128_vm4, %v4029_v32, 0.0  ;;  %v4030_v38 = vld [vmem:[%s4743_s4 + $0x1d8] sm:$0xff]  ;;  %v4031_v63 = vld [vmem:[%s4743_s4 + $0x1e0] sm:$0xff]  ;;  %v6916_v29 = vpop.eup %3425 }
 0x185   : > { %13455 = vst [vmem:[#allocation165_spill] sm:$0xff] %v6904_v57  ;;  %v6909_v1 = vsel %vm1129_vm5, %v4030_v38, 0.0  ;;  %v6914_v18 = vsel %vm1130_vm6, %v4031_v63, 0.0  ;;  %13458 = vst [vmem:[#allocation230_spill] sm:$0xff] %v6916_v29  ;;  %v13459_v47 = vld [vmem:[#allocation166_spill] sm:$0xff]  ;;  %v4033_v57 = vld [vmem:[%s4743_s4 + $0x1f0] sm:$0xff] }
 0x186   : > { %13456 = vst [vmem:[#allocation228_spill] sm:$0xff] %v6909_v1  ;;  %13457 = vst [vmem:[#allocation229_spill] sm:$0xff] %v6914_v18  ;;  %3445 = vpow2.f32 %v13459_v47  ;;  %v4032_v8 = vld [vmem:[%s4743_s4 + $0x1e8] sm:$0xff]  ;;  %v6927_v38 = vsel %vm1132_vm8, %v4033_v57, 0.0  ;;  %v4034_v1 = vld [vmem:[%s4743_s4 + $0x1f8] sm:$0xff]  ;;  %v6934_v18 = vpop.eup %3427 }
 0x187   : > { %v6922_v32 = vsel %vm1131_vm7, %v4032_v8, 0.0  ;;  %13461 = vst [vmem:[#allocation231_spill] sm:$0xff] %v6927_v38  ;;  %v6932_v63 = vsel %vm1133_vm9, %v4034_v1, 0.0  ;;  %13463 = vst [vmem:[#allocation233_spill] sm:$0xff] %v6934_v18  ;;  %v13464_v47 = vld [vmem:[#allocation171_spill] sm:$0xff]  ;;  %v13466_v8 = vld [vmem:[#allocation92_spill] sm:$0xff]  ;;  %v6952_v18 = vpop.eup %3429 }
 0x188   : > { %13460 = vst [vmem:[#allocation166_spill] sm:$0xff] %v6922_v32  ;;  %13462 = vst [vmem:[#allocation232_spill] sm:$0xff] %v6932_v63  ;;  %3447 = vpow2.f32 %v13464_v47  ;;  %v6938_v29 = vld [vmem:[%s4743_s4 + $0x210] sm:$0xff]  ;;  %v6943_v6 = vld [vmem:[%s4743_s4 + $0x218] sm:$0xff] }
 0x189   : > { %13465 = vst [vmem:[#allocation171_spill] sm:$0xff] %v6938_v29  ;;  %13467 = vst [vmem:[#allocation234_spill] sm:$0xff] %v6943_v6  ;;  %v13468_v57 = vld [vmem:[#allocation105_spill] sm:$0xff]  ;;  %v13470_v1 = vld [vmem:[#allocation106_spill] sm:$0xff] }
 0x18a   : > { %v6948_v60 = vld [vmem:[%s4743_s4 + $0x220] sm:$0xff]  ;;  %13471 = vst [vmem:[#allocation236_spill] sm:$0xff] %v6952_v18  ;;  %v13472_v47 = vld [vmem:[#allocation116_spill] sm:$0xff]  ;;  %v6956_v45 = vld [vmem:[%s4743_s4 + $0x228] sm:$0xff]  ;;  %v6970_v18 = vpop.eup %3431 }
 0x18b   : > { %13469 = vst [vmem:[#allocation235_spill] sm:$0xff] %v6948_v60  ;;  %3449 = vpow2.f32 %v13472_v47  ;;  %13473 = vst [vmem:[#allocation116_spill] sm:$0xff] %v6956_v45  ;;  %v6961_v51 = vld [vmem:[%s4743_s4 + $0x230] sm:$0xff]  ;;  %v13476_v11 = vld [vmem:[#allocation113_spill] sm:$0xff]  ;;  %v13580_v38 = vsub.f32 %v6948_v60, %v13470_v1 }
 0x18c   : > { %13475 = vst [vmem:[#allocation237_spill] sm:$0xff] %v6961_v51  ;;  %v6966_v23 = vld [vmem:[%s4743_s4 + $0x238] sm:$0xff]  ;;  %v13478_v3 = vld [vmem:[#allocation118_spill] sm:$0xff]  ;;  %13479 = vst [vmem:[#allocation239_spill] sm:$0xff] %v6970_v18  ;;  %v6988_v18 = vpop.eup %3433 }
 0x18d   : > { %13477 = vst [vmem:[#allocation238_spill] sm:$0xff] %v6966_v23  ;;  %v13480_v47 = vld [vmem:[#allocation117_spill] sm:$0xff]  ;;  %v13482_v17 = vld [vmem:[#allocation119_spill] sm:$0xff]  ;;  %v13486_v48 = vld [vmem:[#allocation126_spill] sm:$0xff] }
 0x18e   : > { %3451 = vpow2.f32 %v13480_v47  ;;  %13481 = vst [vmem:[#allocation117_spill] sm:$0xff] %v6974_v46  ;;  %13487 = vst [vmem:[#allocation242_spill] sm:$0xff] %v6988_v18  ;;  %v13488_v47 = vld [vmem:[#allocation121_spill] sm:$0xff]  ;;  %v6992_v35 = vld [vmem:[%s4743_s4 + $0x258] sm:$0xff]  ;;  %v7006_v18 = vpop.eup %3435 }
 0x18f   : > { %3453 = vpow2.f32 %v13488_v47  ;;  %13489 = vst [vmem:[#allocation121_spill] sm:$0xff] %v6992_v35  ;;  %v13490_v39 = vld [vmem:[#allocation132_spill] sm:$0xff]  ;;  %v6997_v52 = vld [vmem:[%s4743_s4 + $0x260] sm:$0xff]  ;;  %v13492_v25 = vld [vmem:[#allocation143_spill] sm:$0xff] }
 0x190   : > { %13491 = vst [vmem:[#allocation243_spill] sm:$0xff] %v6997_v52  ;;  %v7002_v56 = vld [vmem:[%s4743_s4 + $0x268] sm:$0xff]  ;;  %v13493_v28 = vld [vmem:[#allocation133_spill] sm:$0xff]  ;;  %13494 = vst [vmem:[#allocation244_spill] sm:$0xff] %v7006_v18  ;;  %v7024_v18 = vpop.eup %3437 }
 0x191   : > { %v13495_v47 = vld [vmem:[#allocation122_spill] sm:$0xff]  ;;  %v7010_v26 = vld [vmem:[%s4743_s4 + $0x270] sm:$0xff]  ;;  %v7015_v49 = vld [vmem:[%s4743_s4 + $0x278] sm:$0xff]  ;;  %13501 = vst [vmem:[#allocation246_spill] sm:$0xff] %v7024_v18  ;;  %v7042_v18 = vpop.eup %3439 }
 0x192   : > { %3455 = vpow2.f32 %v13495_v47  ;;  %v13496_v61 = vld [vmem:[#allocation134_spill] sm:$0xff]  ;;  %13497 = vst [vmem:[#allocation122_spill] sm:$0xff] %v7015_v49  ;;  %v13498_v16 = vld [vmem:[#allocation139_spill] sm:$0xff]  ;;  %v7020_v22 = vld [vmem:[%s4743_s4 + $0x280] sm:$0xff] }
 0x193   : > { %13499 = vst [vmem:[#allocation245_spill] sm:$0xff] %v7020_v22  ;;  %v13500_v62 = vld [vmem:[#allocation144_spill] sm:$0xff]  ;;  %v13502_v47 = vld [vmem:[#allocation123_spill] sm:$0xff]  ;;  %v7028_v7 = vld [vmem:[%s4743_s4 + $0x288] sm:$0xff] }
 0x194   : > { %3457 = vpow2.f32 %v13502_v47  ;;  %13503 = vst [vmem:[#allocation123_spill] sm:$0xff] %v7028_v7  ;;  %v13504_v13 = vld [vmem:[#allocation140_spill] sm:$0xff]  ;;  %v7033_v40 = vld [vmem:[%s4743_s4 + $0x290] sm:$0xff]  ;;  %v13506_v15 = vld [vmem:[#allocation141_spill] sm:$0xff] }
 0x195   : > { %13505 = vst [vmem:[#allocation247_spill] sm:$0xff] %v7033_v40  ;;  %v7038_v9 = vld [vmem:[%s4743_s4 + $0x298] sm:$0xff]  ;;  %v13508_v4 = vld [vmem:[#allocation142_spill] sm:$0xff]  ;;  %13509 = vst [vmem:[#allocation249_spill] sm:$0xff] %v7042_v18  ;;  %v7060_v18 = vpop.eup %3441 }
 0x196   : > { %13507 = vst [vmem:[#allocation248_spill] sm:$0xff] %v7038_v9  ;;  %v13510_v47 = vld [vmem:[#allocation124_spill] sm:$0xff]  ;;  %v7046_v24 = vld [vmem:[%s4743_s4 + $0x2a0] sm:$0xff]  ;;  %v7051_v37 = vld [vmem:[%s4743_s4 + $0x2a8] sm:$0xff] }
 0x197   : > { %3459 = vpow2.f32 %v13510_v47  ;;  %13511 = vst [vmem:[#allocation124_spill] sm:$0xff] %v7046_v24  ;;  %v13512_v30 = vld [vmem:[#allocation145_spill] sm:$0xff]  ;;  %13513 = vst [vmem:[#allocation250_spill] sm:$0xff] %v7051_v37  ;;  %v13514_v54 = vld [vmem:[#allocation27_spill] sm:$0xff] }
 0x198   : > { %13517 = vst [vmem:[#allocation252_spill] sm:$0xff] %v7060_v18  ;;  %v13518_v47 = vld [vmem:[#allocation128_spill] sm:$0xff]  ;;  %v7074_v58 = vld [vmem:[%s4743_s4 + $0x2c8] sm:$0xff]  ;;  %v7078_v18 = vpop.eup %3443  ;;  %v7082_v0 = vld [vmem:[%s4743_s4 + $0x2d0] sm:$0xff] }
 0x199   : > { %3461 = vpow2.f32 %v13518_v47  ;;  %v7064_v36 = vld [vmem:[%s4743_s4 + $0x2b8] sm:$0xff]  ;;  %13523 = vst [vmem:[#allocation254_spill] sm:$0xff] %v7074_v58  ;;  %13525 = vst [vmem:[#allocation255_spill] sm:$0xff] %v7078_v18  ;;  %v13526_v47 = vld [vmem:[#allocation129_spill] sm:$0xff]  ;;  %v7096_v18 = vpop.eup %3445 }
 0x19a   : > { %13519 = vst [vmem:[#allocation128_spill] sm:$0xff] %v7064_v36  ;;  %3463 = vpow2.f32 %v13526_v47  ;;  %13527 = vst [vmem:[#allocation129_spill] sm:$0xff] %v7082_v0  ;;  %v7087_v59 = vld [vmem:[%s4743_s4 + $0x2d8] sm:$0xff]  ;;  %v7092_v12 = vld [vmem:[%s4743_s4 + $0x2e0] sm:$0xff] }
 0x19b   : > { %13529 = vst [vmem:[#allocation256_spill] sm:$0xff] %v7087_v59  ;;  %13531 = vst [vmem:[#allocation257_spill] sm:$0xff] %v7092_v12  ;;  %3465 = vpow2.f32 %v6612_v5  ;;  %v7100_v47 = vld [vmem:[%s4743_s4 + $0x2e8] sm:$0xff]  ;;  %v7105_v14 = vld [vmem:[%s4743_s4 + $0x2f0] sm:$0xff] }
 0x19c   : > { %13533 = vst [vmem:[#allocation258_spill] sm:$0xff] %v7096_v18  ;;  %13534 = vst [vmem:[#allocation259_spill] sm:$0xff] %v7100_v47  ;;  %v7110_v50 = vld [vmem:[%s4743_s4 + $0x2f8] sm:$0xff]  ;;  %v7114_v18 = vpop.eup %3447  ;;  %v13541_v5 = vld [vmem:[#allocation130_spill] sm:$0xff] }
 0x19d   : > { %13536 = vst [vmem:[#allocation260_spill] sm:$0xff] %v7105_v14  ;;  %13538 = vst [vmem:[#allocation261_spill] sm:$0xff] %v7110_v50  ;;  %3467 = vpow2.f32 %v13541_v5  ;;  %v7118_v19 = vld [vmem:[%s4743_s4 + $0x300] sm:$0xff]  ;;  %v7123_v20 = vld [vmem:[%s4743_s4 + $0x308] sm:$0xff] }
 0x19e   : > { %13540 = vst [vmem:[#allocation262_spill] sm:$0xff] %v7114_v18  ;;  %13542 = vst [vmem:[#allocation130_spill] sm:$0xff] %v7118_v19  ;;  %v7128_v0 = vld [vmem:[%s4743_s4 + $0x310] sm:$0xff]  ;;  %v7132_v18 = vpop.eup %3449  ;;  %v7136_v59 = vld [vmem:[%s4743_s4 + $0x318] sm:$0xff] }
 0x19f   : > { %13544 = vst [vmem:[#allocation263_spill] sm:$0xff] %v7123_v20  ;;  %13546 = vst [vmem:[#allocation264_spill] sm:$0xff] %v7128_v0  ;;  %v13549_v5 = vld [vmem:[#allocation131_spill] sm:$0xff]  ;;  %v7141_v12 = vld [vmem:[%s4743_s4 + $0x320] sm:$0xff]  ;;  %v7148_v14 = vpop.eup %3451 }
 0x1a0   : > { %13548 = vst [vmem:[#allocation265_spill] sm:$0xff] %v7132_v18  ;;  %3469 = vpow2.f32 %v13549_v5  ;;  %13550 = vst [vmem:[#allocation131_spill] sm:$0xff] %v7136_v59  ;;  %v13554_v47 = vld [vmem:[#allocation18_spill] sm:$0xff]  ;;  %v13555_v20 = vld [vmem:[#allocation79_spill] sm:$0xff] }
 0x1a1   : > { %13552 = vst [vmem:[#allocation266_spill] sm:$0xff] %v7141_v12  ;;  %v13556_v58 = vsub.f32 %v13554_v47, %v13555_v20  ;;  %13557 = vst [vmem:[#allocation267_spill] sm:$0xff] %v7148_v14  ;;  %3471 = vpow2.f32 %v6633_v44  ;;  %v7152_v5 = vld [vmem:[%s4743_s4 + $0x328] sm:$0xff]  ;;  %v7157_v50 = vld [vmem:[%s4743_s4 + $0x330] sm:$0xff]  ;;  %v7164_v14 = vpop.eup %3453 }
 0x1a2   : > { %13558 = vst [vmem:[#allocation268_spill] sm:$0xff] %v7152_v5  ;;  %13560 = vst [vmem:[#allocation269_spill] sm:$0xff] %v7157_v50  ;;  %v13561_v59 = vld [vmem:[#allocation64_spill] sm:$0xff]  ;;  %v13562_v19 = vld [vmem:[#allocation83_spill] sm:$0xff]  ;;  %3473 = vpow2.f32 %v6638_v31 }
 0x1a3   : > { %v1262_v63 = vmul.f32 1.442695, %v13556_v58  ;;  %v13563_v12 = vld [vmem:[#allocation85_spill] sm:$0xff]  ;;  %13565 = vst [vmem:[#allocation270_spill] sm:$0xff] %v7164_v14  ;;  %v7168_v44 = vld [vmem:[%s4743_s4 + $0x338] sm:$0xff]  ;;  %3475 = vpow2.f32 %v6643_v43  ;;  %v7184_v31 = vld [vmem:[%s4743_s4 + $0x348] sm:$0xff] }
 0x1a4   : > { %v13564_v20 = vsub.f32 %v13562_v19, %v13563_v12  ;;  %13566 = vst [vmem:[#allocation271_spill] sm:$0xff] %v7168_v44  ;;  %v7173_v18 = vld [vmem:[%s4743_s4 + $0x340] sm:$0xff]  ;;  %v13570_v12 = vsub.f32 %v6938_v29, %v13466_v8  ;;  %v7180_v19 = vpop.eup %3455  ;;  %13572 = vst [vmem:[#allocation274_spill] sm:$0xff] %v7184_v31  ;;  %v7189_v47 = vld [vmem:[%s4743_s4 + $0x350] sm:$0xff]  ;;  %v13575_v8 = vsub.f32 %v6943_v6, %v13468_v57  ;;  %v1270_v57 = vmul.f32 1.442695, %v13580_v38 }
 0x1a5   : > { %13568 = vst [vmem:[#allocation272_spill] sm:$0xff] %v7173_v18  ;;  %13571 = vst [vmem:[#allocation273_spill] sm:$0xff] %v7180_v19  ;;  %v7196_v29 = vpop.eup %3457  ;;  %v7199_v19 = vld [vmem:[%s4743_s4 + $0x358] sm:$0xff]  ;;  %v7204_v18 = vld [vmem:[%s4743_s4 + $0x360] sm:$0xff]  ;;  %3477 = vpow2.f32 %v1262_v63  ;;  %v13586_v63 = vsub.f32 %v6956_v45, %v13474_v2 }
 0x1a6   : > { %v1264_v58 = vmul.f32 1.442695, %v13564_v20  ;;  %v1266_v20 = vmul.f32 1.442695, %v13570_v12  ;;  %v1268_v12 = vmul.f32 1.442695, %v13575_v8  ;;  %v7211_v8 = vpop.eup %3459 }
 0x1a7   : > { %13576 = vst [vmem:[#allocation275_spill] sm:$0xff] %v7196_v29  ;;  %13577 = vst [vmem:[#allocation276_spill] sm:$0xff] %v7199_v19  ;;  %v13579_v32 = vld [vmem:[#allocation21_spill] sm:$0xff]  ;;  %v7214_v29 = vld [vmem:[%s4743_s4 + $0x368] sm:$0xff]  ;;  %v1272_v14 = vmul.f32 1.442695, %v13586_v63  ;;  %v7226_v38 = vpop.eup %3461 }
 0x1a8   : > { %13581 = vst [vmem:[#allocation277_spill] sm:$0xff] %v7211_v8  ;;  %13582 = vst [vmem:[#allocation278_spill] sm:$0xff] %v7214_v29  ;;  %v7219_v5 = vld [vmem:[%s4743_s4 + $0x370] sm:$0xff]  ;;  %v13585_v43 = vld [vmem:[#allocation78_spill] sm:$0xff]  ;;  %3479 = vpow2.f32 %v1264_v58  ;;  %v13592_v58 = vsub.f32 %v6961_v51, %v13476_v11  ;;  %v7241_v63 = vpop.eup %3463 }
 0x1a9   : > { %13584 = vst [vmem:[#allocation279_spill] sm:$0xff] %v7219_v5  ;;  %13587 = vst [vmem:[#allocation280_spill] sm:$0xff] %v7226_v38  ;;  %v7229_v1 = vld [vmem:[%s4743_s4 + $0x378] sm:$0xff]  ;;  %v7234_v44 = vld [vmem:[%s4743_s4 + $0x380] sm:$0xff]  ;;  %3481 = vpow2.f32 %v1266_v20  ;;  %v13598_v20 = vsub.f32 %v6966_v23, %v13478_v3 }
 0x1aa   : > { %13588 = vst [vmem:[#allocation281_spill] sm:$0xff] %v7229_v1  ;;  %13590 = vst [vmem:[#allocation282_spill] sm:$0xff] %v7234_v44  ;;  %v13591_v6 = vld [vmem:[#allocation25_spill] sm:$0xff]  ;;  %v1274_v19 = vmul.f32 1.442695, %v13592_v58  ;;  %v7244_v2 = vld [vmem:[%s4743_s4 + $0x388] sm:$0xff]  ;;  %3483 = vpow2.f32 %v1268_v12  ;;  %v7256_v58 = vpop.eup %3465  ;;  %v13604_v12 = vsub.f32 %v6974_v46, %v13482_v17 }
 0x1ab   : > { %13593 = vst [vmem:[#allocation283_spill] sm:$0xff] %v7241_v63  ;;  %13594 = vst [vmem:[#allocation284_spill] sm:$0xff] %v7244_v2  ;;  %v7249_v60 = vld [vmem:[%s4743_s4 + $0x390] sm:$0xff]  ;;  %v13597_v8 = vld [vmem:[#allocation29_spill] sm:$0xff]  ;;  %v1276_v29 = vmul.f32 1.442695, %v13598_v20  ;;  %3485 = vpow2.f32 %v1270_v57  ;;  %v7271_v20 = vpop.eup %3467  ;;  %v13610_v57 = vsub.f32 %v6979_v27, %v13484_v10 }
 0x1ac   : > { %13596 = vst [vmem:[#allocation285_spill] sm:$0xff] %v7249_v60  ;;  %13599 = vst [vmem:[#allocation286_spill] sm:$0xff] %v7256_v58  ;;  %v7259_v11 = vld [vmem:[%s4743_s4 + $0x398] sm:$0xff]  ;;  %v7264_v45 = vld [vmem:[%s4743_s4 + $0x3a0] sm:$0xff]  ;;  %v1278_v1 = vmul.f32 1.442695, %v13604_v12  ;;  %3487 = vpow2.f32 %v1272_v14  ;;  %v7286_v12 = vpop.eup %3469  ;;  %v13616_v14 = vsub.f32 %v6984_v53, %v13486_v48  ;;  %v13636_v53 = vsub.f32 %v7015_v49, %v13498_v16 }
 0x1ad   : > { %13600 = vst [vmem:[#allocation287_spill] sm:$0xff] %v7259_v11  ;;  %13602 = vst [vmem:[#allocation288_spill] sm:$0xff] %v7264_v45  ;;  %v13603_v38 = vld [vmem:[#allocation47_spill] sm:$0xff]  ;;  %v7274_v3 = vld [vmem:[%s4743_s4 + $0x3a8] sm:$0xff]  ;;  %v1280_v2 = vmul.f32 1.442695, %v13610_v57  ;;  %3489 = vpow2.f32 %v1274_v19  ;;  %v7301_v57 = vpop.eup %3471  ;;  %v13622_v19 = vsub.f32 %v6992_v35, %v13490_v39 }
 0x1ae   : > { %13605 = vst [vmem:[#allocation289_spill] sm:$0xff] %v7271_v20  ;;  %13606 = vst [vmem:[#allocation290_spill] sm:$0xff] %v7274_v3  ;;  %v7279_v51 = vld [vmem:[%s4743_s4 + $0x3b0] sm:$0xff]  ;;  %v7289_v17 = vld [vmem:[%s4743_s4 + $0x3b8] sm:$0xff]  ;;  %v1282_v11 = vmul.f32 1.442695, %v13616_v14  ;;  %3491 = vpow2.f32 %v1276_v29  ;;  %v7316_v14 = vpop.eup %3473  ;;  %v13628_v29 = vsub.f32 %v6997_v52, %v13492_v25 }
 0x1af   : > { %13608 = vst [vmem:[#allocation291_spill] sm:$0xff] %v7279_v51  ;;  %v13609_v63 = vld [vmem:[#allocation147_spill] sm:$0xff]  ;;  %13611 = vst [vmem:[#allocation292_spill] sm:$0xff] %v7286_v12  ;;  %v7294_v23 = vld [vmem:[%s4743_s4 + $0x3c0] sm:$0xff]  ;;  %v1284_v3 = vmul.f32 1.442695, %v13622_v19  ;;  %3493 = vpow2.f32 %v1278_v1  ;;  %v7331_v39 = vpop.eup %3475  ;;  %v13632_v1 = vsub.f32 %v7002_v56, %v13493_v28 }
 0x1b0   : > { %13612 = vst [vmem:[#allocation293_spill] sm:$0xff] %v7289_v17  ;;  %13614 = vst [vmem:[#allocation294_spill] sm:$0xff] %v7294_v23  ;;  %v7304_v10 = vld [vmem:[%s4743_s4 + $0x3c8] sm:$0xff]  ;;  %v7309_v46 = vld [vmem:[%s4743_s4 + $0x3d0] sm:$0xff]  ;;  %v1286_v17 = vmul.f32 1.442695, %v13628_v29  ;;  %3495 = vpow2.f32 %v1280_v2  ;;  %v7346_v27 = vpop.eup %3477 }
 0x1b1   : > { %13617 = vst [vmem:[#allocation295_spill] sm:$0xff] %v7301_v57  ;;  %13618 = vst [vmem:[#allocation296_spill] sm:$0xff] %v7304_v10  ;;  %v13621_v20 = vld [vmem:[#allocation49_spill] sm:$0xff]  ;;  %v7319_v48 = vld [vmem:[%s4743_s4 + $0x3d8] sm:$0xff]  ;;  %v1288_v12 = vmul.f32 1.442695, %v13632_v1  ;;  %3497 = vpow2.f32 %v1282_v11  ;;  %v13638_v1 = vsub.f32 %v7020_v22, %v13500_v62  ;;  %v13640_v11 = vsub.f32 %v7033_v40, %v13506_v15 }
 0x1b2   : > { %13620 = vst [vmem:[#allocation297_spill] sm:$0xff] %v7309_v46  ;;  %13623 = vst [vmem:[#allocation298_spill] sm:$0xff] %v7316_v14  ;;  %v13625_v57 = vld [vmem:[#allocation86_spill] sm:$0xff]  ;;  %v7324_v58 = vld [vmem:[%s4743_s4 + $0x3e0] sm:$0xff]  ;;  %v13635_v14 = vsub.f32 %v7010_v26, %v13496_v61  ;;  %v1292_v2 = vmul.f32 1.442695, %v13636_v53  ;;  %v7359_v52 = vpop.eup %3479  ;;  %3499 = vpow2.f32 %v1284_v3  ;;  %v13642_v53 = vsub.f32 %v7038_v9, %v13508_v4 }
 0x1b3   : > { %13624 = vst [vmem:[#allocation299_spill] sm:$0xff] %v7319_v48  ;;  %13626 = vst [vmem:[#allocation300_spill] sm:$0xff] %v7324_v58  ;;  %v7334_v19 = vld [vmem:[%s4743_s4 + $0x3e8] sm:$0xff]  ;;  %v7339_v35 = vld [vmem:[%s4743_s4 + $0x3f0] sm:$0xff]  ;;  %v1294_v28 = vmul.f32 1.442695, %v13638_v1  ;;  %3501 = vpow2.f32 %v1286_v17  ;;  %v13643_v3 = vsub.f32 %v7046_v24, %v13512_v30  ;;  %v13644_v1 = vsub.f32 %v7051_v37, %v13514_v54 }
 0x1b4   : > { %13629 = vst [vmem:[#allocation301_spill] sm:$0xff] %v7331_v39  ;;  %13630 = vst [vmem:[#allocation302_spill] sm:$0xff] %v7334_v19  ;;  %v7349_v29 = vld [vmem:[%s4743_s4 + $0x3f8] sm:$0xff]  ;;  %v1290_v39 = vmul.f32 1.442695, %v13635_v14  ;;  %v7370_v14 = vpop.eup %3481  ;;  %3503 = vpow2.f32 %v1288_v12  ;;  %v13647_v17 = vsub.f32 %v7064_v36, %v13520_v41  ;;  %v13652_v54 = vld [vmem:[#allocation254_spill] sm:$0xff] }
 0x1b5   : > { %13631 = vst [vmem:[#allocation303_spill] sm:$0xff] %v7339_v35  ;;  %13633 = vst [vmem:[#allocation304_spill] sm:$0xff] %v7346_v27  ;;  %v13639_v27 = vsub.f32 %v7028_v7, %v13504_v13  ;;  %v1298_v61 = vmul.f32 1.442695, %v13640_v11  ;;  %v1300_v16 = vmul.f32 1.442695, %v13642_v53  ;;  %v13646_v11 = vsub.f32 %v7056_v42, %v13516_v55 }
 0x1b6   : > { %13634 = vst [vmem:[#allocation305_spill] sm:$0xff] %v7349_v29  ;;  %13637 = vst [vmem:[#allocation306_spill] sm:$0xff] %v7359_v52  ;;  %v1302_v62 = vmul.f32 1.442695, %v13643_v3  ;;  %v1304_v13 = vmul.f32 1.442695, %v13644_v1  ;;  %3505 = vpow2.f32 %v1290_v39 }
 0x1b7   : > { %v1296_v25 = vmul.f32 1.442695, %v13639_v27  ;;  %13641 = vst [vmem:[#allocation307_spill] sm:$0xff] %v7370_v14  ;;  %v7381_v27 = vpop.eup %3483  ;;  %v1306_v15 = vmul.f32 1.442695, %v13646_v11  ;;  %v13648_v53 = vld [vmem:[#allocation253_spill] sm:$0xff]  ;;  %3507 = vpow2.f32 %v1292_v2 }
 0x1b8   : > { %13645 = vst [vmem:[#allocation308_spill] sm:$0xff] %v7381_v27  ;;  %v1308_v4 = vmul.f32 1.442695, %v13647_v17  ;;  %v13649_v14 = vld [vmem:[#allocation32_spill] sm:$0xff]  ;;  %v7392_v3 = vpop.eup %3485  ;;  %v13653_v1 = vld [vmem:[#allocation35_spill] sm:$0xff]  ;;  %v13655_v12 = vld [vmem:[#allocation129_spill] sm:$0xff]  ;;  %3509 = vpow2.f32 %v1294_v28 }
 0x1b9   : > { %v13650_v52 = vsub.f32 %v13648_v53, %v13649_v14  ;;  %13651 = vst [vmem:[#allocation309_spill] sm:$0xff] %v7392_v3  ;;  %v13654_v37 = vsub.f32 %v13652_v54, %v13653_v1  ;;  %v13656_v24 = vld [vmem:[#allocation36_spill] sm:$0xff]  ;;  %v13659_v42 = vld [vmem:[#allocation37_spill] sm:$0xff]  ;;  %v7403_v17 = vpop.eup %3487  ;;  %v13665_v39 = vld [vmem:[#allocation259_spill] sm:$0xff]  ;;  %3511 = vpow2.f32 %v1296_v25 }
 0x1ba   : > { %v13657_v9 = vsub.f32 %v13655_v12, %v13656_v24  ;;  %v13658_v11 = vld [vmem:[#allocation256_spill] sm:$0xff]  ;;  %13661 = vst [vmem:[#allocation310_spill] sm:$0xff] %v7403_v17  ;;  %v13662_v14 = vld [vmem:[#allocation257_spill] sm:$0xff]  ;;  %v13666_v36 = vld [vmem:[#allocation43_spill] sm:$0xff]  ;;  %3513 = vpow2.f32 %v1298_v61 }
 0x1bb   : > { %v1310_v30 = vmul.f32 1.442695, %v13650_v52  ;;  %v1312_v27 = vmul.f32 1.442695, %v13654_v37  ;;  %v13660_v40 = vsub.f32 %v13658_v11, %v13659_v42  ;;  %v13663_v52 = vld [vmem:[#allocation42_spill] sm:$0xff]  ;;  %v13667_v1 = vsub.f32 %v13665_v39, %v13666_v36  ;;  %v13668_v54 = vld [vmem:[#allocation260_spill] sm:$0xff]  ;;  %v7420_v42 = vpop.eup %3489 }
 0x1bc   : > { %v1314_v55 = vmul.f32 1.442695, %v13657_v9  ;;  %v13664_v53 = vsub.f32 %v13662_v14, %v13663_v52  ;;  %v13669_v24 = vld [vmem:[#allocation44_spill] sm:$0xff]  ;;  %13671 = vst [vmem:[#allocation311_spill] sm:$0xff] %v7420_v42  ;;  %v13673_v2 = vld [vmem:[#allocation50_spill] sm:$0xff]  ;;  %v13676_v52 = vld [vmem:[#allocation51_spill] sm:$0xff]  ;;  %3515 = vpow2.f32 %v1300_v16 }
 0x1bd   : > { %v1316_v41 = vmul.f32 1.442695, %v13660_v40  ;;  %v7413_v37 = vmul.f32 1.442695, %v13667_v1  ;;  %v13670_v9 = vsub.f32 %v13668_v54, %v13669_v24  ;;  %v13672_v40 = vld [vmem:[#allocation261_spill] sm:$0xff]  ;;  %v13678_v1 = vld [vmem:[#allocation263_spill] sm:$0xff]  ;;  %3517 = vpow2.f32 %v1302_v62 }
 0x1be   : > { %v7408_v3 = vmul.f32 1.442695, %v13664_v53  ;;  %v13674_v17 = vsub.f32 %v13672_v40, %v13673_v2  ;;  %v13675_v53 = vld [vmem:[#allocation130_spill] sm:$0xff]  ;;  %v13679_v36 = vld [vmem:[#allocation52_spill] sm:$0xff]  ;;  %v13682_v28 = vld [vmem:[#allocation57_spill] sm:$0xff]  ;;  %3519 = vpow2.f32 %v1304_v13  ;;  %v13715_v62 = vsub.f32 %v7219_v5, %v13585_v43 }
 0x1bf   : > { %v7418_v12 = vmul.f32 1.442695, %v13670_v9  ;;  %v13677_v14 = vsub.f32 %v13675_v53, %v13676_v52  ;;  %v13680_v39 = vsub.f32 %v13678_v1, %v13679_v36  ;;  %v7437_v9 = vpop.eup %3491  ;;  %v13683_v24 = vsub.f32 %v7128_v0, %v13682_v28  ;;  %v13685_v2 = vld [vmem:[#allocation58_spill] sm:$0xff]  ;;  %v13688_v52 = vld [vmem:[#allocation59_spill] sm:$0xff]  ;;  %v13691_v36 = vld [vmem:[#allocation268_spill] sm:$0xff] }
 0x1c0   : > { %v7425_v11 = vmul.f32 1.442695, %v13674_v17  ;;  %13681 = vst [vmem:[#allocation312_spill] sm:$0xff] %v7437_v9  ;;  %v13684_v17 = vld [vmem:[#allocation131_spill] sm:$0xff]  ;;  %v13700_v61 = vld [vmem:[#allocation69_spill] sm:$0xff]  ;;  %v13708_v16 = vld [vmem:[#allocation76_spill] sm:$0xff]  ;;  %3521 = vpow2.f32 %v1306_v15  ;;  %v13729_v15 = vsub.f32 %v7264_v45, %v13603_v38 }
 0x1c1   : > { %v7430_v7 = vmul.f32 1.442695, %v13677_v14  ;;  %v7435_v22 = vmul.f32 1.442695, %v13680_v39  ;;  %v7442_v42 = vmul.f32 1.442695, %v13683_v24  ;;  %v13686_v40 = vsub.f32 %v13684_v17, %v13685_v2  ;;  %v7454_v39 = vpop.eup %3493 }
 0x1c2   : > { %v13687_v14 = vld [vmem:[#allocation266_spill] sm:$0xff]  ;;  %13690 = vst [vmem:[#allocation313_spill] sm:$0xff] %v7454_v39  ;;  %v13692_v25 = vld [vmem:[#allocation63_spill] sm:$0xff]  ;;  %v13694_v24 = vsub.f32 %v7157_v50, %v13561_v59  ;;  %v13696_v2 = vld [vmem:[#allocation65_spill] sm:$0xff]  ;;  %3523 = vpow2.f32 %v1308_v4 }
 0x1c3   : > { %v7447_v54 = vmul.f32 1.442695, %v13686_v40  ;;  %v13689_v53 = vsub.f32 %v13687_v14, %v13688_v52  ;;  %v13693_v9 = vsub.f32 %v13691_v36, %v13692_v25  ;;  %v13695_v40 = vld [vmem:[#allocation271_spill] sm:$0xff]  ;;  %v13699_v52 = vld [vmem:[#allocation272_spill] sm:$0xff]  ;;  %v13722_v13 = vld [vmem:[#allocation26_spill] sm:$0xff]  ;;  %3525 = vpow2.f32 %v1310_v30 }
 0x1c4   : > { %v7464_v28 = vmul.f32 1.442695, %v13694_v24  ;;  %v13697_v17 = vsub.f32 %v13695_v40, %v13696_v2  ;;  %v13701_v39 = vsub.f32 %v13699_v52, %v13700_v61  ;;  %v13704_v24 = vld [vmem:[#allocation71_spill] sm:$0xff]  ;;  %v13707_v2 = vld [vmem:[#allocation276_spill] sm:$0xff]  ;;  %v13747_v30 = vsub.f32 %v7309_v46, %v13621_v20  ;;  %v13776_v46 = vld [vmem:[#allocation81_spill] sm:$0xff] }
 0x1c5   : > { %v7452_v49 = vmul.f32 1.442695, %v13689_v53  ;;  %v7459_v1 = vmul.f32 1.442695, %v13693_v9  ;;  %v7471_v53 = vpop.eup %3495  ;;  %v13702_v9 = vld [vmem:[#allocation70_spill] sm:$0xff]  ;;  %v13705_v59 = vsub.f32 %v7189_v47, %v13704_v24  ;;  %v13737_v4 = vld [vmem:[#allocation48_spill] sm:$0xff]  ;;  %3527 = vpow2.f32 %v1312_v27 }
 0x1c6   : > { %v7469_v0 = vmul.f32 1.442695, %v13697_v17  ;;  %13698 = vst [vmem:[#allocation314_spill] sm:$0xff] %v7471_v53  ;;  %v7476_v14 = vmul.f32 1.442695, %v13701_v39  ;;  %v13703_v25 = vsub.f32 %v7184_v31, %v13702_v9  ;;  %v7488_v17 = vpop.eup %3497  ;;  %v13709_v53 = vsub.f32 %v13707_v2, %v13708_v16  ;;  %v13712_v9 = vld [vmem:[#allocation77_spill] sm:$0xff] }
 0x1c7   : > { %v7486_v50 = vmul.f32 1.442695, %v13705_v59  ;;  %13706 = vst [vmem:[#allocation315_spill] sm:$0xff] %v7488_v17  ;;  %v13710_v39 = vsub.f32 %v7204_v18, %v13579_v32  ;;  %v7505_v59 = vpop.eup %3499  ;;  %v7510_v24 = vmul.f32 1.442695, %v13715_v62  ;;  %v13717_v16 = vld [vmem:[#allocation23_spill] sm:$0xff]  ;;  %v13724_v62 = vsub.f32 %v7249_v60, %v13597_v8 }
 0x1c8   : > { %v7481_v36 = vmul.f32 1.442695, %v13703_v25  ;;  %v7493_v40 = vmul.f32 1.442695, %v13709_v53  ;;  %v13711_v25 = vld [vmem:[#allocation278_spill] sm:$0xff]  ;;  %13714 = vst [vmem:[#allocation316_spill] sm:$0xff] %v7505_v59  ;;  %3529 = vpow2.f32 %v1314_v55  ;;  %v13755_v27 = vsub.f32 %v7334_v19, %v13364_v21 }
 0x1c9   : > { %v7498_v61 = vmul.f32 1.442695, %v13710_v39  ;;  %v13713_v31 = vsub.f32 %v13711_v25, %v13712_v9  ;;  %v13716_v53 = vld [vmem:[#allocation281_spill] sm:$0xff]  ;;  %v13719_v39 = vsub.f32 %v7234_v44, %v13591_v6  ;;  %v13721_v9 = vld [vmem:[#allocation284_spill] sm:$0xff]  ;;  %v7532_v43 = vmul.f32 1.442695, %v13724_v62 }
 0x1ca   : > { %v13718_v17 = vsub.f32 %v13716_v53, %v13717_v16  ;;  %v13723_v59 = vsub.f32 %v13721_v9, %v13722_v13  ;;  %v13726_v16 = vld [vmem:[#allocation41_spill] sm:$0xff]  ;;  %v7544_v6 = vmul.f32 1.442695, %v13729_v15  ;;  %v13731_v13 = vld [vmem:[#allocation146_spill] sm:$0xff]  ;;  %v13733_v62 = vsub.f32 %v7279_v51, %v13609_v63  ;;  %v13740_v15 = vld [vmem:[#allocation148_spill] sm:$0xff] }
 0x1cb   : > { %v7503_v52 = vmul.f32 1.442695, %v13713_v31  ;;  %v7520_v32 = vmul.f32 1.442695, %v13719_v39  ;;  %v7522_v31 = vpop.eup %3501  ;;  %v13741_v45 = vsub.f32 %v7294_v23, %v13740_v15  ;;  %v13749_v15 = vsub.f32 %v7319_v48, %v13625_v57  ;;  %v7610_v55 = vld [vmem:[%s4754_s26] sm:$0xff]  ;;  %v13793_v60 = vld [vmem:[#allocation171_spill] sm:$0xff] }
 0x1cc   : > { %v7515_v2 = vmul.f32 1.442695, %v13718_v17  ;;  %13720 = vst [vmem:[#allocation317_spill] sm:$0xff] %v7522_v31  ;;  %v7527_v25 = vmul.f32 1.442695, %v13723_v59  ;;  %v13725_v17 = vld [vmem:[#allocation287_spill] sm:$0xff]  ;;  %v7539_v39 = vpop.eup %3503  ;;  %v13757_v57 = vsub.f32 %v7339_v35, %v13367_v33  ;;  %3531 = vpow2.f32 %v1316_v41 }
 0x1cd   : > { %v13727_v53 = vsub.f32 %v13725_v17, %v13726_v16  ;;  %13728 = vst [vmem:[#allocation318_spill] sm:$0xff] %v7539_v39  ;;  %v13730_v59 = vld [vmem:[#allocation290_spill] sm:$0xff]  ;;  %v7554_v8 = vmul.f32 1.442695, %v13733_v62  ;;  %v13736_v16 = vld [vmem:[#allocation293_spill] sm:$0xff]  ;;  %vm1390_vm0 = vcmp.eq.s32.totalorder %v7610_v55, 1  ;;  %3533 = vpow2.f32 %v7408_v3 }
 0x1ce   : > { %v13732_v31 = vsub.f32 %v13730_v59, %v13731_v13  ;;  %v13738_v39 = vsub.f32 %v13736_v16, %v13737_v4  ;;  %v7566_v13 = vmul.f32 1.442695, %v13741_v45  ;;  %v7583_v45 = vmul.f32 1.442695, %v13749_v15  ;;  %v13751_v4 = vld [vmem:[#allocation90_spill] sm:$0xff]  ;;  %v7625_v41 = vld [vmem:[%s4754_s26 + $0x18] sm:$0xff] }
 0x1cf   : > { %v7537_v5 = vmul.f32 1.442695, %v13727_v53  ;;  %13734 = vst [vmem:[#allocation319_spill] sm:$0xff] %v7554_v8  ;;  %v7556_v53 = vpop.eup %3505  ;;  %v7600_v15 = vmul.f32 1.442695, %v13757_v57  ;;  %v7618_v57 = vld [vmem:[%s4754_s26 + $0x10] sm:$0xff]  ;;  %3535 = vpow2.f32 %v7413_v37 }
 0x1d0   : > { %v7549_v9 = vmul.f32 1.442695, %v13732_v31  ;;  %13735 = vst [vmem:[#allocation320_spill] sm:$0xff] %v7556_v53  ;;  %v7561_v38 = vmul.f32 1.442695, %v13738_v39  ;;  %13742 = vst [vmem:[#allocation322_spill] sm:$0xff] %v7566_v13  ;;  %v7573_v63 = vpop.eup %3507  ;;  %3537 = vpow2.f32 %v7418_v12 }
 0x1d1   : > { %v13743_v31 = vld [vmem:[#allocation84_spill] sm:$0xff]  ;;  %13746 = vst [vmem:[#allocation324_spill] sm:$0xff] %v7573_v63  ;;  %v7578_v39 = vmul.f32 1.442695, %v13747_v30  ;;  %13750 = vst [vmem:[#allocation326_spill] sm:$0xff] %v7583_v45  ;;  %vm1392_vm3 = vcmp.eq.s32.totalorder %v7618_v57, 1  ;;  %3539 = vpow2.f32 %v7425_v11 }
 0x1d2   : > { %13739 = vst [vmem:[#allocation321_spill] sm:$0xff] %v7561_v38  ;;  %v13744_v59 = vsub.f32 %v7304_v10, %v13743_v31  ;;  %v13752_v31 = vsub.f32 %v7324_v58, %v13751_v4  ;;  %v7595_v30 = vmul.f32 1.442695, %v13755_v27  ;;  %13758 = vst [vmem:[#allocation330_spill] sm:$0xff] %v7600_v15  ;;  %v13759_v4 = vsub.f32 %v7349_v29, %v13370_v34  ;;  %v7614_v27 = vld [vmem:[%s4754_s26 + $0x8] sm:$0xff]  ;;  %v7629_v34 = vld [vmem:[%s4754_s26 + $0x20] sm:$0xff] }
 0x1d3   : > { %13748 = vst [vmem:[#allocation325_spill] sm:$0xff] %v7578_v39  ;;  %vm1391_vm1 = vcmp.eq.s32.totalorder %v7614_v27, 1  ;;  %vm1393_vm4 = vcmp.eq.s32.totalorder %v7625_v41, 1  ;;  %vm1394_vm5 = vcmp.eq.s32.totalorder %v7629_v34, 1  ;;  %v7633_v33 = vld [vmem:[%s4754_s26 + $0x28] sm:$0xff]  ;;  %v7640_v3 = vld [vmem:[%s4754_s26 + $0x30] sm:$0xff] }
 0x1d4   : > { %v7571_v62 = vmul.f32 1.442695, %v13744_v59  ;;  %v7588_v53 = vmul.f32 1.442695, %v13752_v31  ;;  %v7590_v59 = vpop.eup %3509  ;;  %13756 = vst [vmem:[#allocation329_spill] sm:$0xff] %v7595_v30  ;;  %vm1395_vm6 = vcmp.eq.s32.totalorder %v7633_v33, 1  ;;  %3541 = vpow2.f32 %v7430_v7 }
 0x1d5   : > { %13754 = vst [vmem:[#allocation328_spill] sm:$0xff] %v7590_v59  ;;  %v7605_v31 = vmul.f32 1.442695, %v13759_v4  ;;  %v7607_v20 = vpop.eup %3511  ;;  %vm1396_vm7 = vcmp.eq.s32.totalorder %v7640_v3, 1  ;;  %v7655_v37 = vld [vmem:[%s4754_s26 + $0x48] sm:$0xff]  ;;  %v7663_v63 = vld [vmem:[%s4754_s26 + $0x58] sm:$0xff]  ;;  %3543 = vpow2.f32 %v7435_v22 }
 0x1d6   : > { %13745 = vst [vmem:[#allocation323_spill] sm:$0xff] %v7571_v62  ;;  %13753 = vst [vmem:[#allocation327_spill] sm:$0xff] %v7588_v53  ;;  %v7621_v4 = vpop.eup %3513  ;;  %vm1399_vm13 = vcmp.eq.s32.totalorder %v7655_v37, 1  ;;  %v7670_v12 = vld [vmem:[%s4754_s26 + $0x60] sm:$0xff]  ;;  %v7678_v15 = vld [vmem:[%s4754_s26 + $0x70] sm:$0xff]  ;;  %3545 = vpow2.f32 %v7442_v42 }
 0x1d7   : > { %13760 = vst [vmem:[#allocation331_spill] sm:$0xff] %v7605_v31  ;;  %13761 = vst [vmem:[#allocation332_spill] sm:$0xff] %v7607_v20  ;;  %v7636_v21 = vpop.eup %3515  ;;  %v7648_v20 = vld [vmem:[%s4754_s26 + $0x40] sm:$0xff]  ;;  %v7693_v53 = vld [vmem:[%s4754_s26 + $0x88] sm:$0xff]  ;;  %3547 = vpow2.f32 %v7447_v54 }
 0x1d8   : > { %13762 = vst [vmem:[#allocation333_spill] sm:$0xff] %v7621_v4  ;;  %13763 = vst [vmem:[#allocation334_spill] sm:$0xff] %v7636_v21  ;;  %v7644_v4 = vld [vmem:[%s4754_s26 + $0x38] sm:$0xff]  ;;  %vm1398_vm9 = vcmp.eq.s32.totalorder %v7648_v20, 1  ;;  %v7651_v59 = vpop.eup %3517  ;;  %v7659_v21 = vld [vmem:[%s4754_s26 + $0x50] sm:$0xff]  ;;  %3549 = vpow2.f32 %v7452_v49 }
 0x1d9   : > { %vm1397_vm8 = vcmp.eq.s32.totalorder %v7644_v4, 1  ;;  %13764 = vst [vmem:[#allocation335_spill] sm:$0xff] %v7651_v59  ;;  %v7666_v31 = vpop.eup %3519  ;;  %v7674_v59 = vld [vmem:[%s4754_s26 + $0x68] sm:$0xff]  ;;  %v7689_v11 = vld [vmem:[%s4754_s26 + $0x80] sm:$0xff]  ;;  %v7700_v45 = vld [vmem:[%s4754_s26 + $0x90] sm:$0xff]  ;;  %3551 = vpow2.f32 %v7459_v1 }
 0x1da   : > { %13765 = vst [vmem:[#allocation336_spill] sm:$0xff] %v7666_v31  ;;  %v7681_v30 = vpop.eup %3521  ;;  %v7685_v31 = vld [vmem:[%s4754_s26 + $0x78] sm:$0xff]  ;;  %v13770_v19 = vld [vmem:[#allocation13_spill] sm:$0xff]  ;;  %v13774_v39 = vld [vmem:[#allocation74_spill] sm:$0xff]  ;;  %3553 = vpow2.f32 %v7464_v28  ;;  %v7751_v28 = vsel %vm1392_vm3, %v13793_v60, 0.0 }
 0x1db   : > { %13766 = vst [vmem:[#allocation337_spill] sm:$0xff] %v7681_v30  ;;  %v7696_v29 = vpop.eup %3523  ;;  %v7704_v7 = vld [vmem:[%s4754_s26 + $0x98] sm:$0xff]  ;;  %v13771_v58 = vld [vmem:[#allocation73_spill] sm:$0xff]  ;;  %v13778_v42 = vld [vmem:[#allocation82_spill] sm:$0xff]  ;;  %3555 = vpow2.f32 %v7469_v0 }
 0x1dc   : > { %13767 = vst [vmem:[#allocation338_spill] sm:$0xff] %v7696_v29  ;;  %v13768_v30 = vld [vmem:[#allocation68_spill] sm:$0xff]  ;;  %v7708_v35 = vpop.eup %3525  ;;  %v13772_v29 = vld [vmem:[#allocation14_spill] sm:$0xff]  ;;  %v13775_v48 = vld [vmem:[#allocation17_spill] sm:$0xff]  ;;  %3557 = vpow2.f32 %v7476_v14 }
 0x1dd   : > { %13769 = vst [vmem:[#allocation68_spill] sm:$0xff] %v7708_v35  ;;  %v7714_v22 = vpop.eup %3527  ;;  %v13779_v35 = vld [vmem:[#allocation88_spill] sm:$0xff]  ;;  %v13780_v62 = vld [vmem:[#allocation89_spill] sm:$0xff]  ;;  %v13782_v54 = vld [vmem:[#allocation22_spill] sm:$0xff]  ;;  %3559 = vpow2.f32 %v7481_v36 }
 0x1de   : > { %13773 = vst [vmem:[#allocation13_spill] sm:$0xff] %v7714_v22  ;;  %v7720_v10 = vpop.eup %3529  ;;  %vm1420_vm12 = vcmp.eq.s32.totalorder %v13782_v54, 1  ;;  %v13783_v22 = vld [vmem:[#allocation95_spill] sm:$0xff]  ;;  %v13784_v16 = vld [vmem:[#allocation96_spill] sm:$0xff]  ;;  %v13786_v49 = vld [vmem:[#allocation97_spill] sm:$0xff]  ;;  %3561 = vpow2.f32 %v7486_v50 }
 0x1df   : > { %13777 = vst [vmem:[#allocation73_spill] sm:$0xff] %v7720_v10  ;;  %v7726_v23 = vpop.eup %3531  ;;  %vm1421_vm2 = vcmp.eq.s32.totalorder %v13783_v22, 1  ;;  %vm1422_vm15 = vcmp.eq.s32.totalorder %v13784_v16, 1  ;;  %vm1423_vm11 = vcmp.eq.s32.totalorder %v13786_v49, 1  ;;  %v13787_v10 = vld [vmem:[#allocation103_spill] sm:$0xff]  ;;  %v13788_v13 = vld [vmem:[#allocation104_spill] sm:$0xff]  ;;  %3563 = vpow2.f32 %v7493_v40 }
 0x1e0   : > { %13781 = vst [vmem:[#allocation14_spill] sm:$0xff] %v7726_v23  ;;  %v7732_v51 = vpop.eup %3533  ;;  %v13789_v17 = vld [vmem:[#allocation18_spill] sm:$0xff]  ;;  %v13791_v23 = vld [vmem:[#allocation83_spill] sm:$0xff]  ;;  %13794 = vst [vmem:[#allocation82_spill] sm:$0xff] %v7751_v28  ;;  %3565 = vpow2.f32 %v7498_v61 }
 0x1e1   : > { %13785 = vst [vmem:[#allocation74_spill] sm:$0xff] %v7732_v51  ;;  %v7741_v1 = vsel %vm1390_vm0, %v13789_v17, 0.0  ;;  %v7746_v38 = vsel %vm1391_vm1, %v13791_v23, 0.0  ;;  %v7753_v51 = vpop.eup %3535  ;;  %v13795_v44 = vld [vmem:[#allocation108_spill] sm:$0xff]  ;;  %v13796_v8 = vld [vmem:[#allocation110_spill] sm:$0xff]  ;;  %v13797_v17 = vld [vmem:[#allocation111_spill] sm:$0xff]  ;;  %3567 = vpow2.f32 %v7503_v52 }
 0x1e2   : > { %13790 = vst [vmem:[#allocation17_spill] sm:$0xff] %v7741_v1  ;;  %13792 = vst [vmem:[#allocation81_spill] sm:$0xff] %v7746_v38  ;;  %vm1426_vm14 = vcmp.eq.s32.totalorder %v13795_v44, 1  ;;  %vm1427_vm10 = vcmp.eq.s32.totalorder %v13796_v8, 1  ;;  %vm1428_vm0 = vcmp.eq.s32.totalorder %v13797_v17, 1  ;;  %v13798_v55 = vld [vmem:[#allocation234_spill] sm:$0xff]  ;;  %v7774_v28 = vpop.eup %3537  ;;  %3569 = vpow2.f32 %v7510_v24 }
 0x1e3   : > { %v7762_v23 = vsel %vm1393_vm4, %v13798_v55, 0.0  ;;  %v13800_v27 = vld [vmem:[#allocation235_spill] sm:$0xff]  ;;  %v13802_v57 = vld [vmem:[#allocation116_spill] sm:$0xff]  ;;  %v13804_v38 = vld [vmem:[#allocation114_spill] sm:$0xff] }
 0x1e4   : > { %13799 = vst [vmem:[#allocation88_spill] sm:$0xff] %v7762_v23  ;;  %v7767_v60 = vsel %vm1394_vm5, %v13800_v27, 0.0  ;;  %v7772_v0 = vsel %vm1395_vm6, %v13802_v57, 0.0  ;;  %vm1429_vm1 = vcmp.eq.s32.totalorder %v13804_v38, 1  ;;  %v13805_v1 = vld [vmem:[#allocation55_spill] sm:$0xff]  ;;  %v13806_v41 = vld [vmem:[#allocation61_spill] sm:$0xff] }
 0x1e5   : > { %13801 = vst [vmem:[#allocation89_spill] sm:$0xff] %v7767_v60  ;;  %13803 = vst [vmem:[#allocation22_spill] sm:$0xff] %v7772_v0  ;;  %vm1430_vm3 = vcmp.eq.s32.totalorder %v13805_v1, 1  ;;  %vm1431_vm4 = vcmp.eq.s32.totalorder %v13806_v41, 1  ;;  %v13807_v55 = vld [vmem:[#allocation237_spill] sm:$0xff]  ;;  %v13809_v27 = vld [vmem:[#allocation238_spill] sm:$0xff]  ;;  %v7795_v0 = vpop.eup %3539  ;;  %3571 = vpow2.f32 %v7515_v2 }
 0x1e6   : > { %v7783_v34 = vsel %vm1396_vm7, %v13807_v55, 0.0  ;;  %v7788_v33 = vsel %vm1397_vm8, %v13809_v27, 0.0  ;;  %v13811_v57 = vld [vmem:[#allocation117_spill] sm:$0xff]  ;;  %v13813_v60 = vld [vmem:[#allocation62_spill] sm:$0xff]  ;;  %v13815_v3 = vld [vmem:[#allocation151_spill] sm:$0xff]  ;;  %vm13818_vm8 = vcmp.eq.s32.totalorder %v7659_v21, 1 }
 0x1e7   : > { %13808 = vst [vmem:[#allocation95_spill] sm:$0xff] %v7783_v34  ;;  %13810 = vst [vmem:[#allocation96_spill] sm:$0xff] %v7788_v33  ;;  %v7793_v14 = vsel %vm1398_vm9, %v13811_v57, 0.0  ;;  %v13814_v23 = vld [vmem:[#allocation150_spill] sm:$0xff]  ;;  %v13816_v55 = vld [vmem:[#allocation240_spill] sm:$0xff]  ;;  %vm13820_vm9 = vcmp.eq.s32.totalorder %v7663_v63, 1 }
 0x1e8   : > { %13812 = vst [vmem:[#allocation97_spill] sm:$0xff] %v7793_v14  ;;  %v7804_v4 = vsel %vm1399_vm13, %v13816_v55, 0.0  ;;  %v13817_v27 = vld [vmem:[#allocation241_spill] sm:$0xff]  ;;  %v7816_v14 = vpop.eup %3541  ;;  %v13822_v33 = vld [vmem:[#allocation152_spill] sm:$0xff]  ;;  %v13823_v34 = vld [vmem:[#allocation154_spill] sm:$0xff]  ;;  %vm13826_vm5 = vcmp.eq.s32.totalorder %v7670_v12, 1  ;;  %3573 = vpow2.f32 %v7520_v32 }
 0x1e9   : > { %v7809_v20 = vsel %vm13818_vm8, %v13817_v27, 0.0  ;;  %v13819_v57 = vld [vmem:[#allocation121_spill] sm:$0xff]  ;;  %v13824_v37 = vld [vmem:[#allocation155_spill] sm:$0xff]  ;;  %vm13828_vm8 = vcmp.eq.s32.totalorder %v7674_v59, 1  ;;  %v7837_v27 = vpop.eup %3543  ;;  %v13834_v12 = vld [vmem:[#allocation162_spill] sm:$0xff]  ;;  %vm13836_vm7 = vcmp.eq.s32.totalorder %v7685_v31, 1  ;;  %3575 = vpow2.f32 %v7527_v25 }
 0x1ea   : > { %v7814_v36 = vsel %vm13820_vm9, %v13819_v57, 0.0  ;;  %v13825_v55 = vld [vmem:[#allocation243_spill] sm:$0xff]  ;;  %v7830_v63 = vsel %vm13828_vm8, %v7002_v56, 0.0  ;;  %vm13830_vm9 = vcmp.eq.s32.totalorder %v7678_v15, 1  ;;  %v13832_v57 = vld [vmem:[#allocation156_spill] sm:$0xff]  ;;  %v13838_v59 = vld [vmem:[#allocation245_spill] sm:$0xff] }
 0x1eb   : > { %13821 = vst [vmem:[#allocation103_spill] sm:$0xff] %v7814_v36  ;;  %v7825_v21 = vsel %vm13826_vm5, %v13825_v55, 0.0  ;;  %13829 = vst [vmem:[#allocation18_spill] sm:$0xff] %v7830_v63  ;;  %v7835_v50 = vsel %vm13830_vm9, %v7010_v26, 0.0  ;;  %v13833_v36 = vld [vmem:[#allocation161_spill] sm:$0xff]  ;;  %v13835_v55 = vld [vmem:[#allocation122_spill] sm:$0xff] }
 0x1ec   : > { %13827 = vst [vmem:[#allocation104_spill] sm:$0xff] %v7825_v21  ;;  %13831 = vst [vmem:[#allocation83_spill] sm:$0xff] %v7835_v50  ;;  %v7846_v56 = vsel %vm13836_vm7, %v13835_v55, 0.0  ;;  %vm13839_vm8 = vcmp.eq.s32.totalorder %v7689_v11, 1  ;;  %v13841_v15 = vld [vmem:[#allocation123_spill] sm:$0xff]  ;;  %vm13842_vm9 = vcmp.eq.s32.totalorder %v7693_v53, 1  ;;  %v7858_v50 = vpop.eup %3545  ;;  %3577 = vpow2.f32 %v7532_v43 }
 0x1ed   : > { %13837 = vst [vmem:[#allocation171_spill] sm:$0xff] %v7846_v56  ;;  %v7851_v26 = vsel %vm13839_vm8, %v13838_v59, 0.0  ;;  %v7856_v40 = vsel %vm13842_vm9, %v13841_v15, 0.0  ;;  %v13844_v63 = vld [vmem:[#allocation163_spill] sm:$0xff]  ;;  %v13845_v21 = vld [vmem:[#allocation168_spill] sm:$0xff]  ;;  %v13846_v31 = vld [vmem:[#allocation169_spill] sm:$0xff] }
 0x1ee   : > { %13840 = vst [vmem:[#allocation108_spill] sm:$0xff] %v7851_v26  ;;  %13843 = vst [vmem:[#allocation110_spill] sm:$0xff] %v7856_v40  ;;  %v13847_v55 = vld [vmem:[#allocation247_spill] sm:$0xff]  ;;  %vm13848_vm13 = vcmp.eq.s32.totalorder %v7700_v45, 1  ;;  %v13850_v59 = vld [vmem:[#allocation248_spill] sm:$0xff]  ;;  %vm13851_vm8 = vcmp.eq.s32.totalorder %v7704_v7, 1  ;;  %v7879_v40 = vpop.eup %3547  ;;  %3579 = vpow2.f32 %v7537_v5 }
 0x1ef   : > { %v7867_v11 = vsel %vm13848_vm13, %v13847_v55, 0.0  ;;  %v7872_v53 = vsel %vm13851_vm8, %v13850_v59, 0.0  ;;  %v13853_v15 = vld [vmem:[#allocation124_spill] sm:$0xff]  ;;  %vm13854_vm9 = vcmp.eq.s32.totalorder %v13768_v30, 1  ;;  %v13856_v26 = vld [vmem:[#allocation170_spill] sm:$0xff]  ;;  %v13857_v56 = vld [vmem:[#allocation173_spill] sm:$0xff] }
 0x1f0   : > { %13849 = vst [vmem:[#allocation111_spill] sm:$0xff] %v7867_v11  ;;  %13852 = vst [vmem:[#allocation234_spill] sm:$0xff] %v7872_v53  ;;  %v7877_v61 = vsel %vm13854_vm9, %v13853_v15, 0.0  ;;  %v13858_v45 = vld [vmem:[#allocation174_spill] sm:$0xff]  ;;  %vm13860_vm5 = vcmp.eq.s32.totalorder %v13770_v19, 1  ;;  %v13862_v59 = vld [vmem:[#allocation251_spill] sm:$0xff] }
 0x1f1   : > { %13855 = vst [vmem:[#allocation235_spill] sm:$0xff] %v7877_v61  ;;  %v13859_v55 = vld [vmem:[#allocation250_spill] sm:$0xff]  ;;  %vm13863_vm8 = vcmp.eq.s32.totalorder %v13771_v58, 1  ;;  %v13865_v15 = vld [vmem:[#allocation128_spill] sm:$0xff]  ;;  %vm13866_vm9 = vcmp.eq.s32.totalorder %v13772_v29, 1  ;;  %v7900_v61 = vpop.eup %3549  ;;  %v13868_v53 = vld [vmem:[#allocation175_spill] sm:$0xff]  ;;  %3581 = vpow2.f32 %v7544_v6 }
 0x1f2   : > { %v7888_v7 = vsel %vm13860_vm5, %v13859_v55, 0.0  ;;  %v7893_v30 = vsel %vm13863_vm8, %v13862_v59, 0.0  ;;  %v7898_v52 = vsel %vm13866_vm9, %v13865_v15, 0.0  ;;  %v13869_v11 = vld [vmem:[#allocation177_spill] sm:$0xff]  ;;  %v13870_v19 = vld [vmem:[#allocation178_spill] sm:$0xff]  ;;  %vm13872_vm7 = vcmp.eq.s32.totalorder %v13774_v39, 1 }
 0x1f3   : > { %13861 = vst [vmem:[#allocation116_spill] sm:$0xff] %v7888_v7  ;;  %13864 = vst [vmem:[#allocation114_spill] sm:$0xff] %v7893_v30  ;;  %v13871_v55 = vld [vmem:[#allocation253_spill] sm:$0xff]  ;;  %v13874_v59 = vld [vmem:[#allocation254_spill] sm:$0xff]  ;;  %vm13875_vm8 = vcmp.eq.s32.totalorder %v13775_v48, 1  ;;  %vm13878_vm9 = vcmp.eq.s32.totalorder %v13776_v46, 1 }
 0x1f4   : > { %13867 = vst [vmem:[#allocation55_spill] sm:$0xff] %v7898_v52  ;;  %v7909_v58 = vsel %vm13872_vm7, %v13871_v55, 0.0  ;;  %v7914_v29 = vsel %vm13875_vm8, %v13874_v59, 0.0  ;;  %v13877_v15 = vld [vmem:[#allocation129_spill] sm:$0xff]  ;;  %v7921_v52 = vpop.eup %3551  ;;  %v13880_v30 = vld [vmem:[#allocation179_spill] sm:$0xff]  ;;  %v13882_v39 = vld [vmem:[#allocation138_spill] sm:$0xff]  ;;  %3583 = vpow2.f32 %v7549_v9 }
 0x1f5   : > { %13873 = vst [vmem:[#allocation61_spill] sm:$0xff] %v7909_v58  ;;  %13876 = vst [vmem:[#allocation237_spill] sm:$0xff] %v7914_v29  ;;  %v7919_v24 = vsel %vm13878_vm9, %v13877_v15, 0.0  ;;  %vm1450_vm5 = vcmp.eq.s32.totalorder %v13880_v30, 1  ;;  %v13881_v7 = vld [vmem:[#allocation137_spill] sm:$0xff]  ;;  %v13883_v55 = vld [vmem:[#allocation256_spill] sm:$0xff] }
 0x1f6   : > { %13879 = vst [vmem:[#allocation238_spill] sm:$0xff] %v7919_v24  ;;  %vm1451_vm6 = vcmp.eq.s32.totalorder %v13881_v7, 1  ;;  %vm13884_vm13 = vcmp.eq.s32.totalorder %v13778_v42, 1  ;;  %v13885_v59 = vld [vmem:[#allocation257_spill] sm:$0xff]  ;;  %vm13886_vm8 = vcmp.eq.s32.totalorder %v13779_v35, 1  ;;  %v13887_v15 = vld [vmem:[#allocation259_spill] sm:$0xff]  ;;  %v7942_v24 = vpop.eup %3553 }
 0x1f7   : > { %v7930_v48 = vsel %vm13884_vm13, %v13883_v55, 0.0  ;;  %v7935_v46 = vsel %vm13886_vm8, %v13885_v59, 0.0  ;;  %vm13888_vm9 = vcmp.eq.s32.totalorder %v13780_v62, 1  ;;  %v13889_v29 = vld [vmem:[#allocation181_spill] sm:$0xff]  ;;  %v13890_v58 = vld [vmem:[#allocation260_spill] sm:$0xff]  ;;  %v13892_v59 = vld [vmem:[#allocation130_spill] sm:$0xff] }
 0x1f8   : > { %v7940_v2 = vsel %vm13888_vm9, %v13887_v15, 0.0  ;;  %vm1453_vm7 = vcmp.eq.s32.totalorder %v13889_v29, 1  ;;  %v7949_v42 = vsel %vm1420_vm12, %v13890_v58, 0.0  ;;  %v13891_v55 = vld [vmem:[#allocation261_spill] sm:$0xff]  ;;  %v7959_v62 = vsel %vm1422_vm15, %v13892_v59, 0.0  ;;  %v7961_v15 = vpop.eup %3555  ;;  %v13893_v32 = vld [vmem:[#allocation263_spill] sm:$0xff] }
 0x1f9   : > { %v7954_v35 = vsel %vm1421_vm2, %v13891_v55, 0.0  ;;  %v7967_v54 = vsel %vm1423_vm11, %v13893_v32, 0.0  ;;  %v13894_v58 = vld [vmem:[#allocation264_spill] sm:$0xff]  ;;  %vm13895_vm12 = vcmp.eq.s32.totalorder %v13787_v10, 1  ;;  %v13896_v55 = vld [vmem:[#allocation131_spill] sm:$0xff]  ;;  %vm13897_vm2 = vcmp.eq.s32.totalorder %v13788_v13, 1  ;;  %v7979_v59 = vpop.eup %3557 }
 0x1fa   : > { %v7972_v22 = vsel %vm13895_vm12, %v13894_v58, 0.0  ;;  %v7977_v16 = vsel %vm13897_vm2, %v13896_v55, 0.0  ;;  %v13898_v25 = vld [vmem:[#allocation266_spill] sm:$0xff]  ;;  %v13899_v32 = vld [vmem:[#allocation268_spill] sm:$0xff]  ;;  %v13900_v58 = vld [vmem:[#allocation269_spill] sm:$0xff]  ;;  %v7997_v55 = vpop.eup %3559  ;;  %vm13906_vm15 = vcmp.eq.s32.totalorder %v13814_v23, 1 }
 0x1fb   : > { %v7985_v49 = vsel %vm1426_vm14, %v13898_v25, 0.0  ;;  %v7990_v10 = vsel %vm1427_vm10, %v13899_v32, 0.0  ;;  %v7995_v13 = vsel %vm1428_vm0, %v13900_v58, 0.0  ;;  %v13901_v43 = vld [vmem:[#allocation271_spill] sm:$0xff]  ;;  %v13902_v25 = vld [vmem:[#allocation272_spill] sm:$0xff]  ;;  %v13903_v32 = vld [vmem:[#allocation274_spill] sm:$0xff]  ;;  %v8015_v58 = vpop.eup %3561 }
 0x1fc   : > { %v8003_v44 = vsel %vm1429_vm1, %v13901_v43, 0.0  ;;  %v8008_v8 = vsel %vm1430_vm3, %v13902_v25, 0.0  ;;  %v8013_v17 = vsel %vm1431_vm4, %v13903_v32, 0.0  ;;  %vm13904_vm14 = vcmp.eq.s32.totalorder %v13813_v60, 1  ;;  %v13905_v38 = vld [vmem:[#allocation276_spill] sm:$0xff]  ;;  %v8033_v43 = vpop.eup %3563  ;;  %v13909_v6 = vld [vmem:[#allocation278_spill] sm:$0xff] }
 0x1fd   : > { %v8021_v5 = vsel %vm13904_vm14, %v7189_v47, 0.0  ;;  %v8026_v1 = vsel %vm13906_vm15, %v13905_v38, 0.0  ;;  %vm13907_vm10 = vcmp.eq.s32.totalorder %v13815_v3, 1  ;;  %vm13910_vm11 = vcmp.eq.s32.totalorder %v13822_v33, 1  ;;  %v13912_v47 = vld [vmem:[#allocation279_spill] sm:$0xff]  ;;  %v13915_v25 = vld [vmem:[#allocation281_spill] sm:$0xff] }
 0x1fe   : > { %v8031_v41 = vsel %vm13907_vm10, %v7204_v18, 0.0  ;;  %v8039_v60 = vsel %vm13910_vm11, %v13909_v6, 0.0  ;;  %vm13913_vm0 = vcmp.eq.s32.totalorder %v13823_v34, 1  ;;  %vm13916_vm1 = vcmp.eq.s32.totalorder %v13824_v37, 1  ;;  %v8051_v18 = vpop.eup %3565  ;;  %v13918_v32 = vld [vmem:[#allocation319_spill] sm:$0xff]  ;;  %v13919_v9 = vld [vmem:[#allocation282_spill] sm:$0xff] }
 0x1ff   : > { %13908 = vst [vmem:[#allocation117_spill] sm:$0xff] %v8031_v41  ;;  %13911 = vst [vmem:[#allocation62_spill] sm:$0xff] %v8039_v60  ;;  %v8044_v23 = vsel %vm13913_vm0, %v13912_v47, 0.0  ;;  %v8049_v3 = vsel %vm13916_vm1, %v13915_v25, 0.0  ;;  %3585 = vpow2.f32 %v13918_v32  ;;  %vm13920_vm3 = vcmp.eq.s32.totalorder %v13832_v57, 1  ;;  %v13922_v38 = vld [vmem:[#allocation284_spill] sm:$0xff]  ;;  %v8069_v47 = vpop.eup %3567 }
 0x200   : > { %13914 = vst [vmem:[#allocation150_spill] sm:$0xff] %v8044_v23  ;;  %13917 = vst [vmem:[#allocation151_spill] sm:$0xff] %v8049_v3  ;;  %v8057_v33 = vsel %vm13920_vm3, %v13919_v9, 0.0  ;;  %vm13923_vm4 = vcmp.eq.s32.totalorder %v13833_v36, 1  ;;  %v13925_v6 = vld [vmem:[#allocation285_spill] sm:$0xff]  ;;  %vm13926_vm13 = vcmp.eq.s32.totalorder %v13834_v12, 1 }
 0x201   : > { %13921 = vst [vmem:[#allocation240_spill] sm:$0xff] %v8057_v33  ;;  %v8062_v34 = vsel %vm13923_vm4, %v13922_v38, 0.0  ;;  %v8067_v37 = vsel %vm13926_vm13, %v13925_v6, 0.0  ;;  %v13928_v25 = vld [vmem:[#allocation321_spill] sm:$0xff]  ;;  %v13929_v32 = vld [vmem:[#allocation287_spill] sm:$0xff]  ;;  %vm13930_vm8 = vcmp.eq.s32.totalorder %v13844_v63, 1  ;;  %v8087_v6 = vpop.eup %3569 }
 0x202   : > { %13924 = vst [vmem:[#allocation241_spill] sm:$0xff] %v8062_v34  ;;  %13927 = vst [vmem:[#allocation121_spill] sm:$0xff] %v8067_v37  ;;  %3587 = vpow2.f32 %v13928_v25  ;;  %v8075_v57 = vsel %vm13930_vm8, %v13929_v32, 0.0  ;;  %v13932_v9 = vld [vmem:[#allocation288_spill] sm:$0xff]  ;;  %vm13933_vm9 = vcmp.eq.s32.totalorder %v13845_v21, 1  ;;  %v13935_v38 = vld [vmem:[#allocation290_spill] sm:$0xff] }
 0x203   : > { %13931 = vst [vmem:[#allocation152_spill] sm:$0xff] %v8075_v57  ;;  %v8080_v36 = vsel %vm13933_vm9, %v13932_v9, 0.0  ;;  %vm13936_vm12 = vcmp.eq.s32.totalorder %v13846_v31, 1  ;;  %v13938_v37 = vld [vmem:[#allocation322_spill] sm:$0xff]  ;;  %v13939_v25 = vld [vmem:[#allocation291_spill] sm:$0xff]  ;;  %vm13940_vm2 = vcmp.eq.s32.totalorder %v13856_v26, 1 }
 0x204   : > { %13934 = vst [vmem:[#allocation154_spill] sm:$0xff] %v8080_v36  ;;  %v8085_v12 = vsel %vm13936_vm12, %v13935_v38, 0.0  ;;  %3589 = vpow2.f32 %v13938_v37  ;;  %v8093_v63 = vsel %vm13940_vm2, %v13939_v25, 0.0  ;;  %v13942_v32 = vld [vmem:[#allocation293_spill] sm:$0xff]  ;;  %vm13943_vm14 = vcmp.eq.s32.totalorder %v13857_v56, 1  ;;  %v13945_v9 = vld [vmem:[#allocation294_spill] sm:$0xff]  ;;  %v8105_v38 = vpop.eup %3571 }
 0x205   : > { %13937 = vst [vmem:[#allocation155_spill] sm:$0xff] %v8085_v12  ;;  %13941 = vst [vmem:[#allocation243_spill] sm:$0xff] %v8093_v63  ;;  %v8098_v21 = vsel %vm13943_vm14, %v13942_v32, 0.0  ;;  %vm13946_vm15 = vcmp.eq.s32.totalorder %v13858_v45, 1  ;;  %v13948_v12 = vld [vmem:[#allocation323_spill] sm:$0xff]  ;;  %v13949_v37 = vld [vmem:[#allocation296_spill] sm:$0xff] }
 0x206   : > { %13944 = vst [vmem:[#allocation156_spill] sm:$0xff] %v8098_v21  ;;  %v8103_v31 = vsel %vm13946_vm15, %v13945_v9, 0.0  ;;  %3591 = vpow2.f32 %v13948_v12  ;;  %vm13950_vm10 = vcmp.eq.s32.totalorder %v13868_v53, 1  ;;  %v13952_v25 = vld [vmem:[#allocation297_spill] sm:$0xff]  ;;  %vm13953_vm11 = vcmp.eq.s32.totalorder %v13869_v11, 1  ;;  %v13955_v32 = vld [vmem:[#allocation299_spill] sm:$0xff]  ;;  %v8123_v9 = vpop.eup %3573 }
 0x207   : > { %13947 = vst [vmem:[#allocation161_spill] sm:$0xff] %v8103_v31  ;;  %v8111_v26 = vsel %vm13950_vm10, %v13949_v37, 0.0  ;;  %v8116_v56 = vsel %vm13953_vm11, %v13952_v25, 0.0  ;;  %vm13956_vm0 = vcmp.eq.s32.totalorder %v13870_v19, 1  ;;  %v13958_v31 = vld [vmem:[#allocation325_spill] sm:$0xff]  ;;  %v13959_v12 = vld [vmem:[#allocation300_spill] sm:$0xff] }
 0x208   : > { %13951 = vst [vmem:[#allocation162_spill] sm:$0xff] %v8111_v26  ;;  %13954 = vst [vmem:[#allocation122_spill] sm:$0xff] %v8116_v56  ;;  %v8121_v45 = vsel %vm13956_vm0, %v13955_v32, 0.0  ;;  %3593 = vpow2.f32 %v13958_v31  ;;  %v8129_v53 = vsel %vm1450_vm5, %v13959_v12, 0.0  ;;  %v13961_v37 = vld [vmem:[#allocation302_spill] sm:$0xff]  ;;  %v13963_v25 = vld [vmem:[#allocation303_spill] sm:$0xff]  ;;  %v8141_v32 = vpop.eup %3575 }
 0x209   : > { %13957 = vst [vmem:[#allocation245_spill] sm:$0xff] %v8121_v45  ;;  %13960 = vst [vmem:[#allocation123_spill] sm:$0xff] %v8129_v53  ;;  %v8134_v11 = vsel %vm1451_vm6, %v13961_v37, 0.0  ;;  %vm13964_vm1 = vcmp.eq.s32.totalorder %v13882_v39, 1  ;;  %v13966_v45 = vld [vmem:[#allocation326_spill] sm:$0xff]  ;;  %v13967_v31 = vld [vmem:[#allocation305_spill] sm:$0xff]  ;;  %v8157_v39 = vpop.eup %3577 }
 0x20a   : > { %13962 = vst [vmem:[#allocation163_spill] sm:$0xff] %v8134_v11  ;;  %v8139_v19 = vsel %vm13964_vm1, %v13963_v25, 0.0  ;;  %3595 = vpow2.f32 %v13966_v45  ;;  %v8147_v30 = vsel %vm1453_vm7, %v13967_v31, 0.0  ;;  %v13969_v12 = vld [vmem:[#allocation99_spill] sm:$0xff]  ;;  %v13970_v53 = vld [vmem:[#allocation304_spill] sm:$0xff]  ;;  %v13972_v7 = vld [vmem:[#allocation54_spill] sm:$0xff] }
 0x20b   : > { %13965 = vst [vmem:[#allocation168_spill] sm:$0xff] %v8139_v19  ;;  %13968 = vst [vmem:[#allocation169_spill] sm:$0xff] %v8147_v30  ;;  %v8151_v56 = vadd.f32 %v13970_v53, %v13969_v12  ;;  %v13973_v37 = vld [vmem:[#allocation306_spill] sm:$0xff]  ;;  %v13975_v25 = vld [vmem:[#allocation327_spill] sm:$0xff]  ;;  %v3580_v12 = vpop.eup %3579 }
 0x20c   : > { %v8155_v11 = vadd.f32 %v13973_v37, %v13972_v7  ;;  %3597 = vpow2.f32 %v13975_v25  ;;  %v13976_v19 = vld [vmem:[#allocation10_spill] sm:$0xff]  ;;  %v13977_v26 = vld [vmem:[#allocation307_spill] sm:$0xff]  ;;  %v13979_v21 = vld [vmem:[#allocation100_spill] sm:$0xff] }
 0x20d   : > { %13971 = vst [vmem:[#allocation247_spill] sm:$0xff] %v8151_v56  ;;  %v8162_v45 = vadd.f32 %v13977_v26, %v13976_v19  ;;  %v13980_v29 = vld [vmem:[#allocation308_spill] sm:$0xff]  ;;  %v13983_v63 = vld [vmem:[#allocation309_spill] sm:$0xff]  ;;  %v13986_v7 = vld [vmem:[#allocation11_spill] sm:$0xff] }
 0x20e   : > { %13974 = vst [vmem:[#allocation248_spill] sm:$0xff] %v8155_v11  ;;  %v8166_v31 = vadd.f32 %v13980_v29, %v13979_v21  ;;  %v13982_v30 = vld [vmem:[#allocation56_spill] sm:$0xff]  ;;  %v13985_v56 = vld [vmem:[#allocation329_spill] sm:$0xff]  ;;  %v13987_v37 = vld [vmem:[#allocation310_spill] sm:$0xff]  ;;  %v3582_v21 = vpop.eup %3581 }
 0x20f   : > { %13978 = vst [vmem:[#allocation124_spill] sm:$0xff] %v8162_v45  ;;  %v8170_v53 = vadd.f32 %v13983_v63, %v13982_v30  ;;  %3599 = vpow2.f32 %v13985_v56  ;;  %v8175_v11 = vadd.f32 %v13987_v37, %v13986_v7  ;;  %v13989_v25 = vld [vmem:[#allocation60_spill] sm:$0xff]  ;;  %v13990_v36 = vld [vmem:[#allocation311_spill] sm:$0xff]  ;;  %v13995_v29 = vld [vmem:[#allocation330_spill] sm:$0xff] }
 0x210   : > { %13981 = vst [vmem:[#allocation170_spill] sm:$0xff] %v8166_v31  ;;  %v8179_v57 = vadd.f32 %v13990_v36, %v13989_v25  ;;  %v13992_v26 = vld [vmem:[#allocation12_spill] sm:$0xff]  ;;  %3601 = vpow2.f32 %v13995_v29  ;;  %v13996_v63 = vld [vmem:[#allocation67_spill] sm:$0xff]  ;;  %v13997_v30 = vld [vmem:[#allocation313_spill] sm:$0xff]  ;;  %v3584_v36 = vpop.eup %3583 }
 0x211   : > { %13984 = vst [vmem:[#allocation173_spill] sm:$0xff] %v8170_v53  ;;  %13988 = vst [vmem:[#allocation174_spill] sm:$0xff] %v8175_v11  ;;  %v13993_v19 = vld [vmem:[#allocation312_spill] sm:$0xff]  ;;  %v8188_v53 = vadd.f32 %v13997_v30, %v13996_v63  ;;  %v14000_v31 = vld [vmem:[#allocation314_spill] sm:$0xff] }
 0x212   : > { %13991 = vst [vmem:[#allocation250_spill] sm:$0xff] %v8179_v57  ;;  %v8183_v45 = vadd.f32 %v13993_v19, %v13992_v26  ;;  %v13999_v56 = vld [vmem:[#allocation72_spill] sm:$0xff]  ;;  %v14002_v7 = vld [vmem:[#allocation75_spill] sm:$0xff]  ;;  %v14009_v29 = vld [vmem:[#allocation94_spill] sm:$0xff] }
 0x213   : > { %13998 = vst [vmem:[#allocation128_spill] sm:$0xff] %v8188_v53  ;;  %v8192_v34 = vadd.f32 %v14000_v31, %v13999_v56  ;;  %v14003_v37 = vld [vmem:[#allocation315_spill] sm:$0xff]  ;;  %v14007_v19 = vld [vmem:[#allocation316_spill] sm:$0xff]  ;;  %v14010_v57 = vld [vmem:[#allocation317_spill] sm:$0xff]  ;;  %v3586_v31 = vpop.eup %3585 }
 0x214   : > { %13994 = vst [vmem:[#allocation251_spill] sm:$0xff] %v8183_v45  ;;  %v8196_v11 = vadd.f32 %v14003_v37, %v14002_v7  ;;  %v14005_v25 = vld [vmem:[#allocation331_spill] sm:$0xff]  ;;  %v8205_v33 = vadd.f32 %v14010_v57, %v14009_v29  ;;  %v14012_v63 = vld [vmem:[#allocation101_spill] sm:$0xff]  ;;  %v14013_v30 = vld [vmem:[#allocation318_spill] sm:$0xff] }
 0x215   : > { %14001 = vst [vmem:[#allocation175_spill] sm:$0xff] %v8192_v34  ;;  %3603 = vpow2.f32 %v14005_v25  ;;  %v14006_v26 = vld [vmem:[#allocation87_spill] sm:$0xff]  ;;  %v8209_v53 = vadd.f32 %v14013_v30, %v14012_v63  ;;  %v14015_v56 = vld [vmem:[#allocation109_spill] sm:$0xff]  ;;  %v14016_v34 = vld [vmem:[#allocation320_spill] sm:$0xff] }
 0x216   : > { %14004 = vst [vmem:[#allocation177_spill] sm:$0xff] %v8196_v11  ;;  %v8201_v45 = vadd.f32 %v14007_v19, %v14006_v26  ;;  %14011 = vst [vmem:[#allocation253_spill] sm:$0xff] %v8205_v33  ;;  %v8213_v7 = vadd.f32 %v14016_v34, %v14015_v56  ;;  %v14018_v37 = vld [vmem:[#allocation115_spill] sm:$0xff]  ;;  %v14019_v11 = vld [vmem:[#allocation324_spill] sm:$0xff]  ;;  %v3588_v33 = vpop.eup %3587 }
 0x217   : > { %14014 = vst [vmem:[#allocation254_spill] sm:$0xff] %v8209_v53  ;;  %v8217_v25 = vadd.f32 %v14019_v11, %v14018_v37  ;;  %v14021_v3 = vld [vmem:[#allocation149_spill] sm:$0xff]  ;;  %v14022_v26 = vld [vmem:[#allocation328_spill] sm:$0xff]  ;;  %v14030_v23 = vld [vmem:[#allocation167_spill] sm:$0xff] }
 0x218   : > { %14008 = vst [vmem:[#allocation178_spill] sm:$0xff] %v8201_v45  ;;  %14017 = vst [vmem:[#allocation129_spill] sm:$0xff] %v8213_v7  ;;  %v8221_v19 = vadd.f32 %v14022_v26, %v14021_v3  ;;  %v14024_v45 = vld [vmem:[#allocation153_spill] sm:$0xff]  ;;  %v14025_v57 = vld [vmem:[#allocation332_spill] sm:$0xff] }
 0x219   : > { %14020 = vst [vmem:[#allocation179_spill] sm:$0xff] %v8217_v25  ;;  %v8225_v29 = vadd.f32 %v14025_v57, %v14024_v45  ;;  %v14027_v63 = vld [vmem:[#allocation160_spill] sm:$0xff]  ;;  %v14028_v30 = vld [vmem:[#allocation333_spill] sm:$0xff]  ;;  %v14031_v34 = vld [vmem:[#allocation334_spill] sm:$0xff] }
 0x21a   : > { %14023 = vst [vmem:[#allocation137_spill] sm:$0xff] %v8221_v19  ;;  %v8229_v53 = vadd.f32 %v14028_v30, %v14027_v63  ;;  %v8233_v56 = vadd.f32 %v14031_v34, %v14030_v23  ;;  %v14033_v7 = vld [vmem:[#allocation172_spill] sm:$0xff]  ;;  %v14034_v11 = vld [vmem:[#allocation335_spill] sm:$0xff]  ;;  %v3590_v19 = vpop.eup %3589  ;;  %v14040_v57 = vld [vmem:[#allocation337_spill] sm:$0xff] }
 0x21b   : > { %14026 = vst [vmem:[#allocation138_spill] sm:$0xff] %v8225_v29  ;;  %v8237_v37 = vadd.f32 %v14034_v11, %v14033_v7  ;;  %v14036_v25 = vld [vmem:[#allocation176_spill] sm:$0xff]  ;;  %v14042_v60 = vld [vmem:[#allocation135_spill] sm:$0xff]  ;;  %v14043_v63 = vld [vmem:[#allocation338_spill] sm:$0xff] }
 0x21c   : > { %14029 = vst [vmem:[#allocation256_spill] sm:$0xff] %v8229_v53  ;;  %14032 = vst [vmem:[#allocation257_spill] sm:$0xff] %v8233_v56  ;;  %v14037_v3 = vld [vmem:[#allocation336_spill] sm:$0xff]  ;;  %v8249_v30 = vadd.f32 %v14043_v63, %v14042_v60  ;;  %v14049_v7 = vld [vmem:[#allocation13_spill] sm:$0xff] }
 0x21d   : > { %14035 = vst [vmem:[#allocation259_spill] sm:$0xff] %v8237_v37  ;;  %v8241_v26 = vadd.f32 %v14037_v3, %v14036_v25  ;;  %v14039_v45 = vld [vmem:[#allocation180_spill] sm:$0xff]  ;;  %v3592_v37 = vpop.eup %3591  ;;  %v14052_v3 = vld [vmem:[#allocation73_spill] sm:$0xff]  ;;  %v14058_v60 = vld [vmem:[#allocation74_spill] sm:$0xff] }
 0x21e   : > { %v8245_v29 = vadd.f32 %v14040_v57, %v14039_v45  ;;  %14044 = vst [vmem:[#allocation261_spill] sm:$0xff] %v8249_v30  ;;  %v14045_v53 = vld [vmem:[#allocation136_spill] sm:$0xff]  ;;  %v14055_v45 = vld [vmem:[#allocation14_spill] sm:$0xff] }
 0x21f   : > { %14038 = vst [vmem:[#allocation181_spill] sm:$0xff] %v8241_v26  ;;  %v14046_v23 = vld [vmem:[#allocation68_spill] sm:$0xff] }
 0x220   : > { %14041 = vst [vmem:[#allocation260_spill] sm:$0xff] %v8245_v29  ;;  %v8253_v34 = vadd.f32 %v14046_v23, %v14045_v53  ;;  %v14048_v56 = vld [vmem:[#allocation184_spill] sm:$0xff]  ;;  %v3594_v23 = vpop.eup %3593 }
 0x221   : > { %v8257_v11 = vadd.f32 %v14049_v7, %v14048_v56  ;;  %v14051_v25 = vld [vmem:[#allocation188_spill] sm:$0xff] }
 0x222   : > { %14047 = vst [vmem:[#allocation130_spill] sm:$0xff] %v8253_v34  ;;  %v8261_v26 = vadd.f32 %v14052_v3, %v14051_v25  ;;  %v14054_v41 = vld [vmem:[#allocation192_spill] sm:$0xff] }
 0x223   : > { %14050 = vst [vmem:[#allocation263_spill] sm:$0xff] %v8257_v11  ;;  %v8265_v57 = vadd.f32 %v14055_v45, %v14054_v41  ;;  %v14057_v29 = vld [vmem:[#allocation196_spill] sm:$0xff]  ;;  %v14068_v45 = vld [vmem:[#allocation215_spill] sm:$0xff] }
 0x224   : > { %14053 = vst [vmem:[#allocation264_spill] sm:$0xff] %v8261_v26  ;;  %v8269_v63 = vadd.f32 %v14058_v60, %v14057_v29  ;;  %v14060_v30 = vld [vmem:[#allocation200_spill] sm:$0xff]  ;;  %v8289_v29 = vadd.f32 %v7837_v27, %v14068_v45  ;;  %v3596_v60 = vpop.eup %3595  ;;  %v14078_v27 = vld [vmem:[#allocation230_spill] sm:$0xff] }
 0x225   : > { %14056 = vst [vmem:[#allocation131_spill] sm:$0xff] %v8265_v57  ;;  %v8273_v53 = vadd.f32 %v7753_v51, %v14060_v30  ;;  %v14062_v56 = vld [vmem:[#allocation204_spill] sm:$0xff]  ;;  %v14070_v51 = vld [vmem:[#allocation218_spill] sm:$0xff]  ;;  %v8309_v45 = vadd.f32 %v7942_v24, %v14078_v27 }
 0x226   : > { %14059 = vst [vmem:[#allocation266_spill] sm:$0xff] %v8269_v63  ;;  %v8277_v7 = vadd.f32 %v7774_v28, %v14062_v56  ;;  %v14064_v11 = vld [vmem:[#allocation208_spill] sm:$0xff]  ;;  %14069 = vst [vmem:[#allocation274_spill] sm:$0xff] %v8289_v29  ;;  %v8293_v30 = vadd.f32 %v7858_v50, %v14070_v51  ;;  %v14080_v29 = vld [vmem:[#allocation233_spill] sm:$0xff] }
 0x227   : > { %14061 = vst [vmem:[#allocation268_spill] sm:$0xff] %v8273_v53  ;;  %v8281_v25 = vadd.f32 %v7795_v0, %v14064_v11  ;;  %v14066_v3 = vld [vmem:[#allocation212_spill] sm:$0xff]  ;;  %v14072_v53 = vld [vmem:[#allocation221_spill] sm:$0xff]  ;;  %v14076_v11 = vld [vmem:[#allocation227_spill] sm:$0xff]  ;;  %v8313_v50 = vadd.f32 %v7961_v15, %v14080_v29 }
 0x228   : > { %14063 = vst [vmem:[#allocation269_spill] sm:$0xff] %v8277_v7  ;;  %v8285_v41 = vadd.f32 %v7816_v14, %v14066_v3  ;;  %14071 = vst [vmem:[#allocation276_spill] sm:$0xff] %v8293_v30  ;;  %v8297_v28 = vadd.f32 %v7879_v40, %v14072_v53  ;;  %v14074_v56 = vld [vmem:[#allocation224_spill] sm:$0xff]  ;;  %v8305_v14 = vadd.f32 %v7921_v52, %v14076_v11  ;;  %v3598_v3 = vpop.eup %3597  ;;  %v14084_v53 = vld [vmem:[#allocation239_spill] sm:$0xff] }
 0x229   : > { %14065 = vst [vmem:[#allocation271_spill] sm:$0xff] %v8281_v25  ;;  %v8301_v0 = vadd.f32 %v7900_v61, %v14074_v56  ;;  %14079 = vst [vmem:[#allocation319_spill] sm:$0xff] %v8309_v45  ;;  %v14082_v51 = vld [vmem:[#allocation236_spill] sm:$0xff]  ;;  %v8321_v61 = vadd.f32 %v7997_v55, %v14084_v53  ;;  %v3600_v56 = vpop.eup %3599  ;;  %v14086_v52 = vld [vmem:[#allocation242_spill] sm:$0xff] }
 0x22a   : > { %14067 = vst [vmem:[#allocation272_spill] sm:$0xff] %v8285_v41  ;;  %14073 = vst [vmem:[#allocation278_spill] sm:$0xff] %v8297_v28  ;;  %v8317_v40 = vadd.f32 %v7979_v59, %v14082_v51  ;;  %v8325_v11 = vadd.f32 %v8015_v58, %v14086_v52  ;;  %v14090_v27 = vld [vmem:[#allocation246_spill] sm:$0xff]  ;;  %v14092_v29 = vld [vmem:[#allocation249_spill] sm:$0xff]  ;;  %v3602_v51 = vpop.eup %3601 }
 0x22b   : > { %14075 = vst [vmem:[#allocation279_spill] sm:$0xff] %v8301_v0  ;;  %14077 = vst [vmem:[#allocation281_spill] sm:$0xff] %v8305_v14  ;;  %v14088_v14 = vld [vmem:[#allocation244_spill] sm:$0xff]  ;;  %v8333_v15 = vadd.f32 %v8051_v18, %v14090_v27  ;;  %v8337_v59 = vadd.f32 %v8069_v47, %v14092_v29  ;;  %v14098_v52 = vld [vmem:[#allocation258_spill] sm:$0xff]  ;;  %v3604_v27 = vpop.eup %3603 }
 0x22c   : > { %14081 = vst [vmem:[#allocation282_spill] sm:$0xff] %v8313_v50  ;;  %14083 = vst [vmem:[#allocation284_spill] sm:$0xff] %v8317_v40  ;;  %v8329_v24 = vadd.f32 %v8033_v43, %v14088_v14  ;;  %v14094_v55 = vld [vmem:[#allocation252_spill] sm:$0xff]  ;;  %v8349_v43 = vadd.f32 %v8123_v9, %v14098_v52  ;;  %v14100_v14 = vld [vmem:[#allocation262_spill] sm:$0xff] }
 0x22d   : > { %14085 = vst [vmem:[#allocation285_spill] sm:$0xff] %v8321_v61  ;;  %14087 = vst [vmem:[#allocation321_spill] sm:$0xff] %v8325_v11  ;;  %v8341_v53 = vadd.f32 %v8087_v6, %v14094_v55  ;;  %v14096_v61 = vld [vmem:[#allocation255_spill] sm:$0xff]  ;;  %v8353_v18 = vadd.f32 %v8141_v32, %v14100_v14  ;;  %v14102_v47 = vld [vmem:[#allocation265_spill] sm:$0xff] }
 0x22e   : > { %14089 = vst [vmem:[#allocation287_spill] sm:$0xff] %v8329_v24  ;;  %14091 = vst [vmem:[#allocation288_spill] sm:$0xff] %v8333_v15  ;;  %v8345_v58 = vadd.f32 %v8105_v38, %v14096_v61  ;;  %v8357_v29 = vadd.f32 %v8157_v39, %v14102_v47  ;;  %v14106_v55 = vld [vmem:[#allocation270_spill] sm:$0xff]  ;;  %v14108_v38 = vld [vmem:[#allocation273_spill] sm:$0xff] }
 0x22f   : > { %14093 = vst [vmem:[#allocation290_spill] sm:$0xff] %v8337_v59  ;;  %14095 = vst [vmem:[#allocation322_spill] sm:$0xff] %v8341_v53  ;;  %v14104_v59 = vld [vmem:[#allocation267_spill] sm:$0xff]  ;;  %v8363_v53 = vadd.f32 %v3582_v21, %v14106_v55  ;;  %v8366_v61 = vadd.f32 %v3584_v36, %v14108_v38  ;;  %v14114_v14 = vld [vmem:[#allocation280_spill] sm:$0xff] }
 0x230   : > { %14097 = vst [vmem:[#allocation291_spill] sm:$0xff] %v8345_v58  ;;  %14099 = vst [vmem:[#allocation293_spill] sm:$0xff] %v8349_v43  ;;  %v8360_v6 = vadd.f32 %v3580_v12, %v14104_v59  ;;  %v14110_v9 = vld [vmem:[#allocation275_spill] sm:$0xff]  ;;  %v14112_v43 = vld [vmem:[#allocation277_spill] sm:$0xff] }
 0x231   : > { %14101 = vst [vmem:[#allocation294_spill] sm:$0xff] %v8353_v18  ;;  %14103 = vst [vmem:[#allocation323_spill] sm:$0xff] %v8357_v29  ;;  %v8369_v52 = vadd.f32 %v3586_v31, %v14110_v9  ;;  %v8372_v32 = vadd.f32 %v3588_v33, %v14112_v43  ;;  %v8375_v18 = vadd.f32 %v3590_v19, %v14114_v14  ;;  %v14116_v39 = vld [vmem:[#allocation283_spill] sm:$0xff]  ;;  %v14118_v12 = vld [vmem:[#allocation286_spill] sm:$0xff] }
 0x232   : > { %14105 = vst [vmem:[#allocation296_spill] sm:$0xff] %v8360_v6  ;;  %14107 = vst [vmem:[#allocation297_spill] sm:$0xff] %v8363_v53  ;;  %v8378_v47 = vadd.f32 %v3592_v37, %v14116_v39  ;;  %v8381_v59 = vadd.f32 %v3594_v23, %v14118_v12  ;;  %v14120_v21 = vld [vmem:[#allocation289_spill] sm:$0xff]  ;;  %v14122_v36 = vld [vmem:[#allocation292_spill] sm:$0xff] }
 0x233   : > { %14109 = vst [vmem:[#allocation299_spill] sm:$0xff] %v8366_v61  ;;  %14111 = vst [vmem:[#allocation325_spill] sm:$0xff] %v8369_v52  ;;  %v8384_v55 = vadd.f32 %v3596_v60, %v14120_v21  ;;  %v8387_v38 = vadd.f32 %v3598_v3, %v14122_v36  ;;  %v14124_v31 = vld [vmem:[#allocation295_spill] sm:$0xff]  ;;  %v14126_v33 = vld [vmem:[#allocation298_spill] sm:$0xff] }
 0x234   : > { %14113 = vst [vmem:[#allocation300_spill] sm:$0xff] %v8372_v32  ;;  %14115 = vst [vmem:[#allocation302_spill] sm:$0xff] %v8375_v18  ;;  %v8390_v9 = vadd.f32 %v3600_v56, %v14124_v31  ;;  %v8393_v43 = vadd.f32 %v3602_v51, %v14126_v33  ;;  %v14128_v19 = vld [vmem:[#allocation301_spill] sm:$0xff]  ;;  %v14130_v37 = vld [vmem:[#allocation15_spill] sm:$0xff] }
 0x235   : > { %14117 = vst [vmem:[#allocation303_spill] sm:$0xff] %v8378_v47  ;;  %14119 = vst [vmem:[#allocation326_spill] sm:$0xff] %v8381_v59  ;;  %v8396_v14 = vadd.f32 %v3604_v27, %v14128_v19  ;;  %v14131_v39 = vld [vmem:[#allocation17_spill] sm:$0xff]  ;;  %v14133_v23 = vld [vmem:[#allocation16_spill] sm:$0xff] }
 0x236   : > { %14121 = vst [vmem:[#allocation305_spill] sm:$0xff] %v8384_v55  ;;  %14123 = vst [vmem:[#allocation99_spill] sm:$0xff] %v8387_v38  ;;  %v8400_v47 = vadd.f32 %v14131_v39, %v14130_v37  ;;  %v14134_v12 = vld [vmem:[#allocation81_spill] sm:$0xff]  ;;  %v14136_v21 = vld [vmem:[#allocation19_spill] sm:$0xff] }
 0x237   : > { %14125 = vst [vmem:[#allocation304_spill] sm:$0xff] %v8390_v9  ;;  %14127 = vst [vmem:[#allocation54_spill] sm:$0xff] %v8393_v43  ;;  %v8404_v60 = vadd.f32 %v14134_v12, %v14133_v23  ;;  %v14137_v3 = vld [vmem:[#allocation82_spill] sm:$0xff]  ;;  %v14139_v56 = vld [vmem:[#allocation20_spill] sm:$0xff] }
 0x238   : > { %14129 = vst [vmem:[#allocation306_spill] sm:$0xff] %v8396_v14  ;;  %14132 = vst [vmem:[#allocation327_spill] sm:$0xff] %v8400_v47  ;;  %v8408_v36 = vadd.f32 %v14137_v3, %v14136_v21  ;;  %v14140_v31 = vld [vmem:[#allocation88_spill] sm:$0xff]  ;;  %v14143_v33 = vld [vmem:[#allocation89_spill] sm:$0xff] }
 0x239   : > { %14135 = vst [vmem:[#allocation10_spill] sm:$0xff] %v8404_v60  ;;  %v8412_v9 = vadd.f32 %v14140_v31, %v14139_v56  ;;  %v14142_v51 = vld [vmem:[#allocation24_spill] sm:$0xff]  ;;  %v14146_v14 = vld [vmem:[#allocation22_spill] sm:$0xff]  ;;  %v14148_v39 = vld [vmem:[#allocation33_spill] sm:$0xff] }
 0x23a   : > { %14138 = vst [vmem:[#allocation307_spill] sm:$0xff] %v8408_v36  ;;  %v8416_v27 = vadd.f32 %v14143_v33, %v14142_v51  ;;  %v14145_v19 = vld [vmem:[#allocation28_spill] sm:$0xff]  ;;  %v14149_v47 = vld [vmem:[#allocation95_spill] sm:$0xff]  ;;  %v14151_v12 = vld [vmem:[#allocation34_spill] sm:$0xff] }
 0x23b   : > { %14141 = vst [vmem:[#allocation100_spill] sm:$0xff] %v8412_v9  ;;  %v8420_v37 = vadd.f32 %v14146_v14, %v14145_v19  ;;  %v8424_v23 = vadd.f32 %v14149_v47, %v14148_v39  ;;  %v14152_v60 = vld [vmem:[#allocation96_spill] sm:$0xff]  ;;  %v14154_v3 = vld [vmem:[#allocation38_spill] sm:$0xff]  ;;  %v14155_v36 = vld [vmem:[#allocation97_spill] sm:$0xff] }
 0x23c   : > { %14144 = vst [vmem:[#allocation308_spill] sm:$0xff] %v8416_v27  ;;  %v8428_v21 = vadd.f32 %v14152_v60, %v14151_v12  ;;  %v8432_v56 = vadd.f32 %v14155_v36, %v14154_v3  ;;  %v14157_v31 = vld [vmem:[#allocation39_spill] sm:$0xff]  ;;  %v14159_v33 = vld [vmem:[#allocation40_spill] sm:$0xff]  ;;  %v14161_v19 = vld [vmem:[#allocation45_spill] sm:$0xff] }
 0x23d   : > { %14147 = vst [vmem:[#allocation56_spill] sm:$0xff] %v8420_v37  ;;  %14150 = vst [vmem:[#allocation309_spill] sm:$0xff] %v8424_v23  ;;  %v8436_v51 = vadd.f32 %v7804_v4, %v14157_v31  ;;  %v8440_v14 = vadd.f32 %v7809_v20, %v14159_v33  ;;  %v14162_v37 = vld [vmem:[#allocation103_spill] sm:$0xff]  ;;  %v14164_v39 = vld [vmem:[#allocation46_spill] sm:$0xff] }
 0x23e   : > { %14153 = vst [vmem:[#allocation329_spill] sm:$0xff] %v8428_v21  ;;  %14156 = vst [vmem:[#allocation11_spill] sm:$0xff] %v8432_v56  ;;  %v8444_v47 = vadd.f32 %v14162_v37, %v14161_v19  ;;  %v14165_v23 = vld [vmem:[#allocation104_spill] sm:$0xff]  ;;  %v14167_v12 = vld [vmem:[#allocation53_spill] sm:$0xff] }
 0x23f   : > { %14158 = vst [vmem:[#allocation310_spill] sm:$0xff] %v8436_v51  ;;  %14160 = vst [vmem:[#allocation60_spill] sm:$0xff] %v8440_v14  ;;  %v8448_v60 = vadd.f32 %v14165_v23, %v14164_v39  ;;  %v14168_v21 = vld [vmem:[#allocation18_spill] sm:$0xff]  ;;  %v14171_v56 = vld [vmem:[#allocation83_spill] sm:$0xff] }
 0x240   : > { %14163 = vst [vmem:[#allocation311_spill] sm:$0xff] %v8444_v47  ;;  %v8452_v36 = vadd.f32 %v14168_v21, %v14167_v12  ;;  %v14170_v3 = vld [vmem:[#allocation66_spill] sm:$0xff]  ;;  %v14173_v31 = vld [vmem:[#allocation80_spill] sm:$0xff]  ;;  %v14174_v51 = vld [vmem:[#allocation171_spill] sm:$0xff] }
 0x241   : > { %14166 = vst [vmem:[#allocation12_spill] sm:$0xff] %v8448_v60  ;;  %v8456_v4 = vadd.f32 %v14171_v56, %v14170_v3  ;;  %v8460_v20 = vadd.f32 %v14174_v51, %v14173_v31  ;;  %v14176_v33 = vld [vmem:[#allocation93_spill] sm:$0xff]  ;;  %v14177_v14 = vld [vmem:[#allocation108_spill] sm:$0xff]  ;;  %v14179_v19 = vld [vmem:[#allocation107_spill] sm:$0xff] }
 0x242   : > { %14169 = vst [vmem:[#allocation312_spill] sm:$0xff] %v8452_v36  ;;  %v8464_v37 = vadd.f32 %v14177_v14, %v14176_v33  ;;  %v14180_v47 = vld [vmem:[#allocation110_spill] sm:$0xff]  ;;  %v14182_v39 = vld [vmem:[#allocation120_spill] sm:$0xff]  ;;  %v14183_v60 = vld [vmem:[#allocation111_spill] sm:$0xff] }
 0x243   : > { %14172 = vst [vmem:[#allocation330_spill] sm:$0xff] %v8456_v4  ;;  %14175 = vst [vmem:[#allocation67_spill] sm:$0xff] %v8460_v20  ;;  %v8468_v23 = vadd.f32 %v14180_v47, %v14179_v19  ;;  %v8472_v21 = vadd.f32 %v14183_v60, %v14182_v39  ;;  %v14185_v12 = vld [vmem:[#allocation127_spill] sm:$0xff]  ;;  %v14186_v36 = vld [vmem:[#allocation234_spill] sm:$0xff] }
 0x244   : > { %14178 = vst [vmem:[#allocation313_spill] sm:$0xff] %v8464_v37  ;;  %v8476_v56 = vadd.f32 %v14186_v36, %v14185_v12  ;;  %v14188_v3 = vld [vmem:[#allocation182_spill] sm:$0xff]  ;;  %v14189_v4 = vld [vmem:[#allocation235_spill] sm:$0xff]  ;;  %v14192_v20 = vld [vmem:[#allocation116_spill] sm:$0xff] }
 0x245   : > { %14181 = vst [vmem:[#allocation72_spill] sm:$0xff] %v8468_v23  ;;  %14184 = vst [vmem:[#allocation314_spill] sm:$0xff] %v8472_v21  ;;  %v8480_v51 = vadd.f32 %v14189_v4, %v14188_v3  ;;  %v14191_v31 = vld [vmem:[#allocation183_spill] sm:$0xff]  ;;  %v14194_v33 = vld [vmem:[#allocation185_spill] sm:$0xff] }
 0x246   : > { %14187 = vst [vmem:[#allocation75_spill] sm:$0xff] %v8476_v56  ;;  %v8484_v14 = vadd.f32 %v14192_v20, %v14191_v31  ;;  %v14195_v37 = vld [vmem:[#allocation114_spill] sm:$0xff]  ;;  %v14198_v23 = vld [vmem:[#allocation55_spill] sm:$0xff]  ;;  %v14201_v21 = vld [vmem:[#allocation61_spill] sm:$0xff] }
 0x247   : > { %14190 = vst [vmem:[#allocation315_spill] sm:$0xff] %v8480_v51  ;;  %v8488_v47 = vadd.f32 %v14195_v37, %v14194_v33  ;;  %v14197_v19 = vld [vmem:[#allocation186_spill] sm:$0xff]  ;;  %v14200_v39 = vld [vmem:[#allocation187_spill] sm:$0xff]  ;;  %v14203_v12 = vld [vmem:[#allocation189_spill] sm:$0xff] }
 0x248   : > { %14193 = vst [vmem:[#allocation331_spill] sm:$0xff] %v8484_v14  ;;  %v8492_v60 = vadd.f32 %v14198_v23, %v14197_v19  ;;  %v8496_v36 = vadd.f32 %v14201_v21, %v14200_v39  ;;  %v14204_v56 = vld [vmem:[#allocation237_spill] sm:$0xff]  ;;  %v14206_v3 = vld [vmem:[#allocation190_spill] sm:$0xff]  ;;  %v14209_v31 = vld [vmem:[#allocation191_spill] sm:$0xff] }
 0x249   : > { %14196 = vst [vmem:[#allocation87_spill] sm:$0xff] %v8488_v47  ;;  %v8500_v4 = vadd.f32 %v14204_v56, %v14203_v12  ;;  %v14207_v51 = vld [vmem:[#allocation238_spill] sm:$0xff]  ;;  %v8508_v37 = vadd.f32 %v7930_v48, %v14209_v31  ;;  %v14211_v33 = vld [vmem:[#allocation193_spill] sm:$0xff]  ;;  %v14215_v39 = vld [vmem:[#allocation195_spill] sm:$0xff] }
 0x24a   : > { %14199 = vst [vmem:[#allocation316_spill] sm:$0xff] %v8492_v60  ;;  %14202 = vst [vmem:[#allocation94_spill] sm:$0xff] %v8496_v36  ;;  %v8504_v20 = vadd.f32 %v14207_v51, %v14206_v3  ;;  %v8512_v23 = vadd.f32 %v7935_v46, %v14211_v33  ;;  %v14213_v19 = vld [vmem:[#allocation194_spill] sm:$0xff]  ;;  %v8520_v56 = vadd.f32 %v7949_v42, %v14215_v39  ;;  %v14217_v12 = vld [vmem:[#allocation197_spill] sm:$0xff] }
 0x24b   : > { %14205 = vst [vmem:[#allocation317_spill] sm:$0xff] %v8500_v4  ;;  %14210 = vst [vmem:[#allocation318_spill] sm:$0xff] %v8508_v37  ;;  %v8516_v21 = vadd.f32 %v7940_v2, %v14213_v19  ;;  %v8524_v51 = vadd.f32 %v7954_v35, %v14217_v12  ;;  %v14219_v3 = vld [vmem:[#allocation198_spill] sm:$0xff]  ;;  %v14221_v31 = vld [vmem:[#allocation199_spill] sm:$0xff] }
 0x24c   : > { %14208 = vst [vmem:[#allocation101_spill] sm:$0xff] %v8504_v20  ;;  %14212 = vst [vmem:[#allocation109_spill] sm:$0xff] %v8512_v23  ;;  %v8528_v48 = vadd.f32 %v7959_v62, %v14219_v3  ;;  %v8532_v46 = vadd.f32 %v7967_v54, %v14221_v31  ;;  %v14223_v33 = vld [vmem:[#allocation201_spill] sm:$0xff]  ;;  %v14225_v19 = vld [vmem:[#allocation202_spill] sm:$0xff] }
 0x24d   : > { %14214 = vst [vmem:[#allocation320_spill] sm:$0xff] %v8516_v21  ;;  %14216 = vst [vmem:[#allocation115_spill] sm:$0xff] %v8520_v56  ;;  %v8536_v2 = vadd.f32 %v7972_v22, %v14223_v33  ;;  %v8540_v42 = vadd.f32 %v7977_v16, %v14225_v19  ;;  %v14227_v39 = vld [vmem:[#allocation203_spill] sm:$0xff]  ;;  %v14229_v12 = vld [vmem:[#allocation205_spill] sm:$0xff] }
 0x24e   : > { %14218 = vst [vmem:[#allocation324_spill] sm:$0xff] %v8524_v51  ;;  %14220 = vst [vmem:[#allocation149_spill] sm:$0xff] %v8528_v48  ;;  %v8544_v35 = vadd.f32 %v7985_v49, %v14227_v39  ;;  %v8548_v62 = vadd.f32 %v7990_v10, %v14229_v12  ;;  %v14231_v3 = vld [vmem:[#allocation206_spill] sm:$0xff]  ;;  %v14233_v31 = vld [vmem:[#allocation207_spill] sm:$0xff] }
 0x24f   : > { %14222 = vst [vmem:[#allocation328_spill] sm:$0xff] %v8532_v46  ;;  %14224 = vst [vmem:[#allocation153_spill] sm:$0xff] %v8536_v2  ;;  %v8552_v54 = vadd.f32 %v7995_v13, %v14231_v3  ;;  %v8556_v22 = vadd.f32 %v8003_v44, %v14233_v31  ;;  %v14235_v33 = vld [vmem:[#allocation209_spill] sm:$0xff]  ;;  %v14237_v19 = vld [vmem:[#allocation210_spill] sm:$0xff] }
 0x250   : > { %14226 = vst [vmem:[#allocation332_spill] sm:$0xff] %v8540_v42  ;;  %14228 = vst [vmem:[#allocation160_spill] sm:$0xff] %v8544_v35  ;;  %v8560_v16 = vadd.f32 %v8008_v8, %v14235_v33  ;;  %v8564_v49 = vadd.f32 %v8013_v17, %v14237_v19  ;;  %v14239_v39 = vld [vmem:[#allocation211_spill] sm:$0xff]  ;;  %v14241_v12 = vld [vmem:[#allocation102_spill] sm:$0xff] }
 0x251   : > { %14230 = vst [vmem:[#allocation333_spill] sm:$0xff] %v8548_v62  ;;  %14232 = vst [vmem:[#allocation167_spill] sm:$0xff] %v8552_v54  ;;  %v8568_v10 = vadd.f32 %v8021_v5, %v14239_v39  ;;  %v8572_v13 = vadd.f32 %v8026_v1, %v14241_v12  ;;  %v14243_v3 = vld [vmem:[#allocation213_spill] sm:$0xff]  ;;  %v14246_v31 = vld [vmem:[#allocation214_spill] sm:$0xff] }
 0x252   : > { %14234 = vst [vmem:[#allocation334_spill] sm:$0xff] %v8556_v22  ;;  %14236 = vst [vmem:[#allocation172_spill] sm:$0xff] %v8560_v16  ;;  %v14244_v54 = vld [vmem:[#allocation117_spill] sm:$0xff]  ;;  %v14247_v22 = vld [vmem:[#allocation62_spill] sm:$0xff] }
 0x253   : > { %14238 = vst [vmem:[#allocation335_spill] sm:$0xff] %v8564_v49  ;;  %14240 = vst [vmem:[#allocation176_spill] sm:$0xff] %v8568_v10  ;;  %v8576_v44 = vadd.f32 %v14244_v54, %v14243_v3  ;;  %v8580_v8 = vadd.f32 %v14247_v22, %v14246_v31  ;;  %v14249_v33 = vld [vmem:[#allocation157_spill] sm:$0xff]  ;;  %v14250_v16 = vld [vmem:[#allocation150_spill] sm:$0xff] }
 0x254   : > { %14242 = vst [vmem:[#allocation336_spill] sm:$0xff] %v8572_v13  ;;  %v8584_v17 = vadd.f32 %v14250_v16, %v14249_v33  ;;  %v14252_v19 = vld [vmem:[#allocation216_spill] sm:$0xff]  ;;  %v14253_v49 = vld [vmem:[#allocation151_spill] sm:$0xff]  ;;  %v14255_v39 = vld [vmem:[#allocation217_spill] sm:$0xff] }
 0x255   : > { %14245 = vst [vmem:[#allocation180_spill] sm:$0xff] %v8576_v44  ;;  %14248 = vst [vmem:[#allocation337_spill] sm:$0xff] %v8580_v8  ;;  %v8588_v5 = vadd.f32 %v14253_v49, %v14252_v19  ;;  %v14256_v10 = vld [vmem:[#allocation240_spill] sm:$0xff]  ;;  %v14258_v12 = vld [vmem:[#allocation158_spill] sm:$0xff] }
 0x256   : > { %14251 = vst [vmem:[#allocation135_spill] sm:$0xff] %v8584_v17  ;;  %v8592_v1 = vadd.f32 %v14256_v10, %v14255_v39  ;;  %v14259_v13 = vld [vmem:[#allocation241_spill] sm:$0xff]  ;;  %v14261_v3 = vld [vmem:[#allocation219_spill] sm:$0xff]  ;;  %v14264_v8 = vld [vmem:[#allocation220_spill] sm:$0xff] }
 0x257   : > { %14254 = vst [vmem:[#allocation338_spill] sm:$0xff] %v8588_v5  ;;  %v8596_v54 = vadd.f32 %v14259_v13, %v14258_v12  ;;  %v14262_v22 = vld [vmem:[#allocation121_spill] sm:$0xff]  ;;  %v14265_v16 = vld [vmem:[#allocation152_spill] sm:$0xff]  ;;  %v14267_v49 = vld [vmem:[#allocation159_spill] sm:$0xff] }
 0x258   : > { %14257 = vst [vmem:[#allocation136_spill] sm:$0xff] %v8592_v1  ;;  %v8600_v31 = vadd.f32 %v14262_v22, %v14261_v3  ;;  %v8604_v33 = vadd.f32 %v14265_v16, %v14264_v8  ;;  %v14268_v19 = vld [vmem:[#allocation154_spill] sm:$0xff]  ;;  %v14271_v39 = vld [vmem:[#allocation155_spill] sm:$0xff]  ;;  %v14276_v3 = vld [vmem:[#allocation164_spill] sm:$0xff] }
 0x259   : > { %14260 = vst [vmem:[#allocation68_spill] sm:$0xff] %v8596_v54  ;;  %v8608_v5 = vadd.f32 %v14268_v19, %v14267_v49  ;;  %v14270_v10 = vld [vmem:[#allocation222_spill] sm:$0xff]  ;;  %v14273_v13 = vld [vmem:[#allocation223_spill] sm:$0xff]  ;;  %v14277_v22 = vld [vmem:[#allocation156_spill] sm:$0xff] }
 0x25a   : > { %14263 = vst [vmem:[#allocation184_spill] sm:$0xff] %v8600_v31  ;;  %14266 = vst [vmem:[#allocation13_spill] sm:$0xff] %v8604_v33  ;;  %v8612_v1 = vadd.f32 %v14271_v39, %v14270_v10  ;;  %v14274_v12 = vld [vmem:[#allocation243_spill] sm:$0xff]  ;;  %v8620_v31 = vadd.f32 %v14277_v22, %v14276_v3  ;;  %v14279_v8 = vld [vmem:[#allocation225_spill] sm:$0xff] }
 0x25b   : > { %14269 = vst [vmem:[#allocation188_spill] sm:$0xff] %v8608_v5  ;;  %v8616_v54 = vadd.f32 %v14274_v12, %v14273_v13  ;;  %v14280_v16 = vld [vmem:[#allocation161_spill] sm:$0xff]  ;;  %v14282_v49 = vld [vmem:[#allocation226_spill] sm:$0xff]  ;;  %v14288_v13 = vld [vmem:[#allocation228_spill] sm:$0xff] }
 0x25c   : > { %14272 = vst [vmem:[#allocation73_spill] sm:$0xff] %v8612_v1  ;;  %14278 = vst [vmem:[#allocation14_spill] sm:$0xff] %v8620_v31  ;;  %v8624_v33 = vadd.f32 %v14280_v16, %v14279_v8  ;;  %v14283_v19 = vld [vmem:[#allocation162_spill] sm:$0xff]  ;;  %v14285_v10 = vld [vmem:[#allocation165_spill] sm:$0xff] }
 0x25d   : > { %14275 = vst [vmem:[#allocation192_spill] sm:$0xff] %v8616_v54  ;;  %v8628_v5 = vadd.f32 %v14283_v19, %v14282_v49  ;;  %v14286_v39 = vld [vmem:[#allocation122_spill] sm:$0xff]  ;;  %v14289_v12 = vld [vmem:[#allocation245_spill] sm:$0xff]  ;;  %v14292_v22 = vld [vmem:[#allocation123_spill] sm:$0xff] }
 0x25e   : > { %14281 = vst [vmem:[#allocation196_spill] sm:$0xff] %v8624_v33  ;;  %v8632_v1 = vadd.f32 %v14286_v39, %v14285_v10  ;;  %v8636_v54 = vadd.f32 %v14289_v12, %v14288_v13  ;;  %v14291_v3 = vld [vmem:[#allocation229_spill] sm:$0xff]  ;;  %v14294_v8 = vld [vmem:[#allocation166_spill] sm:$0xff]  ;;  %v14295_v16 = vld [vmem:[#allocation163_spill] sm:$0xff] }
 0x25f   : > { %14284 = vst [vmem:[#allocation74_spill] sm:$0xff] %v8628_v5  ;;  %v8640_v31 = vadd.f32 %v14292_v22, %v14291_v3  ;;  %v8644_v33 = vadd.f32 %v14295_v16, %v14294_v8  ;;  %v14297_v49 = vld [vmem:[#allocation231_spill] sm:$0xff]  ;;  %v14298_v19 = vld [vmem:[#allocation168_spill] sm:$0xff]  ;;  %v14301_v39 = vld [vmem:[#allocation169_spill] sm:$0xff] }
 0x260   : > { %14287 = vst [vmem:[#allocation200_spill] sm:$0xff] %v8632_v1  ;;  %14290 = vst [vmem:[#allocation204_spill] sm:$0xff] %v8636_v54  ;;  %v8648_v5 = vadd.f32 %v14298_v19, %v14297_v49  ;;  %v14300_v10 = vld [vmem:[#allocation232_spill] sm:$0xff]  ;;  %v8655_v13 = vld [vmem:[%s4743_s4 + $0x400] sm:$0xff] }
 0x261   : > { %14293 = vst [vmem:[#allocation208_spill] sm:$0xff] %v8640_v31  ;;  %14296 = vst [vmem:[#allocation212_spill] sm:$0xff] %v8644_v33  ;;  %v8652_v1 = vadd.f32 %v14301_v39, %v14300_v10  ;;  %v14304_v12 = vld [vmem:[#allocation79_spill] sm:$0xff]  ;;  %v8660_v22 = vld [vmem:[%s4743_s4 + $0x408] sm:$0xff] }
 0x262   : > { %14299 = vst [vmem:[#allocation215_spill] sm:$0xff] %v8648_v5  ;;  %14303 = vst [vmem:[#allocation221_spill] sm:$0xff] %v8655_v13  ;;  %v1646_v3 = vsub.f32 %v8655_v13, %v14304_v12  ;;  %v14306_v31 = vld [vmem:[#allocation85_spill] sm:$0xff]  ;;  %v8665_v16 = vld [vmem:[%s4743_s4 + $0x410] sm:$0xff] }
 0x263   : > { %14302 = vst [vmem:[#allocation218_spill] sm:$0xff] %v8652_v1  ;;  %14305 = vst [vmem:[#allocation224_spill] sm:$0xff] %v8660_v22  ;;  %v1647_v8 = vsub.f32 %v8660_v22, %v14306_v31  ;;  %v14308_v49 = vld [vmem:[#allocation92_spill] sm:$0xff]  ;;  %v14310_v39 = vld [vmem:[#allocation105_spill] sm:$0xff] }
 0x264   : > { %14307 = vst [vmem:[#allocation227_spill] sm:$0xff] %v8665_v16  ;;  %v1648_v19 = vsub.f32 %v8665_v16, %v14308_v49  ;;  %v8670_v10 = vld [vmem:[%s4743_s4 + $0x418] sm:$0xff]  ;;  %v8675_v5 = vld [vmem:[%s4743_s4 + $0x420] sm:$0xff]  ;;  %v14312_v33 = vld [vmem:[#allocation106_spill] sm:$0xff]  ;;  %v1710_v30 = vmul.f32 1.442695, %v1646_v3 }
 0x265   : > { %14309 = vst [vmem:[#allocation230_spill] sm:$0xff] %v8670_v10  ;;  %14311 = vst [vmem:[#allocation233_spill] sm:$0xff] %v8675_v5  ;;  %v8680_v17 = vld [vmem:[%s4743_s4 + $0x428] sm:$0xff]  ;;  %v14314_v44 = vld [vmem:[#allocation112_spill] sm:$0xff]  ;;  %v1712_v28 = vmul.f32 1.442695, %v1647_v8 }
 0x266   : > { %14313 = vst [vmem:[#allocation236_spill] sm:$0xff] %v8680_v17  ;;  %v8685_v35 = vld [vmem:[%s4743_s4 + $0x430] sm:$0xff]  ;;  %v14316_v49 = vld [vmem:[#allocation113_spill] sm:$0xff]  ;;  %v8690_v2 = vld [vmem:[%s4743_s4 + $0x438] sm:$0xff]  ;;  %v1714_v26 = vmul.f32 1.442695, %v1648_v19  ;;  %v14367_v19 = vsub.f32 %v8670_v10, %v14310_v39  ;;  %3605 = vpow2.f32 %v1710_v30  ;;  %v14375_v30 = vsub.f32 %v8680_v17, %v14314_v44 }
 0x267   : > { %14315 = vst [vmem:[#allocation239_spill] sm:$0xff] %v8685_v35  ;;  %14317 = vst [vmem:[#allocation242_spill] sm:$0xff] %v8690_v2  ;;  %v14318_v1 = vld [vmem:[#allocation118_spill] sm:$0xff]  ;;  %v8695_v48 = vld [vmem:[%s4743_s4 + $0x440] sm:$0xff]  ;;  %3607 = vpow2.f32 %v1712_v28  ;;  %v14380_v28 = vsub.f32 %v8685_v35, %v14316_v49 }
 0x268   : > { %14319 = vst [vmem:[#allocation244_spill] sm:$0xff] %v8695_v48  ;;  %v14320_v54 = vld [vmem:[#allocation119_spill] sm:$0xff]  ;;  %v8700_v56 = vld [vmem:[%s4743_s4 + $0x448] sm:$0xff]  ;;  %v14322_v62 = vld [vmem:[#allocation125_spill] sm:$0xff]  ;;  %v1716_v7 = vmul.f32 1.442695, %v14367_v19  ;;  %3609 = vpow2.f32 %v1714_v26  ;;  %v14385_v26 = vsub.f32 %v8690_v2, %v14318_v1 }
 0x269   : > { %14321 = vst [vmem:[#allocation246_spill] sm:$0xff] %v8700_v56  ;;  %v8705_v23 = vld [vmem:[%s4743_s4 + $0x450] sm:$0xff]  ;;  %v14324_v42 = vld [vmem:[#allocation126_spill] sm:$0xff]  ;;  %v8710_v20 = vld [vmem:[%s4743_s4 + $0x458] sm:$0xff]  ;;  %v1720_v34 = vmul.f32 1.442695, %v14375_v30 }
 0x26a   : > { %14323 = vst [vmem:[#allocation249_spill] sm:$0xff] %v8705_v23  ;;  %14325 = vst [vmem:[#allocation252_spill] sm:$0xff] %v8710_v20  ;;  %v14326_v46 = vld [vmem:[#allocation132_spill] sm:$0xff]  ;;  %v8715_v36 = vld [vmem:[%s4743_s4 + $0x460] sm:$0xff]  ;;  %3611 = vpow2.f32 %v1716_v7  ;;  %v1724_v19 = vmul.f32 1.442695, %v14385_v26  ;;  %v14390_v7 = vsub.f32 %v8695_v48, %v14320_v54 }
 0x26b   : > { %14327 = vst [vmem:[#allocation255_spill] sm:$0xff] %v8715_v36  ;;  %v14328_v51 = vld [vmem:[#allocation143_spill] sm:$0xff]  ;;  %v8720_v47 = vld [vmem:[%s4743_s4 + $0x468] sm:$0xff]  ;;  %v14330_v21 = vld [vmem:[#allocation133_spill] sm:$0xff] }
 0x26c   : > { %14329 = vst [vmem:[#allocation258_spill] sm:$0xff] %v8720_v47  ;;  %v8725_v27 = vld [vmem:[%s4743_s4 + $0x470] sm:$0xff]  ;;  %v14332_v37 = vld [vmem:[#allocation134_spill] sm:$0xff]  ;;  %v8730_v43 = vld [vmem:[%s4743_s4 + $0x478] sm:$0xff] }
 0x26d   : > { %14331 = vst [vmem:[#allocation262_spill] sm:$0xff] %v8725_v27  ;;  %14333 = vst [vmem:[#allocation265_spill] sm:$0xff] %v8730_v43  ;;  %v14334_v4 = vld [vmem:[#allocation139_spill] sm:$0xff]  ;;  %v8735_v55 = vld [vmem:[%s4743_s4 + $0x480] sm:$0xff] }
 0x26e   : > { %14335 = vst [vmem:[#allocation267_spill] sm:$0xff] %v8735_v55  ;;  %v14336_v60 = vld [vmem:[#allocation144_spill] sm:$0xff]  ;;  %v8740_v18 = vld [vmem:[%s4743_s4 + $0x488] sm:$0xff]  ;;  %v8745_v52 = vld [vmem:[%s4743_s4 + $0x490] sm:$0xff] }
 0x26f   : > { %14337 = vst [vmem:[#allocation270_spill] sm:$0xff] %v8740_v18  ;;  %v14338_v14 = vld [vmem:[#allocation140_spill] sm:$0xff]  ;;  %v14339_v9 = vld [vmem:[#allocation141_spill] sm:$0xff]  ;;  %v14340_v38 = vld [vmem:[#allocation142_spill] sm:$0xff] }
 0x270   : > { %v8750_v53 = vld [vmem:[%s4743_s4 + $0x498] sm:$0xff]  ;;  %v8755_v29 = vld [vmem:[%s4743_s4 + $0x4a0] sm:$0xff]  ;;  %v8760_v15 = vld [vmem:[%s4743_s4 + $0x4a8] sm:$0xff] }
 0x271   : > { %v14341_v59 = vld [vmem:[#allocation145_spill] sm:$0xff]  ;;  %14342 = vst [vmem:[#allocation273_spill] sm:$0xff] %v8760_v15  ;;  %v14343_v32 = vld [vmem:[#allocation27_spill] sm:$0xff]  ;;  %v14345_v61 = vld [vmem:[#allocation30_spill] sm:$0xff] }
 0x272   : > { %v8765_v11 = vld [vmem:[%s4743_s4 + $0x4b0] sm:$0xff]  ;;  %v8770_v50 = vld [vmem:[%s4743_s4 + $0x4b8] sm:$0xff]  ;;  %v8775_v0 = vld [vmem:[%s4743_s4 + $0x4c0] sm:$0xff] }
 0x273   : > { %14344 = vst [vmem:[#allocation275_spill] sm:$0xff] %v8765_v11  ;;  %14346 = vst [vmem:[#allocation277_spill] sm:$0xff] %v8770_v50  ;;  %v14347_v6 = vld [vmem:[#allocation31_spill] sm:$0xff]  ;;  %v14349_v58 = vld [vmem:[#allocation32_spill] sm:$0xff] }
 0x274   : > { %14348 = vst [vmem:[#allocation280_spill] sm:$0xff] %v8775_v0  ;;  %v8780_v24 = vld [vmem:[%s4743_s4 + $0x4c8] sm:$0xff]  ;;  %v8785_v40 = vld [vmem:[%s4743_s4 + $0x4d0] sm:$0xff]  ;;  %v8790_v45 = vld [vmem:[%s4743_s4 + $0x4d8] sm:$0xff] }
 0x275   : > { %14350 = vst [vmem:[#allocation283_spill] sm:$0xff] %v8780_v24  ;;  %14352 = vst [vmem:[#allocation286_spill] sm:$0xff] %v8785_v40  ;;  %v8795_v3 = vld [vmem:[%s4743_s4 + $0x4e0] sm:$0xff]  ;;  %v8800_v25 = vld [vmem:[%s4743_s4 + $0x4e8] sm:$0xff] }
 0x276   : > { %14354 = vst [vmem:[#allocation289_spill] sm:$0xff] %v8790_v45  ;;  %14356 = vst [vmem:[#allocation292_spill] sm:$0xff] %v8795_v3  ;;  %v8805_v41 = vld [vmem:[%s4743_s4 + $0x4f0] sm:$0xff]  ;;  %v8810_v8 = vld [vmem:[%s4743_s4 + $0x4f8] sm:$0xff] }
 0x277   : > { %14358 = vst [vmem:[#allocation295_spill] sm:$0xff] %v8800_v25  ;;  %14360 = vst [vmem:[#allocation298_spill] sm:$0xff] %v8805_v41  ;;  %v8815_v40 = vld [vmem:[%s4743_s4 + $0x500] sm:$0xff]  ;;  %v14364_v16 = vld [vmem:[#allocation51_spill] sm:$0xff]  ;;  %v14371_v25 = vsub.f32 %v8675_v5, %v14312_v33  ;;  %v1722_v41 = vmul.f32 1.442695, %v14380_v28 }
 0x278   : > { %14362 = vst [vmem:[#allocation301_spill] sm:$0xff] %v8810_v8  ;;  %v8820_v13 = vld [vmem:[%s4743_s4 + $0x508] sm:$0xff]  ;;  %v8828_v63 = vld [vmem:[%s4743_s4 + $0x510] sm:$0xff]  ;;  %v8833_v57 = vld [vmem:[%s4743_s4 + $0x518] sm:$0xff] }
 0x279   : > { %14365 = vst [vmem:[#allocation15_spill] sm:$0xff] %v8820_v13  ;;  %14369 = vst [vmem:[#allocation17_spill] sm:$0xff] %v8833_v57  ;;  %v1718_v22 = vmul.f32 1.442695, %v14371_v25  ;;  %v8841_v39 = vld [vmem:[%s4743_s4 + $0x520] sm:$0xff]  ;;  %v8846_v13 = vld [vmem:[%s4743_s4 + $0x528] sm:$0xff] }
 0x27a   : > { %14372 = vst [vmem:[#allocation16_spill] sm:$0xff] %v8841_v39  ;;  %v8854_v33 = vld [vmem:[%s4743_s4 + $0x530] sm:$0xff]  ;;  %v8859_v8 = vld [vmem:[%s4743_s4 + $0x538] sm:$0xff]  ;;  %v8867_v44 = vld [vmem:[%s4743_s4 + $0x540] sm:$0xff]  ;;  %v1726_v25 = vmul.f32 1.442695, %v14390_v7  ;;  %v14410_v7 = vsub.f32 %v8715_v36, %v14328_v51  ;;  %v8957_v51 = vpop.eup %3605 }
 0x27b   : > { %14376 = vst [vmem:[#allocation81_spill] sm:$0xff] %v8854_v33  ;;  %14378 = vst [vmem:[#allocation19_spill] sm:$0xff] %v8859_v8  ;;  %v8872_v45 = vld [vmem:[%s4743_s4 + $0x548] sm:$0xff]  ;;  %v8880_v49 = vld [vmem:[%s4743_s4 + $0x550] sm:$0xff]  ;;  %3613 = vpow2.f32 %v1718_v22  ;;  %v14395_v22 = vsub.f32 %v8700_v56, %v14322_v62 }
 0x27c   : > { %14381 = vst [vmem:[#allocation82_spill] sm:$0xff] %v8867_v44  ;;  %14383 = vst [vmem:[#allocation20_spill] sm:$0xff] %v8872_v45  ;;  %v8885_v10 = vld [vmem:[%s4743_s4 + $0x558] sm:$0xff]  ;;  %v8893_v1 = vld [vmem:[%s4743_s4 + $0x560] sm:$0xff]  ;;  %3615 = vpow2.f32 %v1720_v34  ;;  %v14400_v34 = vsub.f32 %v8705_v23, %v14324_v42 }
 0x27d   : > { %14386 = vst [vmem:[#allocation88_spill] sm:$0xff] %v8880_v49  ;;  %14388 = vst [vmem:[#allocation24_spill] sm:$0xff] %v8885_v10  ;;  %v8898_v5 = vld [vmem:[%s4743_s4 + $0x568] sm:$0xff]  ;;  %v1728_v30 = vmul.f32 1.442695, %v14395_v22  ;;  %v8906_v54 = vld [vmem:[%s4743_s4 + $0x570] sm:$0xff]  ;;  %3617 = vpow2.f32 %v1722_v41  ;;  %v14405_v41 = vsub.f32 %v8710_v20, %v14326_v46 }
 0x27e   : > { %14391 = vst [vmem:[#allocation89_spill] sm:$0xff] %v8893_v1  ;;  %14393 = vst [vmem:[#allocation28_spill] sm:$0xff] %v8898_v5  ;;  %v8911_v17 = vld [vmem:[%s4743_s4 + $0x578] sm:$0xff]  ;;  %v1730_v28 = vmul.f32 1.442695, %v14400_v34  ;;  %v8919_v62 = vld [vmem:[%s4743_s4 + $0x580] sm:$0xff]  ;;  %3619 = vpow2.f32 %v1724_v19 }
 0x27f   : > { %14396 = vst [vmem:[#allocation22_spill] sm:$0xff] %v8906_v54  ;;  %14398 = vst [vmem:[#allocation33_spill] sm:$0xff] %v8911_v17  ;;  %v8924_v35 = vld [vmem:[%s4743_s4 + $0x588] sm:$0xff]  ;;  %v1732_v26 = vmul.f32 1.442695, %v14405_v41  ;;  %v8932_v42 = vld [vmem:[%s4743_s4 + $0x590] sm:$0xff]  ;;  %3621 = vpow2.f32 %v1726_v25  ;;  %v14415_v25 = vsub.f32 %v8720_v47, %v14330_v21 }
 0x280   : > { %14401 = vst [vmem:[#allocation95_spill] sm:$0xff] %v8919_v62  ;;  %14403 = vst [vmem:[#allocation34_spill] sm:$0xff] %v8924_v35  ;;  %v8937_v2 = vld [vmem:[%s4743_s4 + $0x598] sm:$0xff]  ;;  %v1734_v19 = vmul.f32 1.442695, %v14410_v7  ;;  %v8945_v48 = vld [vmem:[%s4743_s4 + $0x5a0] sm:$0xff]  ;;  %3623 = vpow2.f32 %v1728_v30  ;;  %v14421_v30 = vsub.f32 %v8725_v27, %v14332_v37 }
 0x281   : > { %14406 = vst [vmem:[#allocation96_spill] sm:$0xff] %v8932_v42  ;;  %14408 = vst [vmem:[#allocation38_spill] sm:$0xff] %v8937_v2  ;;  %v8950_v20 = vld [vmem:[%s4743_s4 + $0x5a8] sm:$0xff]  ;;  %v1736_v22 = vmul.f32 1.442695, %v14415_v25  ;;  %v8960_v7 = vld [vmem:[%s4743_s4 + $0x5b0] sm:$0xff]  ;;  %3625 = vpow2.f32 %v1730_v28  ;;  %v8972_v25 = vpop.eup %3607  ;;  %v14427_v28 = vsub.f32 %v8730_v43, %v14334_v4 }
 0x282   : > { %14411 = vst [vmem:[#allocation97_spill] sm:$0xff] %v8945_v48  ;;  %14413 = vst [vmem:[#allocation39_spill] sm:$0xff] %v8950_v20  ;;  %v14414_v23 = vld [vmem:[#allocation146_spill] sm:$0xff]  ;;  %v8965_v46 = vld [vmem:[%s4743_s4 + $0x5b8] sm:$0xff]  ;;  %v1738_v34 = vmul.f32 1.442695, %v14421_v30  ;;  %3627 = vpow2.f32 %v1732_v26  ;;  %v8987_v30 = vpop.eup %3609  ;;  %v14433_v26 = vsub.f32 %v8735_v55, %v14336_v60 }
 0x283   : > { %14416 = vst [vmem:[#allocation40_spill] sm:$0xff] %v8957_v51  ;;  %14417 = vst [vmem:[#allocation45_spill] sm:$0xff] %v8960_v7  ;;  %v14420_v41 = vld [vmem:[#allocation48_spill] sm:$0xff]  ;;  %v8975_v21 = vld [vmem:[%s4743_s4 + $0x5c0] sm:$0xff]  ;;  %v1740_v48 = vmul.f32 1.442695, %v14427_v28  ;;  %3629 = vpow2.f32 %v1734_v19  ;;  %v9002_v28 = vpop.eup %3611  ;;  %v14439_v19 = vsub.f32 %v8740_v18, %v14338_v14 }
 0x284   : > { %14419 = vst [vmem:[#allocation103_spill] sm:$0xff] %v8965_v46  ;;  %14422 = vst [vmem:[#allocation46_spill] sm:$0xff] %v8972_v25  ;;  %v8980_v56 = vld [vmem:[%s4743_s4 + $0x5c8] sm:$0xff]  ;;  %v8990_v37 = vld [vmem:[%s4743_s4 + $0x5d0] sm:$0xff]  ;;  %v1742_v7 = vmul.f32 1.442695, %v14433_v26  ;;  %3631 = vpow2.f32 %v1736_v22  ;;  %v14445_v22 = vsub.f32 %v8745_v52, %v14339_v9  ;;  %v14453_v9 = vsub.f32 %v8765_v11, %v14345_v61 }
 0x285   : > { %14423 = vst [vmem:[#allocation104_spill] sm:$0xff] %v8975_v21  ;;  %14425 = vst [vmem:[#allocation53_spill] sm:$0xff] %v8980_v56  ;;  %v8995_v47 = vld [vmem:[%s4743_s4 + $0x5d8] sm:$0xff]  ;;  %v9005_v4 = vld [vmem:[%s4743_s4 + $0x5e0] sm:$0xff]  ;;  %v1744_v21 = vmul.f32 1.442695, %v14439_v19  ;;  %v9017_v26 = vpop.eup %3613  ;;  %3633 = vpow2.f32 %v1738_v34  ;;  %v14447_v19 = vsub.f32 %v8750_v53, %v14340_v38  ;;  %v14455_v34 = vsub.f32 %v8770_v50, %v14347_v6 }
 0x286   : > { %14428 = vst [vmem:[#allocation18_spill] sm:$0xff] %v8987_v30  ;;  %14429 = vst [vmem:[#allocation66_spill] sm:$0xff] %v8990_v37  ;;  %v9010_v36 = vld [vmem:[%s4743_s4 + $0x5e8] sm:$0xff]  ;;  %v9020_v60 = vld [vmem:[%s4743_s4 + $0x5f0] sm:$0xff]  ;;  %v1746_v25 = vmul.f32 1.442695, %v14445_v22  ;;  %v9032_v27 = vpop.eup %3615  ;;  %3635 = vpow2.f32 %v1740_v48  ;;  %v14451_v48 = vsub.f32 %v8755_v29, %v14341_v59 }
 0x287   : > { %14431 = vst [vmem:[#allocation83_spill] sm:$0xff] %v8995_v47  ;;  %14434 = vst [vmem:[#allocation80_spill] sm:$0xff] %v9002_v28  ;;  %v14442_v28 = vld [vmem:[#allocation9_spill] sm:$0xff]  ;;  %v9025_v51 = vld [vmem:[%s4743_s4 + $0x5f8] sm:$0xff]  ;;  %v1748_v14 = vmul.f32 1.442695, %v14447_v19  ;;  %v9047_v30 = vpop.eup %3617  ;;  %3637 = vpow2.f32 %v1742_v7  ;;  %v14452_v19 = vsub.f32 %v8760_v15, %v14343_v32  ;;  %v14456_v7 = vsub.f32 %v8775_v0, %v14349_v58 }
 0x288   : > { %14435 = vst [vmem:[#allocation171_spill] sm:$0xff] %v9005_v4  ;;  %14437 = vst [vmem:[#allocation93_spill] sm:$0xff] %v9010_v36  ;;  %v14444_v43 = vld [vmem:[#allocation98_spill] sm:$0xff]  ;;  %v1750_v22 = vmul.f32 1.442695, %v14451_v48  ;;  %v9058_v12 = vpop.eup %3619  ;;  %3639 = vpow2.f32 %v1744_v21  ;;  %v14457_v48 = vld [vmem:[#allocation35_spill] sm:$0xff] }
 0x289   : > { %14440 = vst [vmem:[#allocation108_spill] sm:$0xff] %v9017_v26  ;;  %14441 = vst [vmem:[#allocation107_spill] sm:$0xff] %v9020_v60  ;;  %v9038_v26 = vld [vmem:[%s4743_s4 + $0x600] sm:$0xff]  ;;  %v9043_v18 = vld [vmem:[%s4743_s4 + $0x608] sm:$0xff]  ;;  %v1752_v38 = vmul.f32 1.442695, %v14452_v19  ;;  %v9069_v19 = vpop.eup %3621  ;;  %3641 = vpow2.f32 %v1746_v25 }
 0x28a   : > { %14443 = vst [vmem:[#allocation110_spill] sm:$0xff] %v9025_v51  ;;  %14446 = vst [vmem:[#allocation120_spill] sm:$0xff] %v9032_v27  ;;  %v1754_v55 = vmul.f32 1.442695, %v14453_v9  ;;  %v1756_v31 = vmul.f32 1.442695, %v14455_v34  ;;  %3643 = vpow2.f32 %v1748_v14 }
 0x28b   : > { %14448 = vst [vmem:[#allocation111_spill] sm:$0xff] %v9038_v26  ;;  %14449 = vst [vmem:[#allocation127_spill] sm:$0xff] %v9043_v18  ;;  %v1758_v59 = vmul.f32 1.442695, %v14456_v7  ;;  %v14458_v18 = vsub.f32 %v8780_v24, %v14457_v48  ;;  %v14460_v61 = vld [vmem:[#allocation286_spill] sm:$0xff]  ;;  %v14461_v9 = vld [vmem:[#allocation36_spill] sm:$0xff]  ;;  %v9080_v7 = vpop.eup %3623  ;;  %3645 = vpow2.f32 %v1750_v22 }
 0x28c   : > { %14450 = vst [vmem:[#allocation234_spill] sm:$0xff] %v9047_v30  ;;  %14454 = vst [vmem:[#allocation182_spill] sm:$0xff] %v9058_v12  ;;  %v14462_v26 = vsub.f32 %v14460_v61, %v14461_v9  ;;  %v14463_v21 = vld [vmem:[#allocation289_spill] sm:$0xff]  ;;  %v14466_v34 = vld [vmem:[#allocation42_spill] sm:$0xff]  ;;  %3647 = vpow2.f32 %v1752_v38 }
 0x28d   : > { %v1760_v32 = vmul.f32 1.442695, %v14458_v18  ;;  %14459 = vst [vmem:[#allocation235_spill] sm:$0xff] %v9069_v19  ;;  %v14464_v30 = vld [vmem:[#allocation37_spill] sm:$0xff]  ;;  %v14467_v50 = vsub.f32 %v8795_v3, %v14466_v34  ;;  %14468 = vst [vmem:[#allocation183_spill] sm:$0xff] %v9080_v7  ;;  %v14469_v48 = vld [vmem:[#allocation295_spill] sm:$0xff]  ;;  %3649 = vpow2.f32 %v1754_v55 }
 0x28e   : > { %v1762_v12 = vmul.f32 1.442695, %v14462_v26  ;;  %v14465_v27 = vsub.f32 %v14463_v21, %v14464_v30  ;;  %v14470_v18 = vld [vmem:[#allocation43_spill] sm:$0xff]  ;;  %v14472_v25 = vld [vmem:[#allocation298_spill] sm:$0xff]  ;;  %v14473_v0 = vld [vmem:[#allocation44_spill] sm:$0xff]  ;;  %3651 = vpow2.f32 %v1756_v31 }
 0x28f   : > { %v1766_v58 = vmul.f32 1.442695, %v14467_v50  ;;  %v14471_v24 = vsub.f32 %v14469_v48, %v14470_v18  ;;  %v14474_v11 = vsub.f32 %v14472_v25, %v14473_v0  ;;  %v14475_v26 = vld [vmem:[#allocation301_spill] sm:$0xff]  ;;  %v14476_v61 = vld [vmem:[#allocation50_spill] sm:$0xff]  ;;  %v14479_v50 = vsub.f32 %v8815_v40, %v14364_v16  ;;  %v14480_v14 = vld [vmem:[#allocation15_spill] sm:$0xff] }
 0x290   : > { %v1764_v6 = vmul.f32 1.442695, %v14465_v27  ;;  %v14477_v15 = vsub.f32 %v14475_v26, %v14476_v61  ;;  %v9091_v27 = vpop.eup %3625  ;;  %v14481_v7 = vld [vmem:[#allocation52_spill] sm:$0xff]  ;;  %v14500_v55 = vld [vmem:[#allocation70_spill] sm:$0xff]  ;;  %3653 = vpow2.f32 %v1758_v59  ;;  %v14507_v31 = vld [vmem:[#allocation21_spill] sm:$0xff] }
 0x291   : > { %v1768_v19 = vmul.f32 1.442695, %v14471_v24  ;;  %v1770_v9 = vmul.f32 1.442695, %v14474_v11  ;;  %14478 = vst [vmem:[#allocation116_spill] sm:$0xff] %v9091_v27  ;;  %v14482_v3 = vsub.f32 %v14480_v14, %v14481_v7  ;;  %v14483_v24 = vld [vmem:[#allocation57_spill] sm:$0xff]  ;;  %v9106_v25 = vpop.eup %3627  ;;  %3655 = vpow2.f32 %v1760_v32 }
 0x292   : > { %v1772_v30 = vmul.f32 1.442695, %v14477_v15  ;;  %v1774_v34 = vmul.f32 1.442695, %v14479_v50  ;;  %v14484_v0 = vsub.f32 %v8828_v63, %v14483_v24  ;;  %14485 = vst [vmem:[#allocation185_spill] sm:$0xff] %v9106_v25  ;;  %v14486_v15 = vld [vmem:[#allocation58_spill] sm:$0xff]  ;;  %3657 = vpow2.f32 %v1762_v12 }
 0x293   : > { %v9099_v18 = vmul.f32 1.442695, %v14482_v3  ;;  %v14487_v22 = vsub.f32 %v8833_v57, %v14486_v15  ;;  %v14488_v50 = vld [vmem:[#allocation59_spill] sm:$0xff]  ;;  %v14493_v38 = vld [vmem:[#allocation64_spill] sm:$0xff]  ;;  %v14521_v32 = vld [vmem:[#allocation29_spill] sm:$0xff]  ;;  %3659 = vpow2.f32 %v1764_v6  ;;  %v14529_v12 = vsub.f32 %v8950_v20, %v14414_v23 }
 0x294   : > { %v9104_v11 = vmul.f32 1.442695, %v14484_v0  ;;  %v14489_v16 = vsub.f32 %v8841_v39, %v14488_v50  ;;  %v14490_v3 = vld [vmem:[#allocation63_spill] sm:$0xff]  ;;  %v9123_v0 = vpop.eup %3629  ;;  %v14494_v24 = vsub.f32 %v8854_v33, %v14493_v38  ;;  %3661 = vpow2.f32 %v1766_v58  ;;  %v14536_v6 = vld [vmem:[#allocation104_spill] sm:$0xff]  ;;  %v14547_v58 = vld [vmem:[#allocation86_spill] sm:$0xff] }
 0x295   : > { %v9111_v61 = vmul.f32 1.442695, %v14487_v22  ;;  %v14491_v7 = vsub.f32 %v8846_v13, %v14490_v3  ;;  %14492 = vst [vmem:[#allocation114_spill] sm:$0xff] %v9123_v0  ;;  %v14495_v22 = vld [vmem:[#allocation65_spill] sm:$0xff]  ;;  %v14501_v3 = vsub.f32 %v8872_v45, %v14500_v55  ;;  %v14514_v59 = vld [vmem:[#allocation23_spill] sm:$0xff] }
 0x296   : > { %v9116_v27 = vmul.f32 1.442695, %v14489_v16  ;;  %v9128_v25 = vmul.f32 1.442695, %v14494_v24  ;;  %v14496_v15 = vsub.f32 %v8859_v8, %v14495_v22  ;;  %v14497_v16 = vld [vmem:[#allocation69_spill] sm:$0xff]  ;;  %v14502_v24 = vld [vmem:[#allocation71_spill] sm:$0xff] }
 0x297   : > { %v9121_v14 = vmul.f32 1.442695, %v14491_v7  ;;  %v14498_v50 = vsub.f32 %v8867_v44, %v14497_v16  ;;  %v9140_v7 = vpop.eup %3631  ;;  %v9145_v0 = vmul.f32 1.442695, %v14501_v3  ;;  %v14503_v38 = vsub.f32 %v8880_v49, %v14502_v24  ;;  %v14509_v3 = vld [vmem:[#allocation77_spill] sm:$0xff] }
 0x298   : > { %v9133_v57 = vmul.f32 1.442695, %v14496_v15  ;;  %14499 = vst [vmem:[#allocation186_spill] sm:$0xff] %v9140_v7  ;;  %v14504_v15 = vld [vmem:[#allocation76_spill] sm:$0xff]  ;;  %v14508_v16 = vsub.f32 %v8893_v1, %v14507_v31  ;;  %v14510_v55 = vsub.f32 %v8898_v5, %v14509_v3  ;;  %3663 = vpow2.f32 %v1768_v19 }
 0x299   : > { %v9138_v39 = vmul.f32 1.442695, %v14498_v50  ;;  %v9150_v33 = vmul.f32 1.442695, %v14503_v38  ;;  %v14505_v22 = vsub.f32 %v8885_v10, %v14504_v15  ;;  %v9157_v50 = vpop.eup %3633  ;;  %v14511_v38 = vld [vmem:[#allocation78_spill] sm:$0xff]  ;;  %v14515_v15 = vsub.f32 %v8911_v17, %v14514_v59  ;;  %v9451_v10 = vld [vmem:[%s4754_s26 + $0x118] sm:$0xff] }
 0x29a   : > { %14506 = vst [vmem:[#allocation55_spill] sm:$0xff] %v9157_v50  ;;  %v9162_v7 = vmul.f32 1.442695, %v14508_v16  ;;  %v9167_v45 = vmul.f32 1.442695, %v14510_v55  ;;  %v14512_v24 = vsub.f32 %v8906_v54, %v14511_v38  ;;  %v14516_v16 = vld [vmem:[#allocation25_spill] sm:$0xff]  ;;  %v14522_v38 = vsub.f32 %v8932_v42, %v14521_v32 }
 0x29b   : > { %v9155_v8 = vmul.f32 1.442695, %v14505_v22  ;;  %v9174_v22 = vpop.eup %3635  ;;  %v9179_v50 = vmul.f32 1.442695, %v14515_v15  ;;  %v14517_v31 = vsub.f32 %v8919_v62, %v14516_v16  ;;  %v14518_v55 = vld [vmem:[#allocation26_spill] sm:$0xff]  ;;  %v14523_v15 = vld [vmem:[#allocation41_spill] sm:$0xff]  ;;  %3665 = vpow2.f32 %v1770_v9 }
 0x29c   : > { %v9172_v49 = vmul.f32 1.442695, %v14512_v24  ;;  %14513 = vst [vmem:[#allocation187_spill] sm:$0xff] %v9174_v22  ;;  %v14519_v3 = vsub.f32 %v8924_v35, %v14518_v55  ;;  %v9191_v24 = vpop.eup %3637  ;;  %v9196_v22 = vmul.f32 1.442695, %v14522_v38  ;;  %v14524_v59 = vsub.f32 %v8937_v2, %v14523_v15  ;;  %v14526_v16 = vld [vmem:[#allocation47_spill] sm:$0xff] }
 0x29d   : > { %v9184_v1 = vmul.f32 1.442695, %v14517_v31  ;;  %14520 = vst [vmem:[#allocation61_spill] sm:$0xff] %v9191_v24  ;;  %v14525_v31 = vld [vmem:[#allocation97_spill] sm:$0xff]  ;;  %v9213_v55 = vmul.f32 1.442695, %v14529_v12  ;;  %v14557_v19 = vsub.f32 %v9020_v60, %v14442_v28  ;;  %3667 = vpow2.f32 %v1772_v30 }
 0x29e   : > { %v9189_v5 = vmul.f32 1.442695, %v14519_v3  ;;  %v9201_v17 = vmul.f32 1.442695, %v14524_v59  ;;  %v14527_v62 = vsub.f32 %v14525_v31, %v14526_v16  ;;  %v9208_v3 = vpop.eup %3639  ;;  %v14530_v38 = vld [vmem:[#allocation45_spill] sm:$0xff]  ;;  %v14531_v32 = vld [vmem:[#allocation147_spill] sm:$0xff]  ;;  %v14533_v59 = vsub.f32 %v8965_v46, %v14420_v41 }
 0x29f   : > { %14528 = vst [vmem:[#allocation189_spill] sm:$0xff] %v9208_v3  ;;  %v14532_v24 = vsub.f32 %v14530_v38, %v14531_v32  ;;  %v14537_v15 = vld [vmem:[#allocation148_spill] sm:$0xff]  ;;  %v14543_v32 = vld [vmem:[#allocation49_spill] sm:$0xff]  ;;  %v9278_v9 = vld [vmem:[%s4754_s26 + $0x8] sm:$0xff]  ;;  %3669 = vpow2.f32 %v1774_v34  ;;  %vm1873_vm1 = vcmp.eq.s32.totalorder %v9451_v10, 2 }
 0x2a0   : > { %v9206_v54 = vmul.f32 1.442695, %v14527_v62  ;;  %v9223_v16 = vmul.f32 1.442695, %v14533_v59  ;;  %v9225_v62 = vpop.eup %3641  ;;  %v14538_v3 = vsub.f32 %v14536_v6, %v14537_v15  ;;  %v14540_v12 = vld [vmem:[#allocation84_spill] sm:$0xff]  ;;  %v14544_v41 = vsub.f32 %v8990_v37, %v14543_v32  ;;  %v9292_v28 = vld [vmem:[%s4754_s26 + $0x20] sm:$0xff] }
 0x2a1   : > { %v9218_v42 = vmul.f32 1.442695, %v14532_v24  ;;  %14535 = vst [vmem:[#allocation190_spill] sm:$0xff] %v9225_v62  ;;  %v14541_v20 = vsub.f32 %v8980_v56, %v14540_v12  ;;  %v9242_v59 = vpop.eup %3643  ;;  %v14548_v15 = vsub.f32 %v8995_v47, %v14547_v58  ;;  %v14550_v12 = vld [vmem:[#allocation90_spill] sm:$0xff]  ;;  %v14553_v56 = vld [vmem:[#allocation91_spill] sm:$0xff]  ;;  %vm1839_vm5 = vcmp.eq.s32.totalorder %v9278_v9, 2 }
 0x2a2   : > { %14534 = vst [vmem:[#allocation237_spill] sm:$0xff] %v9223_v16  ;;  %v9230_v23 = vmul.f32 1.442695, %v14538_v3  ;;  %v9240_v46 = vmul.f32 1.442695, %v14544_v41  ;;  %14546 = vst [vmem:[#allocation194_spill] sm:$0xff] %v9242_v59  ;;  %v14551_v62 = vsub.f32 %v9005_v4, %v14550_v12  ;;  %v14554_v32 = vsub.f32 %v9010_v36, %v14553_v56  ;;  %v9259_v37 = vpop.eup %3645 }
 0x2a3   : > { %v9235_v24 = vmul.f32 1.442695, %v14541_v20  ;;  %v9247_v3 = vmul.f32 1.442695, %v14548_v15  ;;  %14556 = vst [vmem:[#allocation199_spill] sm:$0xff] %v9259_v37  ;;  %v14559_v15 = vsub.f32 %v9025_v51, %v14444_v43  ;;  %v9272_v12 = vld [vmem:[%s4754_s26] sm:$0xff]  ;;  %3671 = vpow2.f32 %v9099_v18 }
 0x2a4   : > { %14539 = vst [vmem:[#allocation238_spill] sm:$0xff] %v9230_v23  ;;  %14545 = vst [vmem:[#allocation193_spill] sm:$0xff] %v9240_v46  ;;  %v9252_v20 = vmul.f32 1.442695, %v14551_v62  ;;  %v9257_v41 = vmul.f32 1.442695, %v14554_v32  ;;  %v9275_v32 = vpop.eup %3647  ;;  %3673 = vpow2.f32 %v9104_v11 }
 0x2a5   : > { %14542 = vst [vmem:[#allocation191_spill] sm:$0xff] %v9235_v24  ;;  %14549 = vst [vmem:[#allocation195_spill] sm:$0xff] %v9247_v3  ;;  %v9264_v58 = vmul.f32 1.442695, %v14557_v19  ;;  %v9269_v62 = vmul.f32 1.442695, %v14559_v15  ;;  %v9289_v43 = vpop.eup %3649  ;;  %3675 = vpow2.f32 %v9111_v61 }
 0x2a6   : > { %14552 = vst [vmem:[#allocation197_spill] sm:$0xff] %v9252_v20  ;;  %14555 = vst [vmem:[#allocation198_spill] sm:$0xff] %v9257_v41  ;;  %vm1838_vm6 = vcmp.eq.s32.totalorder %v9272_v12, 2  ;;  %v9282_v19 = vld [vmem:[%s4754_s26 + $0x10] sm:$0xff]  ;;  %v9286_v15 = vld [vmem:[%s4754_s26 + $0x18] sm:$0xff]  ;;  %vm1842_vm4 = vcmp.eq.s32.totalorder %v9292_v28, 2  ;;  %3677 = vpow2.f32 %v9116_v27 }
 0x2a7   : > { %14558 = vst [vmem:[#allocation201_spill] sm:$0xff] %v9264_v58  ;;  %14560 = vst [vmem:[#allocation202_spill] sm:$0xff] %v9269_v62  ;;  %vm1840_vm7 = vcmp.eq.s32.totalorder %v9282_v19, 2  ;;  %vm1841_vm3 = vcmp.eq.s32.totalorder %v9286_v15, 2  ;;  %v9296_v30 = vld [vmem:[%s4754_s26 + $0x28] sm:$0xff]  ;;  %v9300_v56 = vld [vmem:[%s4754_s26 + $0x30] sm:$0xff]  ;;  %3679 = vpow2.f32 %v9121_v14 }
 0x2a8   : > { %14561 = vst [vmem:[#allocation203_spill] sm:$0xff] %v9275_v32  ;;  %14562 = vst [vmem:[#allocation205_spill] sm:$0xff] %v9289_v43  ;;  %vm1843_vm13 = vcmp.eq.s32.totalorder %v9296_v30, 2  ;;  %vm1844_vm8 = vcmp.eq.s32.totalorder %v9300_v56, 2  ;;  %v9303_v32 = vpop.eup %3651  ;;  %v9307_v34 = vld [vmem:[%s4754_s26 + $0x38] sm:$0xff]  ;;  %v9311_v43 = vld [vmem:[%s4754_s26 + $0x40] sm:$0xff]  ;;  %3681 = vpow2.f32 %v9128_v25 }
 0x2a9   : > { %14563 = vst [vmem:[#allocation206_spill] sm:$0xff] %v9303_v32  ;;  %vm1845_vm9 = vcmp.eq.s32.totalorder %v9307_v34, 2  ;;  %vm1846_vm12 = vcmp.eq.s32.totalorder %v9311_v43, 2  ;;  %v9315_v37 = vld [vmem:[%s4754_s26 + $0x48] sm:$0xff]  ;;  %v9318_v59 = vpop.eup %3653  ;;  %v9322_v18 = vld [vmem:[%s4754_s26 + $0x50] sm:$0xff]  ;;  %v9326_v32 = vld [vmem:[%s4754_s26 + $0x58] sm:$0xff]  ;;  %3683 = vpow2.f32 %v9133_v57 }
 0x2aa   : > { %vm1847_vm2 = vcmp.eq.s32.totalorder %v9315_v37, 2  ;;  %14564 = vst [vmem:[#allocation207_spill] sm:$0xff] %v9318_v59  ;;  %vm1848_vm14 = vcmp.eq.s32.totalorder %v9322_v18, 2  ;;  %vm1849_vm15 = vcmp.eq.s32.totalorder %v9326_v32, 2  ;;  %v9330_v62 = vld [vmem:[%s4754_s26 + $0x60] sm:$0xff]  ;;  %v9333_v51 = vpop.eup %3655  ;;  %v9337_v11 = vld [vmem:[%s4754_s26 + $0x68] sm:$0xff]  ;;  %3685 = vpow2.f32 %v9138_v39 }
 0x2ab   : > { %14565 = vst [vmem:[#allocation209_spill] sm:$0xff] %v9333_v51  ;;  %v9341_v59 = vld [vmem:[%s4754_s26 + $0x70] sm:$0xff]  ;;  %v9345_v60 = vld [vmem:[%s4754_s26 + $0x78] sm:$0xff]  ;;  %v9348_v36 = vpop.eup %3657  ;;  %v9352_v61 = vld [vmem:[%s4754_s26 + $0x80] sm:$0xff]  ;;  %3687 = vpow2.f32 %v9145_v0 }
 0x2ac   : > { %14566 = vst [vmem:[#allocation210_spill] sm:$0xff] %v9348_v36  ;;  %v9356_v51 = vld [vmem:[%s4754_s26 + $0x88] sm:$0xff]  ;;  %v9360_v58 = vld [vmem:[%s4754_s26 + $0x90] sm:$0xff]  ;;  %v9363_v4 = vpop.eup %3659  ;;  %v9367_v27 = vld [vmem:[%s4754_s26 + $0x98] sm:$0xff]  ;;  %3689 = vpow2.f32 %v9150_v33 }
 0x2ad   : > { %14567 = vst [vmem:[#allocation211_spill] sm:$0xff] %v9363_v4  ;;  %v9371_v36 = vld [vmem:[%s4754_s26 + $0xa0] sm:$0xff]  ;;  %v9375_v47 = vld [vmem:[%s4754_s26 + $0xa8] sm:$0xff]  ;;  %v9378_v41 = vpop.eup %3661  ;;  %v9382_v14 = vld [vmem:[%s4754_s26 + $0xb0] sm:$0xff]  ;;  %3691 = vpow2.f32 %v9155_v8 }
 0x2ae   : > { %14568 = vst [vmem:[#allocation102_spill] sm:$0xff] %v9378_v41  ;;  %v9386_v4 = vld [vmem:[%s4754_s26 + $0xb8] sm:$0xff]  ;;  %v9390_v6 = vld [vmem:[%s4754_s26 + $0xc0] sm:$0xff]  ;;  %v9393_v20 = vpop.eup %3663  ;;  %v9397_v25 = vld [vmem:[%s4754_s26 + $0xc8] sm:$0xff]  ;;  %3693 = vpow2.f32 %v9162_v7 }
 0x2af   : > { %14569 = vst [vmem:[#allocation213_spill] sm:$0xff] %v9393_v20  ;;  %v9401_v41 = vld [vmem:[%s4754_s26 + $0xd0] sm:$0xff]  ;;  %v9405_v38 = vld [vmem:[%s4754_s26 + $0xd8] sm:$0xff]  ;;  %v9408_v31 = vpop.eup %3665  ;;  %v9412_v57 = vld [vmem:[%s4754_s26 + $0xe0] sm:$0xff]  ;;  %3695 = vpow2.f32 %v9167_v45 }
 0x2b0   : > { %14570 = vst [vmem:[#allocation117_spill] sm:$0xff] %v9408_v31  ;;  %v9416_v20 = vld [vmem:[%s4754_s26 + $0xe8] sm:$0xff]  ;;  %v9420_v3 = vld [vmem:[%s4754_s26 + $0xf0] sm:$0xff]  ;;  %v9423_v2 = vpop.eup %3667  ;;  %v9427_v39 = vld [vmem:[%s4754_s26 + $0xf8] sm:$0xff]  ;;  %3697 = vpow2.f32 %v9172_v49 }
 0x2b1   : > { %vm1868_vm0 = vcmp.eq.s32.totalorder %v9420_v3, 2  ;;  %14571 = vst [vmem:[#allocation214_spill] sm:$0xff] %v9423_v2  ;;  %v9431_v31 = vld [vmem:[%s4754_s26 + $0x100] sm:$0xff]  ;;  %v9435_v35 = vld [vmem:[%s4754_s26 + $0x108] sm:$0xff]  ;;  %v9443_v0 = vpop.eup %3669  ;;  %v9447_v2 = vld [vmem:[%s4754_s26 + $0x110] sm:$0xff]  ;;  %3699 = vpow2.f32 %v9179_v50 }
 0x2b2   : > { %v14572_v46 = vld [vmem:[#allocation221_spill] sm:$0xff]  ;;  %14574 = vst [vmem:[#allocation157_spill] sm:$0xff] %v9443_v0  ;;  %vm1872_vm10 = vcmp.eq.s32.totalorder %v9447_v2, 2  ;;  %v14579_v0 = vld [vmem:[#allocation230_spill] sm:$0xff]  ;;  %v9473_v16 = vpop.eup %3671  ;;  %v9515_v30 = vld [vmem:[%s4754_s26 + $0x150] sm:$0xff]  ;;  %3701 = vpow2.f32 %v9184_v1 }
 0x2b3   : > { %v9441_v24 = vsel %vm1838_vm6, %v14572_v46, 0.0  ;;  %v9455_v23 = vld [vmem:[%s4754_s26 + $0x120] sm:$0xff]  ;;  %v14575_v46 = vld [vmem:[#allocation224_spill] sm:$0xff]  ;;  %v9471_v44 = vsel %vm1841_vm3, %v14579_v0, 0.0  ;;  %v9477_v9 = vld [vmem:[%s4754_s26 + $0x128] sm:$0xff]  ;;  %3703 = vpow2.f32 %v9189_v5 }
 0x2b4   : > { %14573 = vst [vmem:[#allocation62_spill] sm:$0xff] %v9441_v24  ;;  %vm1874_vm11 = vcmp.eq.s32.totalorder %v9455_v23, 2  ;;  %v9461_v12 = vsel %vm1839_vm5, %v14575_v46, 0.0  ;;  %v14577_v24 = vld [vmem:[#allocation227_spill] sm:$0xff]  ;;  %14580 = vst [vmem:[#allocation151_spill] sm:$0xff] %v9471_v44  ;;  %vm1875_vm6 = vcmp.eq.s32.totalorder %v9477_v9, 2 }
 0x2b5   : > { %14576 = vst [vmem:[#allocation150_spill] sm:$0xff] %v9461_v12  ;;  %v9466_v33 = vsel %vm1840_vm7, %v14577_v24, 0.0  ;;  %v9481_v46 = vld [vmem:[%s4754_s26 + $0x130] sm:$0xff]  ;;  %v9485_v24 = vld [vmem:[%s4754_s26 + $0x138] sm:$0xff]  ;;  %v14581_v19 = vld [vmem:[#allocation233_spill] sm:$0xff]  ;;  %v9503_v12 = vpop.eup %3673  ;;  %3705 = vpow2.f32 %v9196_v22  ;;  %v9776_v2 = vsel %vm1875_vm6, %v8846_v13, 0.0 }
 0x2b6   : > { %14578 = vst [vmem:[#allocation216_spill] sm:$0xff] %v9466_v33  ;;  %vm1876_vm5 = vcmp.eq.s32.totalorder %v9481_v46, 2  ;;  %vm1877_vm7 = vcmp.eq.s32.totalorder %v9485_v24, 2  ;;  %v9491_v15 = vsel %vm1842_vm4, %v14581_v19, 0.0  ;;  %v14583_v0 = vld [vmem:[#allocation236_spill] sm:$0xff]  ;;  %v14585_v44 = vld [vmem:[#allocation239_spill] sm:$0xff] }
 0x2b7   : > { %14582 = vst [vmem:[#allocation217_spill] sm:$0xff] %v9491_v15  ;;  %v9496_v8 = vsel %vm1843_vm13, %v14583_v0, 0.0  ;;  %v9501_v33 = vsel %vm1844_vm8, %v14585_v44, 0.0  ;;  %v9507_v28 = vld [vmem:[%s4754_s26 + $0x140] sm:$0xff]  ;;  %v9511_v19 = vld [vmem:[%s4754_s26 + $0x148] sm:$0xff]  ;;  %vm1880_vm13 = vcmp.eq.s32.totalorder %v9515_v30, 2  ;;  %v9533_v15 = vpop.eup %3675  ;;  %3707 = vpow2.f32 %v9201_v17 }
 0x2b8   : > { %14584 = vst [vmem:[#allocation240_spill] sm:$0xff] %v9496_v8  ;;  %14586 = vst [vmem:[#allocation158_spill] sm:$0xff] %v9501_v33  ;;  %vm1878_vm3 = vcmp.eq.s32.totalorder %v9507_v28, 2  ;;  %vm1879_vm4 = vcmp.eq.s32.totalorder %v9511_v19, 2  ;;  %v14587_v56 = vld [vmem:[#allocation242_spill] sm:$0xff]  ;;  %v14589_v0 = vld [vmem:[#allocation244_spill] sm:$0xff] }
 0x2b9   : > { %v9521_v44 = vsel %vm1845_vm9, %v14587_v56, 0.0  ;;  %v9526_v7 = vsel %vm1846_vm12, %v14589_v0, 0.0  ;;  %v14591_v33 = vld [vmem:[#allocation246_spill] sm:$0xff]  ;;  %v9537_v34 = vld [vmem:[%s4754_s26 + $0x158] sm:$0xff]  ;;  %v9541_v56 = vld [vmem:[%s4754_s26 + $0x160] sm:$0xff]  ;;  %vm14603_vm9 = vcmp.eq.s32.totalorder %v9341_v59, 2 }
 0x2ba   : > { %14588 = vst [vmem:[#allocation241_spill] sm:$0xff] %v9521_v44  ;;  %14590 = vst [vmem:[#allocation219_spill] sm:$0xff] %v9526_v7  ;;  %v9531_v8 = vsel %vm1847_vm2, %v14591_v33, 0.0  ;;  %v9545_v43 = vld [vmem:[%s4754_s26 + $0x168] sm:$0xff]  ;;  %v14593_v37 = vld [vmem:[#allocation249_spill] sm:$0xff]  ;;  %vm14598_vm2 = vcmp.eq.s32.totalorder %v9330_v62, 2  ;;  %v9563_v44 = vpop.eup %3677  ;;  %3709 = vpow2.f32 %v9206_v54 }
 0x2bb   : > { %14592 = vst [vmem:[#allocation121_spill] sm:$0xff] %v9531_v8  ;;  %v9551_v33 = vsel %vm1848_vm14, %v14593_v37, 0.0  ;;  %v14595_v0 = vld [vmem:[#allocation252_spill] sm:$0xff]  ;;  %v14597_v8 = vld [vmem:[#allocation255_spill] sm:$0xff]  ;;  %v9575_v32 = vld [vmem:[%s4754_s26 + $0x180] sm:$0xff]  ;;  %vm14606_vm14 = vcmp.eq.s32.totalorder %v9345_v60, 2 }
 0x2bc   : > { %14594 = vst [vmem:[#allocation220_spill] sm:$0xff] %v9551_v33  ;;  %v9556_v45 = vsel %vm1849_vm15, %v14595_v0, 0.0  ;;  %v9561_v7 = vsel %vm14598_vm2, %v14597_v8, 0.0  ;;  %v9567_v18 = vld [vmem:[%s4754_s26 + $0x170] sm:$0xff]  ;;  %v9571_v37 = vld [vmem:[%s4754_s26 + $0x178] sm:$0xff]  ;;  %v14600_v62 = vld [vmem:[#allocation258_spill] sm:$0xff]  ;;  %v9593_v33 = vpop.eup %3679  ;;  %3711 = vpow2.f32 %v9213_v55 }
 0x2bd   : > { %14596 = vst [vmem:[#allocation152_spill] sm:$0xff] %v9556_v45  ;;  %14599 = vst [vmem:[#allocation159_spill] sm:$0xff] %v9561_v7  ;;  %vm14601_vm2 = vcmp.eq.s32.totalorder %v9337_v11, 2  ;;  %v14602_v0 = vld [vmem:[#allocation262_spill] sm:$0xff]  ;;  %v14605_v7 = vld [vmem:[#allocation265_spill] sm:$0xff]  ;;  %vm14611_vm15 = vcmp.eq.s32.totalorder %v9356_v51, 2 }
 0x2be   : > { %v9581_v8 = vsel %vm14601_vm2, %v14600_v62, 0.0  ;;  %v9586_v49 = vsel %vm14603_vm9, %v14602_v0, 0.0  ;;  %v9591_v45 = vsel %vm14606_vm14, %v14605_v7, 0.0  ;;  %v9597_v11 = vld [vmem:[%s4754_s26 + $0x188] sm:$0xff]  ;;  %v9601_v62 = vld [vmem:[%s4754_s26 + $0x190] sm:$0xff]  ;;  %v9605_v59 = vld [vmem:[%s4754_s26 + $0x198] sm:$0xff] }
 0x2bf   : > { %14604 = vst [vmem:[#allocation154_spill] sm:$0xff] %v9586_v49  ;;  %14607 = vst [vmem:[#allocation222_spill] sm:$0xff] %v9591_v45  ;;  %v14608_v60 = vld [vmem:[#allocation267_spill] sm:$0xff]  ;;  %vm14609_vm14 = vcmp.eq.s32.totalorder %v9352_v61, 2  ;;  %v14610_v0 = vld [vmem:[#allocation270_spill] sm:$0xff]  ;;  %vm14613_vm2 = vcmp.eq.s32.totalorder %v9360_v58, 2  ;;  %v9623_v49 = vpop.eup %3681  ;;  %3713 = vpow2.f32 %v9218_v42 }
 0x2c0   : > { %v9611_v7 = vsel %vm14609_vm14, %v14608_v60, 0.0  ;;  %v9616_v50 = vsel %vm14611_vm15, %v14610_v0, 0.0  ;;  %v9621_v45 = vsel %vm14613_vm2, %v8745_v52, 0.0  ;;  %v9627_v61 = vld [vmem:[%s4754_s26 + $0x1a0] sm:$0xff]  ;;  %v9631_v60 = vld [vmem:[%s4754_s26 + $0x1a8] sm:$0xff]  ;;  %v9635_v51 = vld [vmem:[%s4754_s26 + $0x1b0] sm:$0xff] }
 0x2c1   : > { %14612 = vst [vmem:[#allocation155_spill] sm:$0xff] %v9616_v50  ;;  %14614 = vst [vmem:[#allocation223_spill] sm:$0xff] %v9621_v45  ;;  %vm14615_vm2 = vcmp.eq.s32.totalorder %v9367_v27, 2  ;;  %vm14617_vm9 = vcmp.eq.s32.totalorder %v9371_v36, 2  ;;  %v14619_v58 = vld [vmem:[#allocation273_spill] sm:$0xff]  ;;  %vm14620_vm14 = vcmp.eq.s32.totalorder %v9375_v47, 2  ;;  %v9653_v45 = vpop.eup %3683 }
 0x2c2   : > { %v9641_v52 = vsel %vm14615_vm2, %v8750_v53, 0.0  ;;  %v9646_v1 = vsel %vm14617_vm9, %v8755_v29, 0.0  ;;  %v9651_v0 = vsel %vm14620_vm14, %v14619_v58, 0.0  ;;  %v9657_v27 = vld [vmem:[%s4754_s26 + $0x1b8] sm:$0xff]  ;;  %v9661_v53 = vld [vmem:[%s4754_s26 + $0x1c0] sm:$0xff]  ;;  %v9665_v29 = vld [vmem:[%s4754_s26 + $0x1c8] sm:$0xff] }
 0x2c3   : > { %14616 = vst [vmem:[#allocation243_spill] sm:$0xff] %v9641_v52  ;;  %14618 = vst [vmem:[#allocation164_spill] sm:$0xff] %v9646_v1  ;;  %v14622_v47 = vld [vmem:[#allocation275_spill] sm:$0xff]  ;;  %vm14623_vm14 = vcmp.eq.s32.totalorder %v9382_v14, 2  ;;  %v14625_v58 = vld [vmem:[#allocation277_spill] sm:$0xff]  ;;  %vm14626_vm15 = vcmp.eq.s32.totalorder %v9386_v4, 2  ;;  %v9683_v52 = vpop.eup %3685 }
 0x2c4   : > { %14621 = vst [vmem:[#allocation156_spill] sm:$0xff] %v9651_v0  ;;  %v9671_v36 = vsel %vm14623_vm14, %v14622_v47, 0.0  ;;  %v9676_v5 = vsel %vm14626_vm15, %v14625_v58, 0.0  ;;  %v14628_v0 = vld [vmem:[#allocation280_spill] sm:$0xff]  ;;  %vm14629_vm2 = vcmp.eq.s32.totalorder %v9390_v6, 2  ;;  %v9687_v14 = vld [vmem:[%s4754_s26 + $0x1d0] sm:$0xff] }
 0x2c5   : > { %14624 = vst [vmem:[#allocation225_spill] sm:$0xff] %v9671_v36  ;;  %14627 = vst [vmem:[#allocation161_spill] sm:$0xff] %v9676_v5  ;;  %v9681_v1 = vsel %vm14629_vm2, %v14628_v0, 0.0  ;;  %v9691_v47 = vld [vmem:[%s4754_s26 + $0x1d8] sm:$0xff]  ;;  %v9695_v4 = vld [vmem:[%s4754_s26 + $0x1e0] sm:$0xff]  ;;  %vm14632_vm2 = vcmp.eq.s32.totalorder %v9397_v25, 2  ;;  %v9713_v5 = vpop.eup %3687 }
 0x2c6   : > { %14630 = vst [vmem:[#allocation226_spill] sm:$0xff] %v9681_v1  ;;  %v14631_v6 = vld [vmem:[#allocation283_spill] sm:$0xff]  ;;  %v14633_v58 = vld [vmem:[#allocation286_spill] sm:$0xff]  ;;  %vm14634_vm9 = vcmp.eq.s32.totalorder %v9401_v41, 2  ;;  %vm14635_vm14 = vcmp.eq.s32.totalorder %v9405_v38, 2  ;;  %v4246_v25 = vld [vmem:[%s4754_s26 + $0x1f8] sm:$0xff] }
 0x2c7   : > { %v9701_v0 = vsel %vm14632_vm2, %v14631_v6, 0.0  ;;  %v9706_v22 = vsel %vm14634_vm9, %v14633_v58, 0.0  ;;  %v9711_v1 = vsel %vm14635_vm14, %v14463_v21, 0.0  ;;  %v4244_v36 = vld [vmem:[%s4754_s26 + $0x1e8] sm:$0xff]  ;;  %v4245_v50 = vld [vmem:[%s4754_s26 + $0x1f0] sm:$0xff]  ;;  %vm1901_vm2 = vcmp.eq.s32.totalorder %v4246_v25, 2  ;;  %v9734_v58 = vpop.eup %3689 }
 0x2c8   : > { %vm1899_vm12 = vcmp.eq.s32.totalorder %v4244_v36, 2  ;;  %vm1900_vm15 = vcmp.eq.s32.totalorder %v4245_v50, 2  ;;  %v14636_v6 = vld [vmem:[#allocation292_spill] sm:$0xff]  ;;  %vm14637_vm8 = vcmp.eq.s32.totalorder %v9412_v57, 2  ;;  %vm14638_vm9 = vcmp.eq.s32.totalorder %v9416_v20, 2  ;;  %v14639_v38 = vld [vmem:[#allocation298_spill] sm:$0xff] }
 0x2c9   : > { %v9722_v41 = vsel %vm14637_vm8, %v14636_v6, 0.0  ;;  %v9727_v21 = vsel %vm14638_vm9, %v14469_v48, 0.0  ;;  %v9732_v17 = vsel %vm1868_vm0, %v14639_v38, 0.0  ;;  %vm14640_vm14 = vcmp.eq.s32.totalorder %v9427_v39, 2  ;;  %v14642_v48 = vld [vmem:[#allocation15_spill] sm:$0xff]  ;;  %v9752_v6 = vpop.eup %3691  ;;  %v14649_v42 = vld [vmem:[#allocation82_spill] sm:$0xff] }
 0x2ca   : > { %v9740_v57 = vsel %vm14640_vm14, %v14475_v26, 0.0  ;;  %vm14641_vm8 = vcmp.eq.s32.totalorder %v9431_v31, 2  ;;  %vm14643_vm9 = vcmp.eq.s32.totalorder %v9435_v35, 2  ;;  %v9758_v54 = vsel %vm1872_vm10, %v8828_v63, 0.0  ;;  %v14644_v26 = vld [vmem:[#allocation17_spill] sm:$0xff]  ;;  %v9770_v39 = vpop.eup %3693  ;;  %v14647_v55 = vld [vmem:[#allocation19_spill] sm:$0xff] }
 0x2cb   : > { %v9745_v20 = vsel %vm14641_vm8, %v8815_v40, 0.0  ;;  %v9750_v3 = vsel %vm14643_vm9, %v14642_v48, 0.0  ;;  %v9763_v31 = vsel %vm1873_vm1, %v14644_v26, 0.0  ;;  %v14645_v40 = vld [vmem:[#allocation16_spill] sm:$0xff]  ;;  %v14646_v63 = vld [vmem:[#allocation81_spill] sm:$0xff]  ;;  %v9786_v23 = vsel %vm1877_vm7, %v14647_v55, 0.0  ;;  %v9788_v38 = vpop.eup %3695 }
 0x2cc   : > { %v9768_v35 = vsel %vm1874_vm11, %v14645_v40, 0.0  ;;  %v9781_v10 = vsel %vm1876_vm5, %v14646_v63, 0.0  ;;  %v14648_v48 = vld [vmem:[#allocation237_spill] sm:$0xff]  ;;  %v9794_v9 = vsel %vm1878_vm3, %v14649_v42, 0.0  ;;  %v14650_v13 = vld [vmem:[#allocation20_spill] sm:$0xff]  ;;  %v9806_v40 = vpop.eup %3697  ;;  %v14653_v63 = vld [vmem:[#allocation238_spill] sm:$0xff] }
 0x2cd   : > { %3715 = vpow2.f32 %v14648_v48  ;;  %v9799_v46 = vsel %vm1879_vm4, %v14650_v13, 0.0  ;;  %v14651_v26 = vld [vmem:[#allocation88_spill] sm:$0xff]  ;;  %vm14655_vm10 = vcmp.eq.s32.totalorder %v9537_v34, 2  ;;  %v14657_v48 = vld [vmem:[#allocation89_spill] sm:$0xff]  ;;  %vm14658_vm11 = vcmp.eq.s32.totalorder %v9541_v56, 2  ;;  %v9824_v13 = vpop.eup %3699  ;;  %v14725_v36 = vld [vmem:[#allocation46_spill] sm:$0xff] }
 0x2ce   : > { %v9804_v24 = vsel %vm1880_vm13, %v14651_v26, 0.0  ;;  %3717 = vpow2.f32 %v14653_v63  ;;  %v14654_v55 = vld [vmem:[#allocation24_spill] sm:$0xff]  ;;  %v9817_v19 = vsel %vm14658_vm11, %v14657_v48, 0.0  ;;  %vm14661_vm0 = vcmp.eq.s32.totalorder %v9545_v43, 2  ;;  %v14663_v26 = vld [vmem:[#allocation191_spill] sm:$0xff]  ;;  %v14664_v63 = vld [vmem:[#allocation22_spill] sm:$0xff] }
 0x2cf   : > { %14652 = vst [vmem:[#allocation162_spill] sm:$0xff] %v9804_v24  ;;  %v9812_v28 = vsel %vm14655_vm10, %v14654_v55, 0.0  ;;  %14659 = vst [vmem:[#allocation122_spill] sm:$0xff] %v9817_v19  ;;  %v14660_v42 = vld [vmem:[#allocation28_spill] sm:$0xff]  ;;  %3719 = vpow2.f32 %v14663_v26  ;;  %vm14665_vm1 = vcmp.eq.s32.totalorder %v9567_v18, 2  ;;  %v14667_v55 = vld [vmem:[#allocation33_spill] sm:$0xff] }
 0x2d0   : > { %14656 = vst [vmem:[#allocation165_spill] sm:$0xff] %v9812_v28  ;;  %v9822_v30 = vsel %vm14661_vm0, %v14660_v42, 0.0  ;;  %v9830_v34 = vsel %vm14665_vm1, %v14664_v63, 0.0  ;;  %vm14668_vm6 = vcmp.eq.s32.totalorder %v9571_v37, 2  ;;  %v14670_v48 = vld [vmem:[#allocation95_spill] sm:$0xff]  ;;  %vm14671_vm5 = vcmp.eq.s32.totalorder %v9575_v32, 2  ;;  %v9842_v42 = vpop.eup %3701 }
 0x2d1   : > { %14662 = vst [vmem:[#allocation228_spill] sm:$0xff] %v9822_v30  ;;  %14666 = vst [vmem:[#allocation245_spill] sm:$0xff] %v9830_v34  ;;  %v9835_v56 = vsel %vm14668_vm6, %v14667_v55, 0.0  ;;  %v9840_v43 = vsel %vm14671_vm5, %v14670_v48, 0.0  ;;  %v14673_v30 = vld [vmem:[#allocation193_spill] sm:$0xff]  ;;  %v14674_v26 = vld [vmem:[#allocation34_spill] sm:$0xff]  ;;  %v9860_v48 = vpop.eup %3703 }
 0x2d2   : > { %14669 = vst [vmem:[#allocation229_spill] sm:$0xff] %v9835_v56  ;;  %14672 = vst [vmem:[#allocation123_spill] sm:$0xff] %v9840_v43  ;;  %3721 = vpow2.f32 %v14673_v30  ;;  %vm14675_vm7 = vcmp.eq.s32.totalorder %v9597_v11, 2  ;;  %v14677_v63 = vld [vmem:[#allocation96_spill] sm:$0xff]  ;;  %vm14678_vm3 = vcmp.eq.s32.totalorder %v9601_v62, 2  ;;  %v14680_v55 = vld [vmem:[#allocation38_spill] sm:$0xff] }
 0x2d3   : > { %v9848_v18 = vsel %vm14675_vm7, %v14674_v26, 0.0  ;;  %v9853_v37 = vsel %vm14678_vm3, %v14677_v63, 0.0  ;;  %vm14681_vm4 = vcmp.eq.s32.totalorder %v9605_v59, 2  ;;  %v14683_v43 = vld [vmem:[#allocation195_spill] sm:$0xff]  ;;  %v14684_v30 = vld [vmem:[#allocation97_spill] sm:$0xff]  ;;  %vm14685_vm13 = vcmp.eq.s32.totalorder %v9627_v61, 2 }
 0x2d4   : > { %14676 = vst [vmem:[#allocation166_spill] sm:$0xff] %v9848_v18  ;;  %14679 = vst [vmem:[#allocation163_spill] sm:$0xff] %v9853_v37  ;;  %v9858_v32 = vsel %vm14681_vm4, %v14680_v55, 0.0  ;;  %3723 = vpow2.f32 %v14683_v43  ;;  %v9866_v11 = vsel %vm14685_vm13, %v14684_v30, 0.0  ;;  %v14687_v26 = vld [vmem:[#allocation39_spill] sm:$0xff]  ;;  %vm14688_vm14 = vcmp.eq.s32.totalorder %v9631_v60, 2  ;;  %v9878_v55 = vpop.eup %3705 }
 0x2d5   : > { %14682 = vst [vmem:[#allocation231_spill] sm:$0xff] %v9858_v32  ;;  %14686 = vst [vmem:[#allocation168_spill] sm:$0xff] %v9866_v11  ;;  %v9871_v62 = vsel %vm14688_vm14, %v14687_v26, 0.0  ;;  %v14690_v63 = vld [vmem:[#allocation45_spill] sm:$0xff]  ;;  %vm14691_vm8 = vcmp.eq.s32.totalorder %v9635_v51, 2  ;;  %v14694_v43 = vld [vmem:[#allocation103_spill] sm:$0xff] }
 0x2d6   : > { %14689 = vst [vmem:[#allocation232_spill] sm:$0xff] %v9871_v62  ;;  %v9876_v59 = vsel %vm14691_vm8, %v14690_v63, 0.0  ;;  %v14693_v32 = vld [vmem:[#allocation197_spill] sm:$0xff]  ;;  %vm14695_vm9 = vcmp.eq.s32.totalorder %v9657_v27, 2  ;;  %v14697_v30 = vld [vmem:[#allocation104_spill] sm:$0xff]  ;;  %vm14698_vm10 = vcmp.eq.s32.totalorder %v9661_v53, 2  ;;  %v9896_v63 = vpop.eup %3707 }
 0x2d7   : > { %14692 = vst [vmem:[#allocation169_spill] sm:$0xff] %v9876_v59  ;;  %3725 = vpow2.f32 %v14693_v32  ;;  %v9884_v61 = vsel %vm14695_vm9, %v14694_v43, 0.0  ;;  %v9889_v60 = vsel %vm14698_vm10, %v14697_v30, 0.0  ;;  %v14700_v26 = vld [vmem:[#allocation53_spill] sm:$0xff]  ;;  %vm14701_vm11 = vcmp.eq.s32.totalorder %v9665_v29, 2  ;;  %v14703_v59 = vld [vmem:[#allocation198_spill] sm:$0xff] }
 0x2d8   : > { %14696 = vst [vmem:[#allocation289_spill] sm:$0xff] %v9884_v61  ;;  %14699 = vst [vmem:[#allocation295_spill] sm:$0xff] %v9889_v60  ;;  %v9894_v51 = vsel %vm14701_vm11, %v14700_v26, 0.0  ;;  %3727 = vpow2.f32 %v14703_v59  ;;  %v14704_v32 = vld [vmem:[#allocation66_spill] sm:$0xff]  ;;  %vm14705_vm0 = vcmp.eq.s32.totalorder %v9687_v14, 2  ;;  %v14707_v43 = vld [vmem:[#allocation83_spill] sm:$0xff]  ;;  %v9914_v26 = vpop.eup %3709 }
 0x2d9   : > { %14702 = vst [vmem:[#allocation301_spill] sm:$0xff] %v9894_v51  ;;  %v9902_v27 = vsel %vm14705_vm0, %v14704_v32, 0.0  ;;  %vm14708_vm1 = vcmp.eq.s32.totalorder %v9691_v47, 2  ;;  %v14710_v30 = vld [vmem:[#allocation171_spill] sm:$0xff]  ;;  %vm14711_vm6 = vcmp.eq.s32.totalorder %v9695_v4, 2  ;;  %v14713_v51 = vld [vmem:[#allocation201_spill] sm:$0xff] }
 0x2da   : > { %14706 = vst [vmem:[#allocation221_spill] sm:$0xff] %v9902_v27  ;;  %v9907_v53 = vsel %vm14708_vm1, %v14707_v43, 0.0  ;;  %v9912_v29 = vsel %vm14711_vm6, %v14710_v30, 0.0  ;;  %3729 = vpow2.f32 %v14713_v51  ;;  %v14714_v59 = vld [vmem:[#allocation93_spill] sm:$0xff]  ;;  %v14716_v14 = vld [vmem:[#allocation107_spill] sm:$0xff]  ;;  %v14718_v47 = vld [vmem:[#allocation110_spill] sm:$0xff] }
 0x2db   : > { %14709 = vst [vmem:[#allocation224_spill] sm:$0xff] %v9907_v53  ;;  %14712 = vst [vmem:[#allocation227_spill] sm:$0xff] %v9912_v29  ;;  %v9919_v60 = vsel %vm1899_vm12, %v14714_v59, 0.0  ;;  %v9923_v32 = vsel %vm1900_vm15, %v14716_v14, 0.0  ;;  %v9927_v43 = vsel %vm1901_vm2, %v14718_v47, 0.0  ;;  %v9929_v53 = vpop.eup %3711  ;;  %v14720_v4 = vld [vmem:[#allocation202_spill] sm:$0xff] }
 0x2dc   : > { %14715 = vst [vmem:[#allocation230_spill] sm:$0xff] %v9919_v60  ;;  %14717 = vst [vmem:[#allocation233_spill] sm:$0xff] %v9923_v32  ;;  %3731 = vpow2.f32 %v14720_v4  ;;  %v14721_v30 = vld [vmem:[#allocation247_spill] sm:$0xff]  ;;  %v14722_v29 = vld [vmem:[#allocation40_spill] sm:$0xff]  ;;  %v3714_v32 = vpop.eup %3713 }
 0x2dd   : > { %14719 = vst [vmem:[#allocation236_spill] sm:$0xff] %v9927_v43  ;;  %v9934_v27 = vadd.f32 %v14722_v29, %v14721_v30  ;;  %v14724_v51 = vld [vmem:[#allocation248_spill] sm:$0xff]  ;;  %v14728_v50 = vld [vmem:[#allocation18_spill] sm:$0xff]  ;;  %v14733_v61 = vld [vmem:[#allocation173_spill] sm:$0xff] }
 0x2de   : > { %v9938_v59 = vadd.f32 %v14725_v36, %v14724_v51  ;;  %v14727_v60 = vld [vmem:[#allocation124_spill] sm:$0xff]  ;;  %v14730_v25 = vld [vmem:[#allocation170_spill] sm:$0xff]  ;;  %v14757_v18 = vld [vmem:[#allocation253_spill] sm:$0xff] }
 0x2df   : > { %14723 = vst [vmem:[#allocation239_spill] sm:$0xff] %v9934_v27  ;;  %v9942_v14 = vadd.f32 %v14728_v50, %v14727_v60  ;;  %v14731_v47 = vld [vmem:[#allocation80_spill] sm:$0xff]  ;;  %v14736_v11 = vld [vmem:[#allocation174_spill] sm:$0xff]  ;;  %v14742_v60 = vld [vmem:[#allocation251_spill] sm:$0xff] }
 0x2e0   : > { %14726 = vst [vmem:[#allocation242_spill] sm:$0xff] %v9938_v59  ;;  %v9946_v43 = vadd.f32 %v14731_v47, %v14730_v25  ;;  %v14734_v62 = vld [vmem:[#allocation108_spill] sm:$0xff]  ;;  %v14739_v27 = vld [vmem:[#allocation250_spill] sm:$0xff]  ;;  %v3716_v59 = vpop.eup %3715  ;;  %v14746_v25 = vld [vmem:[#allocation235_spill] sm:$0xff] }
 0x2e1   : > { %14729 = vst [vmem:[#allocation244_spill] sm:$0xff] %v9942_v14  ;;  %v9950_v4 = vadd.f32 %v14734_v62, %v14733_v61  ;;  %v14737_v29 = vld [vmem:[#allocation120_spill] sm:$0xff]  ;;  %v14740_v51 = vld [vmem:[#allocation234_spill] sm:$0xff]  ;;  %v14749_v62 = vld [vmem:[#allocation183_spill] sm:$0xff] }
 0x2e2   : > { %14732 = vst [vmem:[#allocation246_spill] sm:$0xff] %v9946_v43  ;;  %v9954_v30 = vadd.f32 %v14737_v29, %v14736_v11  ;;  %v9958_v36 = vadd.f32 %v14740_v51, %v14739_v27  ;;  %v14743_v50 = vld [vmem:[#allocation182_spill] sm:$0xff]  ;;  %v14745_v37 = vld [vmem:[#allocation128_spill] sm:$0xff]  ;;  %v14748_v43 = vld [vmem:[#allocation175_spill] sm:$0xff] }
 0x2e3   : > { %14735 = vst [vmem:[#allocation249_spill] sm:$0xff] %v9950_v4  ;;  %v9962_v14 = vadd.f32 %v14743_v50, %v14742_v60  ;;  %v9966_v47 = vadd.f32 %v14746_v25, %v14745_v37  ;;  %v9970_v61 = vadd.f32 %v14749_v62, %v14748_v43  ;;  %v14751_v4 = vld [vmem:[#allocation177_spill] sm:$0xff]  ;;  %v14752_v11 = vld [vmem:[#allocation116_spill] sm:$0xff]  ;;  %v14754_v27 = vld [vmem:[#allocation178_spill] sm:$0xff] }
 0x2e4   : > { %14738 = vst [vmem:[#allocation252_spill] sm:$0xff] %v9954_v30  ;;  %14741 = vst [vmem:[#allocation255_spill] sm:$0xff] %v9958_v36  ;;  %v9974_v29 = vadd.f32 %v14752_v11, %v14751_v4  ;;  %v3718_v30 = vpop.eup %3717  ;;  %v14755_v51 = vld [vmem:[#allocation185_spill] sm:$0xff]  ;;  %v14758_v60 = vld [vmem:[#allocation114_spill] sm:$0xff] }
 0x2e5   : > { %14744 = vst [vmem:[#allocation258_spill] sm:$0xff] %v9962_v14  ;;  %14747 = vst [vmem:[#allocation262_spill] sm:$0xff] %v9966_v47  ;;  %v9978_v36 = vadd.f32 %v14755_v51, %v14754_v27  ;;  %v9982_v50 = vadd.f32 %v14758_v60, %v14757_v18  ;;  %v14760_v14 = vld [vmem:[#allocation254_spill] sm:$0xff]  ;;  %v14763_v47 = vld [vmem:[#allocation129_spill] sm:$0xff] }
 0x2e6   : > { %14750 = vst [vmem:[#allocation265_spill] sm:$0xff] %v9970_v61  ;;  %14753 = vst [vmem:[#allocation267_spill] sm:$0xff] %v9974_v29  ;;  %v14761_v37 = vld [vmem:[#allocation186_spill] sm:$0xff]  ;;  %v14764_v43 = vld [vmem:[#allocation55_spill] sm:$0xff]  ;;  %v3720_v61 = vpop.eup %3719 }
 0x2e7   : > { %14756 = vst [vmem:[#allocation270_spill] sm:$0xff] %v9978_v36  ;;  %14759 = vst [vmem:[#allocation273_spill] sm:$0xff] %v9982_v50  ;;  %v9986_v25 = vadd.f32 %v14761_v37, %v14760_v14  ;;  %v9990_v62 = vadd.f32 %v14764_v43, %v14763_v47  ;;  %v14766_v4 = vld [vmem:[#allocation179_spill] sm:$0xff]  ;;  %v14769_v56 = vld [vmem:[#allocation137_spill] sm:$0xff] }
 0x2e8   : > { %v14767_v11 = vld [vmem:[#allocation187_spill] sm:$0xff]  ;;  %v14770_v27 = vld [vmem:[#allocation61_spill] sm:$0xff]  ;;  %v14772_v36 = vld [vmem:[#allocation138_spill] sm:$0xff] }
 0x2e9   : > { %14762 = vst [vmem:[#allocation275_spill] sm:$0xff] %v9986_v25  ;;  %14765 = vst [vmem:[#allocation277_spill] sm:$0xff] %v9990_v62  ;;  %v9994_v29 = vadd.f32 %v14767_v11, %v14766_v4  ;;  %v9998_v51 = vadd.f32 %v14770_v27, %v14769_v56  ;;  %v14773_v18 = vld [vmem:[#allocation189_spill] sm:$0xff]  ;;  %v14775_v50 = vld [vmem:[#allocation256_spill] sm:$0xff]  ;;  %v3722_v25 = vpop.eup %3721 }
 0x2ea   : > { %v10002_v60 = vadd.f32 %v14773_v18, %v14772_v36  ;;  %v14776_v14 = vld [vmem:[#allocation190_spill] sm:$0xff]  ;;  %v14778_v47 = vld [vmem:[#allocation257_spill] sm:$0xff]  ;;  %v14781_v34 = vld [vmem:[#allocation259_spill] sm:$0xff] }
 0x2eb   : > { %14768 = vst [vmem:[#allocation280_spill] sm:$0xff] %v9994_v29  ;;  %14771 = vst [vmem:[#allocation283_spill] sm:$0xff] %v9998_v51  ;;  %v10006_v37 = vadd.f32 %v14776_v14, %v14775_v50  ;;  %v14779_v43 = vld [vmem:[#allocation194_spill] sm:$0xff]  ;;  %v14782_v4 = vld [vmem:[#allocation199_spill] sm:$0xff] }
 0x2ec   : > { %14774 = vst [vmem:[#allocation286_spill] sm:$0xff] %v10002_v60  ;;  %v10010_v62 = vadd.f32 %v14779_v43, %v14778_v47  ;;  %v10014_v11 = vadd.f32 %v14782_v4, %v14781_v34  ;;  %v14784_v29 = vld [vmem:[#allocation181_spill] sm:$0xff]  ;;  %v14785_v56 = vld [vmem:[#allocation203_spill] sm:$0xff]  ;;  %v14787_v51 = vld [vmem:[#allocation260_spill] sm:$0xff]  ;;  %v3724_v60 = vpop.eup %3723 }
 0x2ed   : > { %14777 = vst [vmem:[#allocation292_spill] sm:$0xff] %v10006_v37  ;;  %v10018_v27 = vadd.f32 %v14785_v56, %v14784_v29  ;;  %v14788_v36 = vld [vmem:[#allocation205_spill] sm:$0xff]  ;;  %v14791_v14 = vld [vmem:[#allocation206_spill] sm:$0xff]  ;;  %v14794_v47 = vld [vmem:[#allocation207_spill] sm:$0xff] }
 0x2ee   : > { %14780 = vst [vmem:[#allocation298_spill] sm:$0xff] %v10010_v62  ;;  %14783 = vst [vmem:[#allocation15_spill] sm:$0xff] %v10014_v11  ;;  %v10022_v18 = vadd.f32 %v14788_v36, %v14787_v51  ;;  %v14790_v50 = vld [vmem:[#allocation261_spill] sm:$0xff]  ;;  %v14793_v19 = vld [vmem:[#allocation130_spill] sm:$0xff] }
 0x2ef   : > { %14786 = vst [vmem:[#allocation17_spill] sm:$0xff] %v10018_v27  ;;  %v10026_v37 = vadd.f32 %v14791_v14, %v14790_v50  ;;  %v10030_v43 = vadd.f32 %v14794_v47, %v14793_v19  ;;  %v14796_v62 = vld [vmem:[#allocation263_spill] sm:$0xff]  ;;  %v14797_v34 = vld [vmem:[#allocation209_spill] sm:$0xff]  ;;  %v14799_v11 = vld [vmem:[#allocation264_spill] sm:$0xff]  ;;  %v3726_v27 = vpop.eup %3725 }
 0x2f0   : > { %14789 = vst [vmem:[#allocation16_spill] sm:$0xff] %v10022_v18  ;;  %v10034_v4 = vadd.f32 %v14797_v34, %v14796_v62  ;;  %v14800_v29 = vld [vmem:[#allocation210_spill] sm:$0xff]  ;;  %v14802_v51 = vld [vmem:[#allocation131_spill] sm:$0xff]  ;;  %v14809_v19 = vld [vmem:[#allocation213_spill] sm:$0xff] }
 0x2f1   : > { %14792 = vst [vmem:[#allocation81_spill] sm:$0xff] %v10026_v37  ;;  %14795 = vst [vmem:[#allocation19_spill] sm:$0xff] %v10030_v43  ;;  %v10038_v56 = vadd.f32 %v14800_v29, %v14799_v11  ;;  %v14803_v36 = vld [vmem:[#allocation211_spill] sm:$0xff]  ;;  %v14805_v28 = vld [vmem:[#allocation266_spill] sm:$0xff] }
 0x2f2   : > { %14798 = vst [vmem:[#allocation237_spill] sm:$0xff] %v10034_v4  ;;  %v10042_v18 = vadd.f32 %v14803_v36, %v14802_v51  ;;  %v14806_v50 = vld [vmem:[#allocation102_spill] sm:$0xff]  ;;  %v14808_v37 = vld [vmem:[#allocation268_spill] sm:$0xff]  ;;  %v14811_v43 = vld [vmem:[#allocation269_spill] sm:$0xff]  ;;  %v3728_v4 = vpop.eup %3727 }
 0x2f3   : > { %14801 = vst [vmem:[#allocation82_spill] sm:$0xff] %v10038_v56  ;;  %v10046_v14 = vadd.f32 %v14806_v50, %v14805_v28  ;;  %v10050_v47 = vadd.f32 %v14809_v19, %v14808_v37  ;;  %v14812_v62 = vld [vmem:[#allocation117_spill] sm:$0xff]  ;;  %v14814_v11 = vld [vmem:[#allocation271_spill] sm:$0xff]  ;;  %v14815_v29 = vld [vmem:[#allocation214_spill] sm:$0xff]  ;;  %v3730_v19 = vpop.eup %3729 }
 0x2f4   : > { %14804 = vst [vmem:[#allocation20_spill] sm:$0xff] %v10042_v18  ;;  %v10054_v34 = vadd.f32 %v14812_v62, %v14811_v43  ;;  %v10058_v56 = vadd.f32 %v14815_v29, %v14814_v11  ;;  %v14817_v24 = vld [vmem:[#allocation272_spill] sm:$0xff]  ;;  %v14818_v51 = vld [vmem:[#allocation157_spill] sm:$0xff]  ;;  %v14820_v18 = vld [vmem:[#allocation274_spill] sm:$0xff] }
 0x2f5   : > { %14807 = vst [vmem:[#allocation88_spill] sm:$0xff] %v10046_v14  ;;  %14810 = vst [vmem:[#allocation238_spill] sm:$0xff] %v10050_v47  ;;  %v10062_v36 = vadd.f32 %v14818_v51, %v14817_v24  ;;  %v10066_v28 = vadd.f32 %v9473_v16, %v14820_v18  ;;  %v14822_v50 = vld [vmem:[#allocation276_spill] sm:$0xff]  ;;  %v14824_v43 = vld [vmem:[#allocation278_spill] sm:$0xff]  ;;  %v3732_v18 = vpop.eup %3731 }
 0x2f6   : > { %14813 = vst [vmem:[#allocation24_spill] sm:$0xff] %v10054_v34  ;;  %14816 = vst [vmem:[#allocation89_spill] sm:$0xff] %v10058_v56  ;;  %v10070_v37 = vadd.f32 %v9503_v12, %v14822_v50  ;;  %v10074_v62 = vadd.f32 %v9533_v15, %v14824_v43  ;;  %v14826_v34 = vld [vmem:[#allocation279_spill] sm:$0xff]  ;;  %v14828_v29 = vld [vmem:[#allocation281_spill] sm:$0xff] }
 0x2f7   : > { %14819 = vst [vmem:[#allocation28_spill] sm:$0xff] %v10062_v36  ;;  %14821 = vst [vmem:[#allocation191_spill] sm:$0xff] %v10066_v28  ;;  %v10078_v11 = vadd.f32 %v9563_v44, %v14826_v34  ;;  %v10082_v24 = vadd.f32 %v9593_v33, %v14828_v29  ;;  %v14830_v51 = vld [vmem:[#allocation319_spill] sm:$0xff]  ;;  %v14832_v12 = vld [vmem:[#allocation282_spill] sm:$0xff] }
 0x2f8   : > { %14823 = vst [vmem:[#allocation22_spill] sm:$0xff] %v10070_v37  ;;  %14825 = vst [vmem:[#allocation33_spill] sm:$0xff] %v10074_v62  ;;  %v10086_v16 = vadd.f32 %v9623_v49, %v14830_v51  ;;  %v10090_v50 = vadd.f32 %v9653_v45, %v14832_v12  ;;  %v14834_v37 = vld [vmem:[#allocation284_spill] sm:$0xff]  ;;  %v14836_v43 = vld [vmem:[#allocation285_spill] sm:$0xff] }
 0x2f9   : > { %14827 = vst [vmem:[#allocation95_spill] sm:$0xff] %v10078_v11  ;;  %14829 = vst [vmem:[#allocation193_spill] sm:$0xff] %v10082_v24  ;;  %v10094_v15 = vadd.f32 %v9683_v52, %v14834_v37  ;;  %v10098_v44 = vadd.f32 %v9713_v5, %v14836_v43  ;;  %v14838_v34 = vld [vmem:[#allocation321_spill] sm:$0xff]  ;;  %v14840_v29 = vld [vmem:[#allocation287_spill] sm:$0xff] }
 0x2fa   : > { %14831 = vst [vmem:[#allocation34_spill] sm:$0xff] %v10086_v16  ;;  %14833 = vst [vmem:[#allocation96_spill] sm:$0xff] %v10090_v50  ;;  %v10102_v33 = vadd.f32 %v9734_v58, %v14838_v34  ;;  %v10106_v49 = vadd.f32 %v9752_v6, %v14840_v29  ;;  %v14842_v51 = vld [vmem:[#allocation288_spill] sm:$0xff]  ;;  %v14844_v12 = vld [vmem:[#allocation290_spill] sm:$0xff] }
 0x2fb   : > { %14835 = vst [vmem:[#allocation38_spill] sm:$0xff] %v10094_v15  ;;  %14837 = vst [vmem:[#allocation195_spill] sm:$0xff] %v10098_v44  ;;  %v10110_v45 = vadd.f32 %v9770_v39, %v14842_v51  ;;  %v10114_v52 = vadd.f32 %v9788_v38, %v14844_v12  ;;  %v14846_v37 = vld [vmem:[#allocation322_spill] sm:$0xff]  ;;  %v14848_v43 = vld [vmem:[#allocation291_spill] sm:$0xff] }
 0x2fc   : > { %14839 = vst [vmem:[#allocation97_spill] sm:$0xff] %v10102_v33  ;;  %14841 = vst [vmem:[#allocation39_spill] sm:$0xff] %v10106_v49  ;;  %v10118_v5 = vadd.f32 %v9806_v40, %v14846_v37  ;;  %v10122_v58 = vadd.f32 %v9824_v13, %v14848_v43  ;;  %v14850_v34 = vld [vmem:[#allocation293_spill] sm:$0xff]  ;;  %v14852_v29 = vld [vmem:[#allocation294_spill] sm:$0xff] }
 0x2fd   : > { %14843 = vst [vmem:[#allocation45_spill] sm:$0xff] %v10110_v45  ;;  %14845 = vst [vmem:[#allocation197_spill] sm:$0xff] %v10114_v52  ;;  %v10126_v6 = vadd.f32 %v9842_v42, %v14850_v34  ;;  %v10130_v39 = vadd.f32 %v9860_v48, %v14852_v29  ;;  %v14854_v51 = vld [vmem:[#allocation323_spill] sm:$0xff]  ;;  %v14856_v12 = vld [vmem:[#allocation296_spill] sm:$0xff] }
 0x2fe   : > { %14847 = vst [vmem:[#allocation103_spill] sm:$0xff] %v10118_v5  ;;  %14849 = vst [vmem:[#allocation104_spill] sm:$0xff] %v10122_v58  ;;  %v10134_v38 = vadd.f32 %v9878_v55, %v14854_v51  ;;  %v10138_v40 = vadd.f32 %v9896_v63, %v14856_v12  ;;  %v14858_v37 = vld [vmem:[#allocation297_spill] sm:$0xff]  ;;  %v14860_v43 = vld [vmem:[#allocation299_spill] sm:$0xff] }
 0x2ff   : > { %14851 = vst [vmem:[#allocation53_spill] sm:$0xff] %v10126_v6  ;;  %14853 = vst [vmem:[#allocation198_spill] sm:$0xff] %v10130_v39  ;;  %v10142_v13 = vadd.f32 %v9914_v26, %v14858_v37  ;;  %v10146_v42 = vadd.f32 %v9929_v53, %v14860_v43  ;;  %v14862_v34 = vld [vmem:[#allocation325_spill] sm:$0xff]  ;;  %v14864_v48 = vld [vmem:[#allocation300_spill] sm:$0xff] }
 0x300   : > { %14855 = vst [vmem:[#allocation66_spill] sm:$0xff] %v10134_v38  ;;  %14857 = vst [vmem:[#allocation83_spill] sm:$0xff] %v10138_v40  ;;  %v10149_v6 = vadd.f32 %v3714_v32, %v14862_v34  ;;  %v10152_v29 = vadd.f32 %v3716_v59, %v14864_v48  ;;  %v14866_v55 = vld [vmem:[#allocation302_spill] sm:$0xff]  ;;  %v14868_v38 = vld [vmem:[#allocation303_spill] sm:$0xff] }
 0x301   : > { %14859 = vst [vmem:[#allocation171_spill] sm:$0xff] %v10142_v13  ;;  %14861 = vst [vmem:[#allocation201_spill] sm:$0xff] %v10146_v42  ;;  %v10155_v51 = vadd.f32 %v3718_v30, %v14866_v55  ;;  %v10158_v63 = vadd.f32 %v3720_v61, %v14868_v38  ;;  %v14870_v12 = vld [vmem:[#allocation326_spill] sm:$0xff]  ;;  %v14872_v26 = vld [vmem:[#allocation305_spill] sm:$0xff] }
 0x302   : > { %14863 = vst [vmem:[#allocation93_spill] sm:$0xff] %v10149_v6  ;;  %14865 = vst [vmem:[#allocation107_spill] sm:$0xff] %v10152_v29  ;;  %v10161_v40 = vadd.f32 %v3722_v25, %v14870_v12  ;;  %v10164_v37 = vadd.f32 %v3724_v60, %v14872_v26  ;;  %v14874_v53 = vld [vmem:[#allocation99_spill] sm:$0xff]  ;;  %v14876_v32 = vld [vmem:[#allocation304_spill] sm:$0xff] }
 0x303   : > { %14867 = vst [vmem:[#allocation110_spill] sm:$0xff] %v10155_v51  ;;  %14869 = vst [vmem:[#allocation202_spill] sm:$0xff] %v10158_v63  ;;  %v10167_v43 = vadd.f32 %v3726_v27, %v14874_v53  ;;  %v10170_v34 = vadd.f32 %v3728_v4, %v14876_v32  ;;  %v14878_v59 = vld [vmem:[#allocation54_spill] sm:$0xff]  ;;  %v14882_v61 = vld [vmem:[#allocation327_spill] sm:$0xff] }
 0x304   : > { %14871 = vst [vmem:[#allocation247_spill] sm:$0xff] %v10161_v40  ;;  %14873 = vst [vmem:[#allocation40_spill] sm:$0xff] %v10164_v37  ;;  %v10173_v48 = vadd.f32 %v3730_v19, %v14878_v59  ;;  %v14880_v30 = vld [vmem:[#allocation306_spill] sm:$0xff]  ;;  %v14888_v26 = vld [vmem:[#allocation307_spill] sm:$0xff] }
 0x305   : > { %14875 = vst [vmem:[#allocation248_spill] sm:$0xff] %v10167_v43  ;;  %14877 = vst [vmem:[#allocation46_spill] sm:$0xff] %v10170_v34  ;;  %v10176_v55 = vadd.f32 %v3732_v18, %v14880_v30  ;;  %v14883_v38 = vld [vmem:[#allocation62_spill] sm:$0xff]  ;;  %v14889_v27 = vld [vmem:[#allocation216_spill] sm:$0xff] }
 0x306   : > { %14879 = vst [vmem:[#allocation124_spill] sm:$0xff] %v10173_v48  ;;  %v10180_v63 = vadd.f32 %v14883_v38, %v14882_v61  ;;  %v14885_v25 = vld [vmem:[#allocation10_spill] sm:$0xff]  ;;  %v10188_v53 = vadd.f32 %v14889_v27, %v14888_v26  ;;  %v14891_v4 = vld [vmem:[#allocation100_spill] sm:$0xff]  ;;  %v14892_v32 = vld [vmem:[#allocation151_spill] sm:$0xff] }
 0x307   : > { %14881 = vst [vmem:[#allocation18_spill] sm:$0xff] %v10176_v55  ;;  %v14886_v12 = vld [vmem:[#allocation150_spill] sm:$0xff]  ;;  %v10192_v34 = vadd.f32 %v14892_v32, %v14891_v4  ;;  %v14894_v19 = vld [vmem:[#allocation308_spill] sm:$0xff]  ;;  %v14895_v59 = vld [vmem:[#allocation217_spill] sm:$0xff] }
 0x308   : > { %14884 = vst [vmem:[#allocation170_spill] sm:$0xff] %v10180_v63  ;;  %v10184_v60 = vadd.f32 %v14886_v12, %v14885_v25  ;;  %14890 = vst [vmem:[#allocation173_spill] sm:$0xff] %v10188_v53  ;;  %v10196_v18 = vadd.f32 %v14895_v59, %v14894_v19  ;;  %v14897_v30 = vld [vmem:[#allocation56_spill] sm:$0xff]  ;;  %v14900_v38 = vld [vmem:[#allocation309_spill] sm:$0xff] }
 0x309   : > { %14893 = vst [vmem:[#allocation108_spill] sm:$0xff] %v10192_v34  ;;  %v14898_v55 = vld [vmem:[#allocation240_spill] sm:$0xff]  ;;  %v14901_v48 = vld [vmem:[#allocation158_spill] sm:$0xff]  ;;  %v14903_v12 = vld [vmem:[#allocation329_spill] sm:$0xff] }
 0x30a   : > { %14887 = vst [vmem:[#allocation80_spill] sm:$0xff] %v10184_v60  ;;  %14896 = vst [vmem:[#allocation174_spill] sm:$0xff] %v10196_v18  ;;  %v10200_v61 = vadd.f32 %v14898_v55, %v14897_v30  ;;  %v10204_v25 = vadd.f32 %v14901_v48, %v14900_v38  ;;  %v14904_v43 = vld [vmem:[#allocation241_spill] sm:$0xff]  ;;  %v14906_v27 = vld [vmem:[#allocation11_spill] sm:$0xff] }
 0x30b   : > { %v10208_v26 = vadd.f32 %v14904_v43, %v14903_v12  ;;  %v14907_v37 = vld [vmem:[#allocation219_spill] sm:$0xff]  ;;  %v14909_v32 = vld [vmem:[#allocation310_spill] sm:$0xff]  ;;  %v14910_v40 = vld [vmem:[#allocation121_spill] sm:$0xff] }
 0x30c   : > { %14899 = vst [vmem:[#allocation120_spill] sm:$0xff] %v10200_v61  ;;  %14902 = vst [vmem:[#allocation250_spill] sm:$0xff] %v10204_v25  ;;  %v10212_v4 = vadd.f32 %v14907_v37, %v14906_v27  ;;  %v10216_v19 = vadd.f32 %v14910_v40, %v14909_v32  ;;  %v14912_v59 = vld [vmem:[#allocation60_spill] sm:$0xff]  ;;  %v14915_v30 = vld [vmem:[#allocation311_spill] sm:$0xff] }
 0x30d   : > { %14905 = vst [vmem:[#allocation234_spill] sm:$0xff] %v10208_v26  ;;  %v14913_v51 = vld [vmem:[#allocation220_spill] sm:$0xff]  ;;  %v14919_v6 = vld [vmem:[#allocation159_spill] sm:$0xff]  ;;  %v14923_v27 = vld [vmem:[#allocation330_spill] sm:$0xff] }
 0x30e   : > { %14908 = vst [vmem:[#allocation251_spill] sm:$0xff] %v10212_v4  ;;  %14911 = vst [vmem:[#allocation182_spill] sm:$0xff] %v10216_v19  ;;  %v10220_v55 = vadd.f32 %v14913_v51, %v14912_v59  ;;  %v14916_v29 = vld [vmem:[#allocation152_spill] sm:$0xff]  ;;  %v14924_v42 = vld [vmem:[#allocation154_spill] sm:$0xff] }
 0x30f   : > { %v10224_v48 = vadd.f32 %v14916_v29, %v14915_v30  ;;  %v14918_v38 = vld [vmem:[#allocation12_spill] sm:$0xff]  ;;  %v10236_v40 = vadd.f32 %v14924_v42, %v14923_v27  ;;  %v14926_v32 = vld [vmem:[#allocation67_spill] sm:$0xff]  ;;  %v14927_v13 = vld [vmem:[#allocation222_spill] sm:$0xff] }
 0x310   : > { %14914 = vst [vmem:[#allocation128_spill] sm:$0xff] %v10220_v55  ;;  %v10228_v43 = vadd.f32 %v14919_v6, %v14918_v38  ;;  %v14921_v12 = vld [vmem:[#allocation312_spill] sm:$0xff]  ;;  %v10240_v51 = vadd.f32 %v14927_v13, %v14926_v32  ;;  %v14929_v59 = vld [vmem:[#allocation313_spill] sm:$0xff]  ;;  %v14932_v39 = vld [vmem:[#allocation155_spill] sm:$0xff] }
 0x311   : > { %14917 = vst [vmem:[#allocation235_spill] sm:$0xff] %v10224_v48  ;;  %v10232_v37 = vadd.f32 %v9581_v8, %v14921_v12  ;;  %14925 = vst [vmem:[#allocation177_spill] sm:$0xff] %v10236_v40  ;;  %v10244_v29 = vadd.f32 %v9611_v7, %v14929_v59  ;;  %v14931_v30 = vld [vmem:[#allocation72_spill] sm:$0xff]  ;;  %v14934_v38 = vld [vmem:[#allocation314_spill] sm:$0xff] }
 0x312   : > { %14920 = vst [vmem:[#allocation175_spill] sm:$0xff] %v10228_v43  ;;  %14928 = vst [vmem:[#allocation116_spill] sm:$0xff] %v10240_v51  ;;  %v10248_v6 = vadd.f32 %v14932_v39, %v14931_v30  ;;  %v14935_v58 = vld [vmem:[#allocation223_spill] sm:$0xff]  ;;  %v14941_v52 = vld [vmem:[#allocation164_spill] sm:$0xff] }
 0x313   : > { %14922 = vst [vmem:[#allocation183_spill] sm:$0xff] %v10232_v37  ;;  %14930 = vst [vmem:[#allocation178_spill] sm:$0xff] %v10244_v29  ;;  %v10252_v8 = vadd.f32 %v14935_v58, %v14934_v38  ;;  %v14937_v12 = vld [vmem:[#allocation75_spill] sm:$0xff]  ;;  %v14944_v45 = vld [vmem:[#allocation156_spill] sm:$0xff] }
 0x314   : > { %14933 = vst [vmem:[#allocation185_spill] sm:$0xff] %v10248_v6  ;;  %v14938_v5 = vld [vmem:[#allocation243_spill] sm:$0xff]  ;;  %v14947_v49 = vld [vmem:[#allocation225_spill] sm:$0xff]  ;;  %v14949_v30 = vld [vmem:[#allocation316_spill] sm:$0xff] }
 0x315   : > { %14936 = vst [vmem:[#allocation253_spill] sm:$0xff] %v10252_v8  ;;  %v10256_v42 = vadd.f32 %v14938_v5, %v14937_v12  ;;  %v14940_v27 = vld [vmem:[#allocation315_spill] sm:$0xff]  ;;  %v14950_v33 = vld [vmem:[#allocation161_spill] sm:$0xff]  ;;  %v14952_v38 = vld [vmem:[#allocation94_spill] sm:$0xff] }
 0x316   : > { %v10260_v13 = vadd.f32 %v14941_v52, %v14940_v27  ;;  %v14943_v32 = vld [vmem:[#allocation331_spill] sm:$0xff]  ;;  %v10272_v58 = vadd.f32 %v14950_v33, %v14949_v30  ;;  %v14953_v44 = vld [vmem:[#allocation226_spill] sm:$0xff]  ;;  %v14955_v12 = vld [vmem:[#allocation317_spill] sm:$0xff] }
 0x317   : > { %14939 = vst [vmem:[#allocation114_spill] sm:$0xff] %v10256_v42  ;;  %v10264_v7 = vadd.f32 %v14944_v45, %v14943_v32  ;;  %v14946_v59 = vld [vmem:[#allocation87_spill] sm:$0xff]  ;;  %v10276_v5 = vadd.f32 %v14953_v44, %v14952_v38  ;;  %v10280_v52 = vadd.f32 %v9701_v0, %v14955_v12  ;;  %v14957_v27 = vld [vmem:[#allocation101_spill] sm:$0xff]  ;;  %v14959_v32 = vld [vmem:[#allocation318_spill] sm:$0xff] }
 0x318   : > { %14942 = vst [vmem:[#allocation254_spill] sm:$0xff] %v10260_v13  ;;  %v10268_v39 = vadd.f32 %v14947_v49, %v14946_v59  ;;  %14951 = vst [vmem:[#allocation55_spill] sm:$0xff] %v10272_v58  ;;  %v10284_v45 = vadd.f32 %v9706_v22, %v14957_v27  ;;  %v10288_v49 = vadd.f32 %v9711_v1, %v14959_v32  ;;  %v14961_v59 = vld [vmem:[#allocation109_spill] sm:$0xff]  ;;  %v14963_v30 = vld [vmem:[#allocation320_spill] sm:$0xff] }
 0x319   : > { %14945 = vst [vmem:[#allocation186_spill] sm:$0xff] %v10264_v7  ;;  %14954 = vst [vmem:[#allocation179_spill] sm:$0xff] %v10276_v5  ;;  %v10292_v33 = vadd.f32 %v9722_v41, %v14961_v59  ;;  %v10296_v44 = vadd.f32 %v9727_v21, %v14963_v30  ;;  %v14965_v38 = vld [vmem:[#allocation115_spill] sm:$0xff]  ;;  %v14967_v12 = vld [vmem:[#allocation324_spill] sm:$0xff] }
 0x31a   : > { %14948 = vst [vmem:[#allocation129_spill] sm:$0xff] %v10268_v39  ;;  %14956 = vst [vmem:[#allocation187_spill] sm:$0xff] %v10280_v52  ;;  %v10300_v0 = vadd.f32 %v9732_v17, %v14965_v38  ;;  %v10304_v22 = vadd.f32 %v9740_v57, %v14967_v12  ;;  %v14969_v27 = vld [vmem:[#allocation149_spill] sm:$0xff]  ;;  %v14971_v32 = vld [vmem:[#allocation328_spill] sm:$0xff] }
 0x31b   : > { %14958 = vst [vmem:[#allocation137_spill] sm:$0xff] %v10284_v45  ;;  %14960 = vst [vmem:[#allocation61_spill] sm:$0xff] %v10288_v49  ;;  %v10308_v1 = vadd.f32 %v9745_v20, %v14969_v27  ;;  %v10312_v41 = vadd.f32 %v9750_v3, %v14971_v32  ;;  %v14973_v59 = vld [vmem:[#allocation153_spill] sm:$0xff]  ;;  %v14975_v30 = vld [vmem:[#allocation332_spill] sm:$0xff] }
 0x31c   : > { %14962 = vst [vmem:[#allocation138_spill] sm:$0xff] %v10292_v33  ;;  %14964 = vst [vmem:[#allocation189_spill] sm:$0xff] %v10296_v44  ;;  %v10316_v21 = vadd.f32 %v9758_v54, %v14973_v59  ;;  %v10320_v17 = vadd.f32 %v9763_v31, %v14975_v30  ;;  %v14977_v38 = vld [vmem:[#allocation160_spill] sm:$0xff]  ;;  %v14979_v12 = vld [vmem:[#allocation333_spill] sm:$0xff] }
 0x31d   : > { %14966 = vst [vmem:[#allocation256_spill] sm:$0xff] %v10300_v0  ;;  %14968 = vst [vmem:[#allocation190_spill] sm:$0xff] %v10304_v22  ;;  %v10324_v57 = vadd.f32 %v9768_v35, %v14977_v38  ;;  %v10328_v20 = vadd.f32 %v9776_v2, %v14979_v12  ;;  %v14981_v27 = vld [vmem:[#allocation167_spill] sm:$0xff]  ;;  %v14983_v32 = vld [vmem:[#allocation334_spill] sm:$0xff] }
 0x31e   : > { %14970 = vst [vmem:[#allocation257_spill] sm:$0xff] %v10308_v1  ;;  %14972 = vst [vmem:[#allocation194_spill] sm:$0xff] %v10312_v41  ;;  %v10332_v3 = vadd.f32 %v9781_v10, %v14981_v27  ;;  %v10336_v54 = vadd.f32 %v9786_v23, %v14983_v32  ;;  %v14985_v59 = vld [vmem:[#allocation172_spill] sm:$0xff]  ;;  %v14987_v30 = vld [vmem:[#allocation335_spill] sm:$0xff] }
 0x31f   : > { %14974 = vst [vmem:[#allocation259_spill] sm:$0xff] %v10316_v21  ;;  %14976 = vst [vmem:[#allocation199_spill] sm:$0xff] %v10320_v17  ;;  %v10340_v31 = vadd.f32 %v9794_v9, %v14985_v59  ;;  %v10344_v35 = vadd.f32 %v9799_v46, %v14987_v30  ;;  %v14989_v38 = vld [vmem:[#allocation176_spill] sm:$0xff]  ;;  %v14990_v2 = vld [vmem:[#allocation162_spill] sm:$0xff] }
 0x320   : > { %14978 = vst [vmem:[#allocation181_spill] sm:$0xff] %v10324_v57  ;;  %14980 = vst [vmem:[#allocation203_spill] sm:$0xff] %v10328_v20  ;;  %v10348_v12 = vadd.f32 %v14990_v2, %v14989_v38  ;;  %v14992_v20 = vld [vmem:[#allocation336_spill] sm:$0xff]  ;;  %v14993_v10 = vld [vmem:[#allocation165_spill] sm:$0xff] }
 0x321   : > { %14982 = vst [vmem:[#allocation260_spill] sm:$0xff] %v10332_v3  ;;  %14984 = vst [vmem:[#allocation205_spill] sm:$0xff] %v10336_v54  ;;  %v10352_v27 = vadd.f32 %v14993_v10, %v14992_v20  ;;  %v14995_v3 = vld [vmem:[#allocation180_spill] sm:$0xff]  ;;  %v14996_v23 = vld [vmem:[#allocation122_spill] sm:$0xff] }
 0x322   : > { %14986 = vst [vmem:[#allocation261_spill] sm:$0xff] %v10340_v31  ;;  %14988 = vst [vmem:[#allocation206_spill] sm:$0xff] %v10344_v35  ;;  %v10356_v32 = vadd.f32 %v14996_v23, %v14995_v3  ;;  %v14998_v54 = vld [vmem:[#allocation337_spill] sm:$0xff]  ;;  %v14999_v57 = vld [vmem:[#allocation228_spill] sm:$0xff] }
 0x323   : > { %14991 = vst [vmem:[#allocation130_spill] sm:$0xff] %v10348_v12  ;;  %14994 = vst [vmem:[#allocation207_spill] sm:$0xff] %v10352_v27  ;;  %v10360_v9 = vadd.f32 %v14999_v57, %v14998_v54  ;;  %v10363_v59 = vld [vmem:[%s4743_s4 + $0x610] sm:$0xff]  ;;  %v15002_v46 = vld [vmem:[#allocation92_spill] sm:$0xff] }
 0x324   : > { %14997 = vst [vmem:[#allocation263_spill] sm:$0xff] %v10356_v32  ;;  %15001 = vst [vmem:[#allocation264_spill] sm:$0xff] %v10363_v59  ;;  %v2096_v30 = vsub.f32 %v10363_v59, %v15002_v46  ;;  %v15003_v38 = vld [vmem:[#allocation135_spill] sm:$0xff]  ;;  %v15004_v2 = vld [vmem:[#allocation245_spill] sm:$0xff] }
 0x325   : > { %15000 = vst [vmem:[#allocation209_spill] sm:$0xff] %v10360_v9  ;;  %v10369_v12 = vadd.f32 %v15004_v2, %v15003_v38  ;;  %v15006_v20 = vld [vmem:[#allocation338_spill] sm:$0xff]  ;;  %v15007_v10 = vld [vmem:[#allocation229_spill] sm:$0xff]  ;;  %v15009_v3 = vld [vmem:[#allocation136_spill] sm:$0xff] }
 0x326   : > { %v10373_v27 = vadd.f32 %v15007_v10, %v15006_v20  ;;  %v15010_v23 = vld [vmem:[#allocation123_spill] sm:$0xff]  ;;  %v10380_v57 = vld [vmem:[%s4743_s4 + $0x618] sm:$0xff]  ;;  %v15013_v54 = vld [vmem:[#allocation105_spill] sm:$0xff]  ;;  %v2162_v49 = vmul.f32 1.442695, %v2096_v30 }
 0x327   : > { %15005 = vst [vmem:[#allocation210_spill] sm:$0xff] %v10369_v12  ;;  %v10377_v32 = vadd.f32 %v15010_v23, %v15009_v3  ;;  %15012 = vst [vmem:[#allocation266_spill] sm:$0xff] %v10380_v57  ;;  %v2097_v9 = vsub.f32 %v10380_v57, %v15013_v54  ;;  %v15014_v35 = vld [vmem:[#allocation68_spill] sm:$0xff]  ;;  %v15015_v31 = vld [vmem:[#allocation166_spill] sm:$0xff] }
 0x328   : > { %15008 = vst [vmem:[#allocation131_spill] sm:$0xff] %v10373_v27  ;;  %v10386_v17 = vadd.f32 %v15015_v31, %v15014_v35  ;;  %v15017_v38 = vld [vmem:[#allocation184_spill] sm:$0xff]  ;;  %v15018_v2 = vld [vmem:[#allocation163_spill] sm:$0xff]  ;;  %v10393_v20 = vld [vmem:[%s4743_s4 + $0x620] sm:$0xff] }
 0x329   : > { %15011 = vst [vmem:[#allocation211_spill] sm:$0xff] %v10377_v32  ;;  %v10390_v12 = vadd.f32 %v15018_v2, %v15017_v38  ;;  %15020 = vst [vmem:[#allocation213_spill] sm:$0xff] %v10393_v20  ;;  %v15021_v10 = vld [vmem:[#allocation106_spill] sm:$0xff]  ;;  %v15022_v23 = vld [vmem:[#allocation111_spill] sm:$0xff] }
 0x32a   : > { %15016 = vst [vmem:[#allocation102_spill] sm:$0xff] %v10386_v17  ;;  %v2098_v3 = vsub.f32 %v10393_v20, %v15021_v10  ;;  %v15023_v32 = vld [vmem:[#allocation79_spill] sm:$0xff]  ;;  %v15025_v41 = vld [vmem:[#allocation13_spill] sm:$0xff]  ;;  %v15028_v31 = vld [vmem:[#allocation188_spill] sm:$0xff] }
 0x32b   : > { %15019 = vst [vmem:[#allocation268_spill] sm:$0xff] %v10390_v12  ;;  %v15024_v27 = vsub.f32 %v15022_v23, %v15023_v32  ;;  %v15026_v1 = vld [vmem:[#allocation231_spill] sm:$0xff]  ;;  %v15029_v35 = vld [vmem:[#allocation168_spill] sm:$0xff]  ;;  %v10409_v38 = vld [vmem:[%s4743_s4 + $0x628] sm:$0xff] }
 0x32c   : > { %v10402_v22 = vadd.f32 %v15026_v1, %v15025_v41  ;;  %v10406_v17 = vadd.f32 %v15029_v35, %v15028_v31  ;;  %15031 = vst [vmem:[#allocation271_spill] sm:$0xff] %v10409_v38  ;;  %v15032_v2 = vld [vmem:[#allocation112_spill] sm:$0xff]  ;;  %v15033_v0 = vld [vmem:[#allocation127_spill] sm:$0xff]  ;;  %v15034_v44 = vld [vmem:[#allocation85_spill] sm:$0xff] }
 0x32d   : > { %v2158_v21 = vmul.f32 1.442695, %v15024_v27  ;;  %v2099_v12 = vsub.f32 %v10409_v38, %v15032_v2  ;;  %v15035_v15 = vsub.f32 %v15033_v0, %v15034_v44  ;;  %v15036_v23 = vld [vmem:[#allocation73_spill] sm:$0xff]  ;;  %v15037_v27 = vld [vmem:[#allocation232_spill] sm:$0xff]  ;;  %v10425_v31 = vld [vmem:[%s4743_s4 + $0x630] sm:$0xff] }
 0x32e   : > { %15027 = vst [vmem:[#allocation269_spill] sm:$0xff] %v10402_v22  ;;  %15030 = vst [vmem:[#allocation117_spill] sm:$0xff] %v10406_v17  ;;  %v10418_v50 = vadd.f32 %v15037_v27, %v15036_v23  ;;  %v15039_v1 = vld [vmem:[#allocation192_spill] sm:$0xff]  ;;  %v15040_v41 = vld [vmem:[#allocation169_spill] sm:$0xff] }
 0x32f   : > { %v2160_v33 = vmul.f32 1.442695, %v15035_v15  ;;  %v10422_v22 = vadd.f32 %v15040_v41, %v15039_v1  ;;  %15042 = vst [vmem:[#allocation157_spill] sm:$0xff] %v10425_v31  ;;  %v15043_v35 = vld [vmem:[#allocation113_spill] sm:$0xff]  ;;  %v15044_v16 = vld [vmem:[#allocation14_spill] sm:$0xff]  ;;  %v15047_v15 = vld [vmem:[#allocation196_spill] sm:$0xff]  ;;  %3733 = vpow2.f32 %v2158_v21 }
 0x330   : > { %15038 = vst [vmem:[#allocation214_spill] sm:$0xff] %v10418_v50  ;;  %v2100_v17 = vsub.f32 %v10425_v31, %v15043_v35  ;;  %v15045_v45 = vld [vmem:[#allocation289_spill] sm:$0xff]  ;;  %v15048_v0 = vld [vmem:[#allocation295_spill] sm:$0xff]  ;;  %v10438_v27 = vld [vmem:[%s4743_s4 + $0x638] sm:$0xff]  ;;  %v2164_v41 = vmul.f32 1.442695, %v2097_v9 }
 0x331   : > { %15041 = vst [vmem:[#allocation272_spill] sm:$0xff] %v10422_v22  ;;  %v10431_v24 = vadd.f32 %v15045_v45, %v15044_v16  ;;  %v10435_v23 = vadd.f32 %v15048_v0, %v15047_v15  ;;  %15050 = vst [vmem:[#allocation278_spill] sm:$0xff] %v10438_v27  ;;  %v15051_v50 = vld [vmem:[#allocation118_spill] sm:$0xff]  ;;  %v15053_v52 = vld [vmem:[#allocation301_spill] sm:$0xff]  ;;  %3735 = vpow2.f32 %v2160_v33 }
 0x332   : > { %v2101_v1 = vsub.f32 %v10438_v27, %v15051_v50  ;;  %v15052_v22 = vld [vmem:[#allocation74_spill] sm:$0xff]  ;;  %v10447_v30 = vld [vmem:[%s4743_s4 + $0x640] sm:$0xff]  ;;  %v15056_v16 = vld [vmem:[#allocation119_spill] sm:$0xff]  ;;  %3737 = vpow2.f32 %v2162_v49 }
 0x333   : > { %15046 = vst [vmem:[#allocation274_spill] sm:$0xff] %v10431_v24  ;;  %15049 = vst [vmem:[#allocation276_spill] sm:$0xff] %v10435_v23  ;;  %v10444_v11 = vadd.f32 %v15053_v52, %v15052_v22  ;;  %v2102_v45 = vsub.f32 %v10447_v30, %v15056_v16  ;;  %v2166_v24 = vmul.f32 1.442695, %v2098_v3  ;;  %v15057_v15 = vld [vmem:[#allocation200_spill] sm:$0xff]  ;;  %v15058_v0 = vld [vmem:[#allocation221_spill] sm:$0xff]  ;;  %3739 = vpow2.f32 %v2164_v41 }
 0x334   : > { %15055 = vst [vmem:[#allocation281_spill] sm:$0xff] %v10447_v30  ;;  %v10453_v23 = vadd.f32 %v15058_v0, %v15057_v15  ;;  %v10456_v5 = vld [vmem:[%s4743_s4 + $0x648] sm:$0xff]  ;;  %v15061_v9 = vld [vmem:[#allocation125_spill] sm:$0xff]  ;;  %v2168_v52 = vmul.f32 1.442695, %v2099_v12  ;;  %v15062_v22 = vld [vmem:[#allocation204_spill] sm:$0xff] }
 0x335   : > { %15054 = vst [vmem:[#allocation279_spill] sm:$0xff] %v10444_v11  ;;  %15060 = vst [vmem:[#allocation282_spill] sm:$0xff] %v10456_v5  ;;  %v2103_v62 = vsub.f32 %v10456_v5, %v15061_v9  ;;  %v15063_v11 = vld [vmem:[#allocation224_spill] sm:$0xff]  ;;  %v10465_v39 = vld [vmem:[%s4743_s4 + $0x650] sm:$0xff]  ;;  %v2170_v15 = vmul.f32 1.442695, %v2100_v17  ;;  %3741 = vpow2.f32 %v2166_v24 }
 0x336   : > { %15059 = vst [vmem:[#allocation319_spill] sm:$0xff] %v10453_v23  ;;  %v10462_v58 = vadd.f32 %v15063_v11, %v15062_v22  ;;  %15065 = vst [vmem:[#allocation285_spill] sm:$0xff] %v10465_v39  ;;  %v15066_v21 = vld [vmem:[#allocation126_spill] sm:$0xff]  ;;  %v15067_v0 = vld [vmem:[#allocation208_spill] sm:$0xff]  ;;  %v2172_v11 = vmul.f32 1.442695, %v2101_v1  ;;  %3743 = vpow2.f32 %v2168_v52 }
 0x337   : > { %v2104_v3 = vsub.f32 %v10465_v39, %v15066_v21  ;;  %v15068_v23 = vld [vmem:[#allocation227_spill] sm:$0xff]  ;;  %v10474_v33 = vld [vmem:[%s4743_s4 + $0x658] sm:$0xff]  ;;  %v10483_v13 = vld [vmem:[%s4743_s4 + $0x660] sm:$0xff]  ;;  %3745 = vpow2.f32 %v2170_v15 }
 0x338   : > { %15064 = vst [vmem:[#allocation284_spill] sm:$0xff] %v10462_v58  ;;  %v10471_v28 = vadd.f32 %v15068_v23, %v15067_v0  ;;  %15070 = vst [vmem:[#allocation287_spill] sm:$0xff] %v10474_v33  ;;  %v15071_v12 = vld [vmem:[#allocation132_spill] sm:$0xff]  ;;  %v15073_v58 = vld [vmem:[#allocation230_spill] sm:$0xff]  ;;  %v2174_v23 = vmul.f32 1.442695, %v2102_v45  ;;  %3747 = vpow2.f32 %v2172_v11 }
 0x339   : > { %v2105_v7 = vsub.f32 %v10474_v33, %v15071_v12  ;;  %v15072_v22 = vld [vmem:[#allocation212_spill] sm:$0xff]  ;;  %15075 = vst [vmem:[#allocation290_spill] sm:$0xff] %v10483_v13  ;;  %v15076_v49 = vld [vmem:[#allocation143_spill] sm:$0xff]  ;;  %v10488_v0 = vld [vmem:[%s4743_s4 + $0x668] sm:$0xff]  ;;  %v2178_v6 = vmul.f32 1.442695, %v2104_v3  ;;  %v10537_v48 = vpop.eup %3733 }
 0x33a   : > { %15069 = vst [vmem:[#allocation321_spill] sm:$0xff] %v10471_v28  ;;  %v10480_v36 = vadd.f32 %v15073_v58, %v15072_v22  ;;  %v2106_v17 = vsub.f32 %v10483_v13, %v15076_v49  ;;  %15077 = vst [vmem:[#allocation322_spill] sm:$0xff] %v10488_v0  ;;  %v15078_v28 = vld [vmem:[#allocation133_spill] sm:$0xff]  ;;  %v10493_v41 = vld [vmem:[%s4743_s4 + $0x670] sm:$0xff]  ;;  %v2176_v22 = vmul.f32 1.442695, %v2103_v62  ;;  %3749 = vpow2.f32 %v2174_v23 }
 0x33b   : > { %v2107_v56 = vsub.f32 %v10488_v0, %v15078_v28  ;;  %15079 = vst [vmem:[#allocation291_spill] sm:$0xff] %v10493_v41  ;;  %v15080_v1 = vld [vmem:[#allocation134_spill] sm:$0xff]  ;;  %v15082_v42 = vld [vmem:[#allocation139_spill] sm:$0xff]  ;;  %v10503_v45 = vld [vmem:[%s4743_s4 + $0x680] sm:$0xff]  ;;  %v10549_v12 = vpop.eup %3735 }
 0x33c   : > { %15074 = vst [vmem:[#allocation288_spill] sm:$0xff] %v10480_v36  ;;  %v2108_v58 = vsub.f32 %v10493_v41, %v15080_v1  ;;  %v10498_v36 = vld [vmem:[%s4743_s4 + $0x678] sm:$0xff]  ;;  %15083 = vst [vmem:[#allocation294_spill] sm:$0xff] %v10503_v45  ;;  %v10508_v14 = vld [vmem:[%s4743_s4 + $0x688] sm:$0xff]  ;;  %3751 = vpow2.f32 %v2176_v22 }
 0x33d   : > { %15081 = vst [vmem:[#allocation293_spill] sm:$0xff] %v10498_v36  ;;  %v2109_v24 = vsub.f32 %v10498_v36, %v15082_v42  ;;  %v15084_v8 = vld [vmem:[#allocation144_spill] sm:$0xff]  ;;  %15085 = vst [vmem:[#allocation323_spill] sm:$0xff] %v10508_v14  ;;  %v10513_v62 = vld [vmem:[%s4743_s4 + $0x690] sm:$0xff]  ;;  %v2180_v42 = vmul.f32 1.442695, %v2105_v7  ;;  %3753 = vpow2.f32 %v2178_v6 }
 0x33e   : > { %v2110_v47 = vsub.f32 %v10503_v45, %v15084_v8  ;;  %v15086_v29 = vld [vmem:[#allocation140_spill] sm:$0xff]  ;;  %15087 = vst [vmem:[#allocation296_spill] sm:$0xff] %v10513_v62  ;;  %v15088_v51 = vld [vmem:[#allocation141_spill] sm:$0xff]  ;;  %v15090_v8 = vld [vmem:[#allocation142_spill] sm:$0xff]  ;;  %v2186_v9 = vmul.f32 1.442695, %v2108_v58 }
 0x33f   : > { %v2111_v52 = vsub.f32 %v10508_v14, %v15086_v29  ;;  %v2112_v1 = vsub.f32 %v10513_v62, %v15088_v51  ;;  %v10518_v40 = vld [vmem:[%s4743_s4 + $0x698] sm:$0xff]  ;;  %v10523_v3 = vld [vmem:[%s4743_s4 + $0x6a0] sm:$0xff]  ;;  %v2182_v29 = vmul.f32 1.442695, %v2106_v17  ;;  %v10528_v49 = vld [vmem:[%s4743_s4 + $0x6a8] sm:$0xff]  ;;  %15097 = vst [vmem:[#allocation302_spill] sm:$0xff] %v10537_v48  ;;  %3755 = vpow2.f32 %v2180_v42 }
 0x340   : > { %15089 = vst [vmem:[#allocation297_spill] sm:$0xff] %v10518_v40  ;;  %v2113_v15 = vsub.f32 %v10518_v40, %v15090_v8  ;;  %15091 = vst [vmem:[#allocation299_spill] sm:$0xff] %v10523_v3  ;;  %v15092_v28 = vld [vmem:[#allocation145_spill] sm:$0xff]  ;;  %v15094_v51 = vld [vmem:[#allocation27_spill] sm:$0xff]  ;;  %v2184_v8 = vmul.f32 1.442695, %v2107_v56 }
 0x341   : > { %v2114_v37 = vsub.f32 %v10523_v3, %v15092_v28  ;;  %15093 = vst [vmem:[#allocation325_spill] sm:$0xff] %v10528_v49  ;;  %v2115_v7 = vsub.f32 %v10528_v49, %v15094_v51  ;;  %v10533_v11 = vld [vmem:[%s4743_s4 + $0x6b0] sm:$0xff]  ;;  %v15096_v43 = vld [vmem:[#allocation30_spill] sm:$0xff]  ;;  %v10540_v28 = vld [vmem:[%s4743_s4 + $0x6b8] sm:$0xff]  ;;  %v2188_v50 = vmul.f32 1.442695, %v2109_v24  ;;  %v10561_v51 = vpop.eup %3737  ;;  %3757 = vpow2.f32 %v2182_v29 }
 0x342   : > { %15095 = vst [vmem:[#allocation300_spill] sm:$0xff] %v10533_v11  ;;  %15098 = vst [vmem:[#allocation303_spill] sm:$0xff] %v10540_v28  ;;  %v15099_v23 = vld [vmem:[#allocation31_spill] sm:$0xff]  ;;  %v10545_v21 = vld [vmem:[%s4743_s4 + $0x6c0] sm:$0xff]  ;;  %v2190_v2 = vmul.f32 1.442695, %v2110_v47  ;;  %v10573_v17 = vpop.eup %3739  ;;  %3759 = vpow2.f32 %v2184_v8 }
 0x343   : > { %15100 = vst [vmem:[#allocation326_spill] sm:$0xff] %v10545_v21  ;;  %v15101_v55 = vld [vmem:[#allocation32_spill] sm:$0xff]  ;;  %15102 = vst [vmem:[#allocation305_spill] sm:$0xff] %v10549_v12  ;;  %v10552_v56 = vld [vmem:[%s4743_s4 + $0x6c8] sm:$0xff]  ;;  %v2192_v54 = vmul.f32 1.442695, %v2111_v52  ;;  %v10585_v19 = vpop.eup %3741  ;;  %3761 = vpow2.f32 %v2186_v9 }
 0x344   : > { %15103 = vst [vmem:[#allocation99_spill] sm:$0xff] %v10552_v56  ;;  %v15104_v22 = vld [vmem:[#allocation35_spill] sm:$0xff]  ;;  %v15106_v4 = vld [vmem:[#allocation36_spill] sm:$0xff]  ;;  %15107 = vst [vmem:[#allocation54_spill] sm:$0xff] %v10561_v51  ;;  %v2194_v44 = vmul.f32 1.442695, %v2112_v1  ;;  %v10597_v26 = vpop.eup %3743  ;;  %3763 = vpow2.f32 %v2188_v50 }
 0x345   : > { %v10557_v16 = vld [vmem:[%s4743_s4 + $0x6d0] sm:$0xff]  ;;  %v10564_v6 = vld [vmem:[%s4743_s4 + $0x6d8] sm:$0xff]  ;;  %v15109_v58 = vld [vmem:[#allocation37_spill] sm:$0xff]  ;;  %15112 = vst [vmem:[#allocation62_spill] sm:$0xff] %v10573_v17  ;;  %v2196_v49 = vmul.f32 1.442695, %v2113_v15  ;;  %v10609_v61 = vpop.eup %3745  ;;  %3765 = vpow2.f32 %v2190_v2 }
 0x346   : > { %15105 = vst [vmem:[#allocation304_spill] sm:$0xff] %v10557_v16  ;;  %15108 = vst [vmem:[#allocation306_spill] sm:$0xff] %v10564_v6  ;;  %v10569_v35 = vld [vmem:[%s4743_s4 + $0x6e0] sm:$0xff]  ;;  %v15111_v25 = vld [vmem:[#allocation42_spill] sm:$0xff]  ;;  %v2198_v40 = vmul.f32 1.442695, %v2114_v37  ;;  %v10621_v34 = vpop.eup %3747  ;;  %3767 = vpow2.f32 %v2192_v54 }
 0x347   : > { %15110 = vst [vmem:[#allocation327_spill] sm:$0xff] %v10569_v35  ;;  %v10576_v42 = vld [vmem:[%s4743_s4 + $0x6e8] sm:$0xff]  ;;  %v15114_v24 = vld [vmem:[#allocation43_spill] sm:$0xff]  ;;  %v15116_v18 = vld [vmem:[#allocation44_spill] sm:$0xff]  ;;  %v2200_v45 = vmul.f32 1.442695, %v2115_v7  ;;  %v10633_v32 = vpop.eup %3749  ;;  %3769 = vpow2.f32 %v2194_v44  ;;  %v15137_v44 = vsub.f32 %v10540_v28, %v15099_v23 }
 0x348   : > { %15113 = vst [vmem:[#allocation10_spill] sm:$0xff] %v10576_v42  ;;  %v10581_v10 = vld [vmem:[%s4743_s4 + $0x6f0] sm:$0xff]  ;;  %15117 = vst [vmem:[#allocation307_spill] sm:$0xff] %v10585_v19  ;;  %v10588_v47 = vld [vmem:[%s4743_s4 + $0x6f8] sm:$0xff]  ;;  %v10648_v7 = vpop.eup %3751  ;;  %3771 = vpow2.f32 %v2196_v49  ;;  %v15141_v49 = vsub.f32 %v10545_v21, %v15101_v55 }
 0x349   : > { %15115 = vst [vmem:[#allocation150_spill] sm:$0xff] %v10581_v10  ;;  %15118 = vst [vmem:[#allocation216_spill] sm:$0xff] %v10588_v47  ;;  %v15119_v29 = vld [vmem:[#allocation50_spill] sm:$0xff]  ;;  %v10593_v46 = vld [vmem:[%s4743_s4 + $0x700] sm:$0xff]  ;;  %3773 = vpow2.f32 %v2198_v40  ;;  %v15145_v40 = vsub.f32 %v10552_v56, %v15104_v22 }
 0x34a   : > { %v15120_v53 = vld [vmem:[#allocation51_spill] sm:$0xff]  ;;  %15121 = vst [vmem:[#allocation100_spill] sm:$0xff] %v10597_v26  ;;  %v10600_v8 = vld [vmem:[%s4743_s4 + $0x708] sm:$0xff]  ;;  %v15122_v52 = vld [vmem:[#allocation52_spill] sm:$0xff]  ;;  %v15133_v26 = vsub.f32 %v10533_v11, %v15096_v43  ;;  %v2206_v33 = vmul.f32 1.442695, %v15141_v49  ;;  %3775 = vpow2.f32 %v2200_v45  ;;  %v15151_v45 = vsub.f32 %v10557_v16, %v15106_v4 }
 0x34b   : > { %v10605_v60 = vld [vmem:[%s4743_s4 + $0x710] sm:$0xff]  ;;  %v15123_v63 = vld [vmem:[#allocation57_spill] sm:$0xff]  ;;  %15124 = vst [vmem:[#allocation151_spill] sm:$0xff] %v10609_v61  ;;  %v10612_v9 = vld [vmem:[%s4743_s4 + $0x718] sm:$0xff]  ;;  %v2204_v61 = vmul.f32 1.442695, %v15137_v44 }
 0x34c   : > { %v15125_v1 = vld [vmem:[#allocation58_spill] sm:$0xff]  ;;  %v10617_v19 = vld [vmem:[%s4743_s4 + $0x720] sm:$0xff]  ;;  %v15126_v3 = vld [vmem:[#allocation59_spill] sm:$0xff]  ;;  %15127 = vst [vmem:[#allocation308_spill] sm:$0xff] %v10621_v34  ;;  %v2202_v54 = vmul.f32 1.442695, %v15133_v26  ;;  %v10663_v26 = vpop.eup %3753 }
 0x34d   : > { %v10624_v50 = vld [vmem:[%s4743_s4 + $0x728] sm:$0xff]  ;;  %v15128_v15 = vld [vmem:[#allocation63_spill] sm:$0xff]  ;;  %v15129_v14 = vld [vmem:[#allocation64_spill] sm:$0xff]  ;;  %15130 = vst [vmem:[#allocation217_spill] sm:$0xff] %v10633_v32  ;;  %v10678_v44 = vpop.eup %3755  ;;  %v2208_v39 = vmul.f32 1.442695, %v15145_v40 }
 0x34e   : > { %v10629_v62 = vld [vmem:[%s4743_s4 + $0x730] sm:$0xff]  ;;  %v10636_v37 = vld [vmem:[%s4743_s4 + $0x738] sm:$0xff]  ;;  %v15131_v2 = vld [vmem:[#allocation65_spill] sm:$0xff]  ;;  %15134 = vst [vmem:[#allocation56_spill] sm:$0xff] %v10648_v7  ;;  %v10693_v49 = vpop.eup %3757  ;;  %3777 = vpow2.f32 %v2202_v54  ;;  %v2210_v30 = vmul.f32 1.442695, %v15151_v45  ;;  %v15157_v54 = vsub.f32 %v10564_v6, %v15109_v58 }
 0x34f   : > { %v10641_v17 = vld [vmem:[%s4743_s4 + $0x740] sm:$0xff]  ;;  %v10651_v32 = vld [vmem:[%s4743_s4 + $0x748] sm:$0xff]  ;;  %v10656_v34 = vld [vmem:[%s4743_s4 + $0x750] sm:$0xff]  ;;  %15138 = vst [vmem:[#allocation240_spill] sm:$0xff] %v10663_v26  ;;  %v10708_v40 = vpop.eup %3759  ;;  %3779 = vpow2.f32 %v2204_v61  ;;  %v15163_v61 = vsub.f32 %v10569_v35, %v15111_v25 }
 0x350   : > { %v15132_v36 = vld [vmem:[#allocation69_spill] sm:$0xff]  ;;  %v15135_v41 = vld [vmem:[#allocation70_spill] sm:$0xff]  ;;  %v15136_v13 = vld [vmem:[#allocation71_spill] sm:$0xff]  ;;  %15142 = vst [vmem:[#allocation309_spill] sm:$0xff] %v10678_v44  ;;  %v2212_v31 = vmul.f32 1.442695, %v15157_v54  ;;  %v10723_v45 = vpop.eup %3761  ;;  %3781 = vpow2.f32 %v2206_v33  ;;  %v15169_v33 = vsub.f32 %v10576_v42, %v15114_v24 }
 0x351   : > { %v10666_v43 = vld [vmem:[%s4743_s4 + $0x758] sm:$0xff]  ;;  %v10671_v0 = vld [vmem:[%s4743_s4 + $0x760] sm:$0xff]  ;;  %v10681_v23 = vld [vmem:[%s4743_s4 + $0x768] sm:$0xff]  ;;  %15146 = vst [vmem:[#allocation158_spill] sm:$0xff] %v10693_v49  ;;  %v2214_v38 = vmul.f32 1.442695, %v15163_v61  ;;  %v10738_v54 = vpop.eup %3763  ;;  %3783 = vpow2.f32 %v2208_v39  ;;  %v15175_v39 = vsub.f32 %v10581_v10, %v15116_v18 }
 0x352   : > { %v15139_v7 = vld [vmem:[#allocation76_spill] sm:$0xff]  ;;  %v15140_v51 = vld [vmem:[#allocation21_spill] sm:$0xff]  ;;  %v10686_v11 = vld [vmem:[%s4743_s4 + $0x770] sm:$0xff]  ;;  %15152 = vst [vmem:[#allocation11_spill] sm:$0xff] %v10708_v40  ;;  %v2216_v48 = vmul.f32 1.442695, %v15169_v33  ;;  %v10753_v61 = vpop.eup %3765  ;;  %3785 = vpow2.f32 %v2210_v30  ;;  %v15179_v30 = vsub.f32 %v10588_v47, %v15119_v29 }
 0x353   : > { %v15143_v26 = vld [vmem:[#allocation77_spill] sm:$0xff]  ;;  %v15144_v5 = vld [vmem:[#allocation78_spill] sm:$0xff]  ;;  %v10696_v55 = vld [vmem:[%s4743_s4 + $0x778] sm:$0xff]  ;;  %15158 = vst [vmem:[#allocation121_spill] sm:$0xff] %v10723_v45  ;;  %v2218_v59 = vmul.f32 1.442695, %v15175_v39  ;;  %v10768_v33 = vpop.eup %3767  ;;  %3787 = vpow2.f32 %v2212_v31 }
 0x354   : > { %15147 = vst [vmem:[#allocation329_spill] sm:$0xff] %v10696_v55  ;;  %v15148_v44 = vld [vmem:[#allocation23_spill] sm:$0xff]  ;;  %v10701_v28 = vld [vmem:[%s4743_s4 + $0x780] sm:$0xff]  ;;  %v10711_v22 = vld [vmem:[%s4743_s4 + $0x788] sm:$0xff]  ;;  %v10780_v18 = vpop.eup %3769  ;;  %3789 = vpow2.f32 %v2214_v38 }
 0x355   : > { %15149 = vst [vmem:[#allocation241_spill] sm:$0xff] %v10701_v28  ;;  %v15150_v27 = vld [vmem:[#allocation25_spill] sm:$0xff]  ;;  %15153 = vst [vmem:[#allocation219_spill] sm:$0xff] %v10711_v22  ;;  %v15154_v49 = vld [vmem:[#allocation26_spill] sm:$0xff]  ;;  %3791 = vpow2.f32 %v2216_v48  ;;  %v15193_v48 = vsub.f32 %v10617_v19, %v15126_v3 }
 0x356   : > { %v10716_v21 = vld [vmem:[%s4743_s4 + $0x790] sm:$0xff]  ;;  %v15156_v12 = vld [vmem:[#allocation29_spill] sm:$0xff]  ;;  %v10726_v4 = vld [vmem:[%s4743_s4 + $0x798] sm:$0xff]  ;;  %15164 = vst [vmem:[#allocation311_spill] sm:$0xff] %v10738_v54  ;;  %3793 = vpow2.f32 %v2218_v59  ;;  %v15195_v59 = vsub.f32 %v10629_v62, %v15129_v14 }
 0x357   : > { %15155 = vst [vmem:[#allocation310_spill] sm:$0xff] %v10716_v21  ;;  %15159 = vst [vmem:[#allocation60_spill] sm:$0xff] %v10726_v4  ;;  %v15160_v40 = vld [vmem:[#allocation41_spill] sm:$0xff]  ;;  %v15162_v20 = vld [vmem:[#allocation47_spill] sm:$0xff] }
 0x358   : > { %v10731_v56 = vld [vmem:[%s4743_s4 + $0x7a0] sm:$0xff]  ;;  %v10741_v58 = vld [vmem:[%s4743_s4 + $0x7a8] sm:$0xff]  ;;  %v10746_v16 = vld [vmem:[%s4743_s4 + $0x7b0] sm:$0xff]  ;;  %15170 = vst [vmem:[#allocation159_spill] sm:$0xff] %v10753_v61 }
 0x359   : > { %15161 = vst [vmem:[#allocation220_spill] sm:$0xff] %v10731_v56  ;;  %15165 = vst [vmem:[#allocation152_spill] sm:$0xff] %v10741_v58  ;;  %v10756_v25 = vld [vmem:[%s4743_s4 + $0x7b8] sm:$0xff]  ;;  %v10761_v6 = vld [vmem:[%s4743_s4 + $0x7c0] sm:$0xff]  ;;  %v2220_v58 = vmul.f32 1.442695, %v15179_v30 }
 0x35a   : > { %15167 = vst [vmem:[#allocation12_spill] sm:$0xff] %v10746_v16  ;;  %15171 = vst [vmem:[#allocation312_spill] sm:$0xff] %v10756_v25  ;;  %v10771_v24 = vld [vmem:[%s4743_s4 + $0x7c8] sm:$0xff]  ;;  %v15177_v61 = vld [vmem:[#allocation84_spill] sm:$0xff] }
 0x35b   : > { %15173 = vst [vmem:[#allocation330_spill] sm:$0xff] %v10761_v6  ;;  %15176 = vst [vmem:[#allocation154_spill] sm:$0xff] %v10768_v33  ;;  %v2151_v42 = vsub.f32 %v10771_v24, %v15177_v61  ;;  %v4303_v35 = vld [vmem:[%s4743_s4 + $0x7d0] sm:$0xff]  ;;  %v15178_v54 = vld [vmem:[#allocation49_spill] sm:$0xff]  ;;  %v15183_v24 = vsub.f32 %v10593_v46, %v15120_v53  ;;  %3795 = vpow2.f32 %v2220_v58  ;;  %v15198_v58 = vsub.f32 %v10641_v17, %v15132_v36 }
 0x35c   : > { %v2152_v25 = vsub.f32 %v4303_v35, %v15178_v54  ;;  %15180 = vst [vmem:[#allocation67_spill] sm:$0xff] %v10780_v18  ;;  %v4304_v39 = vld [vmem:[%s4743_s4 + $0x7d8] sm:$0xff]  ;;  %v15181_v10 = vld [vmem:[#allocation86_spill] sm:$0xff]  ;;  %v4305_v45 = vld [vmem:[%s4743_s4 + $0x7e0] sm:$0xff]  ;;  %v10789_v35 = vpop.eup %3771 }
 0x35d   : > { %v2153_v33 = vsub.f32 %v4304_v39, %v15181_v10  ;;  %v15182_v6 = vld [vmem:[#allocation90_spill] sm:$0xff]  ;;  %v2222_v61 = vmul.f32 1.442695, %v15183_v24  ;;  %15184 = vst [vmem:[#allocation222_spill] sm:$0xff] %v10789_v35  ;;  %v15185_v54 = vld [vmem:[#allocation91_spill] sm:$0xff]  ;;  %v15186_v47 = vld [vmem:[#allocation9_spill] sm:$0xff]  ;;  %v15187_v39 = vsub.f32 %v10600_v8, %v15122_v52  ;;  %v10798_v18 = vpop.eup %3773  ;;  %v15190_v24 = vsub.f32 %v10605_v60, %v15123_v63 }
 0x35e   : > { %v2154_v57 = vsub.f32 %v4305_v45, %v15182_v6  ;;  %v4306_v31 = vld [vmem:[%s4743_s4 + $0x7e8] sm:$0xff]  ;;  %v4307_v30 = vld [vmem:[%s4743_s4 + $0x7f0] sm:$0xff]  ;;  %15188 = vst [vmem:[#allocation313_spill] sm:$0xff] %v10798_v18  ;;  %v4308_v38 = vld [vmem:[%s4743_s4 + $0x7f8] sm:$0xff]  ;;  %v2238_v3 = vmul.f32 1.442695, %v15198_v58 }
 0x35f   : > { %v2155_v29 = vsub.f32 %v4306_v31, %v15185_v54  ;;  %v2156_v16 = vsub.f32 %v4307_v30, %v15186_v47  ;;  %v2224_v10 = vmul.f32 1.442695, %v15187_v39  ;;  %v15189_v45 = vld [vmem:[#allocation98_spill] sm:$0xff]  ;;  %v2226_v53 = vmul.f32 1.442695, %v15190_v24  ;;  %v10808_v30 = vpop.eup %3775  ;;  %v11035_v35 = vld [vmem:[%s4754_s26 + $0xb0] sm:$0xff] }
 0x360   : > { %v2157_v6 = vsub.f32 %v4308_v38, %v15189_v45  ;;  %v15191_v31 = vsub.f32 %v10612_v9, %v15125_v1  ;;  %15192 = vst [vmem:[#allocation72_spill] sm:$0xff] %v10808_v30  ;;  %v2230_v39 = vmul.f32 1.442695, %v15193_v48  ;;  %v15194_v47 = vsub.f32 %v10624_v50, %v15128_v15  ;;  %v10819_v24 = vpop.eup %3777  ;;  %v11020_v30 = vld [vmem:[%s4754_s26 + $0x98] sm:$0xff] }
 0x361   : > { %v2234_v45 = vmul.f32 1.442695, %v15195_v59  ;;  %15196 = vst [vmem:[#allocation155_spill] sm:$0xff] %v10819_v24  ;;  %3797 = vpow2.f32 %v2222_v61  ;;  %v15199_v48 = vsub.f32 %v10651_v32, %v15135_v41  ;;  %v15201_v59 = vsub.f32 %v10656_v34, %v15136_v13 }
 0x362   : > { %v2228_v54 = vmul.f32 1.442695, %v15191_v31  ;;  %v2232_v38 = vmul.f32 1.442695, %v15194_v47  ;;  %v15197_v31 = vsub.f32 %v10636_v37, %v15131_v2  ;;  %v10830_v47 = vpop.eup %3779  ;;  %3799 = vpow2.f32 %v2224_v10 }
 0x363   : > { %v2240_v15 = vmul.f32 1.442695, %v15199_v48  ;;  %15200 = vst [vmem:[#allocation314_spill] sm:$0xff] %v10830_v47  ;;  %v2242_v14 = vmul.f32 1.442695, %v15201_v59  ;;  %v15202_v61 = vsub.f32 %v10666_v43, %v15139_v7  ;;  %v10841_v58 = vpop.eup %3781  ;;  %3801 = vpow2.f32 %v2226_v53 }
 0x364   : > { %v2236_v1 = vmul.f32 1.442695, %v15197_v31  ;;  %v15203_v31 = vsub.f32 %v10671_v0, %v15140_v51  ;;  %15204 = vst [vmem:[#allocation223_spill] sm:$0xff] %v10841_v58  ;;  %v15205_v48 = vsub.f32 %v10681_v23, %v15143_v26  ;;  %v15206_v10 = vsub.f32 %v10686_v11, %v15144_v5  ;;  %v10858_v51 = vpop.eup %3783  ;;  %v15226_v58 = vld [vmem:[#allocation148_spill] sm:$0xff] }
 0x365   : > { %v2244_v2 = vmul.f32 1.442695, %v15202_v61  ;;  %v15207_v61 = vsub.f32 %v10696_v55, %v15148_v44  ;;  %15208 = vst [vmem:[#allocation75_spill] sm:$0xff] %v10858_v51  ;;  %3803 = vpow2.f32 %v2228_v54  ;;  %v15209_v53 = vsub.f32 %v10701_v28, %v15150_v27  ;;  %v11105_v28 = vld [vmem:[%s4754_s26 + $0xf8] sm:$0xff]  ;;  %v11188_v55 = vld [vmem:[%s4754_s26 + $0x140] sm:$0xff] }
 0x366   : > { %v2246_v36 = vmul.f32 1.442695, %v15203_v31  ;;  %v10846_v41 = vmul.f32 1.442695, %v15205_v48  ;;  %v10851_v59 = vmul.f32 1.442695, %v15206_v10  ;;  %v15210_v48 = vsub.f32 %v10711_v22, %v15154_v49 }
 0x367   : > { %v10856_v7 = vmul.f32 1.442695, %v15207_v61  ;;  %v10863_v31 = vmul.f32 1.442695, %v15209_v53  ;;  %v15211_v10 = vsub.f32 %v10716_v21, %v15156_v12  ;;  %v10875_v61 = vpop.eup %3785  ;;  %3805 = vpow2.f32 %v2230_v39  ;;  %v15216_v49 = vld [vmem:[#allocation146_spill] sm:$0xff]  ;;  %v15219_v12 = vld [vmem:[#allocation12_spill] sm:$0xff] }
 0x368   : > { %v10868_v26 = vmul.f32 1.442695, %v15210_v48  ;;  %15212 = vst [vmem:[#allocation243_spill] sm:$0xff] %v10875_v61  ;;  %v15213_v54 = vsub.f32 %v10726_v4, %v15160_v40  ;;  %v15214_v53 = vsub.f32 %v10731_v56, %v15162_v20  ;;  %v15215_v48 = vld [vmem:[#allocation152_spill] sm:$0xff]  ;;  %3807 = vpow2.f32 %v2232_v38  ;;  %v15220_v39 = vld [vmem:[#allocation147_spill] sm:$0xff]  ;;  %v11065_v56 = vld [vmem:[%s4754_s26 + $0xe0] sm:$0xff] }
 0x369   : > { %v10873_v5 = vmul.f32 1.442695, %v15211_v10  ;;  %v15217_v13 = vsub.f32 %v15215_v48, %v15216_v49  ;;  %v10892_v10 = vpop.eup %3787  ;;  %v15221_v52 = vsub.f32 %v15219_v12, %v15220_v39  ;;  %v15223_v40 = vld [vmem:[#allocation48_spill] sm:$0xff]  ;;  %3809 = vpow2.f32 %v2234_v45  ;;  %v11050_v48 = vld [vmem:[%s4754_s26 + $0xc8] sm:$0xff]  ;;  %v4338_v4 = vld [vmem:[%s4743_s4 + $0x600] sm:$0xff] }
 0x36a   : > { %v10880_v44 = vmul.f32 1.442695, %v15213_v54  ;;  %v10885_v27 = vmul.f32 1.442695, %v15214_v53  ;;  %15218 = vst [vmem:[#allocation315_spill] sm:$0xff] %v10892_v10  ;;  %v15222_v54 = vld [vmem:[#allocation312_spill] sm:$0xff]  ;;  %3811 = vpow2.f32 %v2236_v1 }
 0x36b   : > { %v10890_v63 = vmul.f32 1.442695, %v15217_v13  ;;  %v10897_v61 = vmul.f32 1.442695, %v15221_v52  ;;  %v15224_v51 = vsub.f32 %v15222_v54, %v15223_v40  ;;  %v15225_v53 = vld [vmem:[#allocation330_spill] sm:$0xff]  ;;  %v10909_v13 = vpop.eup %3789  ;;  %3813 = vpow2.f32 %v2238_v3  ;;  %v10944_v3 = vld [vmem:[%s4754_s26 + $0x18] sm:$0xff] }
 0x36c   : > { %v15227_v47 = vsub.f32 %v15225_v53, %v15226_v58  ;;  %15228 = vst [vmem:[#allocation164_spill] sm:$0xff] %v10909_v13  ;;  %v10911_v38 = vmul.f32 1.442695, %v2151_v42  ;;  %v10913_v39 = vmul.f32 1.442695, %v2152_v25  ;;  %v10917_v54 = vpop.eup %3791  ;;  %v10930_v42 = vld [vmem:[%s4754_s26] sm:$0xff]  ;;  %3815 = vpow2.f32 %v2240_v15 }
 0x36d   : > { %v10902_v20 = vmul.f32 1.442695, %v15224_v51  ;;  %v10915_v52 = vmul.f32 1.442695, %v2153_v33  ;;  %15229 = vst [vmem:[#allocation331_spill] sm:$0xff] %v10917_v54  ;;  %v10925_v58 = vpop.eup %3793  ;;  %vm2286_vm12 = vcmp.eq.s32.totalorder %v10930_v42, 3  ;;  %3817 = vpow2.f32 %v2242_v14 }
 0x36e   : > { %v10907_v49 = vmul.f32 1.442695, %v15227_v47  ;;  %v10919_v51 = vmul.f32 1.442695, %v2154_v57  ;;  %v10921_v47 = vmul.f32 1.442695, %v2155_v29  ;;  %v10937_v57 = vpop.eup %3795  ;;  %3819 = vpow2.f32 %v2244_v2 }
 0x36f   : > { %v10923_v53 = vmul.f32 1.442695, %v2156_v16  ;;  %15232 = vst [vmem:[#allocation225_spill] sm:$0xff] %v10925_v58  ;;  %v10927_v25 = vmul.f32 1.442695, %v2157_v6  ;;  %v10934_v33 = vld [vmem:[%s4754_s26 + $0x8] sm:$0xff]  ;;  %v10951_v29 = vpop.eup %3797  ;;  %3821 = vpow2.f32 %v2246_v36 }
 0x370   : > { %15230 = vst [vmem:[#allocation156_spill] sm:$0xff] %v10921_v47  ;;  %vm2287_vm15 = vcmp.eq.s32.totalorder %v10934_v33, 3  ;;  %15234 = vst [vmem:[#allocation161_spill] sm:$0xff] %v10937_v57  ;;  %v10940_v16 = vld [vmem:[%s4754_s26 + $0x10] sm:$0xff]  ;;  %vm2289_vm5 = vcmp.eq.s32.totalorder %v10944_v3, 3  ;;  %v10948_v6 = vld [vmem:[%s4754_s26 + $0x20] sm:$0xff]  ;;  %v10965_v40 = vpop.eup %3799  ;;  %3823 = vpow2.f32 %v10846_v41 }
 0x371   : > { %15231 = vst [vmem:[#allocation87_spill] sm:$0xff] %v10923_v53  ;;  %15233 = vst [vmem:[#allocation316_spill] sm:$0xff] %v10927_v25  ;;  %vm2288_vm2 = vcmp.eq.s32.totalorder %v10940_v16, 3  ;;  %vm2290_vm7 = vcmp.eq.s32.totalorder %v10948_v6, 3  ;;  %v10954_v1 = vld [vmem:[%s4754_s26 + $0x28] sm:$0xff]  ;;  %v10958_v15 = vld [vmem:[%s4754_s26 + $0x30] sm:$0xff]  ;;  %v10979_v58 = vpop.eup %3801  ;;  %3825 = vpow2.f32 %v10851_v59 }
 0x372   : > { %15235 = vst [vmem:[#allocation94_spill] sm:$0xff] %v10951_v29  ;;  %vm2291_vm3 = vcmp.eq.s32.totalorder %v10954_v1, 3  ;;  %vm2292_vm4 = vcmp.eq.s32.totalorder %v10958_v15, 3  ;;  %v10962_v45 = vld [vmem:[%s4754_s26 + $0x38] sm:$0xff]  ;;  %15236 = vst [vmem:[#allocation226_spill] sm:$0xff] %v10965_v40  ;;  %v10968_v29 = vld [vmem:[%s4754_s26 + $0x40] sm:$0xff]  ;;  %v10993_v13 = vpop.eup %3803  ;;  %3827 = vpow2.f32 %v10856_v7 }
 0x373   : > { %vm2293_vm13 = vcmp.eq.s32.totalorder %v10962_v45, 3  ;;  %vm2294_vm14 = vcmp.eq.s32.totalorder %v10968_v29, 3  ;;  %v10972_v14 = vld [vmem:[%s4754_s26 + $0x48] sm:$0xff]  ;;  %v10976_v57 = vld [vmem:[%s4754_s26 + $0x50] sm:$0xff]  ;;  %15237 = vst [vmem:[#allocation317_spill] sm:$0xff] %v10979_v58  ;;  %v10982_v40 = vld [vmem:[%s4754_s26 + $0x58] sm:$0xff]  ;;  %v11008_v24 = vpop.eup %3805  ;;  %3829 = vpow2.f32 %v10863_v31 }
 0x374   : > { %vm2295_vm8 = vcmp.eq.s32.totalorder %v10972_v14, 3  ;;  %vm2296_vm9 = vcmp.eq.s32.totalorder %v10976_v57, 3  ;;  %vm2297_vm10 = vcmp.eq.s32.totalorder %v10982_v40, 3  ;;  %v10986_v2 = vld [vmem:[%s4754_s26 + $0x60] sm:$0xff]  ;;  %v10990_v54 = vld [vmem:[%s4754_s26 + $0x68] sm:$0xff]  ;;  %15238 = vst [vmem:[#allocation101_spill] sm:$0xff] %v10993_v13  ;;  %v11023_v18 = vpop.eup %3807  ;;  %3831 = vpow2.f32 %v10868_v26 }
 0x375   : > { %v10997_v36 = vld [vmem:[%s4754_s26 + $0x70] sm:$0xff]  ;;  %v11001_v58 = vld [vmem:[%s4754_s26 + $0x78] sm:$0xff]  ;;  %v11005_v10 = vld [vmem:[%s4754_s26 + $0x80] sm:$0xff]  ;;  %15239 = vst [vmem:[#allocation318_spill] sm:$0xff] %v11008_v24  ;;  %v11038_v12 = vpop.eup %3809  ;;  %vm2311_vm0 = vcmp.eq.s32.totalorder %v11050_v48, 3  ;;  %3833 = vpow2.f32 %v10873_v5 }
 0x376   : > { %v11012_v41 = vld [vmem:[%s4754_s26 + $0x88] sm:$0xff]  ;;  %v11016_v13 = vld [vmem:[%s4754_s26 + $0x90] sm:$0xff]  ;;  %15240 = vst [vmem:[#allocation109_spill] sm:$0xff] %v11023_v18  ;;  %v11027_v59 = vld [vmem:[%s4754_s26 + $0xa0] sm:$0xff]  ;;  %v11053_v25 = vpop.eup %3811  ;;  %3835 = vpow2.f32 %v10880_v44 }
 0x377   : > { %v11031_v24 = vld [vmem:[%s4754_s26 + $0xa8] sm:$0xff]  ;;  %15241 = vst [vmem:[#allocation320_spill] sm:$0xff] %v11038_v12  ;;  %v11042_v7 = vld [vmem:[%s4754_s26 + $0xb8] sm:$0xff]  ;;  %v11046_v18 = vld [vmem:[%s4754_s26 + $0xc0] sm:$0xff]  ;;  %v11078_v53 = vpop.eup %3813  ;;  %3837 = vpow2.f32 %v10885_v27 }
 0x378   : > { %15242 = vst [vmem:[#allocation115_spill] sm:$0xff] %v11053_v25  ;;  %v11057_v31 = vld [vmem:[%s4754_s26 + $0xd0] sm:$0xff]  ;;  %v11061_v12 = vld [vmem:[%s4754_s26 + $0xd8] sm:$0xff]  ;;  %v11071_v25 = vsel %vm2286_vm12, %v4338_v4, 0.0  ;;  %v4339_v26 = vld [vmem:[%s4743_s4 + $0x608] sm:$0xff]  ;;  %3839 = vpow2.f32 %v10890_v63 }
 0x379   : > { %vm2312_vm1 = vcmp.eq.s32.totalorder %v11057_v31, 3  ;;  %vm2313_vm11 = vcmp.eq.s32.totalorder %v11061_v12, 3  ;;  %15243 = vst [vmem:[#allocation324_spill] sm:$0xff] %v11071_v25  ;;  %v11076_v21 = vsel %vm2287_vm15, %v4339_v26, 0.0  ;;  %15245 = vst [vmem:[#allocation328_spill] sm:$0xff] %v11078_v53  ;;  %v11082_v47 = vld [vmem:[%s4754_s26 + $0xe8] sm:$0xff]  ;;  %v11101_v25 = vpop.eup %3815 }
 0x37a   : > { %15244 = vst [vmem:[#allocation149_spill] sm:$0xff] %v11076_v21  ;;  %vm2315_vm6 = vcmp.eq.s32.totalorder %v11082_v47, 3  ;;  %v11086_v22 = vld [vmem:[%s4754_s26 + $0xf0] sm:$0xff]  ;;  %v15246_v4 = vld [vmem:[#allocation264_spill] sm:$0xff]  ;;  %v15248_v33 = vld [vmem:[#allocation266_spill] sm:$0xff]  ;;  %vm2317_vm15 = vcmp.eq.s32.totalorder %v11105_v28, 3 }
 0x37b   : > { %vm2316_vm12 = vcmp.eq.s32.totalorder %v11086_v22, 3  ;;  %v11092_v42 = vsel %vm2288_vm2, %v15246_v4, 0.0  ;;  %v11097_v26 = vsel %vm2289_vm5, %v15248_v33, 0.0  ;;  %v15250_v5 = vld [vmem:[#allocation239_spill] sm:$0xff]  ;;  %v15251_v53 = vld [vmem:[#allocation302_spill] sm:$0xff]  ;;  %15252 = vst [vmem:[#allocation160_spill] sm:$0xff] %v11101_v25 }
 0x37c   : > { %15247 = vst [vmem:[#allocation153_spill] sm:$0xff] %v11092_v42  ;;  %15249 = vst [vmem:[#allocation332_spill] sm:$0xff] %v11097_v26  ;;  %v2414_v21 = vadd.f32 %v15251_v53, %v15250_v5  ;;  %v11109_v16 = vld [vmem:[%s4754_s26 + $0x100] sm:$0xff]  ;;  %v15255_v33 = vld [vmem:[#allocation271_spill] sm:$0xff]  ;;  %v11124_v26 = vpop.eup %3817 }
 0x37d   : > { %vm2318_vm2 = vcmp.eq.s32.totalorder %v11109_v16, 3  ;;  %v15253_v3 = vld [vmem:[#allocation213_spill] sm:$0xff]  ;;  %v11120_v53 = vsel %vm2291_vm3, %v15255_v33, 0.0  ;;  %v15257_v44 = vld [vmem:[#allocation242_spill] sm:$0xff]  ;;  %15259 = vst [vmem:[#allocation334_spill] sm:$0xff] %v11124_v26  ;;  %v11132_v6 = vld [vmem:[%s4754_s26 + $0x110] sm:$0xff] }
 0x37e   : > { %v11115_v4 = vsel %vm2290_vm7, %v15253_v3, 0.0  ;;  %15256 = vst [vmem:[#allocation167_spill] sm:$0xff] %v11120_v53  ;;  %v15258_v5 = vld [vmem:[#allocation305_spill] sm:$0xff]  ;;  %v11128_v42 = vld [vmem:[%s4754_s26 + $0x108] sm:$0xff]  ;;  %vm2320_vm7 = vcmp.eq.s32.totalorder %v11132_v6, 3  ;;  %v11136_v1 = vld [vmem:[%s4754_s26 + $0x118] sm:$0xff]  ;;  %v11154_v53 = vpop.eup %3819  ;;  %3841 = vlog2.f32 %v2414_v21 }
 0x37f   : > { %15254 = vst [vmem:[#allocation333_spill] sm:$0xff] %v11115_v4  ;;  %v2415_v25 = vadd.f32 %v15258_v5, %v15257_v44  ;;  %vm2319_vm5 = vcmp.eq.s32.totalorder %v11128_v42, 3  ;;  %v15260_v3 = vld [vmem:[#allocation157_spill] sm:$0xff]  ;;  %v15262_v27 = vld [vmem:[#allocation278_spill] sm:$0xff]  ;;  %15266 = vst [vmem:[#allocation162_spill] sm:$0xff] %v11154_v53  ;;  %v11385_v28 = vsel %vm2320_vm7, %v10605_v60, 0.0 }
 0x380   : > { %v11142_v33 = vsel %vm2292_vm4, %v15260_v3, 0.0  ;;  %v11147_v44 = vsel %vm2293_vm13, %v15262_v27, 0.0  ;;  %v15264_v5 = vld [vmem:[#allocation281_spill] sm:$0xff]  ;;  %v11162_v15 = vld [vmem:[%s4754_s26 + $0x128] sm:$0xff]  ;;  %v11166_v45 = vld [vmem:[%s4754_s26 + $0x130] sm:$0xff]  ;;  %vm15296_vm13 = vcmp.eq.s32.totalorder %v11016_v13, 3 }
 0x381   : > { %15261 = vst [vmem:[#allocation172_spill] sm:$0xff] %v11142_v33  ;;  %15263 = vst [vmem:[#allocation335_spill] sm:$0xff] %v11147_v44  ;;  %v11152_v26 = vsel %vm2294_vm14, %v15264_v5, 0.0  ;;  %v11158_v4 = vld [vmem:[%s4754_s26 + $0x120] sm:$0xff]  ;;  %vm2323_vm3 = vcmp.eq.s32.totalorder %v11162_v15, 3  ;;  %v15267_v29 = vld [vmem:[#allocation282_spill] sm:$0xff]  ;;  %v11181_v44 = vpop.eup %3821  ;;  %3843 = vlog2.f32 %v2415_v25 }
 0x382   : > { %15265 = vst [vmem:[#allocation176_spill] sm:$0xff] %v11152_v26  ;;  %vm2322_vm4 = vcmp.eq.s32.totalorder %v11158_v4, 3  ;;  %v11172_v3 = vsel %vm2295_vm8, %v15267_v29, 0.0  ;;  %v15268_v63 = vld [vmem:[#allocation285_spill] sm:$0xff]  ;;  %v15270_v5 = vld [vmem:[#allocation244_spill] sm:$0xff]  ;;  %v15271_v53 = vld [vmem:[#allocation54_spill] sm:$0xff]  ;;  %3845 = vpow2.f32 %v10897_v61 }
 0x383   : > { %v11177_v27 = vsel %vm2296_vm9, %v15268_v63, 0.0  ;;  %v2416_v26 = vadd.f32 %v15271_v53, %v15270_v5  ;;  %15272 = vst [vmem:[#allocation165_spill] sm:$0xff] %v11181_v44  ;;  %v11184_v33 = vld [vmem:[%s4754_s26 + $0x138] sm:$0xff]  ;;  %v15273_v14 = vld [vmem:[#allocation287_spill] sm:$0xff]  ;;  %v15274_v29 = vld [vmem:[#allocation290_spill] sm:$0xff]  ;;  %vm15275_vm8 = vcmp.eq.s32.totalorder %v10986_v2, 3  ;;  %v11206_v44 = vpop.eup %3823 }
 0x384   : > { %15269 = vst [vmem:[#allocation336_spill] sm:$0xff] %v11177_v27  ;;  %v11194_v57 = vsel %vm2297_vm10, %v15273_v14, 0.0  ;;  %v11199_v53 = vsel %vm15275_vm8, %v15274_v29, 0.0  ;;  %v15277_v63 = vld [vmem:[#allocation322_spill] sm:$0xff]  ;;  %vm15278_vm9 = vcmp.eq.s32.totalorder %v10990_v54, 3  ;;  %15280 = vst [vmem:[#allocation337_spill] sm:$0xff] %v11206_v44 }
 0x385   : > { %15276 = vst [vmem:[#allocation180_spill] sm:$0xff] %v11199_v53  ;;  %v11204_v5 = vsel %vm15278_vm9, %v15277_v63, 0.0  ;;  %v11209_v27 = vld [vmem:[%s4754_s26 + $0x148] sm:$0xff]  ;;  %v11213_v40 = vld [vmem:[%s4754_s26 + $0x150] sm:$0xff]  ;;  %vm15282_vm8 = vcmp.eq.s32.totalorder %v10997_v36, 3  ;;  %v15284_v54 = vld [vmem:[#allocation293_spill] sm:$0xff]  ;;  %3847 = vlog2.f32 %v2416_v26 }
 0x386   : > { %15279 = vst [vmem:[#allocation122_spill] sm:$0xff] %v11204_v5  ;;  %v15281_v2 = vld [vmem:[#allocation291_spill] sm:$0xff]  ;;  %vm15285_vm9 = vcmp.eq.s32.totalorder %v11001_v58, 3  ;;  %v15287_v29 = vld [vmem:[#allocation246_spill] sm:$0xff]  ;;  %v11228_v5 = vpop.eup %3825  ;;  %v11232_v53 = vld [vmem:[%s4754_s26 + $0x158] sm:$0xff]  ;;  %vm15291_vm10 = vcmp.eq.s32.totalorder %v11005_v10, 3  ;;  %3849 = vpow2.f32 %v10902_v20 }
 0x387   : > { %v11219_v14 = vsel %vm15282_vm8, %v15281_v2, 0.0  ;;  %v11224_v21 = vsel %vm15285_vm9, %v15284_v54, 0.0  ;;  %v15288_v63 = vld [vmem:[#allocation62_spill] sm:$0xff]  ;;  %15289 = vst [vmem:[#allocation245_spill] sm:$0xff] %v11228_v5  ;;  %v11236_v36 = vld [vmem:[%s4754_s26 + $0x160] sm:$0xff]  ;;  %v15292_v61 = vld [vmem:[#allocation323_spill] sm:$0xff]  ;;  %v11258_v5 = vpop.eup %3827 }
 0x388   : > { %15283 = vst [vmem:[#allocation228_spill] sm:$0xff] %v11219_v14  ;;  %15286 = vst [vmem:[#allocation135_spill] sm:$0xff] %v11224_v21  ;;  %v2417_v44 = vadd.f32 %v15288_v63, %v15287_v29  ;;  %v11240_v58 = vld [vmem:[%s4754_s26 + $0x168] sm:$0xff]  ;;  %vm15293_vm14 = vcmp.eq.s32.totalorder %v11012_v41, 3  ;;  %v15295_v29 = vld [vmem:[#allocation296_spill] sm:$0xff]  ;;  %vm15299_vm9 = vcmp.eq.s32.totalorder %v11020_v30, 3  ;;  %v11272_v13 = vpop.eup %3829 }
 0x389   : > { %v15290_v25 = vld [vmem:[#allocation294_spill] sm:$0xff]  ;;  %v11251_v54 = vsel %vm15293_vm14, %v15292_v61, 0.0  ;;  %v11256_v63 = vsel %vm15296_vm13, %v15295_v29, 0.0  ;;  %15297 = vst [vmem:[#allocation229_spill] sm:$0xff] %v11258_v5  ;;  %v15298_v21 = vld [vmem:[#allocation297_spill] sm:$0xff]  ;;  %v15300_v10 = vld [vmem:[#allocation299_spill] sm:$0xff] }
 0x38a   : > { %v11246_v2 = vsel %vm15291_vm10, %v15290_v25, 0.0  ;;  %15294 = vst [vmem:[#allocation338_spill] sm:$0xff] %v11251_v54  ;;  %v11263_v14 = vsel %vm15299_vm9, %v15298_v21, 0.0  ;;  %vm15301_vm10 = vcmp.eq.s32.totalorder %v11027_v59, 3  ;;  %v15303_v41 = vld [vmem:[#allocation249_spill] sm:$0xff]  ;;  %v15304_v61 = vld [vmem:[#allocation307_spill] sm:$0xff]  ;;  %3851 = vlog2.f32 %v2417_v44 }
 0x38b   : > { %v11268_v25 = vsel %vm15301_vm10, %v15300_v10, 0.0  ;;  %v2418_v54 = vadd.f32 %v15304_v61, %v15303_v41  ;;  %15305 = vst [vmem:[#allocation123_spill] sm:$0xff] %v11272_v13  ;;  %v11276_v29 = vld [vmem:[%s4754_s26 + $0x170] sm:$0xff]  ;;  %v11280_v30 = vld [vmem:[%s4754_s26 + $0x178] sm:$0xff]  ;;  %v11284_v59 = vld [vmem:[%s4754_s26 + $0x180] sm:$0xff]  ;;  %vm15307_vm10 = vcmp.eq.s32.totalorder %v11031_v24, 3  ;;  %v11302_v13 = vpop.eup %3831  ;;  %3853 = vpow2.f32 %v10907_v49 }
 0x38c   : > { %15302 = vst [vmem:[#allocation136_spill] sm:$0xff] %v11268_v25  ;;  %vm2333_vm14 = vcmp.eq.s32.totalorder %v11280_v30, 3  ;;  %v15306_v21 = vld [vmem:[#allocation325_spill] sm:$0xff]  ;;  %v15308_v10 = vld [vmem:[#allocation300_spill] sm:$0xff]  ;;  %vm15309_vm8 = vcmp.eq.s32.totalorder %v11035_v35, 3  ;;  %v15310_v41 = vld [vmem:[#allocation303_spill] sm:$0xff] }
 0x38d   : > { %v11290_v26 = vsel %vm15307_vm10, %v15306_v21, 0.0  ;;  %v11295_v20 = vsel %vm15309_vm8, %v15308_v10, 0.0  ;;  %vm15311_vm13 = vcmp.eq.s32.totalorder %v11042_v7, 3  ;;  %15313 = vst [vmem:[#allocation166_spill] sm:$0xff] %v11302_v13  ;;  %v11305_v5 = vld [vmem:[%s4754_s26 + $0x188] sm:$0xff]  ;;  %vm15315_vm10 = vcmp.eq.s32.totalorder %v11046_v18, 3  ;;  %v11320_v13 = vpop.eup %3833 }
 0x38e   : > { %v11300_v61 = vsel %vm15311_vm13, %v15310_v41, 0.0  ;;  %vm2335_vm9 = vcmp.eq.s32.totalorder %v11305_v5, 3  ;;  %v15314_v25 = vld [vmem:[#allocation326_spill] sm:$0xff]  ;;  %v15316_v21 = vld [vmem:[#allocation99_spill] sm:$0xff]  ;;  %v15317_v7 = vld [vmem:[#allocation252_spill] sm:$0xff]  ;;  %15319 = vst [vmem:[#allocation184_spill] sm:$0xff] %v11320_v13  ;;  %v11338_v44 = vpop.eup %3835  ;;  %3855 = vlog2.f32 %v2418_v54 }
 0x38f   : > { %15312 = vst [vmem:[#allocation68_spill] sm:$0xff] %v11300_v61  ;;  %v11311_v24 = vsel %vm15315_vm10, %v15314_v25, 0.0  ;;  %v11316_v35 = vsel %vm2311_vm0, %v15316_v21, 0.0  ;;  %v15318_v10 = vld [vmem:[#allocation100_spill] sm:$0xff]  ;;  %v15321_v25 = vld [vmem:[#allocation306_spill] sm:$0xff]  ;;  %v15323_v21 = vld [vmem:[#allocation327_spill] sm:$0xff]  ;;  %3857 = vpow2.f32 %v10911_v38 }
 0x390   : > { %v2419_v41 = vadd.f32 %v15318_v10, %v15317_v7  ;;  %v15320_v61 = vld [vmem:[#allocation304_spill] sm:$0xff]  ;;  %v11331_v48 = vsel %vm2313_vm11, %v15321_v25, 0.0  ;;  %vm15324_vm0 = vcmp.eq.s32.totalorder %v11065_v56, 3  ;;  %v15325_v10 = vld [vmem:[#allocation10_spill] sm:$0xff]  ;;  %v15327_v12 = vld [vmem:[#allocation255_spill] sm:$0xff]  ;;  %v11371_v54 = vsel %vm2318_vm2, %v10593_v46, 0.0 }
 0x391   : > { %v11326_v18 = vsel %vm2312_vm1, %v15320_v61, 0.0  ;;  %15322 = vst [vmem:[#allocation163_spill] sm:$0xff] %v11331_v48  ;;  %v11336_v7 = vsel %vm15324_vm0, %v15323_v21, 0.0  ;;  %v11343_v49 = vsel %vm2315_vm6, %v15325_v10, 0.0  ;;  %v15326_v31 = vld [vmem:[#allocation150_spill] sm:$0xff]  ;;  %v15328_v25 = vld [vmem:[#allocation151_spill] sm:$0xff]  ;;  %v11352_v48 = vpop.eup %3837 }
 0x392   : > { %v11348_v61 = vsel %vm2316_vm12, %v15326_v31, 0.0  ;;  %v2420_v13 = vadd.f32 %v15328_v25, %v15327_v12  ;;  %v11356_v56 = vld [vmem:[%s4754_s26 + $0x190] sm:$0xff]  ;;  %v11360_v47 = vld [vmem:[%s4754_s26 + $0x198] sm:$0xff]  ;;  %v15330_v10 = vld [vmem:[#allocation258_spill] sm:$0xff]  ;;  %v11375_v12 = vpop.eup %3839  ;;  %v11380_v25 = vsel %vm2319_vm5, %v10600_v8, 0.0  ;;  %vm15333_vm6 = vcmp.eq.s32.totalorder %v11136_v1, 3 }
 0x393   : > { %vm2336_vm11 = vcmp.eq.s32.totalorder %v11356_v56, 3  ;;  %vm2337_vm1 = vcmp.eq.s32.totalorder %v11360_v47, 3  ;;  %v15329_v22 = vld [vmem:[#allocation216_spill] sm:$0xff]  ;;  %15332 = vst [vmem:[#allocation111_spill] sm:$0xff] %v11375_v12  ;;  %v11390_v46 = vsel %vm15333_vm6, %v10612_v9, 0.0  ;;  %3859 = vlog2.f32 %v2419_v41  ;;  %v3842_v16 = vpop.eup %3841  ;;  %v15337_v4 = vld [vmem:[#allocation262_spill] sm:$0xff] }
 0x394   : > { %v11366_v21 = vsel %vm2317_vm15, %v15329_v22, 0.0  ;;  %v15331_v38 = vld [vmem:[#allocation308_spill] sm:$0xff]  ;;  %3861 = vpow2.f32 %v10913_v39  ;;  %v4363_v22 = vld [vmem:[%s4754_s26 + $0x1a0] sm:$0xff]  ;;  %v11397_v8 = vsel %vm2322_vm4, %v10617_v19, 0.0  ;;  %v11402_v60 = vsel %vm2323_vm3, %v10624_v50, 0.0  ;;  %v3844_v42 = vpop.eup %3843  ;;  %v11424_v15 = vld [vmem:[%s4754_s26 + $0x1a8] sm:$0xff] }
 0x395   : > { %v2421_v31 = vadd.f32 %v15331_v38, %v15330_v10  ;;  %vm2338_vm12 = vcmp.eq.s32.totalorder %v4363_v22, 3  ;;  %vm15334_vm15 = vcmp.eq.s32.totalorder %v11166_v45, 3  ;;  %vm15335_vm2 = vcmp.eq.s32.totalorder %v11184_v33, 3  ;;  %v15338_v6 = vld [vmem:[#allocation217_spill] sm:$0xff]  ;;  %v11421_v1 = vpop.eup %3845  ;;  %v15364_v30 = vld [vmem:[#allocation270_spill] sm:$0xff] }
 0x396   : > { %v11407_v9 = vsel %vm15334_vm15, %v10629_v62, 0.0  ;;  %v11412_v39 = vsel %vm15335_vm2, %v10636_v37, 0.0  ;;  %vm15336_vm5 = vcmp.eq.s32.totalorder %v11188_v55, 3  ;;  %v2422_v50 = vadd.f32 %v15338_v6, %v15337_v4  ;;  %15339 = vst [vmem:[#allocation13_spill] sm:$0xff] %v11421_v1  ;;  %v15344_v37 = vld [vmem:[#allocation56_spill] sm:$0xff]  ;;  %v3848_v45 = vpop.eup %3847  ;;  %v15389_v47 = vld [vmem:[#allocation277_spill] sm:$0xff] }
 0x397   : > { %v11417_v19 = vsel %vm15336_vm5, %v10641_v17, 0.0  ;;  %3863 = vlog2.f32 %v2420_v13  ;;  %vm2339_vm7 = vcmp.eq.s32.totalorder %v11424_v15, 3  ;;  %vm15340_vm3 = vcmp.eq.s32.totalorder %v11209_v27, 3  ;;  %v15343_v17 = vld [vmem:[#allocation265_spill] sm:$0xff]  ;;  %v11455_v27 = vpop.eup %3849  ;;  %v15366_v6 = vld [vmem:[#allocation156_spill] sm:$0xff]  ;;  %v15405_v15 = vld [vmem:[#allocation159_spill] sm:$0xff] }
 0x398   : > { %v11430_v62 = vsel %vm15340_vm3, %v10651_v32, 0.0  ;;  %vm15341_vm4 = vcmp.eq.s32.totalorder %v11213_v40, 3  ;;  %v2423_v33 = vadd.f32 %v15344_v37, %v15343_v17  ;;  %3865 = vlog2.f32 %v2421_v31  ;;  %15351 = vst [vmem:[#allocation73_spill] sm:$0xff] %v11455_v27  ;;  %v15353_v40 = vld [vmem:[#allocation240_spill] sm:$0xff]  ;;  %v3852_v10 = vpop.eup %3851  ;;  %v11478_v31 = vld [vmem:[%s4754_s26 + $0x1b0] sm:$0xff]  ;;  %v15368_v17 = vld [vmem:[#allocation158_spill] sm:$0xff] }
 0x399   : > { %v11435_v55 = vsel %vm15341_vm4, %v10656_v34, 0.0  ;;  %3867 = vpow2.f32 %v10915_v52  ;;  %vm15345_vm8 = vcmp.eq.s32.totalorder %v11232_v53, 3  ;;  %vm15347_vm13 = vcmp.eq.s32.totalorder %v11236_v36, 3  ;;  %v15352_v52 = vld [vmem:[#allocation267_spill] sm:$0xff]  ;;  %v15356_v36 = vld [vmem:[#allocation329_spill] sm:$0xff]  ;;  %v11475_v38 = vpop.eup %3853 }
 0x39a   : > { %15342 = vst [vmem:[#allocation231_spill] sm:$0xff] %v11435_v55  ;;  %v11443_v13 = vsel %vm15345_vm8, %v10666_v43, 0.0  ;;  %v11448_v32 = vsel %vm15347_vm13, %v10671_v0, 0.0  ;;  %vm15349_vm10 = vcmp.eq.s32.totalorder %v11240_v58, 3  ;;  %3869 = vpow2.f32 %v10919_v51  ;;  %v15358_v58 = vld [vmem:[#allocation241_spill] sm:$0xff]  ;;  %15361 = vst [vmem:[#allocation14_spill] sm:$0xff] %v11475_v38 }
 0x39b   : > { %15346 = vst [vmem:[#allocation188_spill] sm:$0xff] %v11443_v13  ;;  %15348 = vst [vmem:[#allocation168_spill] sm:$0xff] %v11448_v32  ;;  %v11453_v34 = vsel %vm15349_vm10, %v10681_v23, 0.0  ;;  %v2424_v41 = vadd.f32 %v15353_v40, %v15352_v52  ;;  %v2543_v53 = vmul.f32 0.6931472, %v3842_v16  ;;  %vm15354_vm0 = vcmp.eq.s32.totalorder %v11276_v29, 3 }
 0x39c   : > { %15350 = vst [vmem:[#allocation127_spill] sm:$0xff] %v11453_v34  ;;  %v2545_v43 = vmul.f32 0.6931472, %v3844_v42  ;;  %v11463_v0 = vsel %vm15354_vm0, %v10686_v11, 0.0  ;;  %v11468_v23 = vsel %vm2333_vm14, %v15356_v36, 0.0  ;;  %vm15359_vm6 = vcmp.eq.s32.totalorder %v11284_v59, 3  ;;  %v3856_v59 = vpop.eup %3855 }
 0x39d   : > { %15355 = vst [vmem:[#allocation232_spill] sm:$0xff] %v11463_v0  ;;  %15357 = vst [vmem:[#allocation192_spill] sm:$0xff] %v11468_v23  ;;  %v11473_v51 = vsel %vm15359_vm6, %v15358_v58, 0.0  ;;  %3871 = vlog2.f32 %v2422_v50  ;;  %vm2340_vm15 = vcmp.eq.s32.totalorder %v11478_v31, 3  ;;  %v15362_v29 = vld [vmem:[#allocation219_spill] sm:$0xff]  ;;  %v15365_v16 = vld [vmem:[#allocation309_spill] sm:$0xff]  ;;  %v11495_v5 = vpop.eup %3857 }
 0x39e   : > { %15360 = vst [vmem:[#allocation169_spill] sm:$0xff] %v11473_v51  ;;  %v11484_v11 = vsel %vm2335_vm9, %v15362_v29, 0.0  ;;  %v2425_v42 = vadd.f32 %v15365_v16, %v15364_v30  ;;  %v2547_v4 = vmul.f32 0.6931472, %v3848_v45  ;;  %3873 = vlog2.f32 %v2423_v33  ;;  %v15367_v50 = vld [vmem:[#allocation273_spill] sm:$0xff]  ;;  %v15369_v52 = vld [vmem:[#allocation170_spill] sm:$0xff]  ;;  %v3860_v16 = vpop.eup %3859 }
 0x39f   : > { %15363 = vst [vmem:[#allocation289_spill] sm:$0xff] %v11484_v11  ;;  %3875 = vpow2.f32 %v15366_v6  ;;  %v2426_v37 = vadd.f32 %v15368_v17, %v15367_v50  ;;  %v15370_v40 = vld [vmem:[#allocation324_spill] sm:$0xff]  ;;  %v15372_v51 = vld [vmem:[#allocation149_spill] sm:$0xff]  ;;  %15373 = vst [vmem:[#allocation196_spill] sm:$0xff] %v11495_v5  ;;  %v2549_v29 = vmul.f32 0.6931472, %v3852_v10 }
 0x3a0   : > { %v2478_v36 = vadd.f32 %v15370_v40, %v15369_v52  ;;  %v15371_v58 = vld [vmem:[#allocation80_spill] sm:$0xff]  ;;  %3877 = vlog2.f32 %v2424_v41  ;;  %v15374_v11 = vld [vmem:[#allocation79_spill] sm:$0xff]  ;;  %v15375_v45 = vld [vmem:[#allocation85_spill] sm:$0xff]  ;;  %v11512_v40 = vpop.eup %3861  ;;  %v2553_v34 = vmul.f32 0.6931472, %v3860_v16  ;;  %vm2935_vm4 = vcmask 0  }
 0x3a1   : > { %v2479_v23 = vadd.f32 %v15372_v51, %v15371_v58  ;;  %v2670_v30 = vadd.f32 %v2543_v53, %v15374_v11  ;;  %v2671_v33 = vadd.f32 %v2545_v43, %v15375_v45  ;;  %v15376_v0 = vld [vmem:[#allocation87_spill] sm:$0xff]  ;;  %v15377_v6 = vld [vmem:[#allocation310_spill] sm:$0xff]  ;;  %v15379_v17 = vld [vmem:[#allocation60_spill] sm:$0xff]  ;;  %15383 = vst [vmem:[#allocation301_spill] sm:$0xff] %v11512_v40  ;;  %v3864_v45 = vpop.eup %3863 }
 0x3a2   : > { %3879 = vpow2.f32 %v15376_v0  ;;  %v11503_v50 = vsel %vm2336_vm11, %v15377_v6, 0.0  ;;  %v11508_v51 = vsel %vm2337_vm1, %v15379_v17, 0.0  ;;  %v15381_v52 = vld [vmem:[#allocation275_spill] sm:$0xff]  ;;  %v15384_v53 = vld [vmem:[#allocation173_spill] sm:$0xff]  ;;  %v2551_v0 = vmul.f32 0.6931472, %v3856_v59  ;;  %v3866_v40 = vpop.eup %3865 }
 0x3a3   : > { %15378 = vst [vmem:[#allocation295_spill] sm:$0xff] %v11503_v50  ;;  %15380 = vst [vmem:[#allocation74_spill] sm:$0xff] %v11508_v51  ;;  %v15382_v10 = vld [vmem:[#allocation11_spill] sm:$0xff]  ;;  %v15385_v43 = vld [vmem:[#allocation153_spill] sm:$0xff]  ;;  %3881 = vlog2.f32 %v2425_v42  ;;  %v2734_v59 = vsub.f32 %v2670_v30, %v2478_v36  ;;  %v2735_v42 = vsub.f32 %v2671_v33, %v2479_v23 }
 0x3a4   : > { %v2427_v41 = vadd.f32 %v15382_v10, %v15381_v52  ;;  %v2480_v11 = vadd.f32 %v15385_v43, %v15384_v53  ;;  %v15386_v58 = vld [vmem:[#allocation92_spill] sm:$0xff]  ;;  %v15390_v17 = vld [vmem:[#allocation121_spill] sm:$0xff]  ;;  %3883 = vlog2.f32 %v2426_v37  ;;  %v11526_v43 = vpop.eup %3867  ;;  %v15399_v36 = vld [vmem:[#allocation311_spill] sm:$0xff] }
 0x3a5   : > { %v2672_v56 = vadd.f32 %v2547_v4, %v15386_v58  ;;  %v15387_v6 = vld [vmem:[#allocation220_spill] sm:$0xff]  ;;  %v2428_v51 = vadd.f32 %v15390_v17, %v15389_v47  ;;  %v15393_v38 = vld [vmem:[#allocation105_spill] sm:$0xff]  ;;  %15394 = vst [vmem:[#allocation221_spill] sm:$0xff] %v11526_v43  ;;  %v364_v4 = vld [vmem:[%s11530_s22 + $0x8] sm:$0xff]  ;;  %v11544_v16 = vpop.eup %3869 }
 0x3a6   : > { %v11519_v50 = vsel %vm2338_vm12, %v15387_v6, 0.0  ;;  %v15391_v5 = vld [vmem:[#allocation108_spill] sm:$0xff]  ;;  %v2673_v53 = vadd.f32 %v2549_v29, %v15393_v38  ;;  %v363_v22 = vld [vmem:[%s11530_s22] sm:$0xff]  ;;  %v15400_v29 = vld [vmem:[#allocation174_spill] sm:$0xff]  ;;  %15402 = vst [vmem:[#allocation224_spill] sm:$0xff] %v11544_v16 }
 0x3a7   : > { %15388 = vst [vmem:[#allocation200_spill] sm:$0xff] %v11519_v50  ;;  %v15392_v52 = vld [vmem:[#allocation332_spill] sm:$0xff]  ;;  %v15401_v30 = vld [vmem:[#allocation333_spill] sm:$0xff]  ;;  %v2555_v6 = vmul.f32 0.6931472, %v3864_v45  ;;  %v15403_v47 = vld [vmem:[#allocation106_spill] sm:$0xff]  ;;  %v2798_v16 = vmul.f32 %v2734_v59, %v363_v22 }
 0x3a8   : > { %v2481_v10 = vadd.f32 %v15392_v52, %v15391_v5  ;;  %v15395_v58 = vld [vmem:[#allocation316_spill] sm:$0xff]  ;;  %v2482_v33 = vadd.f32 %v15401_v30, %v15400_v29  ;;  %v2674_v17 = vadd.f32 %v2551_v0, %v15403_v47  ;;  %v2736_v52 = vsub.f32 %v2672_v56, %v2480_v11  ;;  %v365_v50 = vld [vmem:[%s11530_s22 + $0x10] sm:$0xff]  ;;  %v15413_v47 = vld [vmem:[#allocation154_spill] sm:$0xff] }
 0x3a9   : > { %3885 = vpow2.f32 %v15395_v58  ;;  %v15396_v5 = vld [vmem:[#allocation152_spill] sm:$0xff]  ;;  %v3872_v58 = vpop.eup %3871  ;;  %v15404_v43 = vld [vmem:[#allocation283_spill] sm:$0xff] }
 0x3aa   : > { %v11538_v37 = vsel %vm2339_vm7, %v15396_v5, 0.0  ;;  %v15398_v38 = vld [vmem:[#allocation280_spill] sm:$0xff]  ;;  %3887 = vlog2.f32 %v2427_v41  ;;  %v2430_v5 = vadd.f32 %v15405_v15, %v15404_v43  ;;  %v15407_v32 = vld [vmem:[#allocation167_spill] sm:$0xff]  ;;  %v2737_v45 = vsub.f32 %v2673_v53, %v2481_v10  ;;  %v15412_v43 = vld [vmem:[#allocation286_spill] sm:$0xff] }
 0x3ab   : > { %15397 = vst [vmem:[#allocation204_spill] sm:$0xff] %v11538_v37  ;;  %v2429_v23 = vadd.f32 %v15399_v36, %v15398_v38  ;;  %v15406_v37 = vld [vmem:[#allocation120_spill] sm:$0xff]  ;;  %v2557_v38 = vmul.f32 0.6931472, %v3866_v40  ;;  %3889 = vlog2.f32 %v2428_v51  ;;  %v3874_v36 = vpop.eup %3873  ;;  %v2799_v41 = vmul.f32 %v2735_v42, %v364_v4  ;;  %v15414_v40 = vld [vmem:[#allocation250_spill] sm:$0xff]  ;;  %v15416_v10 = vld [vmem:[#allocation113_spill] sm:$0xff] }
 0x3ac   : > { %v2483_v27 = vadd.f32 %v15407_v32, %v15406_v37  ;;  %v15408_v29 = vld [vmem:[#allocation112_spill] sm:$0xff]  ;;  %v11553_v13 = vpop.eup %3875  ;;  %v2431_v32 = vadd.f32 %v15413_v47, %v15412_v43  ;;  %v2559_v15 = vmul.f32 0.6931472, %v3872_v58  ;;  %v2676_v53 = vadd.f32 %v2555_v6, %v15416_v10  ;;  %v367_v4 = vld [vmem:[%s11530_s22 + $0x20] sm:$0xff] }
 0x3ad   : > { %v2675_v30 = vadd.f32 %v2553_v34, %v15408_v29  ;;  %15409 = vst [vmem:[#allocation208_spill] sm:$0xff] %v11553_v13  ;;  %v366_v11 = vld [vmem:[%s11530_s22 + $0x18] sm:$0xff]  ;;  %3891 = vlog2.f32 %v2429_v23  ;;  %v3878_v34 = vpop.eup %3877  ;;  %v2738_v59 = vsub.f32 %v2674_v17, %v2482_v33  ;;  %v2800_v42 = vmul.f32 %v2736_v52, %v365_v50  ;;  %v15419_v29 = vld [vmem:[#allocation67_spill] sm:$0xff]  ;;  %v15422_v23 = vld [vmem:[#allocation118_spill] sm:$0xff] }
 0x3ae   : > { %v15410_v0 = vld [vmem:[#allocation12_spill] sm:$0xff]  ;;  %v11566_v22 = vpop.eup %3879  ;;  %v15421_v13 = vld [vmem:[#allocation335_spill] sm:$0xff]  ;;  %v2561_v47 = vmul.f32 0.6931472, %v3874_v36  ;;  %3893 = vlog2.f32 %v2430_v5  ;;  %v2677_v58 = vadd.f32 %v2557_v38, %v15422_v23  ;;  %v2801_v1 = vmul.f32 %v2737_v45, %v366_v11  ;;  %v368_v50 = vld [vmem:[%s11530_s22 + $0x28] sm:$0xff] }
 0x3af   : > { %v11559_v56 = vsel %vm2340_vm15, %v15410_v0, 0.0  ;;  %v15415_v51 = vld [vmem:[#allocation172_spill] sm:$0xff]  ;;  %15417 = vst [vmem:[#allocation212_spill] sm:$0xff] %v11566_v22  ;;  %v2862_v6 = vadd.f32 %v2799_v41, %v2798_v16  ;;  %v15423_v17 = vld [vmem:[#allocation298_spill] sm:$0xff]  ;;  %v15425_v22 = vld [vmem:[#allocation251_spill] sm:$0xff]  ;;  %3895 = vlog2.f32 %v2431_v32 }
 0x3b0   : > { %15411 = vst [vmem:[#allocation227_spill] sm:$0xff] %v11559_v56  ;;  %v2484_v37 = vadd.f32 %v15415_v51, %v15414_v40  ;;  %v15418_v31 = vld [vmem:[#allocation292_spill] sm:$0xff]  ;;  %v15420_v56 = vld [vmem:[#allocation234_spill] sm:$0xff]  ;;  %v3882_v40 = vpop.eup %3881  ;;  %v2739_v51 = vsub.f32 %v2675_v30, %v2483_v27  ;;  %v369_v27 = vld [vmem:[%s11530_s22 + $0x30] sm:$0xff] }
 0x3b1   : > { %v2432_v0 = vadd.f32 %v15419_v29, %v15418_v31  ;;  %v2485_v43 = vadd.f32 %v15421_v13, %v15420_v56  ;;  %v3884_v33 = vpop.eup %3883  ;;  %v15424_v52 = vld [vmem:[#allocation222_spill] sm:$0xff]  ;;  %v15426_v55 = vld [vmem:[#allocation176_spill] sm:$0xff]  ;;  %v2563_v29 = vmul.f32 0.6931472, %v3878_v34  ;;  %v15427_v13 = vld [vmem:[#allocation119_spill] sm:$0xff]  ;;  %v2802_v56 = vmul.f32 %v2738_v59, %v367_v4 }
 0x3b2   : > { %v2433_v10 = vadd.f32 %v15424_v52, %v15423_v17  ;;  %v2486_v31 = vadd.f32 %v15426_v55, %v15425_v22  ;;  %v2678_v36 = vadd.f32 %v2559_v15, %v15427_v13  ;;  %v2740_v5 = vsub.f32 %v2676_v53, %v2484_v37  ;;  %v15428_v16 = vld [vmem:[#allocation15_spill] sm:$0xff]  ;;  %v15429_v30 = vld [vmem:[#allocation313_spill] sm:$0xff]  ;;  %v15430_v41 = vld [vmem:[#allocation182_spill] sm:$0xff] }
 0x3b3   : > { %v2863_v12 = vadd.f32 %v2862_v6, %v2800_v42  ;;  %v11580_v38 = vpop.eup %3885  ;;  %v2434_v45 = vadd.f32 %v15429_v30, %v15428_v16  ;;  %v2487_v11 = vadd.f32 %v11172_v3, %v15430_v41  ;;  %v2565_v23 = vmul.f32 0.6931472, %v3882_v40  ;;  %v15431_v34 = vld [vmem:[#allocation125_spill] sm:$0xff]  ;;  %v370_v59 = vld [vmem:[%s11530_s22 + $0x38] sm:$0xff]  ;;  %v15436_v3 = vld [vmem:[#allocation126_spill] sm:$0xff] }
 0x3b4   : > { %3897 = vlog2.f32 %v2432_v0  ;;  %v3888_v55 = vpop.eup %3887  ;;  %v2679_v32 = vadd.f32 %v2561_v47, %v15431_v34  ;;  %v2741_v15 = vsub.f32 %v2677_v58, %v2485_v43  ;;  %v2803_v22 = vmul.f32 %v2739_v51, %v368_v50  ;;  %v15432_v42 = vld [vmem:[#allocation17_spill] sm:$0xff]  ;;  %v15433_v4 = vld [vmem:[#allocation72_spill] sm:$0xff]  ;;  %v15439_v51 = vld [vmem:[#allocation235_spill] sm:$0xff] }
 0x3b5   : > { %v2864_v37 = vadd.f32 %v2863_v12, %v2801_v1  ;;  %v3890_v53 = vpop.eup %3889  ;;  %v2435_v6 = vadd.f32 %v15433_v4, %v15432_v42  ;;  %v15434_v17 = vld [vmem:[#allocation128_spill] sm:$0xff]  ;;  %v2567_v16 = vmul.f32 0.6931472, %v3884_v33  ;;  %3899 = vlog2.f32 %v2433_v10  ;;  %v371_v43 = vld [vmem:[%s11530_s22 + $0x40] sm:$0xff]  ;;  %v15438_v12 = vld [vmem:[#allocation155_spill] sm:$0xff] }
 0x3b6   : > { %v15435_v52 = vld [vmem:[#allocation336_spill] sm:$0xff]  ;;  %v2680_v0 = vadd.f32 %v2563_v29, %v15436_v3  ;;  %v2742_v40 = vsub.f32 %v2678_v36, %v2486_v31  ;;  %v2804_v30 = vmul.f32 %v2740_v5, %v369_v27  ;;  %v2489_v50 = vadd.f32 %v11194_v57, %v15439_v51  ;;  %v372_v31 = vld [vmem:[%s11530_s22 + $0x48] sm:$0xff]  ;;  %v15441_v36 = vld [vmem:[#allocation81_spill] sm:$0xff] }
 0x3b7   : > { %v2488_v13 = vadd.f32 %v15435_v52, %v15434_v17  ;;  %v2865_v41 = vadd.f32 %v2864_v37, %v2802_v56  ;;  %v3892_v47 = vpop.eup %3891  ;;  %v15437_v58 = vld [vmem:[#allocation16_spill] sm:$0xff]  ;;  %v2569_v34 = vmul.f32 0.6931472, %v3888_v55  ;;  %3901 = vlog2.f32 %v2434_v45  ;;  %v15442_v5 = vld [vmem:[#allocation314_spill] sm:$0xff]  ;;  %v15443_v27 = vld [vmem:[#allocation175_spill] sm:$0xff] }
 0x3b8   : > { %v2436_v1 = vadd.f32 %v15438_v12, %v15437_v58  ;;  %v15440_v42 = vld [vmem:[#allocation132_spill] sm:$0xff]  ;;  %v2743_v10 = vsub.f32 %v2679_v32, %v2487_v11  ;;  %v2805_v4 = vmul.f32 %v2741_v15, %v370_v59  ;;  %v3894_v29 = vpop.eup %3893  ;;  %v2437_v56 = vadd.f32 %v15442_v5, %v15441_v36  ;;  %v15445_v58 = vld [vmem:[#allocation143_spill] sm:$0xff]  ;;  %v15450_v36 = vld [vmem:[#allocation133_spill] sm:$0xff] }
 0x3b9   : > { %v2681_v33 = vadd.f32 %v2565_v23, %v15440_v42  ;;  %v2866_v17 = vadd.f32 %v2865_v41, %v2803_v22  ;;  %v15444_v37 = vld [vmem:[#allocation180_spill] sm:$0xff]  ;;  %v2571_v3 = vmul.f32 0.6931472, %v3890_v53  ;;  %3903 = vlog2.f32 %v2435_v6  ;;  %v3896_v23 = vpop.eup %3895  ;;  %v373_v11 = vld [vmem:[%s11530_s22 + $0x50] sm:$0xff]  ;;  %v15449_v41 = vld [vmem:[#allocation122_spill] sm:$0xff] }
 0x3ba   : > { %v2490_v52 = vadd.f32 %v15444_v37, %v15443_v27  ;;  %v2682_v57 = vadd.f32 %v2567_v16, %v15445_v58  ;;  %v2744_v45 = vsub.f32 %v2680_v0, %v2488_v13  ;;  %v2806_v55 = vmul.f32 %v2742_v40, %v371_v43  ;;  %v15446_v32 = vld [vmem:[#allocation19_spill] sm:$0xff]  ;;  %v374_v13 = vld [vmem:[%s11530_s22 + $0x58] sm:$0xff]  ;;  %v15451_v0 = vld [vmem:[#allocation237_spill] sm:$0xff] }
 0x3bb   : > { %v2867_v12 = vadd.f32 %v2866_v17, %v2804_v30  ;;  %v15447_v15 = vld [vmem:[#allocation223_spill] sm:$0xff]  ;;  %v2573_v42 = vmul.f32 0.6931472, %v3892_v47  ;;  %3905 = vlog2.f32 %v2436_v1  ;;  %v2683_v53 = vadd.f32 %v2569_v34, %v15450_v36  ;;  %v15453_v43 = vld [vmem:[#allocation177_spill] sm:$0xff]  ;;  %v15454_v17 = vld [vmem:[#allocation228_spill] sm:$0xff] }
 0x3bc   : > { %v2438_v22 = vadd.f32 %v15447_v15, %v15446_v32  ;;  %v15448_v59 = vld [vmem:[#allocation183_spill] sm:$0xff]  ;;  %v2745_v6 = vsub.f32 %v2681_v33, %v2489_v50  ;;  %v2807_v5 = vmul.f32 %v2743_v10, %v372_v31  ;;  %v2492_v37 = vadd.f32 %v15454_v17, %v15453_v43  ;;  %v15455_v32 = vld [vmem:[#allocation134_spill] sm:$0xff]  ;;  %v375_v50 = vld [vmem:[%s11530_s22 + $0x60] sm:$0xff] }
 0x3bd   : > { %v2491_v51 = vadd.f32 %v15449_v41, %v15448_v59  ;;  %v2868_v27 = vadd.f32 %v2867_v12, %v2805_v4  ;;  %v15452_v40 = vld [vmem:[#allocation75_spill] sm:$0xff]  ;;  %v2575_v58 = vmul.f32 0.6931472, %v3894_v29  ;;  %3907 = vlog2.f32 %v2437_v56  ;;  %v15456_v33 = vld [vmem:[#allocation82_spill] sm:$0xff]  ;;  %v15458_v31 = vld [vmem:[#allocation116_spill] sm:$0xff] }
 0x3be   : > { %v3898_v16 = vpop.eup %3897  ;;  %v2439_v30 = vadd.f32 %v15452_v40, %v15451_v0  ;;  %v2684_v47 = vadd.f32 %v2571_v3, %v15455_v32  ;;  %v2746_v1 = vsub.f32 %v2682_v57, %v2490_v52  ;;  %v2808_v15 = vmul.f32 %v2744_v45, %v373_v11  ;;  %v15457_v10 = vld [vmem:[#allocation243_spill] sm:$0xff]  ;;  %v376_v52 = vld [vmem:[%s11530_s22 + $0x68] sm:$0xff]  ;;  %v15461_v57 = vld [vmem:[#allocation20_spill] sm:$0xff] }
 0x3bf   : > { %v2869_v59 = vadd.f32 %v2868_v27, %v2806_v55  ;;  %v3900_v34 = vpop.eup %3899  ;;  %v2440_v4 = vadd.f32 %v15457_v10, %v15456_v33  ;;  %v15459_v12 = vld [vmem:[#allocation135_spill] sm:$0xff]  ;;  %v2577_v36 = vmul.f32 0.6931472, %v3896_v23  ;;  %3909 = vlog2.f32 %v2438_v22  ;;  %v15463_v11 = vld [vmem:[#allocation178_spill] sm:$0xff]  ;;  %v15464_v32 = vld [vmem:[#allocation144_spill] sm:$0xff] }
 0x3c0   : > { %v2493_v41 = vadd.f32 %v15459_v12, %v15458_v31  ;;  %v15460_v0 = vld [vmem:[#allocation139_spill] sm:$0xff]  ;;  %v2747_v56 = vsub.f32 %v2683_v53, %v2491_v51  ;;  %v2809_v40 = vmul.f32 %v2745_v6, %v374_v13  ;;  %v2494_v27 = vadd.f32 %v11246_v2, %v15463_v11  ;;  %v15465_v53 = vld [vmem:[#allocation88_spill] sm:$0xff]  ;;  %v15467_v13 = vld [vmem:[#allocation185_spill] sm:$0xff] }
 0x3c1   : > { %v2685_v29 = vadd.f32 %v2573_v42, %v15460_v0  ;;  %v2870_v43 = vadd.f32 %v2869_v59, %v2807_v5  ;;  %v3902_v3 = vpop.eup %3901  ;;  %v15462_v45 = vld [vmem:[#allocation315_spill] sm:$0xff]  ;;  %v2579_v17 = vmul.f32 0.6931472, %v3898_v16  ;;  %3911 = vlog2.f32 %v2439_v30  ;;  %v15466_v6 = vld [vmem:[#allocation164_spill] sm:$0xff]  ;;  %v15468_v59 = vld [vmem:[#allocation338_spill] sm:$0xff] }
 0x3c2   : > { %v2441_v55 = vadd.f32 %v15462_v45, %v15461_v57  ;;  %v2686_v23 = vadd.f32 %v2575_v58, %v15464_v32  ;;  %v2748_v22 = vsub.f32 %v2684_v47, %v2492_v37  ;;  %v2810_v33 = vmul.f32 %v2746_v1, %v375_v50  ;;  %v377_v51 = vld [vmem:[%s11530_s22 + $0x70] sm:$0xff]  ;;  %v15469_v0 = vld [vmem:[#allocation140_spill] sm:$0xff]  ;;  %v15470_v47 = vld [vmem:[#allocation238_spill] sm:$0xff] }
 0x3c3   : > { %v2871_v10 = vadd.f32 %v2870_v43, %v2808_v15  ;;  %v3904_v42 = vpop.eup %3903  ;;  %v2442_v5 = vadd.f32 %v15466_v6, %v15465_v53  ;;  %v2495_v31 = vadd.f32 %v15468_v59, %v15467_v13  ;;  %v2581_v12 = vmul.f32 0.6931472, %v3900_v34  ;;  %v378_v37 = vld [vmem:[%s11530_s22 + $0x78] sm:$0xff]  ;;  %v15471_v1 = vld [vmem:[#allocation331_spill] sm:$0xff]  ;;  %v15472_v50 = vld [vmem:[#allocation253_spill] sm:$0xff] }
 0x3c4   : > { %3913 = vlog2.f32 %v2440_v4  ;;  %v2687_v2 = vadd.f32 %v2577_v36, %v15469_v0  ;;  %v2749_v16 = vsub.f32 %v2685_v29, %v2493_v41  ;;  %v2811_v30 = vmul.f32 %v2747_v56, %v376_v52  ;;  %v15473_v11 = vld [vmem:[#allocation141_spill] sm:$0xff]  ;;  %v15474_v29 = vld [vmem:[#allocation24_spill] sm:$0xff]  ;;  %v15476_v52 = vld [vmem:[#allocation114_spill] sm:$0xff] }
 0x3c5   : > { %v2872_v57 = vadd.f32 %v2871_v10, %v2809_v40  ;;  %v3906_v58 = vpop.eup %3905  ;;  %v2443_v15 = vadd.f32 %v15471_v1, %v15470_v47  ;;  %v2496_v43 = vadd.f32 %v11256_v63, %v15472_v50  ;;  %v2583_v45 = vmul.f32 0.6931472, %v3902_v3  ;;  %v379_v41 = vld [vmem:[%s11530_s22 + $0x80] sm:$0xff]  ;;  %v15477_v13 = vld [vmem:[#allocation142_spill] sm:$0xff]  ;;  %v15481_v0 = vld [vmem:[#allocation136_spill] sm:$0xff] }
 0x3c6   : > { %3915 = vlog2.f32 %v2441_v55  ;;  %v2688_v34 = vadd.f32 %v2579_v17, %v15473_v11  ;;  %v2750_v4 = vsub.f32 %v2686_v23, %v2494_v27  ;;  %v2812_v32 = vmul.f32 %v2748_v22, %v377_v51  ;;  %v15475_v56 = vld [vmem:[#allocation225_spill] sm:$0xff]  ;;  %v380_v27 = vld [vmem:[%s11530_s22 + $0x88] sm:$0xff] }
 0x3c7   : > { %v2873_v53 = vadd.f32 %v2872_v57, %v2810_v33  ;;  %v3908_v36 = vpop.eup %3907  ;;  %v2444_v40 = vadd.f32 %v15475_v56, %v15474_v29  ;;  %v2497_v10 = vadd.f32 %v11263_v14, %v15476_v52  ;;  %v2585_v6 = vmul.f32 0.6931472, %v3904_v42  ;;  %v15478_v23 = vld [vmem:[#allocation89_spill] sm:$0xff]  ;;  %v15480_v51 = vld [vmem:[#allocation254_spill] sm:$0xff]  ;;  %v15486_v29 = vld [vmem:[#allocation27_spill] sm:$0xff] }
 0x3c8   : > { %3917 = vlog2.f32 %v2442_v5  ;;  %v2689_v63 = vadd.f32 %v2581_v12, %v15477_v13  ;;  %v2751_v3 = vsub.f32 %v2687_v2, %v2495_v31  ;;  %v2813_v55 = vmul.f32 %v2749_v16, %v378_v37  ;;  %v15479_v22 = vld [vmem:[#allocation161_spill] sm:$0xff]  ;;  %v381_v31 = vld [vmem:[%s11530_s22 + $0x90] sm:$0xff]  ;;  %v15483_v2 = vld [vmem:[#allocation28_spill] sm:$0xff] }
 0x3c9   : > { %v2874_v59 = vadd.f32 %v2873_v53, %v2811_v30  ;;  %v3910_v17 = vpop.eup %3909  ;;  %v2445_v33 = vadd.f32 %v15479_v22, %v15478_v23  ;;  %v2498_v57 = vadd.f32 %v15481_v0, %v15480_v51  ;;  %v2587_v47 = vmul.f32 0.6931472, %v3906_v58  ;;  %v15482_v1 = vld [vmem:[#allocation145_spill] sm:$0xff]  ;;  %v15484_v16 = vld [vmem:[#allocation94_spill] sm:$0xff]  ;;  %v15494_v51 = vld [vmem:[#allocation68_spill] sm:$0xff] }
 0x3ca   : > { %3919 = vlog2.f32 %v2443_v15  ;;  %v2690_v14 = vadd.f32 %v2583_v45, %v15482_v1  ;;  %v2752_v42 = vsub.f32 %v2688_v34, %v2496_v43  ;;  %v2814_v5 = vmul.f32 %v2750_v4, %v379_v41  ;;  %v15485_v37 = vld [vmem:[#allocation186_spill] sm:$0xff]  ;;  %v382_v43 = vld [vmem:[%s11530_s22 + $0x98] sm:$0xff]  ;;  %v15487_v34 = vld [vmem:[#allocation191_spill] sm:$0xff] }
 0x3cb   : > { %v2875_v50 = vadd.f32 %v2874_v59, %v2812_v32  ;;  %v3912_v12 = vpop.eup %3911  ;;  %v2446_v30 = vadd.f32 %v15484_v16, %v15483_v2  ;;  %v2499_v11 = vadd.f32 %v11290_v26, %v15485_v37  ;;  %v2589_v53 = vmul.f32 0.6931472, %v3908_v36  ;;  %v15488_v4 = vld [vmem:[#allocation226_spill] sm:$0xff]  ;;  %v15489_v41 = vld [vmem:[#allocation129_spill] sm:$0xff] }
 0x3cc   : > { %3921 = vlog2.f32 %v2444_v40  ;;  %v2691_v58 = vadd.f32 %v2585_v6, %v15486_v29  ;;  %v2753_v15 = vsub.f32 %v2689_v63, %v2497_v10  ;;  %v2815_v56 = vmul.f32 %v2751_v3, %v380_v27  ;;  %v15490_v23 = vld [vmem:[#allocation30_spill] sm:$0xff]  ;;  %v383_v10 = vld [vmem:[%s11530_s22 + $0xa0] sm:$0xff]  ;;  %v15493_v27 = vld [vmem:[#allocation55_spill] sm:$0xff] }
 0x3cd   : > { %v2876_v52 = vadd.f32 %v2875_v50, %v2813_v55  ;;  %v2447_v32 = vadd.f32 %v15488_v4, %v15487_v34  ;;  %v2500_v13 = vadd.f32 %v11295_v20, %v15489_v41  ;;  %v2591_v59 = vmul.f32 0.6931472, %v3910_v17  ;;  %v15491_v63 = vld [vmem:[#allocation22_spill] sm:$0xff]  ;;  %v15492_v3 = vld [vmem:[#allocation317_spill] sm:$0xff]  ;;  %v15495_v50 = vld [vmem:[#allocation31_spill] sm:$0xff] }
 0x3ce   : > { %v3914_v45 = vpop.eup %3913  ;;  %3923 = vlog2.f32 %v2445_v33  ;;  %v2692_v26 = vadd.f32 %v2587_v47, %v15490_v23  ;;  %v2754_v36 = vsub.f32 %v2690_v14, %v2498_v57  ;;  %v2816_v40 = vmul.f32 %v2752_v42, %v381_v31  ;;  %v384_v57 = vld [vmem:[%s11530_s22 + $0xa8] sm:$0xff]  ;;  %v15496_v14 = vld [vmem:[#allocation33_spill] sm:$0xff]  ;;  %v15498_v31 = vld [vmem:[#allocation179_spill] sm:$0xff] }
 0x3cf   : > { %v2877_v22 = vadd.f32 %v2876_v52, %v2814_v5  ;;  %v2448_v55 = vadd.f32 %v15492_v3, %v15491_v63  ;;  %v2501_v0 = vadd.f32 %v15494_v51, %v15493_v27  ;;  %v2593_v1 = vmul.f32 0.6931472, %v3912_v12  ;;  %v15497_v42 = vld [vmem:[#allocation101_spill] sm:$0xff]  ;;  %v15499_v29 = vld [vmem:[#allocation32_spill] sm:$0xff]  ;;  %v15503_v23 = vld [vmem:[#allocation35_spill] sm:$0xff] }
 0x3d0   : > { %v3916_v6 = vpop.eup %3915  ;;  %3925 = vlog2.f32 %v2446_v30  ;;  %v2693_v20 = vadd.f32 %v2589_v53, %v15495_v50  ;;  %v2755_v17 = vsub.f32 %v2691_v58, %v2499_v11  ;;  %v2817_v33 = vmul.f32 %v2753_v15, %v382_v43  ;;  %v385_v11 = vld [vmem:[%s11530_s22 + $0xb0] sm:$0xff]  ;;  %v15501_v15 = vld [vmem:[#allocation318_spill] sm:$0xff]  ;;  %v15507_v27 = vld [vmem:[#allocation36_spill] sm:$0xff] }
 0x3d1   : > { %v2878_v2 = vadd.f32 %v2877_v22, %v2815_v56  ;;  %v2449_v5 = vadd.f32 %v15497_v42, %v15496_v14  ;;  %v2502_v16 = vadd.f32 %v11311_v24, %v15498_v31  ;;  %v2595_v37 = vmul.f32 0.6931472, %v3914_v45  ;;  %v15500_v58 = vld [vmem:[#allocation95_spill] sm:$0xff]  ;;  %v15508_v50 = vld [vmem:[#allocation34_spill] sm:$0xff]  ;;  %v15512_v42 = vld [vmem:[#allocation37_spill] sm:$0xff] }
 0x3d2   : > { %v3918_v47 = vpop.eup %3917  ;;  %3927 = vlog2.f32 %v2447_v32  ;;  %v2694_v12 = vadd.f32 %v2591_v59, %v15499_v29  ;;  %v2756_v30 = vsub.f32 %v2692_v26, %v2500_v13  ;;  %v2818_v52 = vmul.f32 %v2754_v36, %v383_v10  ;;  %v15502_v43 = vld [vmem:[#allocation187_spill] sm:$0xff]  ;;  %v386_v13 = vld [vmem:[%s11530_s22 + $0xb8] sm:$0xff]  ;;  %v15504_v26 = vld [vmem:[#allocation193_spill] sm:$0xff] }
 0x3d3   : > { %v2879_v34 = vadd.f32 %v2878_v2, %v2816_v40  ;;  %v2450_v56 = vadd.f32 %v15501_v15, %v15500_v58  ;;  %v2503_v4 = vadd.f32 %v11316_v35, %v15502_v43  ;;  %v2597_v41 = vmul.f32 0.6931472, %v3916_v6  ;;  %v15505_v36 = vld [vmem:[#allocation109_spill] sm:$0xff]  ;;  %v15511_v2 = vld [vmem:[#allocation163_spill] sm:$0xff]  ;;  %v15513_v29 = vld [vmem:[#allocation96_spill] sm:$0xff] }
 0x3d4   : > { %v3920_v53 = vpop.eup %3919  ;;  %3929 = vlog2.f32 %v2448_v55  ;;  %v2695_v24 = vadd.f32 %v2593_v1, %v15503_v23  ;;  %v2757_v45 = vsub.f32 %v2693_v20, %v2501_v0  ;;  %v2819_v32 = vmul.f32 %v2755_v17, %v384_v57  ;;  %v15506_v10 = vld [vmem:[#allocation137_spill] sm:$0xff]  ;;  %v15509_v20 = vld [vmem:[#allocation320_spill] sm:$0xff]  ;;  %v15516_v58 = vld [vmem:[#allocation42_spill] sm:$0xff] }
 0x3d5   : > { %v2880_v22 = vadd.f32 %v2879_v34, %v2817_v33  ;;  %v2451_v40 = vadd.f32 %v15505_v36, %v15504_v26  ;;  %v2504_v63 = vadd.f32 %v11326_v18, %v15506_v10  ;;  %v2599_v3 = vmul.f32 0.6931472, %v3918_v47  ;;  %v387_v0 = vld [vmem:[%s11530_s22 + $0xc0] sm:$0xff]  ;;  %v15517_v23 = vld [vmem:[#allocation38_spill] sm:$0xff]  ;;  %v15520_v26 = vld [vmem:[#allocation43_spill] sm:$0xff] }
 0x3d6   : > { %v3922_v59 = vpop.eup %3921  ;;  %3931 = vlog2.f32 %v2449_v5  ;;  %v2696_v35 = vadd.f32 %v2595_v37, %v15507_v27  ;;  %v2758_v6 = vsub.f32 %v2694_v12, %v2502_v16  ;;  %v2820_v55 = vmul.f32 %v2756_v30, %v385_v11  ;;  %v15510_v33 = vld [vmem:[#allocation61_spill] sm:$0xff]  ;;  %v388_v16 = vld [vmem:[%s11530_s22 + $0xc8] sm:$0xff]  ;;  %v15514_v12 = vld [vmem:[#allocation115_spill] sm:$0xff] }
 0x3d7   : > { %v2881_v51 = vadd.f32 %v2880_v22, %v2818_v52  ;;  %v2452_v17 = vadd.f32 %v15509_v20, %v15508_v50  ;;  %v2505_v57 = vadd.f32 %v15511_v2, %v15510_v33  ;;  %v2601_v14 = vmul.f32 0.6931472, %v3920_v53  ;;  %v15515_v52 = vld [vmem:[#allocation138_spill] sm:$0xff]  ;;  %v15522_v27 = vld [vmem:[#allocation160_spill] sm:$0xff]  ;;  %v391_v33 = vld [vmem:[%s11530_s22 + $0xe0] sm:$0xff] }
 0x3d8   : > { %v3924_v1 = vpop.eup %3923  ;;  %3933 = vlog2.f32 %v2450_v56  ;;  %v2697_v18 = vadd.f32 %v2597_v41, %v15512_v42  ;;  %v2759_v47 = vsub.f32 %v2695_v24, %v2503_v4  ;;  %v2821_v5 = vmul.f32 %v2757_v45, %v386_v13  ;;  %v389_v4 = vld [vmem:[%s11530_s22 + $0xd0] sm:$0xff]  ;;  %v15518_v24 = vld [vmem:[#allocation328_spill] sm:$0xff]  ;;  %v15525_v2 = vld [vmem:[#allocation97_spill] sm:$0xff] }
 0x3d9   : > { %v2882_v31 = vadd.f32 %v2881_v51, %v2819_v32  ;;  %v2453_v30 = vadd.f32 %v15514_v12, %v15513_v29  ;;  %v2506_v34 = vadd.f32 %v11336_v7, %v15515_v52  ;;  %v2603_v11 = vmul.f32 0.6931472, %v3922_v59  ;;  %v15519_v32 = vld [vmem:[#allocation189_spill] sm:$0xff]  ;;  %v15527_v42 = vld [vmem:[#allocation190_spill] sm:$0xff] }
 0x3da   : > { %v3926_v37 = vpop.eup %3925  ;;  %3935 = vlog2.f32 %v2451_v40  ;;  %v2698_v53 = vadd.f32 %v2599_v3, %v15516_v58  ;;  %v2760_v15 = vsub.f32 %v2696_v35, %v2504_v63  ;;  %v2822_v56 = vmul.f32 %v2758_v6, %v387_v0  ;;  %v390_v63 = vld [vmem:[%s11530_s22 + $0xd8] sm:$0xff]  ;;  %v15521_v3 = vld [vmem:[#allocation195_spill] sm:$0xff]  ;;  %v392_v12 = vld [vmem:[%s11530_s22 + $0xe8] sm:$0xff] }
 0x3db   : > { %v2883_v43 = vadd.f32 %v2882_v31, %v2820_v55  ;;  %v2454_v45 = vadd.f32 %v15518_v24, %v15517_v23  ;;  %v2507_v22 = vadd.f32 %v11343_v49, %v15519_v32  ;;  %v2605_v13 = vmul.f32 0.6931472, %v3924_v1  ;;  %v15523_v6 = vld [vmem:[#allocation256_spill] sm:$0xff]  ;;  %v15530_v52 = vld [vmem:[#allocation162_spill] sm:$0xff]  ;;  %v393_v23 = vld [vmem:[%s11530_s22 + $0xf0] sm:$0xff] }
 0x3dc   : > { %v3928_v41 = vpop.eup %3927  ;;  %3937 = vlog2.f32 %v2452_v17  ;;  %v2699_v7 = vadd.f32 %v2601_v14, %v15520_v26  ;;  %v2761_v59 = vsub.f32 %v2697_v18, %v2505_v57  ;;  %v2823_v36 = vmul.f32 %v2759_v47, %v388_v16  ;;  %v15524_v0 = vld [vmem:[#allocation44_spill] sm:$0xff]  ;;  %v15526_v57 = vld [vmem:[#allocation334_spill] sm:$0xff]  ;;  %v15533_v24 = vld [vmem:[#allocation45_spill] sm:$0xff] }
 0x3dd   : > { %v2884_v40 = vadd.f32 %v2883_v43, %v2821_v5  ;;  %v2455_v35 = vadd.f32 %v15522_v27, %v15521_v3  ;;  %v2508_v55 = vadd.f32 %v11348_v61, %v15523_v6  ;;  %v2607_v51 = vmul.f32 0.6931472, %v3926_v37  ;;  %v15528_v5 = vld [vmem:[#allocation50_spill] sm:$0xff]  ;;  %v15537_v3 = vld [vmem:[#allocation197_spill] sm:$0xff]  ;;  %v15539_v6 = vld [vmem:[#allocation259_spill] sm:$0xff] }
 0x3de   : > { %v3930_v10 = vpop.eup %3929  ;;  %3939 = vlog2.f32 %v2453_v30  ;;  %v2700_v49 = vadd.f32 %v2603_v11, %v15524_v0  ;;  %v2762_v1 = vsub.f32 %v2698_v53, %v2506_v34  ;;  %v2824_v50 = vmul.f32 %v2760_v15, %v389_v4  ;;  %v15529_v30 = vld [vmem:[#allocation39_spill] sm:$0xff]  ;;  %v15531_v11 = vld [vmem:[#allocation257_spill] sm:$0xff] }
 0x3df   : > { %v2885_v20 = vadd.f32 %v2884_v40, %v2822_v56  ;;  %v2456_v14 = vadd.f32 %v15526_v57, %v15525_v2  ;;  %v2509_v18 = vadd.f32 %v11366_v21, %v15527_v42  ;;  %v2609_v47 = vmul.f32 0.6931472, %v3928_v41  ;;  %v15532_v15 = vld [vmem:[#allocation51_spill] sm:$0xff]  ;;  %v15538_v27 = vld [vmem:[#allocation337_spill] sm:$0xff] }
 0x3e0   : > { %v3932_v17 = vpop.eup %3931  ;;  %3941 = vlog2.f32 %v2454_v45  ;;  %v2701_v61 = vadd.f32 %v2605_v13, %v15528_v5  ;;  %v2763_v31 = vsub.f32 %v2699_v7, %v2507_v22  ;;  %v2825_v37 = vmul.f32 %v2761_v59, %v390_v63  ;;  %v15534_v45 = vld [vmem:[#allocation165_spill] sm:$0xff]  ;;  %v15535_v22 = vld [vmem:[#allocation194_spill] sm:$0xff]  ;;  %v15536_v7 = vld [vmem:[#allocation52_spill] sm:$0xff] }
 0x3e1   : > { %v2886_v16 = vadd.f32 %v2885_v20, %v2823_v36  ;;  %v2457_v34 = vadd.f32 %v15530_v52, %v15529_v30  ;;  %v2510_v58 = vadd.f32 %v11371_v54, %v15531_v11  ;;  %v2611_v53 = vmul.f32 0.6931472, %v3930_v10  ;;  %v394_v63 = vld [vmem:[%s11530_s22 + $0xf8] sm:$0xff]  ;;  %v15540_v0 = vld [vmem:[#allocation57_spill] sm:$0xff] }
 0x3e2   : > { %v3934_v29 = vpop.eup %3933  ;;  %3943 = vlog2.f32 %v2455_v35  ;;  %v2702_v21 = vadd.f32 %v2607_v51, %v15532_v15  ;;  %v2764_v56 = vsub.f32 %v2700_v49, %v2508_v55  ;;  %v2826_v43 = vmul.f32 %v2762_v1, %v391_v33  ;;  %v15541_v33 = vld [vmem:[#allocation103_spill] sm:$0xff]  ;;  %v15542_v2 = vld [vmem:[#allocation245_spill] sm:$0xff] }
 0x3e3   : > { %v2887_v41 = vadd.f32 %v2886_v16, %v2824_v50  ;;  %v2458_v32 = vadd.f32 %v15534_v45, %v15533_v24  ;;  %v2511_v13 = vadd.f32 %v11380_v25, %v15535_v22  ;;  %v2613_v26 = vmul.f32 0.6931472, %v3932_v17  ;;  %v395_v17 = vld [vmem:[%s11530_s22 + $0x100] sm:$0xff]  ;;  %v396_v16 = vld [vmem:[%s11530_s22 + $0x108] sm:$0xff]  ;;  %v15551_v24 = vld [vmem:[#allocation203_spill] sm:$0xff] }
 0x3e4   : > { %v3936_v4 = vpop.eup %3935  ;;  %3945 = vlog2.f32 %v2456_v14  ;;  %v2703_v54 = vadd.f32 %v2609_v47, %v15536_v7  ;;  %v2765_v59 = vsub.f32 %v2701_v61, %v2509_v18  ;;  %v2827_v36 = vmul.f32 %v2763_v31, %v392_v12  ;;  %v15543_v14 = vld [vmem:[#allocation199_spill] sm:$0xff]  ;;  %v15544_v47 = vld [vmem:[#allocation58_spill] sm:$0xff]  ;;  %v15546_v12 = vld [vmem:[#allocation229_spill] sm:$0xff] }
 0x3e5   : > { %v2888_v40 = vadd.f32 %v2887_v41, %v2825_v37  ;;  %v2459_v35 = vadd.f32 %v15538_v27, %v15537_v3  ;;  %v2512_v55 = vadd.f32 %v11385_v28, %v15539_v6  ;;  %v2615_v51 = vmul.f32 0.6931472, %v3934_v29  ;;  %v15545_v29 = vld [vmem:[#allocation104_spill] sm:$0xff]  ;;  %v15547_v52 = vld [vmem:[#allocation181_spill] sm:$0xff]  ;;  %v15552_v22 = vld [vmem:[#allocation63_spill] sm:$0xff] }
 0x3e6   : > { %v3938_v10 = vpop.eup %3937  ;;  %3947 = vlog2.f32 %v2457_v34  ;;  %v2704_v25 = vadd.f32 %v2611_v53, %v15540_v0  ;;  %v2766_v49 = vsub.f32 %v2702_v21, %v2510_v58  ;;  %v2828_v1 = vmul.f32 %v2764_v56, %v393_v23  ;;  %v15548_v58 = vld [vmem:[#allocation59_spill] sm:$0xff]  ;;  %v15549_v41 = vld [vmem:[#allocation53_spill] sm:$0xff] }
 0x3e7   : > { %v2889_v50 = vadd.f32 %v2888_v40, %v2826_v43  ;;  %v2460_v57 = vadd.f32 %v15542_v2, %v15541_v33  ;;  %v2513_v42 = vadd.f32 %v11390_v46, %v15543_v14  ;;  %v2617_v18 = vmul.f32 0.6931472, %v3936_v4  ;;  %v397_v43 = vld [vmem:[%s11530_s22 + $0x110] sm:$0xff]  ;;  %v15554_v40 = vld [vmem:[#allocation166_spill] sm:$0xff]  ;;  %v15560_v2 = vld [vmem:[#allocation65_spill] sm:$0xff] }
 0x3e8   : > { %v3940_v20 = vpop.eup %3939  ;;  %3949 = vlog2.f32 %v2458_v32  ;;  %v2705_v28 = vadd.f32 %v2613_v26, %v15544_v47  ;;  %v2767_v5 = vsub.f32 %v2703_v54, %v2511_v13  ;;  %v2829_v61 = vmul.f32 %v2765_v59, %v394_v63  ;;  %v15550_v4 = vld [vmem:[#allocation123_spill] sm:$0xff]  ;;  %v398_v59 = vld [vmem:[%s11530_s22 + $0x118] sm:$0xff]  ;;  %v400_v47 = vld [vmem:[%s11530_s22 + $0x128] sm:$0xff] }
 0x3e9   : > { %v2890_v31 = vadd.f32 %v2889_v50, %v2827_v36  ;;  %v2461_v30 = vadd.f32 %v15546_v12, %v15545_v29  ;;  %v2514_v34 = vadd.f32 %v11397_v8, %v15547_v52  ;;  %v2619_v11 = vmul.f32 0.6931472, %v3938_v10  ;;  %v15553_v36 = vld [vmem:[#allocation198_spill] sm:$0xff]  ;;  %v15555_v63 = vld [vmem:[#allocation260_spill] sm:$0xff] }
 0x3ea   : > { %v3942_v37 = vpop.eup %3941  ;;  %3951 = vlog2.f32 %v2459_v35  ;;  %v2706_v46 = vadd.f32 %v2615_v51, %v15548_v58  ;;  %v2768_v53 = vsub.f32 %v2704_v25, %v2512_v55  ;;  %v2830_v15 = vmul.f32 %v2766_v49, %v395_v17  ;;  %v15556_v35 = vld [vmem:[#allocation64_spill] sm:$0xff]  ;;  %v399_v25 = vld [vmem:[%s11530_s22 + $0x120] sm:$0xff]  ;;  %v15557_v49 = vld [vmem:[#allocation66_spill] sm:$0xff] }
 0x3eb   : > { %v2891_v21 = vadd.f32 %v2890_v31, %v2828_v1  ;;  %v2462_v23 = vadd.f32 %v15550_v4, %v15549_v41  ;;  %v2515_v45 = vadd.f32 %v11402_v60, %v15551_v24  ;;  %v2621_v32 = vmul.f32 0.6931472, %v3940_v20  ;;  %v15558_v1 = vld [vmem:[#allocation184_spill] sm:$0xff]  ;;  %v15559_v20 = vld [vmem:[#allocation205_spill] sm:$0xff]  ;;  %v15568_v24 = vld [vmem:[#allocation111_spill] sm:$0xff] }
 0x3ec   : > { %v3944_v56 = vpop.eup %3943  ;;  %3953 = vlog2.f32 %v2460_v57  ;;  %v2707_v8 = vadd.f32 %v2617_v18, %v15552_v22  ;;  %v2769_v13 = vsub.f32 %v2705_v28, %v2513_v42  ;;  %v2831_v26 = vmul.f32 %v2767_v5, %v396_v16  ;;  %v15561_v28 = vld [vmem:[#allocation83_spill] sm:$0xff]  ;;  %v15563_v16 = vld [vmem:[#allocation69_spill] sm:$0xff]  ;;  %v402_v4 = vld [vmem:[%s11530_s22 + $0x138] sm:$0xff] }
 0x3ed   : > { %v2892_v7 = vadd.f32 %v2891_v21, %v2829_v61  ;;  %v2463_v10 = vadd.f32 %v15554_v40, %v15553_v36  ;;  %v2516_v3 = vadd.f32 %v11407_v9, %v15555_v63  ;;  %v2623_v27 = vmul.f32 0.6931472, %v3942_v37  ;;  %v15562_v61 = vld [vmem:[#allocation261_spill] sm:$0xff]  ;;  %v15570_v22 = vld [vmem:[#allocation231_spill] sm:$0xff] }
 0x3ee   : > { %v3946_v54 = vpop.eup %3945  ;;  %3955 = vlog2.f32 %v2461_v30  ;;  %v2708_v60 = vadd.f32 %v2619_v11, %v15556_v35  ;;  %v2770_v6 = vsub.f32 %v2706_v46, %v2514_v34  ;;  %v2832_v55 = vmul.f32 %v2768_v53, %v397_v43  ;;  %v401_v34 = vld [vmem:[%s11530_s22 + $0x130] sm:$0xff]  ;;  %v15565_v46 = vld [vmem:[#allocation206_spill] sm:$0xff]  ;;  %v403_v36 = vld [vmem:[%s11530_s22 + $0x140] sm:$0xff] }
 0x3ef   : > { %v2893_v51 = vadd.f32 %v2892_v7, %v2830_v15  ;;  %v2464_v50 = vadd.f32 %v15558_v1, %v15557_v49  ;;  %v2517_v17 = vadd.f32 %v11412_v39, %v15559_v20  ;;  %v2625_v33 = vmul.f32 0.6931472, %v3944_v56  ;;  %v15564_v11 = vld [vmem:[#allocation171_spill] sm:$0xff]  ;;  %v15566_v15 = vld [vmem:[#allocation70_spill] sm:$0xff]  ;;  %v15572_v40 = vld [vmem:[#allocation93_spill] sm:$0xff] }
 0x3f0   : > { %v3948_v0 = vpop.eup %3947  ;;  %3957 = vlog2.f32 %v2462_v23  ;;  %v2709_v9 = vadd.f32 %v2621_v32, %v15560_v2  ;;  %v2771_v57 = vsub.f32 %v2707_v8, %v2515_v45  ;;  %v2833_v14 = vmul.f32 %v2769_v13, %v398_v59  ;;  %v15567_v23 = vld [vmem:[#allocation201_spill] sm:$0xff]  ;;  %v15569_v32 = vld [vmem:[#allocation130_spill] sm:$0xff]  ;;  %v15571_v13 = vld [vmem:[#allocation71_spill] sm:$0xff] }
 0x3f1   : > { %v2894_v42 = vadd.f32 %v2893_v51, %v2831_v26  ;;  %v2465_v5 = vadd.f32 %v11338_v44, %v15561_v28  ;;  %v2518_v31 = vadd.f32 %v11417_v19, %v15562_v61  ;;  %v2627_v37 = vmul.f32 0.6931472, %v3946_v54  ;;  %v404_v1 = vld [vmem:[%s11530_s22 + $0x148] sm:$0xff]  ;;  %v15578_v20 = vld [vmem:[#allocation73_spill] sm:$0xff]  ;;  %v15580_v2 = vld [vmem:[#allocation168_spill] sm:$0xff] }
 0x3f2   : > { %v3950_v18 = vpop.eup %3949  ;;  %3959 = vlog2.f32 %v2463_v10  ;;  %v2710_v39 = vadd.f32 %v2623_v27, %v15563_v16  ;;  %v2772_v29 = vsub.f32 %v2708_v60, %v2516_v3  ;;  %v2834_v12 = vmul.f32 %v2770_v6, %v399_v25  ;;  %v15573_v10 = vld [vmem:[#allocation13_spill] sm:$0xff]  ;;  %v15574_v3 = vld [vmem:[#allocation207_spill] sm:$0xff]  ;;  %v15575_v27 = vld [vmem:[#allocation188_spill] sm:$0xff] }
 0x3f3   : > { %v2895_v30 = vadd.f32 %v2894_v42, %v2832_v55  ;;  %v2466_v58 = vadd.f32 %v11352_v48, %v15564_v11  ;;  %v2519_v53 = vadd.f32 %v11430_v62, %v15565_v46  ;;  %v2629_v44 = vmul.f32 0.6931472, %v3948_v0  ;;  %v15576_v6 = vld [vmem:[#allocation76_spill] sm:$0xff]  ;;  %v405_v61 = vld [vmem:[%s11530_s22 + $0x150] sm:$0xff] }
 0x3f4   : > { %v3952_v52 = vpop.eup %3951  ;;  %3961 = vlog2.f32 %v2464_v50  ;;  %v2711_v19 = vadd.f32 %v2625_v33, %v15566_v15  ;;  %v2773_v21 = vsub.f32 %v2709_v9, %v2517_v17  ;;  %v2835_v56 = vmul.f32 %v2771_v57, %v400_v47  ;;  %v15577_v50 = vld [vmem:[#allocation107_spill] sm:$0xff]  ;;  %v15587_v15 = vld [vmem:[#allocation202_spill] sm:$0xff] }
 0x3f5   : > { %v2896_v43 = vadd.f32 %v2895_v30, %v2833_v14  ;;  %v2467_v45 = vadd.f32 %v15568_v24, %v15567_v23  ;;  %v2520_v8 = vadd.f32 %v15570_v22, %v15569_v32  ;;  %v2631_v48 = vmul.f32 0.6931472, %v3950_v18  ;;  %v15579_v33 = vld [vmem:[#allocation263_spill] sm:$0xff]  ;;  %v15581_v14 = vld [vmem:[#allocation21_spill] sm:$0xff]  ;;  %v15591_v23 = vld [vmem:[#allocation78_spill] sm:$0xff] }
 0x3f6   : > { %v3954_v41 = vpop.eup %3953  ;;  %3963 = vlog2.f32 %v2465_v5  ;;  %v2712_v62 = vadd.f32 %v2627_v37, %v15571_v13  ;;  %v2774_v26 = vsub.f32 %v2710_v39, %v2518_v31  ;;  %v2836_v7 = vmul.f32 %v2772_v29, %v401_v34  ;;  %v15582_v31 = vld [vmem:[#allocation110_spill] sm:$0xff]  ;;  %v15584_v39 = vld [vmem:[#allocation209_spill] sm:$0xff]  ;;  %v15585_v29 = vld [vmem:[#allocation127_spill] sm:$0xff] }
 0x3f7   : > { %v2897_v54 = vadd.f32 %v2896_v43, %v2834_v12  ;;  %v2468_v63 = vadd.f32 %v15573_v10, %v15572_v40  ;;  %v2521_v35 = vadd.f32 %v15575_v27, %v15574_v3  ;;  %v2633_v60 = vmul.f32 0.6931472, %v3952_v52  ;;  %v15583_v37 = vld [vmem:[#allocation14_spill] sm:$0xff]  ;;  %v15586_v52 = vld [vmem:[#allocation77_spill] sm:$0xff]  ;;  %v15590_v43 = vld [vmem:[#allocation232_spill] sm:$0xff] }
 0x3f8   : > { %v3956_v59 = vpop.eup %3955  ;;  %3965 = vlog2.f32 %v2466_v58  ;;  %v2713_v55 = vadd.f32 %v2629_v44, %v15576_v6  ;;  %v2775_v51 = vsub.f32 %v2711_v19, %v2519_v53  ;;  %v2837_v0 = vmul.f32 %v2773_v21, %v402_v4  ;;  %v406_v44 = vld [vmem:[%s11530_s22 + $0x158] sm:$0xff]  ;;  %v15592_v13 = vld [vmem:[#allocation247_spill] sm:$0xff]  ;;  %v408_v6 = vld [vmem:[%s11530_s22 + $0x168] sm:$0xff] }
 0x3f9   : > { %v2898_v25 = vadd.f32 %v2897_v54, %v2835_v56  ;;  %v2469_v17 = vadd.f32 %v15578_v20, %v15577_v50  ;;  %v2522_v9 = vadd.f32 %v15580_v2, %v15579_v33  ;;  %v2635_v57 = vmul.f32 0.6931472, %v3954_v41  ;;  %v15588_v19 = vld [vmem:[#allocation196_spill] sm:$0xff]  ;;  %v15589_v56 = vld [vmem:[#allocation210_spill] sm:$0xff]  ;;  %v15596_v10 = vld [vmem:[#allocation23_spill] sm:$0xff] }
 0x3fa   : > { %v3958_v49 = vpop.eup %3957  ;;  %3967 = vlog2.f32 %v2467_v45  ;;  %v2714_v42 = vadd.f32 %v2631_v48, %v15581_v14  ;;  %v2776_v18 = vsub.f32 %v2712_v62, %v2520_v8  ;;  %v2838_v47 = vmul.f32 %v2774_v26, %v403_v36  ;;  %v407_v48 = vld [vmem:[%s11530_s22 + $0x160] sm:$0xff]  ;;  %v15595_v54 = vld [vmem:[#allocation192_spill] sm:$0xff] }
 0x3fb   : > { %v2899_v28 = vadd.f32 %v2898_v25, %v2836_v7  ;;  %v2470_v16 = vadd.f32 %v15583_v37, %v15582_v31  ;;  %v2523_v12 = vadd.f32 %v15585_v29, %v15584_v39  ;;  %v2637_v30 = vmul.f32 0.6931472, %v3956_v59  ;;  %v15593_v62 = vld [vmem:[#allocation301_spill] sm:$0xff]  ;;  %v15594_v7 = vld [vmem:[#allocation131_spill] sm:$0xff]  ;;  %v11816_v40 = vld [vmem:[%s4754_s26 + $0x1b8] sm:$0xff] }
 0x3fc   : > { %v3960_v5 = vpop.eup %3959  ;;  %3969 = vlog2.f32 %v2468_v63  ;;  %v2715_v34 = vadd.f32 %v2633_v60, %v15586_v52  ;;  %v2777_v11 = vsub.f32 %v2713_v55, %v2521_v35  ;;  %v2839_v58 = vmul.f32 %v2775_v51, %v404_v1  ;;  %v15597_v55 = vld [vmem:[#allocation40_spill] sm:$0xff]  ;;  %v15598_v51 = vld [vmem:[#allocation221_spill] sm:$0xff]  ;;  %v15599_v25 = vld [vmem:[#allocation211_spill] sm:$0xff] }
 0x3fd   : > { %v2900_v46 = vadd.f32 %v2899_v28, %v2837_v0  ;;  %v2471_v21 = vadd.f32 %v15588_v19, %v15587_v15  ;;  %v2524_v41 = vadd.f32 %v15590_v43, %v15589_v56  ;;  %v2639_v4 = vmul.f32 0.6931472, %v3958_v49  ;;  %v15600_v49 = vld [vmem:[#allocation169_spill] sm:$0xff]  ;;  %v15606_v39 = vld [vmem:[#allocation26_spill] sm:$0xff]  ;;  %v15610_v15 = vld [vmem:[#allocation295_spill] sm:$0xff] }
 0x3fe   : > { %v3962_v53 = vpop.eup %3961  ;;  %3971 = vlog2.f32 %v2469_v17  ;;  %v2716_v24 = vadd.f32 %v2635_v57, %v15591_v23  ;;  %v2778_v45 = vsub.f32 %v2714_v42, %v2522_v9  ;;  %v2840_v32 = vmul.f32 %v2776_v18, %v405_v61  ;;  %v11826_v20 = vld [vmem:[%s4754_s26 + $0x1c0] sm:$0xff]  ;;  %v409_v42 = vld [vmem:[%s11530_s22 + $0x170] sm:$0xff]  ;;  %v15602_v18 = vld [vmem:[#allocation248_spill] sm:$0xff] }
 0x3ff   : > { %v2901_v22 = vadd.f32 %v2900_v46, %v2838_v47  ;;  %v2472_v26 = vadd.f32 %v15593_v62, %v15592_v13  ;;  %v2525_v59 = vadd.f32 %v15595_v54, %v15594_v7  ;;  %v2641_v36 = vmul.f32 0.6931472, %v3960_v5  ;;  %v15601_v17 = vld [vmem:[#allocation25_spill] sm:$0xff]  ;;  %v15603_v47 = vld [vmem:[#allocation224_spill] sm:$0xff]  ;;  %v15604_v5 = vld [vmem:[#allocation102_spill] sm:$0xff] }
 0x400   : > { %v3964_v8 = vpop.eup %3963  ;;  %3973 = vlog2.f32 %v2470_v16  ;;  %vm2341_vm14 = vcmp.eq.s32.totalorder %v11816_v40, 3  ;;  %v2717_v63 = vadd.f32 %v2637_v30, %v15596_v10  ;;  %v2779_v3 = vsub.f32 %v2715_v34, %v2523_v12  ;;  %v15605_v61 = vld [vmem:[#allocation289_spill] sm:$0xff]  ;;  %v11836_v16 = vld [vmem:[%s4754_s26 + $0x1c8] sm:$0xff]  ;;  %v15608_v46 = vld [vmem:[#allocation208_spill] sm:$0xff] }
 0x401   : > { %v2841_v27 = vmul.f32 %v2777_v11, %v406_v44  ;;  %v2902_v35 = vadd.f32 %v2901_v22, %v2839_v58  ;;  %v2473_v0 = vadd.f32 %v15598_v51, %v15597_v55  ;;  %v2526_v1 = vadd.f32 %v15600_v49, %v15599_v25  ;;  %v410_v11 = vld [vmem:[%s11530_s22 + $0x178] sm:$0xff]  ;;  %v15607_v58 = vld [vmem:[#allocation46_spill] sm:$0xff]  ;;  %v11846_v56 = vld [vmem:[%s4754_s26 + $0x1d0] sm:$0xff] }
 0x402   : > { %v3966_v60 = vpop.eup %3965  ;;  %v2643_v50 = vmul.f32 0.6931472, %v3962_v53  ;;  %3975 = vlog2.f32 %v2471_v21  ;;  %vm2342_vm9 = vcmp.eq.s32.totalorder %v11826_v20, 3  ;;  %v2718_v33 = vadd.f32 %v2639_v4, %v15601_v17  ;;  %v15609_v44 = vld [vmem:[#allocation268_spill] sm:$0xff]  ;;  %v15611_v43 = vld [vmem:[#allocation29_spill] sm:$0xff]  ;;  %v15615_v62 = vld [vmem:[#allocation74_spill] sm:$0xff] }
 0x403   : > { %v2780_v2 = vsub.f32 %v2716_v24, %v2524_v41  ;;  %v2842_v9 = vmul.f32 %v2778_v45, %v407_v48  ;;  %v2903_v57 = vadd.f32 %v2902_v35, %v2840_v32  ;;  %v2474_v28 = vadd.f32 %v15603_v47, %v15602_v18  ;;  %v411_v32 = vld [vmem:[%s11530_s22 + $0x180] sm:$0xff]  ;;  %v15612_v22 = vld [vmem:[#allocation124_spill] sm:$0xff]  ;;  %v15617_v35 = vld [vmem:[#allocation18_spill] sm:$0xff] }
 0x404   : > { %v3968_v14 = vpop.eup %3967  ;;  %v2527_v31 = vadd.f32 %v15605_v61, %v15604_v5  ;;  %v2645_v37 = vmul.f32 0.6931472, %v3964_v8  ;;  %3977 = vlog2.f32 %v2472_v26  ;;  %vm2343_vm11 = vcmp.eq.s32.totalorder %v11836_v16, 3  ;;  %v15613_v8 = vld [vmem:[#allocation212_spill] sm:$0xff]  ;;  %v15614_v13 = vld [vmem:[#allocation269_spill] sm:$0xff]  ;;  %v15620_v25 = vld [vmem:[#allocation47_spill] sm:$0xff] }
 0x405   : > { %v2719_v29 = vadd.f32 %v2641_v36, %v15606_v39  ;;  %v2781_v12 = vsub.f32 %v2717_v63, %v2525_v59  ;;  %v2843_v30 = vmul.f32 %v2779_v3, %v408_v6  ;;  %v2904_v52 = vadd.f32 %v2903_v57, %v2841_v27  ;;  %v15616_v54 = vld [vmem:[#allocation41_spill] sm:$0xff]  ;;  %v412_v27 = vld [vmem:[%s11530_s22 + $0x188] sm:$0xff]  ;;  %v15619_v55 = vld [vmem:[#allocation200_spill] sm:$0xff] }
 0x406   : > { %v3970_v34 = vpop.eup %3969  ;;  %v2475_v53 = vadd.f32 %v15608_v46, %v15607_v58  ;;  %v2528_v19 = vadd.f32 %v15610_v15, %v15609_v44  ;;  %v2647_v21 = vmul.f32 0.6931472, %v3966_v60  ;;  %3979 = vlog2.f32 %v2473_v0  ;;  %v15618_v6 = vld [vmem:[#allocation117_spill] sm:$0xff]  ;;  %v15623_v47 = vld [vmem:[#allocation146_spill] sm:$0xff]  ;;  %v414_v39 = vld [vmem:[%s11530_s22 + $0x198] sm:$0xff] }
 0x407   : > { %vm2344_vm1 = vcmp.eq.s32.totalorder %v11846_v56, 3  ;;  %v2720_v41 = vadd.f32 %v2643_v50, %v15611_v43  ;;  %v2782_v4 = vsub.f32 %v2718_v33, %v2526_v1  ;;  %v2844_v23 = vmul.f32 %v2780_v2, %v409_v42  ;;  %v413_v2 = vld [vmem:[%s11530_s22 + $0x190] sm:$0xff]  ;;  %v4373_v43 = vld [vmem:[%s4743_s4 + $0x7c8] sm:$0xff] }
 0x408   : > { %v2905_v24 = vadd.f32 %v2904_v52, %v2842_v9  ;;  %v3972_v45 = vpop.eup %3971  ;;  %v2476_v48 = vadd.f32 %v15613_v8, %v15612_v22  ;;  %v2529_v26 = vadd.f32 %v15615_v62, %v15614_v13  ;;  %v2649_v7 = vmul.f32 0.6931472, %v3968_v14  ;;  %v4370_v9 = vld [vmem:[%s4743_s4 + $0x7b8] sm:$0xff]  ;;  %v15621_v14 = vld [vmem:[#allocation214_spill] sm:$0xff]  ;;  %v4374_v62 = vld [vmem:[%s4754_s26 + $0x1e0] sm:$0xff] }
 0x409   : > { %3981 = vlog2.f32 %v2474_v28  ;;  %v2721_v59 = vadd.f32 %v2645_v37, %v15616_v54  ;;  %v2783_v36 = vsub.f32 %v2719_v29, %v2527_v31  ;;  %v2845_v10 = vmul.f32 %v2781_v12, %v410_v11  ;;  %v4371_v29 = vld [vmem:[%s4743_s4 + $0x7c0] sm:$0xff]  ;;  %v15624_v12 = vld [vmem:[#allocation272_spill] sm:$0xff]  ;;  %v15626_v11 = vld [vmem:[#allocation147_spill] sm:$0xff] }
 0x40a   : > { %v2906_v63 = vadd.f32 %v2905_v24, %v2843_v30  ;;  %v3974_v3 = vpop.eup %3973  ;;  %v2477_v60 = vadd.f32 %v11580_v38, %v15617_v35  ;;  %v2530_v51 = vadd.f32 %v15619_v55, %v15618_v6  ;;  %v2651_v0 = vmul.f32 0.6931472, %v3970_v34  ;;  %v15622_v38 = vld [vmem:[#allocation204_spill] sm:$0xff]  ;;  %v15625_v30 = vld [vmem:[#allocation227_spill] sm:$0xff]  ;;  %v416_v13 = vld [vmem:[%s11530_s22 + $0x1a8] sm:$0xff] }
 0x40b   : > { %3983 = vlog2.f32 %v2475_v53  ;;  %v2722_v49 = vadd.f32 %v2647_v21, %v15620_v25  ;;  %v2784_v1 = vsub.f32 %v2720_v41, %v2528_v19  ;;  %v2846_v50 = vmul.f32 %v2782_v4, %v411_v32  ;;  %v415_v19 = vld [vmem:[%s11530_s22 + $0x1a0] sm:$0xff]  ;;  %v4372_v21 = vld [vmem:[%s4754_s26 + $0x1d8] sm:$0xff]  ;;  %v15627_v41 = vld [vmem:[#allocation274_spill] sm:$0xff] }
 0x40c   : > { %v2907_v17 = vadd.f32 %v2906_v63, %v2844_v23  ;;  %v3976_v33 = vpop.eup %3975  ;;  %v2405_v57 = vsel %vm2341_vm14, %v4370_v9, 0.0  ;;  %v2531_v42 = vadd.f32 %v15622_v38, %v15621_v14  ;;  %v2653_v18 = vmul.f32 0.6931472, %v3972_v45  ;;  %v15628_v24 = vld [vmem:[#allocation48_spill] sm:$0xff]  ;;  %v4376_v6 = vld [vmem:[%s4754_s26 + $0x1e8] sm:$0xff]  ;;  %v15631_v56 = vld [vmem:[#allocation279_spill] sm:$0xff] }
 0x40d   : > { %3985 = vlog2.f32 %v2476_v48  ;;  %v2723_v28 = vadd.f32 %v2649_v7, %v15623_v47  ;;  %v2785_v5 = vsub.f32 %v2721_v59, %v2529_v26  ;;  %v2847_v61 = vmul.f32 %v2783_v36, %v412_v27  ;;  %v4375_v26 = vld [vmem:[%s4743_s4 + $0x7d0] sm:$0xff]  ;;  %v15629_v7 = vld [vmem:[#allocation276_spill] sm:$0xff]  ;;  %v4379_v14 = vld [vmem:[%s4743_s4 + $0x7e0] sm:$0xff] }
 0x40e   : > { %v2908_v31 = vadd.f32 %v2907_v17, %v2845_v10  ;;  %v3978_v37 = vpop.eup %3977  ;;  %v2406_v40 = vsel %vm2342_vm9, %v4371_v29, 0.0  ;;  %v2532_v52 = vadd.f32 %v15625_v30, %v15624_v12  ;;  %v2655_v34 = vmul.f32 0.6931472, %v3974_v3  ;;  %v15630_v36 = vld [vmem:[#allocation148_spill] sm:$0xff]  ;;  %v419_v29 = vld [vmem:[%s11530_s22 + $0x1c0] sm:$0xff]  ;;  %v4381_v12 = vld [vmem:[%s4743_s4 + $0x7e8] sm:$0xff] }
 0x40f   : > { %3987 = vlog2.f32 %v2477_v60  ;;  %v2724_v58 = vadd.f32 %v2651_v0, %v15626_v11  ;;  %v2786_v46 = vsub.f32 %v2722_v49, %v2530_v51  ;;  %v2848_v53 = vmul.f32 %v2784_v1, %v413_v2  ;;  %v417_v60 = vld [vmem:[%s11530_s22 + $0x1b0] sm:$0xff]  ;;  %v4377_v55 = vld [vmem:[%s4743_s4 + $0x7d8] sm:$0xff] }
 0x410   : > { %v2909_v44 = vadd.f32 %v2908_v31, %v2846_v50  ;;  %v3980_v15 = vpop.eup %3979  ;;  %vm2345_vm12 = vcmp.eq.s32.totalorder %v4372_v21, 3  ;;  %v2407_v20 = vsel %vm2343_vm11, %v4373_v43, 0.0  ;;  %v2533_v4 = vadd.f32 %v2405_v57, %v15627_v41  ;;  %v15632_v49 = vld [vmem:[#allocation84_spill] sm:$0xff]  ;;  %v4378_v57 = vld [vmem:[%s4754_s26 + $0x1f0] sm:$0xff]  ;;  %v15638_v43 = vld [vmem:[#allocation233_spill] sm:$0xff] }
 0x411   : > { %v2657_v23 = vmul.f32 0.6931472, %v3976_v33  ;;  %v2725_v45 = vadd.f32 %v2653_v18, %v15628_v24  ;;  %v2787_v32 = vsub.f32 %v2723_v28, %v2531_v42  ;;  %v2849_v22 = vmul.f32 %v2785_v5, %v414_v39  ;;  %v418_v9 = vld [vmem:[%s11530_s22 + $0x1b8] sm:$0xff]  ;;  %v15633_v42 = vld [vmem:[#allocation319_spill] sm:$0xff]  ;;  %v15634_v28 = vld [vmem:[#allocation49_spill] sm:$0xff] }
 0x412   : > { %v2910_v8 = vadd.f32 %v2909_v44, %v2847_v61  ;;  %vm2346_vm2 = vcmp.eq.s32.totalorder %v4374_v62, 3  ;;  %v2408_v16 = vsel %vm2344_vm1, %v4375_v26, 0.0  ;;  %v2534_v54 = vadd.f32 %v2406_v40, %v15629_v7  ;;  %v4380_v40 = vld [vmem:[%s4754_s26 + $0x1f8] sm:$0xff]  ;;  %v15637_v21 = vld [vmem:[#allocation215_spill] sm:$0xff]  ;;  %v15641_v26 = vld [vmem:[#allocation218_spill] sm:$0xff] }
 0x413   : > { %v3982_v48 = vpop.eup %3981  ;;  %v2659_v59 = vmul.f32 0.6931472, %v3978_v37  ;;  %v2726_v10 = vadd.f32 %v2655_v34, %v15630_v36  ;;  %v2788_v63 = vsub.f32 %v2724_v58, %v2532_v52  ;;  %v2850_v3 = vmul.f32 %v2786_v46, %v415_v19  ;;  %v15635_v52 = vld [vmem:[#allocation284_spill] sm:$0xff]  ;;  %v15636_v58 = vld [vmem:[#allocation86_spill] sm:$0xff]  ;;  %v4382_v41 = vld [vmem:[%s4743_s4 + $0x7f0] sm:$0xff] }
 0x414   : > { %v2911_v27 = vadd.f32 %v2910_v8, %v2848_v53  ;;  %vm2347_vm5 = vcmp.eq.s32.totalorder %v4376_v6, 3  ;;  %v2409_v51 = vsel %vm2345_vm12, %v4377_v55, 0.0  ;;  %v2535_v0 = vadd.f32 %v2407_v20, %v15631_v56  ;;  %v420_v19 = vld [vmem:[%s11530_s22 + $0x1c8] sm:$0xff]  ;;  %v421_v62 = vld [vmem:[%s11530_s22 + $0x1d0] sm:$0xff]  ;;  %v15643_v36 = vld [vmem:[#allocation288_spill] sm:$0xff] }
 0x415   : > { %v3984_v35 = vpop.eup %3983  ;;  %v2661_v25 = vmul.f32 0.6931472, %v3980_v15  ;;  %v2727_v1 = vadd.f32 %v2657_v23, %v15632_v49  ;;  %v2789_v50 = vsub.f32 %v2725_v45, %v2533_v4  ;;  %v2851_v17 = vmul.f32 %v2787_v32, %v416_v13  ;;  %v15639_v23 = vld [vmem:[#allocation321_spill] sm:$0xff]  ;;  %v15640_v32 = vld [vmem:[#allocation90_spill] sm:$0xff]  ;;  %v422_v55 = vld [vmem:[%s11530_s22 + $0x1d8] sm:$0xff] }
 0x416   : > { %v2912_v33 = vadd.f32 %v2911_v27, %v2849_v22  ;;  %vm2348_vm7 = vcmp.eq.s32.totalorder %v4378_v57, 3  ;;  %v2410_v38 = vsel %vm2346_vm2, %v4379_v14, 0.0  ;;  %v2536_v18 = vadd.f32 %v2408_v16, %v15633_v42  ;;  %v15642_v16 = vld [vmem:[#allocation236_spill] sm:$0xff]  ;;  %v15645_v56 = vld [vmem:[#allocation9_spill] sm:$0xff] }
 0x417   : > { %v3986_v2 = vpop.eup %3985  ;;  %v2663_v47 = vmul.f32 0.6931472, %v3982_v48  ;;  %v2728_v5 = vadd.f32 %v2659_v59, %v15634_v28  ;;  %v2790_v61 = vsub.f32 %v2726_v10, %v2534_v54  ;;  %v2852_v31 = vmul.f32 %v2788_v63, %v417_v60  ;;  %v4383_v54 = vld [vmem:[%s4743_s4 + $0x7f8] sm:$0xff]  ;;  %v425_v28 = vld [vmem:[%s11530_s22 + $0x1f0] sm:$0xff] }
 0x418   : > { %v2913_v37 = vadd.f32 %v2912_v33, %v2850_v3  ;;  %vm2349_vm3 = vcmp.eq.s32.totalorder %v4380_v40, 3  ;;  %v2411_v30 = vsel %vm2347_vm5, %v4381_v12, 0.0  ;;  %v2537_v34 = vadd.f32 %v2409_v51, %v15635_v52  ;;  %v15644_v3 = vld [vmem:[#allocation91_spill] sm:$0xff]  ;;  %v15646_v33 = vld [vmem:[#allocation98_spill] sm:$0xff] }
 0x419   : > { %v3988_v39 = vpop.eup %3987  ;;  %v2665_v11 = vmul.f32 0.6931472, %v3984_v35  ;;  %v2729_v46 = vadd.f32 %v2661_v25, %v15636_v58  ;;  %v2791_v53 = vsub.f32 %v2727_v1, %v2535_v0  ;;  %v2853_v44 = vmul.f32 %v2789_v50, %v418_v9  ;;  %v423_v50 = vld [vmem:[%s11530_s22 + $0x1e0] sm:$0xff] }
 0x41a   : > { %v2914_v15 = vadd.f32 %v2913_v37, %v2851_v17  ;;  %v2092_v20 = vadd.f32 %v15638_v43, %v15637_v21  ;;  %v2412_v4 = vsel %vm2348_vm7, %v4382_v41, 0.0  ;;  %v2538_v24 = vadd.f32 %v2410_v38, %v15639_v23  ;;  %v424_v38 = vld [vmem:[%s11530_s22 + $0x1e8] sm:$0xff]  ;;  %v426_v37 = vld [vmem:[%s11530_s22 + $0x1f8] sm:$0xff] }
 0x41b   : > { %v2667_v45 = vmul.f32 0.6931472, %v3986_v2  ;;  %v2730_v22 = vadd.f32 %v2663_v47, %v15640_v32  ;;  %v2792_v8 = vsub.f32 %v2728_v5, %v2536_v18  ;;  %v2854_v48 = vmul.f32 %v2790_v61, %v419_v29 }
 0x41c   : > { %v2915_v13 = vadd.f32 %v2914_v15, %v2852_v31  ;;  %v2093_v7 = vadd.f32 %v15642_v16, %v15641_v26  ;;  %v2413_v59 = vsel %vm2349_vm3, %v4383_v54, 0.0  ;;  %v2539_v10 = vadd.f32 %v2411_v30, %v15643_v36 }
 0x41d   : > { %v2669_v63 = vmul.f32 0.6931472, %v3988_v39  ;;  %v2731_v27 = vadd.f32 %v2665_v11, %v15644_v3  ;;  %v2793_v35 = vsub.f32 %v2729_v46, %v2537_v34  ;;  %v2855_v60 = vmul.f32 %v2791_v53, %v420_v19 }
 0x41e   : > { %v2916_v6 = vadd.f32 %v2915_v13, %v2853_v44  ;;  %v2540_v51 = vadd.f32 %v2412_v4, %v2092_v20  ;;  %v2732_v0 = vadd.f32 %v2667_v45, %v15645_v56  ;;  %v2794_v25 = vsub.f32 %v2730_v22, %v2538_v24 }
 0x41f   : > { %v2856_v49 = vmul.f32 %v2792_v8, %v421_v62  ;;  %v2541_v17 = vadd.f32 %v2413_v59, %v2093_v7  ;;  %v2733_v2 = vadd.f32 %v2669_v63, %v15646_v33  ;;  %v2795_v9 = vsub.f32 %v2731_v27, %v2539_v10 }
 0x420   : > { %v2917_v1 = vadd.f32 %v2916_v6, %v2854_v48  ;;  %v2857_v57 = vmul.f32 %v2793_v35, %v422_v55  ;;  %v2796_v42 = vsub.f32 %v2732_v0, %v2540_v51  ;;  %v2858_v18 = vmul.f32 %v2794_v25, %v423_v50 }
 0x421   : > { %v2797_v5 = vsub.f32 %v2733_v2, %v2541_v17  ;;  %v2859_v61 = vmul.f32 %v2795_v9, %v424_v38 }
 0x422   : > { %v2918_v14 = vadd.f32 %v2917_v1, %v2855_v60  ;;  %v2860_v39 = vmul.f32 %v2796_v42, %v425_v28 }
 0x423   : > { %v2861_v40 = vmul.f32 %v2797_v5, %v426_v37 }
 0x424   : > { %v2919_v47 = vadd.f32 %v2918_v14, %v2856_v49 }
 0x426   : > { %v2920_v31 = vadd.f32 %v2919_v47, %v2857_v57 }
 0x428   : > { %v2921_v29 = vadd.f32 %v2920_v31, %v2858_v18 }
 0x42a   : > { %v2922_v12 = vadd.f32 %v2921_v29, %v2859_v61 }
 0x42c   : > { %v2923_v30 = vadd.f32 %v2922_v12, %v2860_v39 }
 0x42e   : > { %v2924_v52 = vadd.f32 %v2923_v30, %v2861_v40 }
 0x430   : > { %2925 = vadd.xlane.f32.xlu0 %v2924_v52 }
 0x4bd   : > { %v2926_v34 = vpop.xlane.xlu0 %2925 }
 0x4be   : > { %v2927_v11 = vrot.slane %v2926_v34, 4 }
 0x4c0   : > { %v2928_v58 = vadd.f32 %v2927_v11, %v2926_v34 }
 0x4c2   : > { %v2929_v46 = vrot.slane %v2928_v58, 2 }
 0x4c4   : > { %v2930_v53 = vadd.f32 %v2929_v46, %v2928_v58 }
 0x4c6   : > { %v2931_v44 = vrot.slane %v2930_v53, 1 }
 0x4c8   : > { %v2932_v15 = vadd.f32 %v2931_v44, %v2930_v53 }
 0x4ca   : > { %3280 = vpush %v2932_v15 }
 0x4fb   : > { %s3281_s30 = spop %3280 }
 0x4fc   : > { %v2934_v19 = vstv %s3281_s30 }
 0x4fd   : > { %2936 = vst.msk [vmem:[%s298_s5] sm:$0x1] %vm2935_vm4, %v2934_v19 }
 0x4fe PF: > { %s19_s17 = sadd.s32 1, %s4528_s17   ;;  %s15647_s12 = smov %s4512_s13 }
 0x4ff   : > { %p16_p1 = scmp.ge.s32.totalorder %s19_s17, 4   ;;  %s15648_s13 = smov %s4516_s14 }
 0x500   : > { %s15649_s14 = smov %s4602_s23  ;;  %s15650_s15 = smov %s4524_s16 }
 0x501   : > { %s15651_s16 = smov %s15653_s19  ;;  %18 = sbr.rel (!%p16_p1) target bundleno = 6 (0x6), region = 99 }
 0x508   :  { %2960 = vsyncpa [#allocation3], 1 }
 0x509   :  { %2962 = vsyncpa [#allocation3 + $0x1], 1 }
 0x50a   :  { %2963 = vsyncpa [#allocation5], 1 }
 0x50b   :  { %2965 = vsyncpa [#allocation5 + $0x1], 1 }

</bundles_post_ra>
